<compile_context>
chip_gen: v5e
topology: v5e:2x2
jax: 0.10.0
libtpu: 0.0.40
codegen_flags: <defaults>
</compile_context>

<pallas_src>
import functools
import math

import jax
import jax.numpy as jnp
from jax.experimental import pallas as pl
from jax.experimental.pallas import tpu as pltpu

LATENT = 87
IN_DIM = 87 * 87          # 7569
HID = 256
LAT_PAD = 128             # 87 -> 128 (lane aligned)
ROW_PAD = 96              # 87 -> 96 recon rows (sublane aligned, mult of 16 for bf16)
IN_PAD = 60 * 128         # 7569 -> 7680 (lane aligned)
MAX_TILE_B = 128          # batch tile cap (safe on v5e/v6e/v7x; raise on v6e if desired)
VMEM_LIMIT = 48 * 1024 * 1024   # < v7x 64 MiB physical VMEM


def _round_up(n, m):
    return ((n + m - 1) // m) * m


def _pad_to(a, shape):
    return jnp.pad(a, [(0, t - s) for s, t in zip(a.shape, shape)])


# ----------------------------------------------------------------------------
# Kernel
# ----------------------------------------------------------------------------
def _vae_kernel(
    # inputs (per-tile x/eps, VMEM-resident weights)
    x_ref, eps_ref,
    w1_ref, b1_ref,
    wenc_ref, benc_ref,      # [fc21 | fc22] fused along N
    wd1_ref, bd1_ref,        # [fc3 | fc32 | fc33 | fc34 | fc35] fused along N
    w4_ref, b4_ref,
    w5_ref, b5_ref,
    # outputs
    recon_ref, mu_ref, logvar_ref, xlat_ref,
    # scratch
    h_sc,                    # (TILE_B, 8, 128) f32
):
    tb = x_ref.shape[0]

    # ---- encode: fc1 -> relu -> fused [fc21 | fc22] ----
    x = x_ref[...]                                               # (tb, 7680) bf16
    h1 = jnp.dot(x, w1_ref[...], preferred_element_type=jnp.float32) + b1_ref[...]
    h1 = jnp.maximum(h1, 0.0)                                    # (tb, 256) f32

    henc = jnp.dot(h1.astype(jnp.bfloat16), wenc_ref[...],
                   preferred_element_type=jnp.float32) + benc_ref[...]
    mu = henc[:, :LAT_PAD]                                       # (tb, 128)
    logvar = henc[:, LAT_PAD:]                                   # (tb, 128)

    # ---- reparameterize (f32 elementwise) ----
    z = mu + eps_ref[...] * jnp.exp(0.5 * logvar)                # (tb, 128) f32

    # ---- decode, layer 1: fc3|fc32|fc33|fc34|fc35 fused (bf16 operands) ----
    s = jax.nn.sigmoid(
        jnp.dot(z.astype(jnp.bfloat16), wd1_ref[...],
                preferred_element_type=jnp.float32) + bd1_ref[...]
    )                                                            # (tb, 640) f32

    # ---- decode, layer 2: fc4 on branch 1, fc5 on branches 2..5 (row-stacked) ----
    sb = s.astype(jnp.bfloat16)
    h31 = jax.nn.sigmoid(
        jnp.dot(sb[:, :LAT_PAD], w4_ref[...], preferred_element_type=jnp.float32)
        + b4_ref[...]
    )                                                            # (tb, 128) f32

    s_rest = jnp.concatenate(
        [sb[:, 1 * LAT_PAD:2 * LAT_PAD],
         sb[:, 2 * LAT_PAD:3 * LAT_PAD],
         sb[:, 3 * LAT_PAD:4 * LAT_PAD],
         sb[:, 4 * LAT_PAD:5 * LAT_PAD]], axis=0)                # (4*tb, 128) bf16
    h_rest = jax.nn.sigmoid(
        jnp.dot(s_rest, w5_ref[...], preferred_element_type=jnp.float32) + b5_ref[...]
    )                                                            # (4*tb, 128) f32
    h32 = h_rest[0 * tb:1 * tb]
    h33 = h_rest[1 * tb:2 * tb]
    h34 = h_rest[2 * tb:3 * tb]
    h35 = h_rest[3 * tb:4 * tb]

    # ---- recon = sum_k outer(h_k) as one K=8 batched contraction on the MXU ----
    # Slots 0..4 hold data, 5..7 are zeroed (K padded 5->8); only the pad slots
    # are zero-filled per step (no full-scratch zero pass).
    h_sc[:, 5:8, :] = jnp.zeros((tb, 3, LAT_PAD), jnp.float32)
    h_sc[:, 0, :] = h31
    h_sc[:, 1, :] = h32
    h_sc[:, 2, :] = h33
    h_sc[:, 3, :] = h34
    h_sc[:, 4, :] = h35
    Hb = h_sc[...].astype(jnp.bfloat16)                          # (tb, 8, 128) bf16
    recon = jnp.einsum("bki,bkj->bij", Hb, Hb,
                       preferred_element_type=jnp.float32)       # (tb, 128, 128) f32

    # Store only 96 recon rows (87 padded to 96 sublanes) in bf16.
    recon_ref[...] = recon[:, :ROW_PAD, :].astype(recon_ref.dtype)
    mu_ref[...] = mu
    logvar_ref[...] = logvar
    xlat_ref[...] = h31 + h32 + h33


# ----------------------------------------------------------------------------
# Parameters (torch-layout: weights stored as (in_features, out_features))
# ----------------------------------------------------------------------------
def init_params(key):
    shapes = {
        "w1": (IN_DIM, HID), "b1": (1, HID),
        "w21": (HID, LATENT), "b21": (1, LATENT),
        "w22": (HID, LATENT), "b22": (1, LATENT),
        "w3": (LATENT, LATENT), "b3": (1, LATENT),
        "w32": (LATENT, LATENT), "b32": (1, LATENT),
        "w33": (LATENT, LATENT), "b33": (1, LATENT),
        "w34": (LATENT, LATENT), "b34": (1, LATENT),
        "w35": (LATENT, LATENT), "b35": (1, LATENT),
        "w4": (LATENT, LATENT), "b4": (1, LATENT),
        "w5": (LATENT, LATENT), "b5": (1, LATENT),
    }
    params = {}
    for i, (name, shp) in enumerate(shapes.items()):
        sub = jax.random.fold_in(key, i)
        fan_in = shp[0] if name.startswith("w") else shp[1]
        scale = 1.0 / jnp.sqrt(jnp.float32(fan_in))
        params[name] = scale * jax.random.normal(sub, shp, dtype=jnp.float32)
    return params


def pack_params(p):
    """Pad to lane-aligned shapes, fuse small weights, cast matmul weights to bf16."""
    w1p = _pad_to(p["w1"], (IN_PAD, HID)).astype(jnp.bfloat16)
    b1p = p["b1"].astype(jnp.float32)
    wenc = jnp.concatenate(
        [_pad_to(p["w21"], (HID, LAT_PAD)), _pad_to(p["w22"], (HID, LAT_PAD))],
        axis=1).astype(jnp.bfloat16)                                   # (256, 256)
    benc = jnp.concatenate(
        [_pad_to(p["b21"], (1, LAT_PAD)), _pad_to(p["b22"], (1, LAT_PAD))],
        axis=1).astype(jnp.float32)                                    # (1, 256)
    wd1 = jnp.concatenate(
        [_pad_to(p[k], (LAT_PAD, LAT_PAD)) for k in ("w3", "w32", "w33", "w34", "w35")],
        axis=1).astype(jnp.bfloat16)                                   # (128, 640)
    bd1 = jnp.concatenate(
        [_pad_to(p[k], (1, LAT_PAD)) for k in ("b3", "b32", "b33", "b34", "b35")],
        axis=1).astype(jnp.float32)                                    # (1, 640)
    w4p = _pad_to(p["w4"], (LAT_PAD, LAT_PAD)).astype(jnp.bfloat16)
    b4p = _pad_to(p["b4"], (1, LAT_PAD)).astype(jnp.float32)
    w5p = _pad_to(p["w5"], (LAT_PAD, LAT_PAD)).astype(jnp.bfloat16)
    b5p = _pad_to(p["b5"], (1, LAT_PAD)).astype(jnp.float32)
    return (w1p, b1p, wenc, benc, wd1, bd1, w4p, b4p, w5p, b5p)


# ----------------------------------------------------------------------------
# Forward wrapper
# ----------------------------------------------------------------------------
def _pad_batch(a, b_pad):
    if a.shape[0] == b_pad:
        return a
    return jnp.pad(a, ((0, b_pad - a.shape[0]),) + ((0, 0),) * (a.ndim - 1))


@functools.partial(jax.jit, static_argnames=("dense_recon",))
def vae_forward(x_flat, eps, packed, dense_recon=True):
    """x_flat: (B, 7569) f32 (or pre-padded (B, 7680) bf16),
       eps:    (B, 87)  f32 (or pre-padded (B, 128)  f32)
       -> (recon, mu, logvar, x_latent).

       dense_recon=True  : recon is (B, 7569) f32 (original module semantics).
       dense_recon=False : recon is the padded (b_pad, 96, 128) bf16 kernel
                           output (rows/cols >= 87 and batch rows >= B are
                           padding and must be masked by the consumer); mu /
                           logvar / x_latent are likewise padded to
                           (b_pad, 128).  This path skips the HBM re-layout of
                           the dominant tensor entirely.
    """
    B = x_flat.shape[0]
    # Cap the tile at ceil(B/2) (rounded to the 16-row bf16 quantum) and force
    # at least 2 grid steps so the "parallel" batch axis shards across both
    # TensorCores on v7x.  MAX_TILE_B keeps tiles VMEM-safe on all gens.
    tile_b = min(MAX_TILE_B, _round_up(max(1, -(-B // 2)), 16))
    grid = max(2, -(-B // tile_b))
    b_pad = grid * tile_b

    w1p, b1p, wenc, benc, wd1, bd1, w4p, b4p, w5p, b5p = packed

    # x: accept pre-padded bf16 (·, 7680) input, otherwise pad+cast once here.
    if x_flat.shape[1] == IN_PAD:
        x_cols = x_flat.astype(jnp.bfloat16)
    else:
        x_cols = jnp.pad(x_flat.astype(jnp.bfloat16),
                         ((0, 0), (0, IN_PAD - x_flat.shape[1])))
    x_p = _pad_batch(x_cols, b_pad)

    if eps.shape[1] == LAT_PAD:
        eps_cols = eps.astype(jnp.float32)
    else:
        eps_cols = jnp.pad(eps.astype(jnp.float32),
                           ((0, 0), (0, LAT_PAD - eps.shape[1])))
    eps_p = _pad_batch(eps_cols, b_pad)

    in_specs = [
        pl.BlockSpec((tile_b, IN_PAD), lambda i: (i, 0)),        # x   (tiled)
        pl.BlockSpec((tile_b, LAT_PAD), lambda i: (i, 0)),       # eps (tiled)
        pl.BlockSpec((IN_PAD, HID), lambda i: (0, 0)),           # w1  (resident)
        pl.BlockSpec((1, HID), lambda i: (0, 0)),                # b1
        pl.BlockSpec((HID, 2 * LAT_PAD), lambda i: (0, 0)),      # wenc
        pl.BlockSpec((1, 2 * LAT_PAD), lambda i: (0, 0)),        # benc
        pl.BlockSpec((LAT_PAD, 5 * LAT_PAD), lambda i: (0, 0)),  # wd1
        pl.BlockSpec((1, 5 * LAT_PAD), lambda i: (0, 0)),        # bd1
        pl.BlockSpec((LAT_PAD, LAT_PAD), lambda i: (0, 0)),      # w4
        pl.BlockSpec((1, LAT_PAD), lambda i: (0, 0)),            # b4
        pl.BlockSpec((LAT_PAD, LAT_PAD), lambda i: (0, 0)),      # w5
        pl.BlockSpec((1, LAT_PAD), lambda i: (0, 0)),            # b5
    ]
    out_specs = (
        pl.BlockSpec((tile_b, ROW_PAD, LAT_PAD), lambda i: (i, 0, 0)),  # recon
        pl.BlockSpec((tile_b, LAT_PAD), lambda i: (i, 0)),              # mu
        pl.BlockSpec((tile_b, LAT_PAD), lambda i: (i, 0)),              # logvar
        pl.BlockSpec((tile_b, LAT_PAD), lambda i: (i, 0)),              # xlat
    )
    out_shape = (
        jax.ShapeDtypeStruct((b_pad, ROW_PAD, LAT_PAD), jnp.bfloat16),
        jax.ShapeDtypeStruct((b_pad, LAT_PAD), jnp.float32),
        jax.ShapeDtypeStruct((b_pad, LAT_PAD), jnp.float32),
        jax.ShapeDtypeStruct((b_pad, LAT_PAD), jnp.float32),
    )

    flops_per_row = 2 * (IN_PAD * HID + HID * 2 * LAT_PAD + LAT_PAD * 5 * LAT_PAD
                         + 5 * LAT_PAD * LAT_PAD + 8 * LAT_PAD * LAT_PAD)
    bytes_weights = sum(int(math.prod(w.shape)) * w.dtype.itemsize for w in packed)
    bytes_io = (b_pad * IN_PAD * 2                       # x (bf16)
                + b_pad * LAT_PAD * 4                    # eps (f32)
                + b_pad * ROW_PAD * LAT_PAD * 2          # recon (bf16)
                + b_pad * 3 * LAT_PAD * 4)               # mu / logvar / xlat (f32)
    cost = pl.CostEstimate(
        flops=int(b_pad * flops_per_row),
        transcendentals=int(b_pad * 11 * LAT_PAD),
        bytes_accessed=int(bytes_weights + bytes_io),
    )

    recon_p, mu_p, logvar_p, xlat_p = pl.pallas_call(
        _vae_kernel,
        out_shape=out_shape,
        grid_spec=pltpu.PrefetchScalarGridSpec(
            num_scalar_prefetch=0,
            grid=(grid,),
            in_specs=in_specs,
            out_specs=out_specs,
            scratch_shapes=[pltpu.VMEM((tile_b, 8, LAT_PAD), jnp.float32)],
        ),
        compiler_params=pltpu.CompilerParams(
            dimension_semantics=("parallel",),
            vmem_limit_bytes=VMEM_LIMIT,
        ),
        cost_estimate=cost,
    )(x_p, eps_p, w1p, b1p, wenc, benc, wd1, bd1, w4p, b4p, w5p, b5p)

    if not dense_recon:
        # Fast path: hand the padded tensors straight through (no HBM re-layout).
        return recon_p, mu_p, logvar_p, xlat_p

    # Compatibility path: original module semantics (recon as (B, 7569) f32).
    recon = recon_p[:B, :LATENT, :LATENT].astype(jnp.float32).reshape(B, IN_DIM)
    return recon, mu_p[:B, :LATENT], logvar_p[:B, :LATENT], xlat_p[:B, :LATENT]


# ----------------------------------------------------------------------------
# Pure-JAX reference (mirrors the PyTorch forward) for validation
# ----------------------------------------------------------------------------
def vae_reference(x_flat, eps, p):
    h1 = jax.nn.relu(x_flat @ p["w1"] + p["b1"])
    mu = h1 @ p["w21"] + p["b21"]
    logvar = h1 @ p["w22"] + p["b22"]
    z = mu + eps * jnp.exp(0.5 * logvar)

    def lin_sig(v, w, b):
        return jax.nn.sigmoid(v @ w + b)

    h31 = lin_sig(lin_sig(z, p["w3"], p["b3"]), p["w4"], p["b4"])
    h32 = lin_sig(lin_sig(z, p["w32"], p["b32"]), p["w5"], p["b5"])
    h33 = lin_sig(lin_sig(z, p["w33"], p["b33"]), p["w5"], p["b5"])
    h34 = lin_sig(lin_sig(z, p["w34"], p["b34"]), p["w5"], p["b5"])
    h35 = lin_sig(lin_sig(z, p["w35"], p["b35"]), p["w5"], p["b5"])

    def outer(h):
        return h[:, :, None] * h[:, None, :]

    recon = (outer(h31) + outer(h32) + outer(h33) + outer(h34) + outer(h35))
    return recon.reshape(-1, IN_DIM), mu, logvar, h31 + h32 + h33


if __name__ == "__main__":
    key = jax.random.PRNGKey(0)
    k_param, k_x, k_eps = jax.random.split(key, 3)

    B = 2
    params = init_params(k_param)
    packed = pack_params(params)

    x = jax.random.normal(k_x, (B, 87, 87), dtype=jnp.float32)
    x_flat = x.reshape(B, IN_DIM)                 # like torch's x.view(-1, 87*87)
    eps = jax.random.normal(k_eps, (B, LATENT), dtype=jnp.float32)

    # Compatibility path (original module semantics).
    recon, mu, logvar, xlat = vae_forward(x_flat, eps, packed)
    jax.block_until_ready((recon, mu, logvar, xlat))

    assert recon.shape == (B, IN_DIM)
    assert mu.shape == (B, LATENT)
    assert logvar.shape == (B, LATENT)
    assert xlat.shape == (B, LATENT)
    assert bool(jnp.all(jnp.isfinite(recon)))

    # Padded fast path (no wrapper re-layout of recon).
    recon_pad, mu_pad, logvar_pad, xlat_pad = vae_forward(
        x_flat, eps, packed, dense_recon=False)
    jax.block_until_ready(recon_pad)
    assert recon_pad.shape[1:] == (ROW_PAD, LAT_PAD)
    assert recon_pad.dtype == jnp.bfloat16
    assert bool(jnp.all(jnp.isfinite(recon_pad.astype(jnp.float32))))

    # Validate against the pure-JAX reference (loose tolerance for the bf16
    # matmul operands and bf16 recon output).
    r_recon, r_mu, r_logvar, r_xlat = vae_reference(x_flat, eps, params)

    def max_abs_diff(a, b):
        return float(jnp.max(jnp.abs(a - b)))

    assert max_abs_diff(recon, r_recon) < 0.25
    assert max_abs_diff(mu, r_mu) < 0.25
    assert max_abs_diff(logvar, r_logvar) < 0.25
    assert max_abs_diff(xlat, r_xlat) < 0.25

    print("KERNEL_OK")
</pallas_src>

<mosaic_0001>
module attributes {stable_mosaic.version = 11 : i64} {
  func.func @_vae_kernel(%arg0: i32, %arg1: memref<16x7680xbf16, #tpu.memory_space<vmem>>, %arg2: memref<16x128xf32, #tpu.memory_space<vmem>>, %arg3: memref<7680x256xbf16, #tpu.memory_space<vmem>>, %arg4: memref<1x256xf32, #tpu.memory_space<vmem>>, %arg5: memref<256x256xbf16, #tpu.memory_space<vmem>>, %arg6: memref<1x256xf32, #tpu.memory_space<vmem>>, %arg7: memref<128x640xbf16, #tpu.memory_space<vmem>>, %arg8: memref<1x640xf32, #tpu.memory_space<vmem>>, %arg9: memref<128x128xbf16, #tpu.memory_space<vmem>>, %arg10: memref<1x128xf32, #tpu.memory_space<vmem>>, %arg11: memref<128x128xbf16, #tpu.memory_space<vmem>>, %arg12: memref<1x128xf32, #tpu.memory_space<vmem>>, %arg13: memref<16x96x128xbf16, #tpu.memory_space<vmem>>, %arg14: memref<16x128xf32, #tpu.memory_space<vmem>>, %arg15: memref<16x128xf32, #tpu.memory_space<vmem>>, %arg16: memref<16x128xf32, #tpu.memory_space<vmem>>, %arg17: memref<16x8x128xf32, #tpu.memory_space<vmem>>) attributes {dimension_semantics = [#tpu.dimension_semantics<parallel>], iteration_bounds = array<i64: 2>, scalar_prefetch = 0 : i64, scratch_operands = 1 : i64, tpu.core_type = #tpu.core_type<tc>, window_params = [{transform_indices = @transform_0, window_bounds = array<i64: 16, 7680>}, {transform_indices = @transform_1, window_bounds = array<i64: 16, 128>}, {pipeline_mode = #tpu.pipeline_mode<synchronous>, transform_indices = @transform_2, window_bounds = array<i64: 7680, 256>}, {pipeline_mode = #tpu.pipeline_mode<synchronous>, transform_indices = @transform_3, window_bounds = array<i64: 1, 256>}, {pipeline_mode = #tpu.pipeline_mode<synchronous>, transform_indices = @transform_4, window_bounds = array<i64: 256, 256>}, {pipeline_mode = #tpu.pipeline_mode<synchronous>, transform_indices = @transform_5, window_bounds = array<i64: 1, 256>}, {pipeline_mode = #tpu.pipeline_mode<synchronous>, transform_indices = @transform_6, window_bounds = array<i64: 128, 640>}, {pipeline_mode = #tpu.pipeline_mode<synchronous>, transform_indices = @transform_7, window_bounds = array<i64: 1, 640>}, {pipeline_mode = #tpu.pipeline_mode<synchronous>, transform_indices = @transform_8, window_bounds = array<i64: 128, 128>}, {pipeline_mode = #tpu.pipeline_mode<synchronous>, transform_indices = @transform_9, window_bounds = array<i64: 1, 128>}, {pipeline_mode = #tpu.pipeline_mode<synchronous>, transform_indices = @transform_10, window_bounds = array<i64: 128, 128>}, {pipeline_mode = #tpu.pipeline_mode<synchronous>, transform_indices = @transform_11, window_bounds = array<i64: 1, 128>}, {transform_indices = @transform_12, window_bounds = array<i64: 16, 96, 128>}, {transform_indices = @transform_13, window_bounds = array<i64: 16, 128>}, {transform_indices = @transform_14, window_bounds = array<i64: 16, 128>}, {transform_indices = @transform_15, window_bounds = array<i64: 16, 128>}]} {
    %c0 = arith.constant 0 : index
    %c0_0 = arith.constant 0 : index
    %0 = vector.load %arg1[%c0, %c0_0] : memref<16x7680xbf16, #tpu.memory_space<vmem>>, vector<16x7680xbf16>
    %c0_1 = arith.constant 0 : index
    %c0_2 = arith.constant 0 : index
    %1 = vector.load %arg3[%c0_1, %c0_2] : memref<7680x256xbf16, #tpu.memory_space<vmem>>, vector<7680x256xbf16>
    %cst = arith.constant dense<0.000000e+00> : vector<16x256xf32>
    %2 = tpu.matmul %0, %1, %cst {dimension_numbers = #tpu.dot_dimension_numbers<[1], [0], [0], [1], [0, 0, 1, 1], [], []>} : vector<16x7680xbf16>, vector<7680x256xbf16>, vector<16x256xf32> -> vector<16x256xf32>
    %c0_3 = arith.constant 0 : index
    %c0_4 = arith.constant 0 : index
    %3 = vector.load %arg4[%c0_3, %c0_4] : memref<1x256xf32, #tpu.memory_space<vmem>>, vector<1x256xf32>
    %4 = vector.broadcast %3 : vector<1x256xf32> to vector<16x256xf32>
    %5 = arith.addf %2, %4 : vector<16x256xf32>
    %cst_5 = arith.constant 0.000000e+00 : f32
    %6 = vector.broadcast %cst_5 : f32 to vector<16x256xf32>
    %7 = arith.maximumf %5, %6 : vector<16x256xf32>
    %8 = arith.truncf %7 : vector<16x256xf32> to vector<16x256xbf16>
    %c0_6 = arith.constant 0 : index
    %c0_7 = arith.constant 0 : index
    %9 = vector.load %arg5[%c0_6, %c0_7] : memref<256x256xbf16, #tpu.memory_space<vmem>>, vector<256x256xbf16>
    %cst_8 = arith.constant dense<0.000000e+00> : vector<16x256xf32>
    %10 = tpu.matmul %8, %9, %cst_8 {dimension_numbers = #tpu.dot_dimension_numbers<[1], [0], [0], [1], [0, 0, 1, 1], [], []>} : vector<16x256xbf16>, vector<256x256xbf16>, vector<16x256xf32> -> vector<16x256xf32>
    %c0_9 = arith.constant 0 : index
    %c0_10 = arith.constant 0 : index
    %11 = vector.load %arg6[%c0_9, %c0_10] : memref<1x256xf32, #tpu.memory_space<vmem>>, vector<1x256xf32>
    %12 = vector.broadcast %11 : vector<1x256xf32> to vector<16x256xf32>
    %13 = arith.addf %10, %12 : vector<16x256xf32>
    %14 = vector.extract_strided_slice %13 {offsets = [0, 0], sizes = [16, 128], strides = [1, 1]} : vector<16x256xf32> to vector<16x128xf32>
    %15 = vector.extract_strided_slice %13 {offsets = [0, 128], sizes = [16, 128], strides = [1, 1]} : vector<16x256xf32> to vector<16x128xf32>
    %c0_11 = arith.constant 0 : index
    %c0_12 = arith.constant 0 : index
    %16 = vector.load %arg2[%c0_11, %c0_12] : memref<16x128xf32, #tpu.memory_space<vmem>>, vector<16x128xf32>
    %cst_13 = arith.constant 5.000000e-01 : f32
    %17 = vector.broadcast %cst_13 : f32 to vector<16x128xf32>
    %18 = arith.mulf %17, %15 : vector<16x128xf32>
    %19 = math.exp %18 : vector<16x128xf32>
    %20 = arith.mulf %16, %19 : vector<16x128xf32>
    %21 = arith.addf %14, %20 : vector<16x128xf32>
    %22 = arith.truncf %21 : vector<16x128xf32> to vector<16x128xbf16>
    %c0_14 = arith.constant 0 : index
    %c0_15 = arith.constant 0 : index
    %23 = vector.load %arg7[%c0_14, %c0_15] : memref<128x640xbf16, #tpu.memory_space<vmem>>, vector<128x640xbf16>
    %cst_16 = arith.constant dense<0.000000e+00> : vector<16x640xf32>
    %24 = tpu.matmul %22, %23, %cst_16 {dimension_numbers = #tpu.dot_dimension_numbers<[1], [0], [0], [1], [0, 0, 1, 1], [], []>} : vector<16x128xbf16>, vector<128x640xbf16>, vector<16x640xf32> -> vector<16x640xf32>
    %c0_17 = arith.constant 0 : index
    %c0_18 = arith.constant 0 : index
    %25 = vector.load %arg8[%c0_17, %c0_18] : memref<1x640xf32, #tpu.memory_space<vmem>>, vector<1x640xf32>
    %26 = vector.broadcast %25 : vector<1x640xf32> to vector<16x640xf32>
    %27 = arith.addf %24, %26 : vector<16x640xf32>
    %28 = arith.negf %27 : vector<16x640xf32>
    %29 = math.exp %28 : vector<16x640xf32>
    %cst_19 = arith.constant 1.000000e+00 : f32
    %30 = vector.broadcast %cst_19 : f32 to vector<16x640xf32>
    %31 = arith.addf %30, %29 : vector<16x640xf32>
    %32 = arith.divf %30, %31 : vector<16x640xf32>
    %33 = arith.truncf %32 : vector<16x640xf32> to vector<16x640xbf16>
    %34 = vector.extract_strided_slice %33 {offsets = [0, 0], sizes = [16, 128], strides = [1, 1]} : vector<16x640xbf16> to vector<16x128xbf16>
    %c0_20 = arith.constant 0 : index
    %c0_21 = arith.constant 0 : index
    %35 = vector.load %arg9[%c0_20, %c0_21] : memref<128x128xbf16, #tpu.memory_space<vmem>>, vector<128x128xbf16>
    %cst_22 = arith.constant dense<0.000000e+00> : vector<16x128xf32>
    %36 = tpu.matmul %34, %35, %cst_22 {dimension_numbers = #tpu.dot_dimension_numbers<[1], [0], [0], [1], [0, 0, 1, 1], [], []>} : vector<16x128xbf16>, vector<128x128xbf16>, vector<16x128xf32> -> vector<16x128xf32>
    %c0_23 = arith.constant 0 : index
    %c0_24 = arith.constant 0 : index
    %37 = vector.load %arg10[%c0_23, %c0_24] : memref<1x128xf32, #tpu.memory_space<vmem>>, vector<1x128xf32>
    %38 = vector.broadcast %37 : vector<1x128xf32> to vector<16x128xf32>
    %39 = arith.addf %36, %38 : vector<16x128xf32>
    %40 = arith.negf %39 : vector<16x128xf32>
    %41 = math.exp %40 : vector<16x128xf32>
    %cst_25 = arith.constant 1.000000e+00 : f32
    %42 = vector.broadcast %cst_25 : f32 to vector<16x128xf32>
    %43 = arith.addf %42, %41 : vector<16x128xf32>
    %44 = arith.divf %42, %43 : vector<16x128xf32>
    %45 = vector.extract_strided_slice %33 {offsets = [0, 128], sizes = [16, 128], strides = [1, 1]} : vector<16x640xbf16> to vector<16x128xbf16>
    %46 = vector.extract_strided_slice %33 {offsets = [0, 256], sizes = [16, 128], strides = [1, 1]} : vector<16x640xbf16> to vector<16x128xbf16>
    %47 = vector.extract_strided_slice %33 {offsets = [0, 384], sizes = [16, 128], strides = [1, 1]} : vector<16x640xbf16> to vector<16x128xbf16>
    %48 = vector.extract_strided_slice %33 {offsets = [0, 512], sizes = [16, 128], strides = [1, 1]} : vector<16x640xbf16> to vector<16x128xbf16>
    %49 = tpu.concatenate %45, %46, %47, %48 in 0 : vector<16x128xbf16>, vector<16x128xbf16>, vector<16x128xbf16>, vector<16x128xbf16> -> vector<64x128xbf16>
    %c0_26 = arith.constant 0 : index
    %c0_27 = arith.constant 0 : index
    %50 = vector.load %arg11[%c0_26, %c0_27] : memref<128x128xbf16, #tpu.memory_space<vmem>>, vector<128x128xbf16>
    %cst_28 = arith.constant dense<0.000000e+00> : vector<64x128xf32>
    %51 = tpu.matmul %49, %50, %cst_28 {dimension_numbers = #tpu.dot_dimension_numbers<[1], [0], [0], [1], [0, 0, 1, 1], [], []>} : vector<64x128xbf16>, vector<128x128xbf16>, vector<64x128xf32> -> vector<64x128xf32>
    %c0_29 = arith.constant 0 : index
    %c0_30 = arith.constant 0 : index
    %52 = vector.load %arg12[%c0_29, %c0_30] : memref<1x128xf32, #tpu.memory_space<vmem>>, vector<1x128xf32>
    %53 = vector.broadcast %52 : vector<1x128xf32> to vector<64x128xf32>
    %54 = arith.addf %51, %53 : vector<64x128xf32>
    %55 = arith.negf %54 : vector<64x128xf32>
    %56 = math.exp %55 : vector<64x128xf32>
    %cst_31 = arith.constant 1.000000e+00 : f32
    %57 = vector.broadcast %cst_31 : f32 to vector<64x128xf32>
    %58 = arith.addf %57, %56 : vector<64x128xf32>
    %59 = arith.divf %57, %58 : vector<64x128xf32>
    %60 = vector.extract_strided_slice %59 {offsets = [0, 0], sizes = [16, 128], strides = [1, 1]} : vector<64x128xf32> to vector<16x128xf32>
    %61 = vector.extract_strided_slice %59 {offsets = [16, 0], sizes = [16, 128], strides = [1, 1]} : vector<64x128xf32> to vector<16x128xf32>
    %62 = vector.extract_strided_slice %59 {offsets = [32, 0], sizes = [16, 128], strides = [1, 1]} : vector<64x128xf32> to vector<16x128xf32>
    %63 = vector.extract_strided_slice %59 {offsets = [48, 0], sizes = [16, 128], strides = [1, 1]} : vector<64x128xf32> to vector<16x128xf32>
    %cst_32 = arith.constant 0.000000e+00 : f32
    %64 = vector.broadcast %cst_32 : f32 to vector<16x3x128xf32>
    %c0_33 = arith.constant 0 : index
    %c5 = arith.constant 5 : index
    %c0_34 = arith.constant 0 : index
    %65 = vector.load %arg17[%c0_33, %c5, %c0_34] : memref<16x8x128xf32, #tpu.memory_space<vmem>>, vector<16x3x128xf32>
    tpu.vector_store %arg17[%c0_33, %c5, %c0_34], %64 {strides = array<i32>} : memref<16x8x128xf32, #tpu.memory_space<vmem>>, vector<16x3x128xf32>,
    %c0_35 = arith.constant 0 : index
    %c0_36 = arith.constant 0 : index
    %c0_37 = arith.constant 0 : index
    %66 = vector.load %arg17[%c0_35, %c0_36, %c0_37] : memref<16x8x128xf32, #tpu.memory_space<vmem>>, vector<16x1x128xf32>
    %67 = vector.shape_cast %66 : vector<16x1x128xf32> to vector<16x128xf32>
    %68 = vector.shape_cast %44 : vector<16x128xf32> to vector<16x1x128xf32>
    tpu.vector_store %arg17[%c0_35, %c0_36, %c0_37], %68 {strides = array<i32>} : memref<16x8x128xf32, #tpu.memory_space<vmem>>, vector<16x1x128xf32>,
    %c0_38 = arith.constant 0 : index
    %c1 = arith.constant 1 : index
    %c0_39 = arith.constant 0 : index
    %69 = vector.load %arg17[%c0_38, %c1, %c0_39] : memref<16x8x128xf32, #tpu.memory_space<vmem>>, vector<16x1x128xf32>
    %70 = vector.shape_cast %69 : vector<16x1x128xf32> to vector<16x128xf32>
    %71 = vector.shape_cast %60 : vector<16x128xf32> to vector<16x1x128xf32>
    tpu.vector_store %arg17[%c0_38, %c1, %c0_39], %71 {strides = array<i32>} : memref<16x8x128xf32, #tpu.memory_space<vmem>>, vector<16x1x128xf32>,
    %c0_40 = arith.constant 0 : index
    %c2 = arith.constant 2 : index
    %c0_41 = arith.constant 0 : index
    %72 = vector.load %arg17[%c0_40, %c2, %c0_41] : memref<16x8x128xf32, #tpu.memory_space<vmem>>, vector<16x1x128xf32>
    %73 = vector.shape_cast %72 : vector<16x1x128xf32> to vector<16x128xf32>
    %74 = vector.shape_cast %61 : vector<16x128xf32> to vector<16x1x128xf32>
    tpu.vector_store %arg17[%c0_40, %c2, %c0_41], %74 {strides = array<i32>} : memref<16x8x128xf32, #tpu.memory_space<vmem>>, vector<16x1x128xf32>,
    %c0_42 = arith.constant 0 : index
    %c3 = arith.constant 3 : index
    %c0_43 = arith.constant 0 : index
    %75 = vector.load %arg17[%c0_42, %c3, %c0_43] : memref<16x8x128xf32, #tpu.memory_space<vmem>>, vector<16x1x128xf32>
    %76 = vector.shape_cast %75 : vector<16x1x128xf32> to vector<16x128xf32>
    %77 = vector.shape_cast %62 : vector<16x128xf32> to vector<16x1x128xf32>
    tpu.vector_store %arg17[%c0_42, %c3, %c0_43], %77 {strides = array<i32>} : memref<16x8x128xf32, #tpu.memory_space<vmem>>, vector<16x1x128xf32>,
    %c0_44 = arith.constant 0 : index
    %c4 = arith.constant 4 : index
    %c0_45 = arith.constant 0 : index
    %78 = vector.load %arg17[%c0_44, %c4, %c0_45] : memref<16x8x128xf32, #tpu.memory_space<vmem>>, vector<16x1x128xf32>
    %79 = vector.shape_cast %78 : vector<16x1x128xf32> to vector<16x128xf32>
    %80 = vector.shape_cast %63 : vector<16x128xf32> to vector<16x1x128xf32>
    tpu.vector_store %arg17[%c0_44, %c4, %c0_45], %80 {strides = array<i32>} : memref<16x8x128xf32, #tpu.memory_space<vmem>>, vector<16x1x128xf32>,
    %c0_46 = arith.constant 0 : index
    %c0_47 = arith.constant 0 : index
    %c0_48 = arith.constant 0 : index
    %81 = vector.load %arg17[%c0_46, %c0_47, %c0_48] : memref<16x8x128xf32, #tpu.memory_space<vmem>>, vector<16x8x128xf32>
    %82 = arith.truncf %81 : vector<16x8x128xf32> to vector<16x8x128xbf16>
    "tpu.trace_start"() <{level = 10 : i32, message = "bki,bkj->bij"}> : () -> ()
    %cst_49 = arith.constant dense<0.000000e+00> : vector<16x128x128xf32>
    %83 = tpu.matmul %82, %82, %cst_49 {dimension_numbers = #tpu.dot_dimension_numbers<[1], [1], [2], [2], [0, 0, 0, 2, 1, 2], [0], [0]>} : vector<16x8x128xbf16>, vector<16x8x128xbf16>, vector<16x128x128xf32> -> vector<16x128x128xf32>
    "tpu.trace_stop"() : () -> ()
    %84 = vector.extract_strided_slice %83 {offsets = [0, 0, 0], sizes = [16, 96, 128], strides = [1, 1, 1]} : vector<16x128x128xf32> to vector<16x96x128xf32>
    %85 = arith.truncf %84 : vector<16x96x128xf32> to vector<16x96x128xbf16>
    %c0_50 = arith.constant 0 : index
    %c0_51 = arith.constant 0 : index
    %c0_52 = arith.constant 0 : index
    %86 = vector.load %arg13[%c0_50, %c0_51, %c0_52] : memref<16x96x128xbf16, #tpu.memory_space<vmem>>, vector<16x96x128xbf16>
    tpu.vector_store %arg13[%c0_50, %c0_51, %c0_52], %85 {strides = array<i32>} : memref<16x96x128xbf16, #tpu.memory_space<vmem>>, vector<16x96x128xbf16>,
    %c0_53 = arith.constant 0 : index
    %c0_54 = arith.constant 0 : index
    %87 = vector.load %arg14[%c0_53, %c0_54] : memref<16x128xf32, #tpu.memory_space<vmem>>, vector<16x128xf32>
    tpu.vector_store %arg14[%c0_53, %c0_54], %14 {strides = array<i32>} : memref<16x128xf32, #tpu.memory_space<vmem>>, vector<16x128xf32>,
    %c0_55 = arith.constant 0 : index
    %c0_56 = arith.constant 0 : index
    %88 = vector.load %arg15[%c0_55, %c0_56] : memref<16x128xf32, #tpu.memory_space<vmem>>, vector<16x128xf32>
    tpu.vector_store %arg15[%c0_55, %c0_56], %15 {strides = array<i32>} : memref<16x128xf32, #tpu.memory_space<vmem>>, vector<16x128xf32>,
    %89 = arith.addf %44, %60 : vector<16x128xf32>
    %90 = arith.addf %89, %61 : vector<16x128xf32>
    %c0_57 = arith.constant 0 : index
    %c0_58 = arith.constant 0 : index
    %91 = vector.load %arg16[%c0_57, %c0_58] : memref<16x128xf32, #tpu.memory_space<vmem>>, vector<16x128xf32>
    tpu.vector_store %arg16[%c0_57, %c0_58], %90 {strides = array<i32>} : memref<16x128xf32, #tpu.memory_space<vmem>>, vector<16x128xf32>,
    return
  }
  func.func @transform_0(%arg0: i32) -> (i32, i32) {
    %c0_i32 = arith.constant 0 : i32
    %c0_i32_0 = arith.constant 0 : i32
    return %arg0, %c0_i32 : i32, i32
  }
  func.func @transform_1(%arg0: i32) -> (i32, i32) {
    %c0_i32 = arith.constant 0 : i32
    %c0_i32_0 = arith.constant 0 : i32
    return %arg0, %c0_i32 : i32, i32
  }
  func.func @transform_2(%arg0: i32) -> (i32, i32) {
    %c0_i32 = arith.constant 0 : i32
    %c0_i32_0 = arith.constant 0 : i32
    %c0_i32_1 = arith.constant 0 : i32
    return %c0_i32, %c0_i32_0 : i32, i32
  }
  func.func @transform_3(%arg0: i32) -> (i32, i32) {
    %c0_i32 = arith.constant 0 : i32
    %c0_i32_0 = arith.constant 0 : i32
    %c0_i32_1 = arith.constant 0 : i32
    return %c0_i32, %c0_i32_0 : i32, i32
  }
  func.func @transform_4(%arg0: i32) -> (i32, i32) {
    %c0_i32 = arith.constant 0 : i32
    %c0_i32_0 = arith.constant 0 : i32
    %c0_i32_1 = arith.constant 0 : i32
    return %c0_i32, %c0_i32_0 : i32, i32
  }
  func.func @transform_5(%arg0: i32) -> (i32, i32) {
    %c0_i32 = arith.constant 0 : i32
    %c0_i32_0 = arith.constant 0 : i32
    %c0_i32_1 = arith.constant 0 : i32
    return %c0_i32, %c0_i32_0 : i32, i32
  }
  func.func @transform_6(%arg0: i32) -> (i32, i32) {
    %c0_i32 = arith.constant 0 : i32
    %c0_i32_0 = arith.constant 0 : i32
    %c0_i32_1 = arith.constant 0 : i32
    return %c0_i32, %c0_i32_0 : i32, i32
  }
  func.func @transform_7(%arg0: i32) -> (i32, i32) {
    %c0_i32 = arith.constant 0 : i32
    %c0_i32_0 = arith.constant 0 : i32
    %c0_i32_1 = arith.constant 0 : i32
    return %c0_i32, %c0_i32_0 : i32, i32
  }
  func.func @transform_8(%arg0: i32) -> (i32, i32) {
    %c0_i32 = arith.constant 0 : i32
    %c0_i32_0 = arith.constant 0 : i32
    %c0_i32_1 = arith.constant 0 : i32
    return %c0_i32, %c0_i32_0 : i32, i32
  }
  func.func @transform_9(%arg0: i32) -> (i32, i32) {
    %c0_i32 = arith.constant 0 : i32
    %c0_i32_0 = arith.constant 0 : i32
    %c0_i32_1 = arith.constant 0 : i32
    return %c0_i32, %c0_i32_0 : i32, i32
  }
  func.func @transform_10(%arg0: i32) -> (i32, i32) {
    %c0_i32 = arith.constant 0 : i32
    %c0_i32_0 = arith.constant 0 : i32
    %c0_i32_1 = arith.constant 0 : i32
    return %c0_i32, %c0_i32_0 : i32, i32
  }
  func.func @transform_11(%arg0: i32) -> (i32, i32) {
    %c0_i32 = arith.constant 0 : i32
    %c0_i32_0 = arith.constant 0 : i32
    %c0_i32_1 = arith.constant 0 : i32
    return %c0_i32, %c0_i32_0 : i32, i32
  }
  func.func @transform_12(%arg0: i32) -> (i32, i32, i32) {
    %c0_i32 = arith.constant 0 : i32
    %c0_i32_0 = arith.constant 0 : i32
    %c0_i32_1 = arith.constant 0 : i32
    return %arg0, %c0_i32, %c0_i32_0 : i32, i32, i32
  }
  func.func @transform_13(%arg0: i32) -> (i32, i32) {
    %c0_i32 = arith.constant 0 : i32
    %c0_i32_0 = arith.constant 0 : i32
    return %arg0, %c0_i32 : i32, i32
  }
  func.func @transform_14(%arg0: i32) -> (i32, i32) {
    %c0_i32 = arith.constant 0 : i32
    %c0_i32_0 = arith.constant 0 : i32
    return %arg0, %c0_i32 : i32, i32
  }
  func.func @transform_15(%arg0: i32) -> (i32, i32) {
    %c0_i32 = arith.constant 0 : i32
    %c0_i32_0 = arith.constant 0 : i32
    return %arg0, %c0_i32 : i32, i32
  }
}

</mosaic_0001>

<bundles_post_ra>
// kernel: vae_forward.1
= control target key start
LH: loop header
LB: loop body
LE: loop exit
PB: predicated region body
PF: predicated region fallthrough
CT: control target
= control target key end

     0   :  { %s20626_s0 = inlined_call_operand.vmem [shape: bf16[32,7680], index: 0, kind: input, shape index: {}]   ;;  %s20627_s1 = inlined_call_operand.vmem [shape: f32[32,128], index: 1, kind: input, shape index: {}]   ;;  %s20628_s2 = inlined_call_operand.hbm [shape: bf16[7680,256], index: 2, kind: input, shape index: {}]   ;;  %s20629_s3 = inlined_call_operand.hbm [shape: f32[1,256], index: 3, kind: input, shape index: {}]   ;;  %s20630_s4 = inlined_call_operand.hbm [shape: bf16[256,256], index: 4, kind: input, shape index: {}]   ;;  %s20631_s5 = inlined_call_operand.hbm [shape: f32[1,256], index: 5, kind: input, shape index: {}]   ;;  %s20632_s6 = inlined_call_operand.hbm [shape: bf16[128,640], index: 6, kind: input, shape index: {}]   ;;  %s20633_s7 = inlined_call_operand.hbm [shape: f32[1,640], index: 7, kind: input, shape index: {}]   ;;  %s20634_s8 = inlined_call_operand.hbm [shape: bf16[128,128], index: 8, kind: input, shape index: {}]   ;;  %s20635_s9 = inlined_call_operand.hbm [shape: f32[1,128], index: 9, kind: input, shape index: {}]   ;;  %s20636_s10 = inlined_call_operand.hbm [shape: bf16[128,128], index: 10, kind: input, shape index: {}]   ;;  %s20637_s11 = inlined_call_operand.hbm [shape: f32[1,128], index: 11, kind: input, shape index: {}]   ;;  %s20638_s12 = inlined_call_operand.vmem [shape: bf16[32,96,128], index: 12, kind: output, shape index: {0}]   ;;  %s20639_s13 = inlined_call_operand.vmem [shape: f32[32,128], index: 13, kind: output, shape index: {1}]   ;;  %s20640_s14 = inlined_call_operand.vmem [shape: f32[32,128], index: 14, kind: output, shape index: {2}]   ;;  %s20641_s15 = inlined_call_operand.vmem [shape: f32[32,128], index: 15, kind: output, shape index: {3}]  }
   0x1   :  { %20693 = sst [smem:[#allocation81_spill]] %s20629_s3 }
   0x2   :  { %20694 = sst [smem:[#allocation82_spill]] %s20631_s5 }
   0x3   :  { %20695 = sst [smem:[#allocation83_spill]] %s20633_s7 }
   0x4   :  { %21 = vsyncpa [#allocation4], 0 }
   0x5   :  { %22 = vsyncpa [#allocation6], 0 }
   0x6   :  { %23 = vsyncpa [#allocation9], 0 }
   0x7   :  { %24 = vsyncpa [#allocation12], 0 }
   0x8   :  { %25 = vsyncpa [#allocation15], 0 }
   0x9   :  { %26 = vsyncpa [#allocation18], 0  ;;  %s19155_s18 = smov 0  }
   0xa LB: > { %20696 = sst [smem:[#allocation25_spill]] %s19056_s18  ;;  %s19164_s22 = sadd.s32 4294967295, %s19056_s18   ;;  %s19056_s18 = sphi %s19155_s18, %s32_s18  }
   0xb   : > { %s20697_s3 = sld [smem:[#allocation81_spill]]  ;;  %p12084_p0 = scmp.ge.s32.totalorder %s19056_s18, 1 }
   0xc   : > { %p403_p1 = scmp.lt.s32.totalorder %s19056_s18, 3  ;;  %p18457_p2 = scmp.eq.s32.totalorder %s19164_s22, 0 }
   0xd   : > { %s19058_s24 = smov [#allocation5]   ;;  %s20699_s5 = sld [smem:[#allocation82_spill]] }
   0xe   : > { %p19169_p3 = pnand %p12084_p0, %p403_p1  ;;  %s431_s25 = sshll.u32 %s19058_s24, 4  ;;  %s432_s25 = int_to_ptr.vmem [resolvable:$true] %s431_s25 }
   0xf   : > { %s20700_s7 = sld [smem:[#allocation83_spill]]  ;;  %s19059_s19 = smov [#allocation8]  }
  0x10   : > { %p18426_p4 = pneg %p19169_p3  ;;  %s457_s20 = sshll.u32 %s19059_s19, 4  ;;  %s458_s20 = int_to_ptr.vmem [resolvable:$true] %s457_s20 }
  0x11   : > { %s429_s21 = sshll.u32 %s20697_s3, 4  ;;  %s19060_s24 = smov [#allocation11]   ;;  %s430_s21 = int_to_ptr.hbm [resolvable:$true] %s429_s21 }
  0x12   : > { %p19183_p5 = pnand %p18457_p2, %p18426_p4  ;;  %s483_s26 = sshll.u32 %s19060_s24, 4  ;;  %s484_s26 = int_to_ptr.vmem [resolvable:$true] %s483_s26 }
  0x13   : > { %s455_s28 = sshll.u32 %s20699_s5, 4  ;;  %s507_s30 = sshll.u32 %s20635_s9, 4  ;;  %s456_s28 = int_to_ptr.hbm [resolvable:$true] %s455_s28  ;;  %s508_s30 = int_to_ptr.hbm [resolvable:$true] %s507_s30 }
  0x14   : > { %18432 = dma.hbm_to_vmem [thread:$0]  (!%p19183_p5), %s430_s21, 32, %s432_s25, [#allocation6]  }
  0x15   : > { %s481_s16 = sshll.u32 %s20700_s7, 4  ;;  %s414_s5 = sshll.u32 %s20628_s2, 4  ;;  %s482_s16 = int_to_ptr.hbm [resolvable:$true] %s481_s16  ;;  %s415_s5 = int_to_ptr.hbm [resolvable:$true] %s414_s5 }
  0x16   : > { %18438 = dma.hbm_to_vmem [thread:$0]  (!%p19183_p5), %s456_s28, 32, %s458_s20, [#allocation9]  }
  0x17   : > { %18444 = dma.hbm_to_vmem [thread:$0]  (!%p19183_p5), %s482_s16, 80, %s484_s26, [#allocation12]  }
  0x18   : > { %s19061_s7 = smov [#allocation14]   ;;  %s19062_s21 = smov [#allocation3]  }
  0x19   : > { %s509_s18 = sshll.u32 %s19061_s7, 4  ;;  %s416_s25 = sshll.u32 %s19062_s21, 4  ;;  %s510_s18 = int_to_ptr.vmem [resolvable:$true] %s509_s18  ;;  %s417_s25 = int_to_ptr.vmem [resolvable:$true] %s416_s25 }
  0x1a   : > { %18450 = dma.hbm_to_vmem [thread:$0]  (!%p19183_p5), %s508_s30, 16, %s510_s18, [#allocation15]  }
  0x1b   : > { %s19063_s28 = smov 128   ;;  %s19064_s20 = smov 8  }
  0x1c   : > { %18429 = dma.hbm_to_vmem [thread:$0]  (!%p19183_p5), %s415_s5, 122880, %s417_s25, [#allocation4], %s19063_s28, %s19063_s28, %s19064_s20  }
  0x1d   : > { %s440_s3 = sshll.u32 %s20630_s4, 4  ;;  %s19065_s26 = smov [#allocation7]   ;;  %s441_s3 = int_to_ptr.hbm [resolvable:$true] %s440_s3 }
  0x1e   : > { %s442_s7 = sshll.u32 %s19065_s26, 4  ;;  %s466_s18 = sshll.u32 %s20632_s6, 4  ;;  %s443_s7 = int_to_ptr.vmem [resolvable:$true] %s442_s7  ;;  %s467_s18 = int_to_ptr.hbm [resolvable:$true] %s466_s18 }
  0x1f   : > { %18435 = dma.hbm_to_vmem [thread:$0]  (!%p19183_p5), %s441_s3, 4096, %s443_s7, [#allocation6], %s19063_s28, %s19063_s28, %s19064_s20  }
  0x20   : > { %s19066_s30 = smov [#allocation10]   ;;  %s19067_s5 = smov 320  }
  0x21   : > { %s468_s19 = sshll.u32 %s19066_s30, 4  ;;  %s19068_s21 = smov 20   ;;  %s469_s19 = int_to_ptr.vmem [resolvable:$true] %s468_s19 }
  0x22   : > { %18441 = dma.hbm_to_vmem [thread:$0]  (!%p19183_p5), %s467_s18, 5120, %s469_s19, [#allocation9], %s19067_s5, %s19067_s5, %s19068_s21  }
  0x23   : > { %s492_s24 = sshll.u32 %s20634_s8, 4  ;;  %s19069_s26 = smov [#allocation13]   ;;  %s493_s24 = int_to_ptr.hbm [resolvable:$true] %s492_s24 }
  0x24   : > { %s494_s27 = sshll.u32 %s19069_s26, 4  ;;  %s518_s3 = sshll.u32 %s20636_s10, 4  ;;  %s495_s27 = int_to_ptr.vmem [resolvable:$true] %s494_s27  ;;  %s519_s3 = int_to_ptr.hbm [resolvable:$true] %s518_s3 }
  0x25   : > { %s19070_s7 = smov 64   ;;  %s19071_s29 = smov 4  }
  0x26   : > { %18447 = dma.hbm_to_vmem [thread:$0]  (!%p19183_p5), %s493_s24, 1024, %s495_s27, [#allocation12], %s19070_s7, %s19070_s7, %s19071_s29  }
  0x27   : > { %s19072_s30 = smov [#allocation16]   ;;  %s533_s21 = sshll.u32 %s20637_s11, 4  ;;  %s534_s21 = int_to_ptr.hbm [resolvable:$true] %s533_s21 }
  0x28   : > { %s520_s18 = sshll.u32 %s19072_s30, 4  ;;  %s19073_s25 = smov [#allocation17]   ;;  %s521_s18 = int_to_ptr.vmem [resolvable:$true] %s520_s18 }
  0x29   : > { %18453 = dma.hbm_to_vmem [thread:$0]  (!%p19183_p5), %s519_s3, 1024, %s521_s18, [#allocation15], %s19070_s7, %s19070_s7, %s19071_s29  }
  0x2a   : > { %s535_s16 = sshll.u32 %s19073_s25, 4  ;;  %567 = sbr.rel (%p19169_p3) target bundleno = 2702 (0xa8e), region = 68  ;;  %s536_s16 = int_to_ptr.vmem [resolvable:$true] %s535_s16 }
  0x2b   : > { %18456 = dma.hbm_to_vmem [thread:$0]  (!%p19183_p5), %s534_s21, 16, %s536_s16, [#allocation18]  }
  0x2f   : > { %19031 = dma.done.wait (%p18457_p2), [#allocation4], 122880  }
  0x30   : > { %19033 = vsyncadd (%p18457_p2), [#allocation4], 4294844416 }
  0x31   : > { %19035 = dma.done.wait (%p18457_p2), [#allocation6], 4128  }
  0x32   : > { %19037 = vsyncadd (%p18457_p2), [#allocation6], 4294963168 }
  0x33   : > { %19039 = dma.done.wait (%p18457_p2), [#allocation9], 5152  }
  0x34   : > { %19041 = vsyncadd (%p18457_p2), [#allocation9], 4294962144 }
  0x35   : > { %19043 = dma.done.wait (%p18457_p2), [#allocation12], 1104  }
  0x36   : > { %19045 = vsyncadd (%p18457_p2), [#allocation12], 4294966192 }
  0x37   : > { %19047 = dma.done.wait (%p18457_p2), [#allocation15], 1040  }
  0x38   : > { %19049 = vsyncadd (%p18457_p2), [#allocation15], 4294966256 }
  0x39   : > { %19051 = dma.done.wait (%p18457_p2), [#allocation18], 16  }
  0x3a   : > { %19053 = vsyncadd (%p18457_p2), [#allocation18], 4294967280  ;;  %v12417_v0 = vld [vmem:[#allocation3 + $0x70] sm:$0xf]  ;;  %v16776_v1 = vld [vmem:[#allocation3 + $0x74] sm:$0xf0] }
  0x3b   : > { %v12545_v2 = vld [vmem:[#allocation3 + $0x170] sm:$0xf]  ;;  %v12418_v3 = vor.u32 %v16776_v1, %v12417_v0  ;;  %v16808_v4 = vld [vmem:[#allocation3 + $0x174] sm:$0xf0]  ;;  %v12409_v9 = vld [vmem:[#allocation3 + $0x60] sm:$0xf] }
  0x3c   : > { %v12801_v5 = vld [vmem:[#allocation3 + $0x370] sm:$0xf]  ;;  %v16872_v6 = vld [vmem:[#allocation3 + $0x374] sm:$0xf0]  ;;  %v12546_v7 = vor.u32 %v16808_v4, %v12545_v2  ;;  %v16774_v10 = vld [vmem:[#allocation3 + $0x64] sm:$0xf0] }
  0x3d   : > { %v12802_v8 = vor.u32 %v16872_v6, %v12801_v5  ;;  %v12537_v11 = vld [vmem:[#allocation3 + $0x160] sm:$0xf]  ;;  %6848 = vmatpush.bf16.msra.mxu0 %v12418_v3  ;;  %v12410_v12 = vor.u32 %v16774_v10, %v12409_v9  ;;  %v16806_v13 = vld [vmem:[#allocation3 + $0x164] sm:$0xf0]  ;;  %v12401_v18 = vld [vmem:[#allocation3 + $0x50] sm:$0xf] }
  0x3e   : > { %v12793_v14 = vld [vmem:[#allocation3 + $0x360] sm:$0xf]  ;;  %v16870_v15 = vld [vmem:[#allocation3 + $0x364] sm:$0xf0]  ;;  %6876 = vmatpush.bf16.msra.mxu3 %v12546_v7  ;;  %v12538_v16 = vor.u32 %v16806_v13, %v12537_v11  ;;  %v16772_v19 = vld [vmem:[#allocation3 + $0x54] sm:$0xf0] }
  0x3f   : > { %6932 = vmatpush.bf16.msra.mxu2 %v12802_v8  ;;  %v12794_v17 = vor.u32 %v16870_v15, %v12793_v14  ;;  %v12529_v20 = vld [vmem:[#allocation3 + $0x150] sm:$0xf]  ;;  %v16804_v21 = vld [vmem:[#allocation3 + $0x154] sm:$0xf0]  ;;  %v12402_v26 = vor.u32 %v16772_v19, %v12401_v18  ;;  %v12393_v28 = vld [vmem:[#allocation3 + $0x40] sm:$0xf] }
  0x40   : > { %v12785_v22 = vld [vmem:[#allocation3 + $0x350] sm:$0xf]  ;;  %v16868_v23 = vld [vmem:[#allocation3 + $0x354] sm:$0xf0]  ;;  %v16770_v29 = vld [vmem:[#allocation3 + $0x44] sm:$0xf0]  ;;  %v12530_v30 = vor.u32 %v16804_v21, %v12529_v20 }
  0x41   : > { %v12481_v24 = vld [vmem:[#allocation3 + $0xf0] sm:$0xf]  ;;  %v16792_v25 = vld [vmem:[#allocation3 + $0xf4] sm:$0xf0]  ;;  %6849 = vmatpush.bf16.msra.mxu0 %v12410_v12  ;;  %v12786_v31 = vor.u32 %v16868_v23, %v12785_v22  ;;  %v12521_v32 = vld [vmem:[#allocation3 + $0x140] sm:$0xf]  ;;  %v12394_v39 = vor.u32 %v16770_v29, %v12393_v28 }
  0x42   : > { %v12482_v27 = vor.u32 %v16792_v25, %v12481_v24  ;;  %6877 = vmatpush.bf16.msra.mxu3 %v12538_v16  ;;  %v16802_v33 = vld [vmem:[#allocation3 + $0x144] sm:$0xf0]  ;;  %v12473_v34 = vld [vmem:[#allocation3 + $0xe0] sm:$0xf]  ;;  %v12465_v40 = vld [vmem:[#allocation3 + $0xd0] sm:$0xf] }
  0x43   : > { %6933 = vmatpush.bf16.msra.mxu2 %v12794_v17  ;;  %v12777_v35 = vld [vmem:[#allocation3 + $0x340] sm:$0xf]  ;;  %v16866_v36 = vld [vmem:[#allocation3 + $0x344] sm:$0xf0]  ;;  %v16788_v41 = vld [vmem:[#allocation3 + $0xd4] sm:$0xf0]  ;;  %v12522_v42 = vor.u32 %v16802_v33, %v12521_v32 }
  0x44   : > { %6862 = vmatpush.bf16.msra.mxu1 %v12482_v27  ;;  %v16790_v37 = vld [vmem:[#allocation3 + $0xe4] sm:$0xf0]  ;;  %s12107_s23 = sshll.u32 %s19164_s22, 1  ;;  %v12778_v43 = vor.u32 %v16866_v36, %v12777_v35  ;;  %v12385_v44 = vld [vmem:[#allocation3 + $0x30] sm:$0xf]  ;;  %v12466_v50 = vor.u32 %v16788_v41, %v12465_v40 }
  0x45   : > { %v12474_v38 = vor.u32 %v16790_v37, %v12473_v34  ;;  %6850 = vmatpush.bf16.msra.mxu0 %v12402_v26  ;;  %v16768_v45 = vld [vmem:[#allocation3 + $0x34] sm:$0xf0]  ;;  %v12513_v46 = vld [vmem:[#allocation3 + $0x130] sm:$0xf]  ;;  %v12457_v51 = vld [vmem:[#allocation3 + $0xc0] sm:$0xf] }
  0x46   : > { %6878 = vmatpush.bf16.msra.mxu3 %v12530_v30  ;;  %v16800_v47 = vld [vmem:[#allocation3 + $0x134] sm:$0xf0]  ;;  %v12769_v48 = vld [vmem:[#allocation3 + $0x330] sm:$0xf]  ;;  %v16786_v52 = vld [vmem:[#allocation3 + $0xc4] sm:$0xf0]  ;;  %v12386_v53 = vor.u32 %v16768_v45, %v12385_v44 }
  0x47   : > { %6934 = vmatpush.bf16.msra.mxu2 %v12786_v31  ;;  %v16864_v49 = vld [vmem:[#allocation3 + $0x334] sm:$0xf0]  ;;  %p19257_p6 = scmp.lt.s32.totalorder %s12107_s23, 3  ;;  %v12514_v54 = vor.u32 %v16800_v47, %v12513_v46  ;;  %v12377_v56 = vld [vmem:[#allocation3 + $0x20] sm:$0xf]  ;;  %v12458_v62 = vor.u32 %v16786_v52, %v12457_v51 }
  0x48   : > { %6863 = vmatpush.bf16.msra.mxu1 %v12474_v38  ;;  %v12770_v55 = vor.u32 %v16864_v49, %v12769_v48  ;;  %v16766_v57 = vld [vmem:[#allocation3 + $0x24] sm:$0xf0]  ;;  %v12505_v58 = vld [vmem:[#allocation3 + $0x120] sm:$0xf]  ;;  %v12449_v63 = vld [vmem:[#allocation3 + $0xb0] sm:$0xf] }
  0x49   : > { %6851 = vmatpush.bf16.msra.mxu0 %v12394_v39  ;;  %v16798_v59 = vld [vmem:[#allocation3 + $0x124] sm:$0xf0]  ;;  %v12761_v60 = vld [vmem:[#allocation3 + $0x320] sm:$0xf]  ;;  %v16784_v0 = vld [vmem:[#allocation3 + $0xb4] sm:$0xf0]  ;;  %v12378_v1 = vor.u32 %v16766_v57, %v12377_v56 }
  0x4a   : > { %6879 = vmatpush.bf16.msra.mxu3 %v12522_v42  ;;  %v16862_v61 = vld [vmem:[#allocation3 + $0x324] sm:$0xf0]  ;;  %s20851_s23 = smov (!%p19257_p6, %s12107_s23), 3  ;;  %v12506_v2 = vor.u32 %v16798_v59, %v12505_v58  ;;  %v12369_v4 = vld [vmem:[#allocation3 + $0x10] sm:$0xf]  ;;  %v12450_v10 = vor.u32 %v16784_v0, %v12449_v63 }
  0x4b   : > { %6935 = vmatpush.bf16.msra.mxu2 %v12778_v43  ;;  %v12762_v3 = vor.u32 %v16862_v61, %v12761_v60  ;;  %v16764_v5 = vld [vmem:[#allocation3 + $0x14] sm:$0xf0]  ;;  %v12497_v6 = vld [vmem:[#allocation3 + $0x110] sm:$0xf]  ;;  %v12441_v11 = vld [vmem:[#allocation3 + $0xa0] sm:$0xf] }
  0x4c   : > { %6864 = vmatpush.bf16.msra.mxu1 %v12466_v50  ;;  %v16796_v7 = vld [vmem:[#allocation3 + $0x114] sm:$0xf0]  ;;  %v12753_v8 = vld [vmem:[#allocation3 + $0x310] sm:$0xf]  ;;  %v16782_v12 = vld [vmem:[#allocation3 + $0xa4] sm:$0xf0]  ;;  %v12370_v13 = vor.u32 %v16764_v5, %v12369_v4 }
  0x4d   : > { %6852 = vmatpush.bf16.msra.mxu0 %v12386_v53  ;;  %v16860_v9 = vld [vmem:[#allocation3 + $0x314] sm:$0xf0]  ;;  %v12361_v14 = vld [vmem:[#allocation3] sm:$0xf]  ;;  %v16762_v15 = vld [vmem:[#allocation3 + $0x4] sm:$0xf0]  ;;  %v12498_v16 = vor.u32 %v16796_v7, %v12497_v6  ;;  %v12442_v24 = vor.u32 %v16782_v12, %v12441_v11 }
  0x4e   : > { %6880 = vmatpush.bf16.msra.mxu3 %v12514_v54  ;;  %s18384_s24 = smul.u32 240, %s20851_s23  ;;  %v12754_v17 = vor.u32 %v16860_v9, %v12753_v8  ;;  %v12489_v18 = vld [vmem:[#allocation3 + $0x100] sm:$0xf]  ;;  %v16794_v19 = vld [vmem:[#allocation3 + $0x104] sm:$0xf0]  ;;  %v12362_v28 = vor.u32 %v16762_v15, %v12361_v14  ;;  %s19979_s20 = sshll.u32 %s20851_s23, 3 }
  0x4f   : > { %6936 = vmatpush.bf16.msra.mxu2 %v12770_v55  ;;  %v12745_v20 = vld [vmem:[#allocation3 + $0x300] sm:$0xf]  ;;  %v16858_v21 = vld [vmem:[#allocation3 + $0x304] sm:$0xf0]  ;;  %v12609_v22 = vld [vmem:[#allocation3 + $0x1f0] sm:$0xf]  ;;  %v12490_v32 = vor.u32 %v16794_v19, %v12489_v18  ;;  %s19985_s29 = scalar_lea.vmem %s20639_s13, %s19979_s20  ;;  %s713_s19 = scalar_lea.vmem %s20640_s14, %s19979_s20 }
  0x50   : > { %6865 = vmatpush.bf16.msra.mxu1 %v12458_v62  ;;  %v16824_v23 = vld [vmem:[#allocation3 + $0x1f4] sm:$0xf0]  ;;  %v12673_v25 = vld [vmem:[#allocation3 + $0x270] sm:$0xf]  ;;  %s19271_s28 = scalar_lea.vmem %s20626_s0, %s18384_s24  ;;  %v12746_v33 = vor.u32 %v16858_v21, %v12745_v20  ;;  %v12601_v34 = vld [vmem:[#allocation3 + $0x1e0] sm:$0xf]  ;;  %s694_s25 = scalar_lea.vmem %s20627_s1, %s19979_s20 }
  0x51   : > { %6853 = vmatpush.bf16.msra.mxu0 %v12378_v1  ;;  %v16840_v26 = vld [vmem:[#allocation3 + $0x274] sm:$0xf0]  ;;  %v13057_v27 = vld [vmem:[#allocation3 + $0x570] sm:$0xf]  ;;  %v12610_v35 = vor.u32 %v16824_v23, %v12609_v22  ;;  %v16822_v37 = vld [vmem:[#allocation3 + $0x1e4] sm:$0xf0]  ;;  %s20266_s17 = scalar_lea.vmem %s20641_s15, %s19979_s20 }
  0x52   : > { %6881 = vmatpush.bf16.msra.mxu3 %v12506_v2  ;;  %v16936_v29 = vld [vmem:[#allocation3 + $0x574] sm:$0xf0]  ;;  %v12433_v30 = vld [vmem:[#allocation3 + $0x90] sm:$0xf]  ;;  %v12674_v36 = vor.u32 %v16840_v26, %v12673_v25  ;;  %v12665_v38 = vld [vmem:[#allocation3 + $0x260] sm:$0xf]  ;;  %v12602_v51 = vor.u32 %v16822_v37, %v12601_v34 }
  0x53   : > { %6937 = vmatpush.bf16.msra.mxu2 %v12762_v3  ;;  %v16780_v31 = vld [vmem:[#allocation3 + $0x94] sm:$0xf0]  ;;  %v16838_v39 = vld [vmem:[#allocation3 + $0x264] sm:$0xf0]  ;;  %v13058_v40 = vor.u32 %v16936_v29, %v13057_v27  ;;  %v13049_v41 = vld [vmem:[#allocation3 + $0x560] sm:$0xf] }
  0x54   : > { %6866 = vmatpush.bf16.msra.mxu1 %v12450_v10  ;;  %v16934_v42 = vld [vmem:[#allocation3 + $0x564] sm:$0xf0]  ;;  %v12434_v43 = vor.u32 %v16780_v31, %v12433_v30  ;;  %v12425_v45 = vld [vmem:[#allocation3 + $0x80] sm:$0xf]  ;;  %v16732_v47 = vld [vmem:[%s19271_s28 + $0xf4] sm:$0xf0]  ;;  %v12666_v52 = vor.u32 %v16838_v39, %v12665_v38 }
  0x55   : > { %6854 = vmatpush.bf16.msra.mxu0 %v12370_v13  ;;  %v12129_v44 = vld [vmem:[%s19271_s28 + $0x8] sm:$0xf]  ;;  %v12737_v48 = vld [vmem:[#allocation3 + $0x2f0] sm:$0xf]  ;;  %v16856_v49 = vld [vmem:[#allocation3 + $0x2f4] sm:$0xf0]  ;;  %v13050_v54 = vor.u32 %v16934_v42, %v13049_v41 }
  0x56   : > { %6882 = vmatpush.bf16.msra.mxu3 %v12498_v16  ;;  %v16778_v46 = vld [vmem:[#allocation3 + $0x84] sm:$0xf0]  ;;  %v19275_v50 = vor.u32 %v16732_v47, %v12129_v44  ;;  %v12593_v53 = vld [vmem:[#allocation3 + $0x1d0] sm:$0xf]  ;;  %v16820_v55 = vld [vmem:[#allocation3 + $0x1d4] sm:$0xf0]  ;;  %v12738_v61 = vor.u32 %v16856_v49, %v12737_v48 }
  0x57   : > { %6938 = vmatpush.bf16.msra.mxu2 %v12754_v17  ;;  %v12657_v56 = vld [vmem:[#allocation3 + $0x250] sm:$0xf]  ;;  %v16836_v57 = vld [vmem:[#allocation3 + $0x254] sm:$0xf0]  ;;  %v12426_v58 = vor.u32 %v16778_v46, %v12425_v45  ;;  %v12729_v62 = vld [vmem:[#allocation3 + $0x2e0] sm:$0xf]  ;;  %v12594_v1 = vor.u32 %v16820_v55, %v12593_v53 }
  0x58   : > { %6867 = vmatpush.bf16.msra.mxu1 %v12442_v24  ;;  %v13041_v59 = vld [vmem:[#allocation3 + $0x550] sm:$0xf]  ;;  %v16932_v60 = vld [vmem:[#allocation3 + $0x554] sm:$0xf0]  ;;  %v16854_v63 = vld [vmem:[#allocation3 + $0x2e4] sm:$0xf0]  ;;  %v12658_v2 = vor.u32 %v16836_v57, %v12657_v56 }
  0x59   : > { %6855 = vmatpush.bf16.msra.mxu0 %v12362_v28  ;;  %v12121_v0 = vld [vmem:[%s19271_s28] sm:$0xf]  ;;  %v16818_v4 = vld [vmem:[#allocation3 + $0x1c4] sm:$0xf0]  ;;  %v16731_v5 = vld [vmem:[%s19271_s28 + $0xec] sm:$0xf0]  ;;  %v13042_v6 = vor.u32 %v16932_v60, %v13041_v59  ;;  %v12730_v12 = vor.u32 %v16854_v63, %v12729_v62 }
  0x5a   : > { %6883 = vmatpush.bf16.msra.mxu3 %v12490_v32  ;;  %v12585_v3 = vld [vmem:[#allocation3 + $0x1c0] sm:$0xf]  ;;  %v16834_v8 = vld [vmem:[#allocation3 + $0x244] sm:$0xf0]  ;;  %v19280_v10 = vor.u32 %v16731_v5, %v12121_v0  ;;  %v16701_v13 = vld [vmem:[%s19271_s28 + $0x4] sm:$0xf] }
  0x5b   : > { %6939 = vmatpush.bf16.msra.mxu2 %v12746_v33  ;;  %v12649_v7 = vld [vmem:[#allocation3 + $0x240] sm:$0xf]  ;;  %v16930_v11 = vld [vmem:[#allocation3 + $0x544] sm:$0xf0]  ;;  %v12123_v14 = vld [vmem:[%s19271_s28 + $0xf0] sm:$0xf0]  ;;  %v12586_v18 = vor.u32 %v16818_v4, %v12585_v3 }
  0x5c   : > { %6868 = vmatpush.bf16.msra.mxu1 %v12434_v43  ;;  %v13033_v9 = vld [vmem:[#allocation3 + $0x540] sm:$0xf]  ;;  %v12721_v15 = vld [vmem:[#allocation3 + $0x2d0] sm:$0xf]  ;;  %v16852_v16 = vld [vmem:[#allocation3 + $0x2d4] sm:$0xf0]  ;;  %6856 = vmatmul.bf16.vlgmr.msra.gmra.mxu0 %v19280_v10  ;;  %v19285_v17 = vor.u32 %v16701_v13, %v12123_v14  ;;  %v12650_v19 = vor.u32 %v16834_v8, %v12649_v7 }
  0x5d   : > { %6904 = vmatpush.bf16.msrb.mxu0 %v12674_v36  ;;  %6884 = vmatmul.bf16.vlgmr.msra.gmra.mxu3 %v19275_v50  ;;  %v12577_v20 = vld [vmem:[#allocation3 + $0x1b0] sm:$0xf]  ;;  %v16816_v21 = vld [vmem:[#allocation3 + $0x1b4] sm:$0xf0]  ;;  %v13034_v22 = vor.u32 %v16930_v11, %v13033_v9  ;;  %v12722_v28 = vor.u32 %v16852_v16, %v12721_v15  ;;  %v16734_v29 = vld [vmem:[%s19271_s28 + $0x104] sm:$0xf0] }
  0x5e   : > { %6890 = vmatpush.bf16.msrb.mxu3 %v12610_v35  ;;  %v12641_v23 = vld [vmem:[#allocation3 + $0x230] sm:$0xf]  ;;  %v16832_v24 = vld [vmem:[#allocation3 + $0x234] sm:$0xf0]  ;;  %v12713_v30 = vld [vmem:[#allocation3 + $0x2c0] sm:$0xf]  ;;  %v12578_v33 = vor.u32 %v16816_v21, %v12577_v20 }
  0x5f   : > { %6988 = vmatpush.bf16.msrb.mxu2 %v13058_v40  ;;  %v12145_v25 = vld [vmem:[%s19271_s28 + $0x18] sm:$0xf]  ;;  %v13025_v26 = vld [vmem:[#allocation3 + $0x530] sm:$0xf]  ;;  %v16850_v31 = vld [vmem:[#allocation3 + $0x2c4] sm:$0xf0]  ;;  %v12642_v34 = vor.u32 %v16832_v24, %v12641_v23 }
  0x60   : > { %6869 = vmatpush.bf16.msra.mxu1 %v12426_v58  ;;  %v16928_v27 = vld [vmem:[#allocation3 + $0x534] sm:$0xf0]  ;;  %v19290_v32 = vor.u32 %v16734_v29, %v12145_v25  ;;  %v12569_v35 = vld [vmem:[#allocation3 + $0x1a0] sm:$0xf]  ;;  %v16814_v37 = vld [vmem:[#allocation3 + $0x1a4] sm:$0xf0]  ;;  %v12714_v42 = vor.u32 %v16850_v31, %v12713_v30 }
  0x61   : > { %6905 = vmatpush.bf16.msrb.mxu0 %v12666_v52  ;;  %v13026_v36 = vor.u32 %v16928_v27, %v13025_v26  ;;  %v12633_v38 = vld [vmem:[#allocation3 + $0x220] sm:$0xf]  ;;  %v16830_v39 = vld [vmem:[#allocation3 + $0x224] sm:$0xf0]  ;;  %v12705_v43 = vld [vmem:[#allocation3 + $0x2b0] sm:$0xf]  ;;  %v12570_v45 = vor.u32 %v16814_v37, %v12569_v35 }
  0x62   : > { %6891 = vmatpush.bf16.msrb.mxu3 %v12602_v51  ;;  %v13017_v40 = vld [vmem:[#allocation3 + $0x520] sm:$0xf]  ;;  %v16926_v41 = vld [vmem:[#allocation3 + $0x524] sm:$0xf0]  ;;  %6940 = vmatmul.bf16.vlgmr.msra.gmra.mxu2 %v19290_v32  ;;  %v16848_v44 = vld [vmem:[#allocation3 + $0x2b4] sm:$0xf0]  ;;  %v12634_v46 = vor.u32 %v16830_v39, %v12633_v38 }
  0x63   : > { %6989 = vmatpush.bf16.msrb.mxu2 %v13050_v54  ;;  %6870 = vmatmul.bf16.vlgmr.msra.gmra.mxu1 %v19285_v17  ;;  %v12561_v47 = vld [vmem:[#allocation3 + $0x190] sm:$0xf]  ;;  %v13018_v48 = vor.u32 %v16926_v41, %v13017_v40  ;;  %v16812_v49 = vld [vmem:[#allocation3 + $0x194] sm:$0xf0]  ;;  %v12706_v55 = vor.u32 %v16848_v44, %v12705_v43  ;;  %v12553_v56 = vld [vmem:[#allocation3 + $0x180] sm:$0xf] }
  0x64   : > { %6918 = vmatpush.bf16.msrb.mxu1 %v12738_v61  ;;  %v12625_v51 = vld [vmem:[#allocation3 + $0x210] sm:$0xf]  ;;  %v16828_v52 = vld [vmem:[#allocation3 + $0x214] sm:$0xf0]  ;;  %v12697_v57 = vld [vmem:[#allocation3 + $0x2a0] sm:$0xf]  ;;  %v12562_v59 = vor.u32 %v16812_v49, %v12561_v47 }
  0x65   : > { %6906 = vmatpush.bf16.msrb.mxu0 %v12658_v2  ;;  %v13009_v53 = vld [vmem:[#allocation3 + $0x510] sm:$0xf]  ;;  %v16924_v54 = vld [vmem:[#allocation3 + $0x514] sm:$0xf0]  ;;  %v16846_v58 = vld [vmem:[#allocation3 + $0x2a4] sm:$0xf0]  ;;  %v12626_v60 = vor.u32 %v16828_v52, %v12625_v51 }
  0x66   : > { %6892 = vmatpush.bf16.msrb.mxu3 %v12594_v1  ;;  %v16810_v61 = vld [vmem:[#allocation3 + $0x184] sm:$0xf0]  ;;  %v12617_v62 = vld [vmem:[#allocation3 + $0x200] sm:$0xf]  ;;  %v13010_v0 = vor.u32 %v16924_v54, %v13009_v53  ;;  %v12865_v3 = vld [vmem:[#allocation3 + $0x3f0] sm:$0xf]  ;;  %v12698_v7 = vor.u32 %v16846_v58, %v12697_v57 }
  0x67   : > { %6990 = vmatpush.bf16.msrb.mxu2 %v13042_v6  ;;  %v16826_v63 = vld [vmem:[#allocation3 + $0x204] sm:$0xf0]  ;;  %v13001_v1 = vld [vmem:[#allocation3 + $0x500] sm:$0xf]  ;;  %v16888_v4 = vld [vmem:[#allocation3 + $0x3f4] sm:$0xf0] }
  0x68   : > { %6919 = vmatpush.bf16.msrb.mxu1 %v12730_v12  ;;  %v16922_v2 = vld [vmem:[#allocation3 + $0x504] sm:$0xf0]  ;;  %v12929_v5 = vld [vmem:[#allocation3 + $0x470] sm:$0xf]  ;;  %v16904_v6 = vld [vmem:[#allocation3 + $0x474] sm:$0xf0]  ;;  %v12554_v12 = vor.u32 %v16810_v61, %v12553_v56  ;;  %v12618_v13 = vor.u32 %v16826_v63, %v12617_v62 }
  0x69   : > { %6907 = vmatpush.bf16.msrb.mxu0 %v12650_v19  ;;  %v13313_v8 = vld [vmem:[#allocation3 + $0x770] sm:$0xf]  ;;  %v17000_v9 = vld [vmem:[#allocation3 + $0x774] sm:$0xf0]  ;;  %v16702_v11 = vld [vmem:[%s19271_s28 + $0xc] sm:$0xf]  ;;  %v12866_v19 = vor.u32 %v16888_v4, %v12865_v3 }
  0x6a   : > { %6893 = vmatpush.bf16.msrb.mxu3 %v12586_v18  ;;  %v12131_v14 = vld [vmem:[%s19271_s28 + $0xf8] sm:$0xf0]  ;;  %v12689_v15 = vld [vmem:[#allocation3 + $0x290] sm:$0xf]  ;;  %v16844_v16 = vld [vmem:[#allocation3 + $0x294] sm:$0xf0]  ;;  %v13002_v18 = vor.u32 %v16922_v2, %v13001_v1  ;;  %v13314_v23 = vor.u32 %v17000_v9, %v13313_v8 }
  0x6b   : > { %6991 = vmatpush.bf16.msrb.mxu2 %v13034_v22  ;;  %v12137_v20 = vld [vmem:[%s19271_s28 + $0x10] sm:$0xf]  ;;  %v16733_v21 = vld [vmem:[%s19271_s28 + $0xfc] sm:$0xf0]  ;;  %v12930_v22 = vor.u32 %v16904_v6, %v12929_v5  ;;  %v16886_v25 = vld [vmem:[#allocation3 + $0x3e4] sm:$0xf0]  ;;  %v19297_v27 = vor.u32 %v16702_v11, %v12131_v14  ;;  %v12690_v31 = vor.u32 %v16844_v16, %v12689_v15 }
  0x6c   : > { %6920 = vmatpush.bf16.msrb.mxu1 %v12722_v28  ;;  %v12857_v24 = vld [vmem:[#allocation3 + $0x3e0] sm:$0xf]  ;;  %v16902_v28 = vld [vmem:[#allocation3 + $0x464] sm:$0xf0]  ;;  %v19299_v35 = vor.u32 %v16733_v21, %v12137_v20  ;;  %v12993_v37 = vld [vmem:[#allocation3 + $0x4f0] sm:$0xf] }
  0x6d   : > { %6908 = vmatpush.bf16.msrb.mxu0 %v12642_v34  ;;  %v12921_v26 = vld [vmem:[#allocation3 + $0x460] sm:$0xf]  ;;  %20703 = vst [vmem:[#allocation26_spill] sm:$0xff] %v19297_v27  ;;  %v16998_v30 = vld [vmem:[#allocation3 + $0x764] sm:$0xf0]  ;;  %s12111_s24 = sshll.u32 %s19164_s22, 4 }
  0x6e   : > { %6894 = vmatpush.bf16.msrb.mxu3 %v12578_v33  ;;  %v13305_v29 = vld [vmem:[#allocation3 + $0x760] sm:$0xf]  ;;  %v16842_v34 = vld [vmem:[#allocation3 + $0x284] sm:$0xf0]  ;;  %20704 = vst [vmem:[#allocation27_spill] sm:$0xff] %v19299_v35  ;;  %v12922_v39 = vor.u32 %v16902_v28, %v12921_v26  ;;  %p697_p7 = scmp.lt.s32.totalorder %s12111_s24, 31 }
  0x6f   : > { %6992 = vmatpush.bf16.msrb.mxu2 %v13026_v36  ;;  %v12681_v33 = vld [vmem:[#allocation3 + $0x280] sm:$0xf]  ;;  %v12858_v36 = vor.u32 %v16886_v25, %v12857_v24  ;;  %v16920_v38 = vld [vmem:[#allocation3 + $0x4f4] sm:$0xf0]  ;;  %v13306_v40 = vor.u32 %v16998_v30, %v13305_v29  ;;  %v12849_v41 = vld [vmem:[#allocation3 + $0x3d0] sm:$0xf] }
  0x70   : > { %6921 = vmatpush.bf16.msrb.mxu1 %v12714_v42  ;;  %v16884_v42 = vld [vmem:[#allocation3 + $0x3d4] sm:$0xf0]  ;;  %v12913_v43 = vld [vmem:[#allocation3 + $0x450] sm:$0xf]  ;;  %v12682_v47 = vor.u32 %v16842_v34, %v12681_v33  ;;  %v16703_v49 = vld [vmem:[%s19271_s28 + $0x14] sm:$0xf] }
  0x71   : > { %6909 = vmatpush.bf16.msrb.mxu0 %v12634_v46  ;;  %v16900_v44 = vld [vmem:[#allocation3 + $0x454] sm:$0xf0]  ;;  %v12139_v51 = vld [vmem:[%s19271_s28 + $0x100] sm:$0xf0]  ;;  %v12841_v52 = vld [vmem:[#allocation3 + $0x3c0] sm:$0xf]  ;;  %v12850_v53 = vor.u32 %v16884_v42, %v12849_v41 }
  0x72   : > { %6895 = vmatpush.bf16.msrb.mxu3 %v12570_v45  ;;  %v13297_v45 = vld [vmem:[#allocation3 + $0x750] sm:$0xf]  ;;  %v16996_v46 = vld [vmem:[#allocation3 + $0x754] sm:$0xf0]  ;;  %v12985_v54 = vld [vmem:[#allocation3 + $0x4e0] sm:$0xf]  ;;  %v12914_v57 = vor.u32 %v16900_v44, %v12913_v43  ;;  %v19307_v62 = vor.u32 %v16703_v49, %v12139_v51 }
  0x73   : > { %6993 = vmatpush.bf16.msrb.mxu2 %v13018_v48  ;;  %v12994_v48 = vor.u32 %v16920_v38, %v12993_v37  ;;  %v12161_v56 = vld [vmem:[%s19271_s28 + $0x28] sm:$0xf]  ;;  %v13298_v58 = vor.u32 %v16996_v46, %v13297_v45  ;;  %v16736_v61 = vld [vmem:[%s19271_s28 + $0x114] sm:$0xf0]  ;;  %v12977_v5 = vld [vmem:[#allocation3 + $0x4d0] sm:$0xf] }
  0x74   : > { %6922 = vmatpush.bf16.msrb.mxu1 %v12706_v55  ;;  %v16918_v55 = vld [vmem:[#allocation3 + $0x4e4] sm:$0xf0]  ;;  %20705 = vst [vmem:[#allocation28_spill] sm:$0xff] %v19307_v62  ;;  %v19309_v2 = vor.u32 %v16736_v61, %v12161_v56  ;;  %v16916_v6 = vld [vmem:[#allocation3 + $0x4d4] sm:$0xf0]  ;;  %s20853_s24 = smov (!%p697_p7, %s12111_s24), 31 }
  0x75   : > { %6910 = vmatpush.bf16.msrb.mxu0 %v12626_v60  ;;  %v12905_v60 = vld [vmem:[#allocation3 + $0x440] sm:$0xf]  ;;  %v16898_v63 = vld [vmem:[#allocation3 + $0x444] sm:$0xf0]  ;;  %v12986_v3 = vor.u32 %v16918_v55, %v12985_v54  ;;  %v12833_v9 = vld [vmem:[#allocation3 + $0x3b0] sm:$0xf]  ;;  %v12978_v16 = vor.u32 %v16916_v6, %v12977_v5 }
  0x76   : > { %6896 = vmatpush.bf16.msrb.mxu3 %v12562_v59  ;;  %v16882_v59 = vld [vmem:[#allocation3 + $0x3c4] sm:$0xf0]  ;;  %20706 = vst [vmem:[#allocation29_spill] sm:$0xff] %v19309_v2  ;;  %v16880_v11 = vld [vmem:[#allocation3 + $0x3b4] sm:$0xf0]  ;;  %s18385_s26 = smul.u32 48, %s20853_s24 }
  0x77   : > { %6994 = vmatpush.bf16.msrb.mxu2 %v13010_v0  ;;  %v13289_v0 = vld [vmem:[#allocation3 + $0x740] sm:$0xf]  ;;  %v16994_v1 = vld [vmem:[#allocation3 + $0x744] sm:$0xf0]  ;;  %v12842_v4 = vor.u32 %v16882_v59, %v12841_v52  ;;  %v13281_v14 = vld [vmem:[#allocation3 + $0x730] sm:$0xf] }
  0x78   : > { %6923 = vmatpush.bf16.msrb.mxu1 %v12698_v7  ;;  %v12906_v7 = vor.u32 %v16898_v63, %v12905_v60  ;;  %v13290_v8 = vor.u32 %v16994_v1, %v13289_v0  ;;  %v16992_v15 = vld [vmem:[#allocation3 + $0x734] sm:$0xf0]  ;;  %v16914_v20 = vld [vmem:[#allocation3 + $0x4c4] sm:$0xf0]  ;;  %v12889_v25 = vld [vmem:[#allocation3 + $0x420] sm:$0xf] }
  0x79   : > { %6911 = vmatpush.bf16.msrb.mxu0 %v12618_v13  ;;  %v16896_v13 = vld [vmem:[#allocation3 + $0x434] sm:$0xf0]  ;;  %v16878_v24 = vld [vmem:[#allocation3 + $0x3a4] sm:$0xf0]  ;;  %v13273_v28 = vld [vmem:[#allocation3 + $0x720] sm:$0xf] }
  0x7a   : > { %6897 = vmatpush.bf16.msrb.mxu3 %v12554_v12  ;;  %v12897_v12 = vld [vmem:[#allocation3 + $0x430] sm:$0xf]  ;;  %v16894_v26 = vld [vmem:[#allocation3 + $0x424] sm:$0xf0]  ;;  %v16912_v34 = vld [vmem:[#allocation3 + $0x4b4] sm:$0xf0] }
  0x7b   : > { %6995 = vmatpush.bf16.msrb.mxu2 %v13002_v18  ;;  %v12834_v18 = vor.u32 %v16880_v11, %v12833_v9  ;;  %v12898_v21 = vor.u32 %v16896_v13, %v12897_v12  ;;  %v16990_v29 = vld [vmem:[#allocation3 + $0x724] sm:$0xf0]  ;;  %v12961_v33 = vld [vmem:[#allocation3 + $0x4b0] sm:$0xf]  ;;  %v16892_v41 = vld [vmem:[#allocation3 + $0x414] sm:$0xf0] }
  0x7c   : > { %6924 = vmatpush.bf16.msrb.mxu1 %v12690_v31  ;;  %6912 = vmatmul.bf16.vlgmr.msrb.gmra.mxu0 %v19299_v35  ;;  %v13274_v37 = vor.u32 %v16990_v29, %v13273_v28  ;;  %v12817_v38 = vld [vmem:[#allocation3 + $0x390] sm:$0xf]  ;;  %v16988_v43 = vld [vmem:[#allocation3 + $0x714] sm:$0xf0]  ;;  %v12962_v44 = vor.u32 %v16912_v34, %v12961_v33  ;;  %v12809_v45 = vld [vmem:[#allocation3 + $0x380] sm:$0xf] }
  0x7d   : > { %6960 = vmatpush.bf16.msra.mxu0 %v12930_v22  ;;  %6898 = vmatmul.bf16.vlgmr.msrb.gmra.mxu3 %v19297_v27  ;;  %v13282_v22 = vor.u32 %v16992_v15, %v13281_v14  ;;  %v13265_v42 = vld [vmem:[#allocation3 + $0x710] sm:$0xf]  ;;  %v16874_v46 = vld [vmem:[#allocation3 + $0x384] sm:$0xf0]  ;;  %v12953_v49 = vld [vmem:[#allocation3 + $0x4a0] sm:$0xf] }
  0x7e   : > { %6946 = vmatpush.bf16.msra.mxu3 %v12866_v19  ;;  %6996 = vmatmul.bf16.vlgmr.msrb.gmra.mxu2 %v19309_v2  ;;  %v12969_v19 = vld [vmem:[#allocation3 + $0x4c0] sm:$0xf]  ;;  %v16910_v51 = vld [vmem:[#allocation3 + $0x4a4] sm:$0xf0]  ;;  %v13185_v59 = vld [vmem:[#allocation3 + $0x670] sm:$0xf]  ;;  %v12810_v1 = vor.u32 %v16874_v46, %v12809_v45 }
  0x7f   : > { %7044 = vmatpush.bf16.msra.mxu2 %v13314_v23  ;;  %v12825_v23 = vld [vmem:[#allocation3 + $0x3a0] sm:$0xf]  ;;  %v12970_v30 = vor.u32 %v16914_v20, %v12969_v19  ;;  %v16890_v54 = vld [vmem:[#allocation3 + $0x404] sm:$0xf0]  ;;  %v16968_v60 = vld [vmem:[#allocation3 + $0x674] sm:$0xf0]  ;;  %v12954_v0 = vor.u32 %v16910_v51, %v12953_v49 }
  0x80   : > { %6925 = vmatpush.bf16.msrb.mxu1 %v12682_v47  ;;  %v12826_v31 = vor.u32 %v16878_v24, %v12825_v23  ;;  %v13257_v55 = vld [vmem:[#allocation3 + $0x700] sm:$0xf]  ;;  %v16986_v56 = vld [vmem:[#allocation3 + $0x704] sm:$0xf0]  ;;  %v13569_v61 = vld [vmem:[#allocation3 + $0x970] sm:$0xf]  ;;  %v13186_v13 = vor.u32 %v16968_v60, %v13185_v59 }
  0x81   : > { %6961 = vmatpush.bf16.msra.mxu0 %v12922_v39  ;;  %v16876_v39 = vld [vmem:[#allocation3 + $0x394] sm:$0xf0]  ;;  %v12945_v5 = vld [vmem:[#allocation3 + $0x490] sm:$0xf]  ;;  %v12153_v9 = vld [vmem:[%s19271_s28 + $0x20] sm:$0xf] }
  0x82   : > { %6947 = vmatpush.bf16.msra.mxu3 %v12858_v36  ;;  %v12890_v36 = vor.u32 %v16894_v26, %v12889_v25  ;;  %v12818_v47 = vor.u32 %v16876_v39, %v12817_v38  ;;  %v17064_v63 = vld [vmem:[#allocation3 + $0x974] sm:$0xf0]  ;;  %v16735_v11 = vld [vmem:[%s19271_s28 + $0x10c] sm:$0xf0]  ;;  %v13113_v14 = vld [vmem:[#allocation3 + $0x5e0] sm:$0xf] }
  0x83   : > { %7045 = vmatpush.bf16.msra.mxu2 %v13306_v40  ;;  %6926 = vmatmul.bf16.vlgmr.msrb.gmra.mxu1 %v19307_v62  ;;  %v12881_v40 = vld [vmem:[#allocation3 + $0x410] sm:$0xf]  ;;  %v13570_v15 = vor.u32 %v17064_v63, %v13569_v61  ;;  %v13177_v19 = vld [vmem:[#allocation3 + $0x660] sm:$0xf]  ;;  %v16966_v20 = vld [vmem:[#allocation3 + $0x664] sm:$0xf0]  ;;  %v19319_v24 = vor.u32 %v16735_v11, %v12153_v9 }
  0x84   : > { %6974 = vmatpush.bf16.msra.mxu1 %v12994_v48  ;;  %v12873_v48 = vld [vmem:[#allocation3 + $0x400] sm:$0xf]  ;;  %v12882_v52 = vor.u32 %v16892_v41, %v12881_v40  ;;  %v12177_v25 = vld [vmem:[%s19271_s28 + $0x38] sm:$0xf]  ;;  %v13105_v26 = vld [vmem:[#allocation3 + $0x5d0] sm:$0xf]  ;;  %v13178_v33 = vor.u32 %v16966_v20, %v13177_v19 }
  0x85   : > { %6962 = vmatpush.bf16.msra.mxu0 %v12914_v57  ;;  %v13121_v57 = vld [vmem:[#allocation3 + $0x5f0] sm:$0xf]  ;;  %v12874_v6 = vor.u32 %v16890_v54, %v12873_v48  ;;  %20708 = vst [vmem:[#allocation31_spill] sm:$0xff] %v19319_v24  ;;  %v12937_v28 = vld [vmem:[#allocation3 + $0x480] sm:$0xf] }
  0x86   : > { %6948 = vmatpush.bf16.msra.mxu3 %v12850_v53  ;;  %v13266_v53 = vor.u32 %v16988_v43, %v13265_v42  ;;  %v16906_v29 = vld [vmem:[#allocation3 + $0x484] sm:$0xf0]  ;;  %v16948_v34 = vld [vmem:[#allocation3 + $0x5d4] sm:$0xf0]  ;;  %v13169_v40 = vld [vmem:[#allocation3 + $0x650] sm:$0xf] }
  0x87   : > { %7046 = vmatpush.bf16.msra.mxu2 %v13298_v58  ;;  %v16952_v58 = vld [vmem:[#allocation3 + $0x5f4] sm:$0xf0]  ;;  %v13553_v42 = vld [vmem:[#allocation3 + $0x950] sm:$0xf]  ;;  %v16705_v45 = vld [vmem:[%s19271_s28 + $0x24] sm:$0xf]  ;;  %v13106_v48 = vor.u32 %v16948_v34, %v13105_v26 }
  0x88   : > { %6975 = vmatpush.bf16.msra.mxu1 %v12986_v3  ;;  %v16704_v3 = vld [vmem:[%s19271_s28 + $0x1c] sm:$0xf]  ;;  %v13122_v12 = vor.u32 %v16952_v58, %v13121_v57  ;;  %v16964_v41 = vld [vmem:[#allocation3 + $0x654] sm:$0xf0]  ;;  %v12155_v46 = vld [vmem:[%s19271_s28 + $0x110] sm:$0xf0] }
  0x89   : > { %6963 = vmatpush.bf16.msra.mxu0 %v12906_v7  ;;  %v13258_v7 = vor.u32 %v16986_v56, %v13257_v55  ;;  %v17060_v43 = vld [vmem:[#allocation3 + $0x954] sm:$0xf0]  ;;  %v13170_v49 = vor.u32 %v16964_v41, %v13169_v40  ;;  %v13097_v51 = vld [vmem:[#allocation3 + $0x5c0] sm:$0xf]  ;;  %v19330_v55 = vor.u32 %v16705_v45, %v12155_v46  ;;  %v16946_v56 = vld [vmem:[#allocation3 + $0x5c4] sm:$0xf0] }
  0x8a   : > { %6949 = vmatpush.bf16.msra.mxu3 %v12842_v4  ;;  %v12147_v4 = vld [vmem:[%s19271_s28 + $0x108] sm:$0xf0]  ;;  %v13554_v54 = vor.u32 %v17060_v43, %v13553_v42  ;;  %v13161_v57 = vld [vmem:[#allocation3 + $0x640] sm:$0xf]  ;;  %v16962_v58 = vld [vmem:[#allocation3 + $0x644] sm:$0xf0]  ;;  %v13098_v63 = vor.u32 %v16946_v56, %v13097_v51 }
  0x8b   : > { %7047 = vmatpush.bf16.msra.mxu2 %v13290_v8  ;;  %v16908_v8 = vld [vmem:[#allocation3 + $0x494] sm:$0xf0]  ;;  %20710 = vst [vmem:[#allocation33_spill] sm:$0xff] %v19330_v55  ;;  %v13545_v59 = vld [vmem:[#allocation3 + $0x940] sm:$0xf] }
  0x8c   : > { %6976 = vmatpush.bf16.msra.mxu1 %v12978_v16  ;;  %v19317_v16 = vor.u32 %v16704_v3, %v12147_v4  ;;  %v12946_v23 = vor.u32 %v16908_v8, %v12945_v5  ;;  %v17058_v60 = vld [vmem:[#allocation3 + $0x944] sm:$0xf0]  ;;  %v13233_v3 = vld [vmem:[#allocation3 + $0x6d0] sm:$0xf]  ;;  %v16980_v4 = vld [vmem:[#allocation3 + $0x6d4] sm:$0xf0] }
  0x8d   : > { %6964 = vmatpush.bf16.msra.mxu0 %v12898_v21  ;;  %v13561_v21 = vld [vmem:[#allocation3 + $0x960] sm:$0xf]  ;;  %v13546_v5 = vor.u32 %v17058_v60, %v13545_v59  ;;  %v16960_v8 = vld [vmem:[#allocation3 + $0x634] sm:$0xf0]  ;;  %v13537_v9 = vld [vmem:[#allocation3 + $0x930] sm:$0xf] }
  0x8e   : > { %6950 = vmatpush.bf16.msra.mxu3 %v12834_v18  ;;  %20707 = vst [vmem:[#allocation30_spill] sm:$0xff] %v19317_v16  ;;  %v16950_v18 = vld [vmem:[#allocation3 + $0x5e4] sm:$0xf0]  ;;  %v17056_v11 = vld [vmem:[#allocation3 + $0x934] sm:$0xf0] }
  0x8f   : > { %7048 = vmatpush.bf16.msra.mxu2 %v13282_v22  ;;  %v17062_v22 = vld [vmem:[#allocation3 + $0x964] sm:$0xf0]  ;;  %v13538_v20 = vor.u32 %v17056_v11, %v13537_v9  ;;  %v16976_v34 = vld [vmem:[#allocation3 + $0x6b4] sm:$0xf0]  ;;  %v13521_v41 = vld [vmem:[#allocation3 + $0x910] sm:$0xf] }
  0x90   : > { %6977 = vmatpush.bf16.msra.mxu1 %v12970_v30  ;;  %v16738_v30 = vld [vmem:[%s19271_s28 + $0x124] sm:$0xf0]  ;;  %v13562_v39 = vor.u32 %v17062_v22, %v13561_v21  ;;  %v13145_v22 = vld [vmem:[#allocation3 + $0x620] sm:$0xf]  ;;  %v16956_v40 = vld [vmem:[#allocation3 + $0x614] sm:$0xf0] }
  0x91   : > { %6965 = vmatpush.bf16.msra.mxu0 %v12890_v36  ;;  %v13249_v36 = vld [vmem:[#allocation3 + $0x6f0] sm:$0xf]  ;;  %v19323_v38 = vor.u32 %v16738_v30, %v12177_v25  ;;  %v16978_v19 = vld [vmem:[#allocation3 + $0x6c4] sm:$0xf0]  ;;  %v13529_v25 = vld [vmem:[#allocation3 + $0x920] sm:$0xf] }
  0x92   : > { %6951 = vmatpush.bf16.msra.mxu3 %v12826_v31  ;;  %v13114_v31 = vor.u32 %v16950_v18, %v13113_v14  ;;  %v13225_v18 = vld [vmem:[#allocation3 + $0x6c0] sm:$0xf]  ;;  %v16942_v21 = vld [vmem:[#allocation3 + $0x5a4] sm:$0xf0]  ;;  %v17052_v42 = vld [vmem:[#allocation3 + $0x914] sm:$0xf0] }
  0x93   : > { %7049 = vmatpush.bf16.msra.mxu2 %v13274_v37  ;;  %v16984_v37 = vld [vmem:[#allocation3 + $0x6f4] sm:$0xf0]  ;;  %20709 = vst [vmem:[#allocation32_spill] sm:$0xff] %v19323_v38  ;;  %v17054_v26 = vld [vmem:[#allocation3 + $0x924] sm:$0xf0] }
  0x94   : > { %6978 = vmatpush.bf16.msra.mxu1 %v12962_v44  ;;  %v12938_v44 = vor.u32 %v16906_v29, %v12937_v28  ;;  %v13226_v28 = vor.u32 %v16978_v19, %v13225_v18  ;;  %v16938_v45 = vld [vmem:[#allocation3 + $0x584] sm:$0xf0]  ;;  %v13129_v46 = vld [vmem:[#allocation3 + $0x600] sm:$0xf]  ;;  %v13441_v59 = vld [vmem:[#allocation3 + $0x870] sm:$0xf] }
  0x95   : > { %6966 = vmatpush.bf16.msra.mxu0 %v12882_v52  ;;  %v13241_v52 = vld [vmem:[#allocation3 + $0x6e0] sm:$0xf]  ;;  %v17050_v56 = vld [vmem:[#allocation3 + $0x904] sm:$0xf0]  ;;  %v17032_v60 = vld [vmem:[#allocation3 + $0x874] sm:$0xf0] }
  0x96   : > { %6952 = vmatpush.bf16.msra.mxu3 %v12818_v47  ;;  %v13250_v47 = vor.u32 %v16984_v37, %v13249_v36  ;;  %v13530_v36 = vor.u32 %v17054_v26, %v13529_v25  ;;  %v16940_v37 = vld [vmem:[#allocation3 + $0x594] sm:$0xf0]  ;;  %v13513_v51 = vld [vmem:[#allocation3 + $0x900] sm:$0xf]  ;;  %v17126_v26 = vld [vmem:[#allocation3 + $0xb64] sm:$0xf0] }
  0x97   : > { %7050 = vmatpush.bf16.msra.mxu2 %v13266_v53  ;;  %v16982_v53 = vld [vmem:[#allocation3 + $0x6e4] sm:$0xf0]  ;;  %v13514_v9 = vor.u32 %v17050_v56, %v13513_v51  ;;  %v13369_v19 = vld [vmem:[#allocation3 + $0x7e0] sm:$0xf]  ;;  %v12171_v51 = vld [vmem:[%s19271_s28 + $0x120] sm:$0xf0] }
  0x98   : > { %6979 = vmatpush.bf16.msra.mxu1 %v12954_v0  ;;  %v13242_v61 = vor.u32 %v16982_v53, %v13241_v52  ;;  %v13162_v0 = vor.u32 %v16962_v58, %v13161_v57  ;;  %v13209_v52 = vld [vmem:[#allocation3 + $0x6a0] sm:$0xf]  ;;  %v16974_v53 = vld [vmem:[#allocation3 + $0x6a4] sm:$0xf0]  ;;  %v13377_v57 = vld [vmem:[#allocation3 + $0x7f0] sm:$0xf] }
  0x99   : > { %6967 = vmatpush.bf16.msra.mxu0 %v12874_v6  ;;  %v16944_v6 = vld [vmem:[#allocation3 + $0x5b4] sm:$0xf0]  ;;  %v13817_v25 = vld [vmem:[#allocation3 + $0xb60] sm:$0xf]  ;;  %v17526_v35 = vld [vmem:[#allocation3 + $0x17e4] sm:$0xf0] }
  0x9a   : > { %6953 = vmatpush.bf16.msra.mxu3 %v12810_v1  ;;  %v13089_v1 = vld [vmem:[#allocation3 + $0x5b0] sm:$0xf]  ;;  %v17016_v58 = vld [vmem:[#allocation3 + $0x7f4] sm:$0xf0]  ;;  %v15417_v2 = vld [vmem:[#allocation3 + $0x17e0] sm:$0xf] }
  0x9b   : > { %7051 = vmatpush.bf16.msra.mxu2 %v13258_v7  ;;  %v13153_v7 = vld [vmem:[#allocation3 + $0x630] sm:$0xf]  ;;  %v13378_v11 = vor.u32 %v17016_v58, %v13377_v57  ;;  %v13353_v58 = vld [vmem:[#allocation3 + $0x7c0] sm:$0xf]  ;;  %v12337_v27 = vld [vmem:[%s19271_s28 + $0xd8] sm:$0xf] }
  0x9c   : > { %6980 = vmatpush.bf16.msra.mxu1 %v12946_v23  ;;  %6968 = vmatmul.bf16.vlgmr.msra.gmra.mxu0 %v19319_v24  ;;  %v13154_v14 = vor.u32 %v16960_v8, %v13153_v7  ;;  %v16958_v23 = vld [vmem:[#allocation3 + $0x624] sm:$0xf0]  ;;  %v16972_v7 = vld [vmem:[#allocation3 + $0x694] sm:$0xf0]  ;;  %v12169_v8 = vld [vmem:[%s19271_s28 + $0x30] sm:$0xf] }
  0x9d   : > { %7016 = vmatpush.bf16.msrb.mxu0 %v13186_v13  ;;  %6954 = vmatmul.bf16.vlgmr.msra.gmra.mxu3 %v19317_v16  ;;  %v13090_v13 = vor.u32 %v16944_v6, %v13089_v1  ;;  %v13146_v30 = vor.u32 %v16958_v23, %v13145_v22  ;;  %v16706_v1 = vld [vmem:[%s19271_s28 + $0x2c] sm:$0xf]  ;;  %v13201_v6 = vld [vmem:[#allocation3 + $0x690] sm:$0xf]  ;;  %v17030_v23 = vld [vmem:[#allocation3 + $0x864] sm:$0xf0] }
  0x9e   : > { %7002 = vmatpush.bf16.msrb.mxu3 %v13122_v12  ;;  %7052 = vmatmul.bf16.vlgmr.msra.gmra.mxu2 %v19323_v38  ;;  %v13234_v12 = vor.u32 %v16980_v4, %v13233_v3  ;;  %v12163_v3 = vld [vmem:[%s19271_s28 + $0x118] sm:$0xf0]  ;;  %v15569_v38 = vld [vmem:[#allocation3 + $0x1910] sm:$0xf]  ;;  %v17564_v24 = vld [vmem:[#allocation3 + $0x1914] sm:$0xf0] }
  0x9f   : > { %7100 = vmatpush.bf16.msrb.mxu2 %v13570_v15  ;;  %v13081_v15 = vld [vmem:[#allocation3 + $0x5a0] sm:$0xf]  ;;  %v19339_v22 = vor.u32 %v16706_v1, %v12163_v3  ;;  %v17122_v1 = vld [vmem:[#allocation3 + $0xb44] sm:$0xf0]  ;;  %v16756_v16 = vld [vmem:[%s19271_s28 + $0x1b4] sm:$0xf0] }
  0xa0   : > { %6981 = vmatpush.bf16.msra.mxu1 %v12938_v44  ;;  %v13082_v29 = vor.u32 %v16942_v21, %v13081_v15  ;;  %v13065_v44 = vld [vmem:[#allocation3 + $0x580] sm:$0xf]  ;;  %v13442_v15 = vor.u32 %v17032_v60, %v13441_v59  ;;  %v17010_v59 = vld [vmem:[#allocation3 + $0x7c4] sm:$0xf0] }
  0xa1   : > { %7017 = vmatpush.bf16.msrb.mxu0 %v13178_v33  ;;  %v13217_v33 = vld [vmem:[#allocation3 + $0x6b0] sm:$0xf]  ;;  %v13066_v4 = vor.u32 %v16938_v45, %v13065_v44  ;;  %v13433_v21 = vld [vmem:[#allocation3 + $0x860] sm:$0xf]  ;;  %20711 = vst [vmem:[#allocation34_spill] sm:$0xff] %v19339_v22 }
  0xa2   : > { %7003 = vmatpush.bf16.msrb.mxu3 %v13114_v31  ;;  %v13073_v31 = vld [vmem:[#allocation3 + $0x590] sm:$0xf]  ;;  %v13218_v43 = vor.u32 %v16976_v34, %v13217_v33  ;;  %v17028_v44 = vld [vmem:[#allocation3 + $0x854] sm:$0xf0]  ;;  %v13417_v60 = vld [vmem:[#allocation3 + $0x840] sm:$0xf] }
  0xa3   : > { %7101 = vmatpush.bf16.msrb.mxu2 %v13562_v39  ;;  %6982 = vmatmul.bf16.vlgmr.msra.gmra.mxu1 %v19330_v55  ;;  %v13137_v39 = vld [vmem:[#allocation3 + $0x610] sm:$0xf]  ;;  %v16754_v55 = vld [vmem:[%s19271_s28 + $0x1a4] sm:$0xf0] }
  0xa4   : > { %7030 = vmatpush.bf16.msrb.mxu1 %v13250_v47  ;;  %v16954_v47 = vld [vmem:[#allocation3 + $0x604] sm:$0xf0]  ;;  %v13809_v45 = vld [vmem:[#allocation3 + $0xb50] sm:$0xf] }
  0xa5   : > { %7018 = vmatpush.bf16.msrb.mxu0 %v13170_v49  ;;  %v13138_v49 = vor.u32 %v16956_v40, %v13137_v39  ;;  %v13434_v39 = vor.u32 %v17030_v23, %v13433_v21  ;;  %v13818_v40 = vor.u32 %v17126_v26, %v13817_v25  ;;  %v17042_v21 = vld [vmem:[#allocation3 + $0x8c4] sm:$0xf0]  ;;  %v13337_v26 = vld [vmem:[#allocation3 + $0x7a0] sm:$0xf] }
  0xa6   : > { %7004 = vmatpush.bf16.msrb.mxu3 %v13106_v48  ;;  %v13074_v48 = vor.u32 %v16940_v37, %v13073_v31  ;;  %v17048_v37 = vld [vmem:[#allocation3 + $0x8f4] sm:$0xf0] }
  0xa7   : > { %7102 = vmatpush.bf16.msrb.mxu2 %v13554_v54  ;;  %v13522_v54 = vor.u32 %v17052_v42, %v13521_v41  ;;  %v13361_v41 = vld [vmem:[#allocation3 + $0x7d0] sm:$0xf]  ;;  %v17012_v42 = vld [vmem:[#allocation3 + $0x7d4] sm:$0xf0] }
  0xa8   : > { %7031 = vmatpush.bf16.msrb.mxu1 %v13242_v61  ;;  %v13825_v61 = vld [vmem:[#allocation3 + $0xb70] sm:$0xf] }
  0xa9   : > { %7019 = vmatpush.bf16.msrb.mxu0 %v13162_v0  ;;  %v13210_v0 = vor.u32 %v16974_v53, %v13209_v52  ;;  %v13362_v52 = vor.u32 %v17012_v42, %v13361_v41  ;;  %v13497_v53 = vld [vmem:[#allocation3 + $0x8e0] sm:$0xf]  ;;  %v17040_v41 = vld [vmem:[#allocation3 + $0x8b4] sm:$0xf0] }
  0xaa   : > { %7005 = vmatpush.bf16.msrb.mxu3 %v13098_v63  ;;  %v17128_v63 = vld [vmem:[#allocation3 + $0xb74] sm:$0xf0] }
  0xab   : > { %7103 = vmatpush.bf16.msrb.mxu2 %v13546_v5  ;;  %v13130_v5 = vor.u32 %v16954_v47, %v13129_v46  ;;  %v13826_v18 = vor.u32 %v17128_v63, %v13825_v61  ;;  %v17124_v46 = vld [vmem:[#allocation3 + $0xb54] sm:$0xf0]  ;;  %v17026_v63 = vld [vmem:[#allocation3 + $0x844] sm:$0xf0] }
  0xac   : > { %7032 = vmatpush.bf16.msrb.mxu1 %v13234_v12  ;;  %v16737_v12 = vld [vmem:[%s19271_s28 + $0x11c] sm:$0xf0]  ;;  %v13810_v57 = vor.u32 %v17124_v46, %v13809_v45  ;;  %v17004_v45 = vld [vmem:[#allocation3 + $0x794] sm:$0xf0]  ;;  %v13393_v46 = vld [vmem:[#allocation3 + $0x810] sm:$0xf] }
  0xad   : > { %7020 = vmatpush.bf16.msrb.mxu0 %v13154_v14  ;;  %v16740_v14 = vld [vmem:[%s19271_s28 + $0x134] sm:$0xf0]  ;;  %v19341_v31 = vor.u32 %v16737_v12, %v12169_v8  ;;  %v13409_v12 = vld [vmem:[#allocation3 + $0x830] sm:$0xf] }
  0xae   : > { %7006 = vmatpush.bf16.msrb.mxu3 %v13090_v13  ;;  %v12193_v13 = vld [vmem:[%s19271_s28 + $0x48] sm:$0xf] }
  0xaf   : > { %7104 = vmatpush.bf16.msrb.mxu2 %v13538_v20  ;;  %v17014_v20 = vld [vmem:[#allocation3 + $0x7e4] sm:$0xf0]  ;;  %20712 = vst [vmem:[#allocation35_spill] sm:$0xff] %v19341_v31  ;;  %v19343_v33 = vor.u32 %v16740_v14, %v12193_v13  ;;  %v17024_v13 = vld [vmem:[#allocation3 + $0x834] sm:$0xf0] }
  0xb0   : > { %7033 = vmatpush.bf16.msrb.mxu1 %v13226_v28  ;;  %v13202_v28 = vor.u32 %v16972_v7, %v13201_v6  ;;  %v13370_v34 = vor.u32 %v17014_v20, %v13369_v19  ;;  %v17044_v6 = vld [vmem:[#allocation3 + $0x8d4] sm:$0xf0]  ;;  %v13418_v7 = vor.u32 %v17026_v63, %v13417_v60  ;;  %v13793_v14 = vld [vmem:[#allocation3 + $0xb30] sm:$0xf]  ;;  %v13481_v20 = vld [vmem:[#allocation3 + $0x8c0] sm:$0xf]  ;;  %v13410_v23 = vor.u32 %v17024_v13, %v13409_v12 }
  0xb1   : > { %7021 = vmatpush.bf16.msrb.mxu0 %v13146_v30  ;;  %v16970_v30 = vld [vmem:[#allocation3 + $0x684] sm:$0xf0]  ;;  %20713 = vst [vmem:[#allocation36_spill] sm:$0xff] %v19343_v33  ;;  %v16708_v12 = vld [vmem:[%s19271_s28 + $0x3c] sm:$0xf] }
  0xb2   : > { %7007 = vmatpush.bf16.msrb.mxu3 %v13082_v29  ;;  %v13193_v29 = vld [vmem:[#allocation3 + $0x680] sm:$0xf]  ;;  %v17018_v63 = vld [vmem:[#allocation3 + $0x804] sm:$0xf0]  ;;  %v12179_v13 = vld [vmem:[%s19271_s28 + $0x128] sm:$0xf0] }
  0xb3   : > { %7105 = vmatpush.bf16.msrb.mxu2 %v13530_v36  ;;  %v13505_v36 = vld [vmem:[#allocation3 + $0x8f0] sm:$0xf]  ;;  %v13194_v47 = vor.u32 %v16970_v30, %v13193_v29  ;;  %v13401_v29 = vld [vmem:[#allocation3 + $0x820] sm:$0xf]  ;;  %v17022_v30 = vld [vmem:[#allocation3 + $0x824] sm:$0xf0] }
  0xb4   : > { %7034 = vmatpush.bf16.msrb.mxu1 %v13218_v43  ;;  %v13425_v43 = vld [vmem:[#allocation3 + $0x850] sm:$0xf]  ;;  %v13402_v42 = vor.u32 %v17022_v30, %v13401_v29  ;;  %v16742_v29 = vld [vmem:[%s19271_s28 + $0x144] sm:$0xf0] }
  0xb5   : > { %7022 = vmatpush.bf16.msrb.mxu0 %v13138_v49  ;;  %v16707_v49 = vld [vmem:[%s19271_s28 + $0x34] sm:$0xf]  ;;  %v13426_v56 = vor.u32 %v17028_v44, %v13425_v43  ;;  %v13329_v44 = vld [vmem:[#allocation3 + $0x790] sm:$0xf] }
  0xb6   : > { %7008 = vmatpush.bf16.msrb.mxu3 %v13074_v48  ;;  %v13506_v48 = vor.u32 %v17048_v37, %v13505_v36  ;;  %v19350_v61 = vor.u32 %v16707_v49, %v12171_v51  ;;  %v17118_v36 = vld [vmem:[#allocation3 + $0xb24] sm:$0xf0]  ;;  %v13482_v37 = vor.u32 %v17042_v21, %v13481_v20  ;;  %v17116_v49 = vld [vmem:[#allocation3 + $0xb14] sm:$0xf0]  ;;  %v12185_v20 = vld [vmem:[%s19271_s28 + $0x40] sm:$0xf] }
  0xb7   : > { %7106 = vmatpush.bf16.msrb.mxu2 %v13522_v54  ;;  %v17046_v54 = vld [vmem:[#allocation3 + $0x8e4] sm:$0xf0]  ;;  %v16739_v21 = vld [vmem:[%s19271_s28 + $0x12c] sm:$0xf0] }
  0xb8   : > { %7035 = vmatpush.bf16.msrb.mxu1 %v13210_v0  ;;  %20714 = vst [vmem:[#allocation37_spill] sm:$0xff] %v19350_v61  ;;  %v13801_v0 = vld [vmem:[#allocation3 + $0xb40] sm:$0xf]  ;;  %v13498_v3 = vor.u32 %v17046_v54, %v13497_v53  ;;  %v17002_v53 = vld [vmem:[#allocation3 + $0x784] sm:$0xf0]  ;;  %v13330_v54 = vor.u32 %v17004_v45, %v13329_v44 }
  0xb9   : > { %7023 = vmatpush.bf16.msrb.mxu0 %v13130_v5  ;;  %v13489_v5 = vld [vmem:[#allocation3 + $0x8d0] sm:$0xf]  ;;  %v13802_v8 = vor.u32 %v17122_v1, %v13801_v0  ;;  %v13769_v0 = vld [vmem:[#allocation3 + $0xb00] sm:$0xf]  ;;  %v17114_v1 = vld [vmem:[#allocation3 + $0xb04] sm:$0xf0] }
  0xba   : > { %7009 = vmatpush.bf16.msrb.mxu3 %v13066_v4  ;;  %v13354_v4 = vor.u32 %v17010_v59, %v13353_v58  ;;  %v17038_v58 = vld [vmem:[#allocation3 + $0x8a4] sm:$0xf0]  ;;  %v13617_v44 = vld [vmem:[#allocation3 + $0x9d0] sm:$0xf]  ;;  %v13449_v45 = vld [vmem:[#allocation3 + $0x880] sm:$0xf] }
  0xbb   : > { %7107 = vmatpush.bf16.msrb.mxu2 %v13514_v9  ;;  %v13345_v9 = vld [vmem:[#allocation3 + $0x7b0] sm:$0xf] }
  0xbc   : > { %7036 = vmatpush.bf16.msrb.mxu1 %v13202_v28  ;;  %7024 = vmatmul.bf16.vlgmr.msrb.gmra.mxu0 %v19341_v31  ;;  %v17006_v28 = vld [vmem:[#allocation3 + $0x7a4] sm:$0xf0] }
  0xbd   : > { %7072 = vmatpush.bf16.msra.mxu0 %v13442_v15  ;;  %7010 = vmatmul.bf16.vlgmr.msrb.gmra.mxu3 %v19339_v22  ;;  %v17120_v15 = vld [vmem:[#allocation3 + $0xb34] sm:$0xf0]  ;;  %v17398_v31 = vld [vmem:[#allocation3 + $0x13e4] sm:$0xf0] }
  0xbe   : > { %7058 = vmatpush.bf16.msra.mxu3 %v13378_v11  ;;  %7108 = vmatmul.bf16.vlgmr.msrb.gmra.mxu2 %v19343_v33  ;;  %v17008_v11 = vld [vmem:[#allocation3 + $0x7b4] sm:$0xf0]  ;;  %v13794_v25 = vor.u32 %v17120_v15, %v13793_v14  ;;  %v13457_v14 = vld [vmem:[#allocation3 + $0x890] sm:$0xf]  ;;  %v14905_v33 = vld [vmem:[#allocation3 + $0x13e0] sm:$0xf] }
  0xbf   : > { %7156 = vmatpush.bf16.msra.mxu2 %v13826_v18  ;;  %v13490_v18 = vor.u32 %v17044_v6, %v13489_v5  ;;  %v13346_v19 = vor.u32 %v17008_v11, %v13345_v9  ;;  %v13697_v5 = vld [vmem:[#allocation3 + $0xa70] sm:$0xf]  ;;  %v17096_v6 = vld [vmem:[#allocation3 + $0xa74] sm:$0xf0] }
  0xc0   : > { %7037 = vmatpush.bf16.msrb.mxu1 %v13194_v47  ;;  %v17020_v47 = vld [vmem:[#allocation3 + $0x814] sm:$0xf0] }
  0xc1   : > { %7073 = vmatpush.bf16.msra.mxu0 %v13434_v39  ;;  %v13338_v39 = vor.u32 %v17006_v28, %v13337_v26  ;;  %v13394_v59 = vor.u32 %v17020_v47, %v13393_v46  ;;  %v13625_v26 = vld [vmem:[#allocation3 + $0x9e0] sm:$0xf]  ;;  %v12209_v28 = vld [vmem:[%s19271_s28 + $0x58] sm:$0xf]  ;;  %v17034_v46 = vld [vmem:[#allocation3 + $0x884] sm:$0xf0] }
  0xc2   : > { %7059 = vmatpush.bf16.msra.mxu3 %v13370_v34  ;;  %v13785_v34 = vld [vmem:[#allocation3 + $0xb20] sm:$0xf]  ;;  %v19363_v47 = vor.u32 %v16742_v29, %v12209_v28  ;;  %v17072_v29 = vld [vmem:[#allocation3 + $0x9b4] sm:$0xf0] }
  0xc3   : > { %7157 = vmatpush.bf16.msra.mxu2 %v13818_v40  ;;  %7038 = vmatmul.bf16.vlgmr.msrb.gmra.mxu1 %v19350_v61  ;;  %v13473_v40 = vld [vmem:[#allocation3 + $0x8b0] sm:$0xf]  ;;  %v13786_v43 = vor.u32 %v17118_v36, %v13785_v34  ;;  %v19359_v34 = vor.u32 %v16708_v12, %v12179_v13  ;;  %v17078_v36 = vld [vmem:[#allocation3 + $0x9e4] sm:$0xf0]  ;;  %v13673_v12 = vld [vmem:[#allocation3 + $0xa40] sm:$0xf] }
  0xc4   : > { %7086 = vmatpush.bf16.msra.mxu1 %v13506_v48  ;;  %v13777_v48 = vld [vmem:[#allocation3 + $0xb10] sm:$0xf]  ;;  %v13474_v51 = vor.u32 %v17040_v41, %v13473_v40  ;;  %v14073_v40 = vld [vmem:[#allocation3 + $0xd60] sm:$0xf]  ;;  %v17190_v41 = vld [vmem:[#allocation3 + $0xd64] sm:$0xf0] }
  0xc5   : > { %7074 = vmatpush.bf16.msra.mxu0 %v13426_v56  ;;  %v13385_v56 = vld [vmem:[#allocation3 + $0x800] sm:$0xf]  ;;  %v13778_v60 = vor.u32 %v17116_v49, %v13777_v48  ;;  %20715 = vst [vmem:[#allocation38_spill] sm:$0xff] %v19359_v34  ;;  %v13626_v48 = vor.u32 %v17078_v36, %v13625_v26  ;;  %v17090_v13 = vld [vmem:[#allocation3 + $0xa44] sm:$0xf0] }
  0xc6   : > { %7060 = vmatpush.bf16.msra.mxu3 %v13362_v52  ;;  %v13321_v52 = vld [vmem:[#allocation3 + $0x780] sm:$0xf]  ;;  %v13386_v15 = vor.u32 %v17018_v63, %v13385_v56  ;;  %20717 = vst [vmem:[#allocation40_spill] sm:$0xff] %v19363_v47  ;;  %v13681_v56 = vld [vmem:[#allocation3 + $0xa50] sm:$0xf] }
  0xc7   : > { %7158 = vmatpush.bf16.msra.mxu2 %v13810_v57  ;;  %v13465_v57 = vld [vmem:[#allocation3 + $0x8a0] sm:$0xf]  ;;  %v13322_v11 = vor.u32 %v17002_v53, %v13321_v52  ;;  %v13761_v52 = vld [vmem:[#allocation3 + $0xaf0] sm:$0xf]  ;;  %v17112_v53 = vld [vmem:[#allocation3 + $0xaf4] sm:$0xf0] }
  0xc8   : > { %7087 = vmatpush.bf16.msra.mxu1 %v13498_v3  ;;  %v13633_v3 = vld [vmem:[#allocation3 + $0x9f0] sm:$0xf]  ;;  %v13466_v9 = vor.u32 %v17038_v58, %v13465_v57  ;;  %v17092_v57 = vld [vmem:[#allocation3 + $0xa54] sm:$0xf0]  ;;  %v16709_v63 = vld [vmem:[%s19271_s28 + $0x44] sm:$0xf] }
  0xc9   : > { %7075 = vmatpush.bf16.msra.mxu0 %v13418_v7  ;;  %v14081_v7 = vld [vmem:[#allocation3 + $0xd70] sm:$0xf]  ;;  %v19372_v26 = vld [vmem:[#allocation5] sm:$0x3]  ;;  %v17088_v36 = vld [vmem:[#allocation3 + $0xa34] sm:$0xf0] }
  0xca   : > { %7061 = vmatpush.bf16.msra.mxu3 %v13354_v4  ;;  %v17080_v4 = vld [vmem:[#allocation3 + $0x9f4] sm:$0xf0]  ;;  %v14065_v58 = vld [vmem:[#allocation3 + $0xd50] sm:$0xf] }
  0xcb   : > { %7159 = vmatpush.bf16.msra.mxu2 %v13802_v8  ;;  %v17192_v8 = vld [vmem:[#allocation3 + $0xd74] sm:$0xf0] }
  0xcc   : > { %7088 = vmatpush.bf16.msra.mxu1 %v13490_v18  ;;  %v13770_v18 = vor.u32 %v17114_v1, %v13769_v0  ;;  %v14082_v30 = vor.u32 %v17192_v8, %v14081_v7  ;;  %v12187_v0 = vld [vmem:[%s19271_s28 + $0x130] sm:$0xf0]  ;;  %v13762_v1 = vor.u32 %v17112_v53, %v13761_v52  ;;  %v17110_v7 = vld [vmem:[#allocation3 + $0xae4] sm:$0xf0]  ;;  %v13657_v52 = vld [vmem:[#allocation3 + $0xa20] sm:$0xf] }
  0xcd   : > { %7076 = vmatpush.bf16.msra.mxu0 %v13410_v23  ;;  %v13634_v23 = vor.u32 %v17080_v4, %v13633_v3  ;;  %v13682_v4 = vor.u32 %v17092_v57, %v13681_v56  ;;  %v17086_v53 = vld [vmem:[#allocation3 + $0xa24] sm:$0xf0]  ;;  %v12305_v22 = vld [vmem:[%s19271_s28 + $0xb8] sm:$0xf] }
  0xce   : > { %7062 = vmatpush.bf16.msra.mxu3 %v13346_v19  ;;  %v17036_v19 = vld [vmem:[#allocation3 + $0x894] sm:$0xf0]  ;;  %v17182_v56 = vld [vmem:[#allocation3 + $0xd24] sm:$0xf0] }
  0xcf   : > { %7160 = vmatpush.bf16.msra.mxu2 %v13794_v25  ;;  %v13698_v25 = vor.u32 %v17096_v6, %v13697_v5  ;;  %v13609_v5 = vld [vmem:[#allocation3 + $0x9c0] sm:$0xf] }
  0xd0   : > { %7089 = vmatpush.bf16.msra.mxu1 %v13482_v37  ;;  %v13689_v37 = vld [vmem:[#allocation3 + $0xa60] sm:$0xf] }
  0xd1   : > { %7077 = vmatpush.bf16.msra.mxu0 %v13402_v42  ;;  %v13458_v42 = vor.u32 %v17036_v19, %v13457_v14  ;;  %v13753_v6 = vld [vmem:[#allocation3 + $0xae0] sm:$0xf]  ;;  %v13601_v19 = vld [vmem:[#allocation3 + $0x9b0] sm:$0xf] }
  0xd2   : > { %7063 = vmatpush.bf16.msra.mxu3 %v13338_v39  ;;  %v17094_v39 = vld [vmem:[#allocation3 + $0xa64] sm:$0xf0]  ;;  %v14057_v14 = vld [vmem:[#allocation3 + $0xd40] sm:$0xf] }
  0xd3   : > { %7161 = vmatpush.bf16.msra.mxu2 %v13786_v43  ;;  %v19361_v43 = vor.u32 %v16739_v21, %v12185_v20  ;;  %v13690_v49 = vor.u32 %v17094_v39, %v13689_v37  ;;  %v13674_v21 = vor.u32 %v17090_v13, %v13673_v12  ;;  %v14049_v37 = vld [vmem:[#allocation3 + $0xd30] sm:$0xf]  ;;  %v17184_v39 = vld [vmem:[#allocation3 + $0xd34] sm:$0xf0] }
  0xd4   : > { %7090 = vmatpush.bf16.msra.mxu1 %v13474_v51  ;;  %v17076_v51 = vld [vmem:[#allocation3 + $0x9d4] sm:$0xf0]  ;;  %v14033_v12 = vld [vmem:[#allocation3 + $0xd10] sm:$0xf] }
  0xd5   : > { %7078 = vmatpush.bf16.msra.mxu0 %v13394_v59  ;;  %20716 = vst [vmem:[#allocation39_spill] sm:$0xff] %v19361_v43  ;;  %v17188_v59 = vld [vmem:[#allocation3 + $0xd54] sm:$0xf0]  ;;  %v13618_v3 = vor.u32 %v17076_v51, %v13617_v44  ;;  %v17070_v51 = vld [vmem:[#allocation3 + $0x9a4] sm:$0xf0] }
  0xd6   : > { %7064 = vmatpush.bf16.msra.mxu3 %v13330_v54  ;;  %v14074_v54 = vor.u32 %v17190_v41, %v14073_v40  ;;  %v14066_v8 = vor.u32 %v17188_v59, %v14065_v58  ;;  %v20643_v41 = vperm.slane %v19372_v26, 0  ;;  %v17180_v13 = vld [vmem:[#allocation3 + $0xd14] sm:$0xf0] }
  0xd7   : > { %7162 = vmatpush.bf16.msra.mxu2 %v13778_v60  ;;  %v13450_v60 = vor.u32 %v17034_v46, %v13449_v45  ;;  %v13593_v45 = vld [vmem:[#allocation3 + $0x9a0] sm:$0xf] }
  0xd8   : > { %7091 = vmatpush.bf16.msra.mxu1 %v13466_v9  ;;  %v19370_v9 = vor.u32 %v16709_v63, %v12187_v0  ;;  %v13737_v46 = vld [vmem:[#allocation3 + $0xac0] sm:$0xf]  ;;  %v13658_v63 = vor.u32 %v17086_v53, %v13657_v52  ;;  %v13585_v0 = vld [vmem:[#allocation3 + $0x990] sm:$0xf]  ;;  %v12195_v52 = vld [vmem:[%s19271_s28 + $0x138] sm:$0xf0] }
  0xd9   : > { %7079 = vmatpush.bf16.msra.mxu0 %v13386_v15  ;;  %v17186_v15 = vld [vmem:[#allocation3 + $0xd44] sm:$0xf0]  ;;  %v6857_v57 = vpop.f32.mrf.mxu0 }
  0xda   : > { %7065 = vmatpush.bf16.msra.mxu3 %v13322_v11  ;;  %20718 = vst [vmem:[#allocation41_spill] sm:$0xff] %v19370_v9  ;;  %v17074_v11 = vld [vmem:[#allocation3 + $0x9c4] sm:$0xf0]  ;;  %v14058_v28 = vor.u32 %v17186_v15, %v14057_v14  ;;  %v6858_v59 = vadd.f32 %v6857_v57, %v20643_v41  ;;  %v17100_v57 = vld [vmem:[#allocation3 + $0xa94] sm:$0xf0] }
  0xdb   : > { %7163 = vmatpush.bf16.msra.mxu2 %v13770_v18  ;;  %v13754_v18 = vor.u32 %v17110_v7, %v13753_v6  ;;  %v13610_v20 = vor.u32 %v17074_v11, %v13609_v5  ;;  %v17068_v6 = vld [vmem:[#allocation3 + $0x994] sm:$0xf0]  ;;  %v13649_v7 = vld [vmem:[#allocation3 + $0xa10] sm:$0xf] }
  0xdc   : > { %7092 = vmatpush.bf16.msra.mxu1 %v13458_v42  ;;  %7080 = vmatmul.bf16.vlgmr.msra.gmra.mxu0 %v19361_v43  ;;  %v13602_v42 = vor.u32 %v17072_v29, %v13601_v19  ;;  %v17066_v19 = vld [vmem:[#allocation3 + $0x984] sm:$0xf0]  ;;  %v14025_v29 = vld [vmem:[#allocation3 + $0xd00] sm:$0xf]  ;;  %v17436_v43 = vld [vmem:[#allocation3 + $0x1514] sm:$0xf0] }
  0xdd   : > { %7128 = vmatpush.bf16.msrb.mxu0 %v13698_v25  ;;  %7066 = vmatmul.bf16.vlgmr.msra.gmra.mxu3 %v19359_v34  ;;  %v17108_v25 = vld [vmem:[#allocation3 + $0xad4] sm:$0xf0] }
  0xde   : > { %7114 = vmatpush.bf16.msrb.mxu3 %v13634_v23  ;;  %7164 = vmatmul.bf16.vlgmr.msra.gmra.mxu2 %v19363_v47  ;;  %v13745_v23 = vld [vmem:[#allocation3 + $0xad0] sm:$0xf]  ;;  %v16752_v34 = vld [vmem:[%s19271_s28 + $0x194] sm:$0xf0] }
  0xdf   : > { %7212 = vmatpush.bf16.msrb.mxu2 %v14082_v30  ;;  %v13665_v30 = vld [vmem:[#allocation3 + $0xa30] sm:$0xf]  ;;  %v13746_v40 = vor.u32 %v17108_v25, %v13745_v23  ;;  %v13586_v25 = vor.u32 %v17068_v6, %v13585_v0  ;;  %v12225_v0 = vld [vmem:[%s19271_s28 + $0x68] sm:$0xf] }
  0xe0   : > { %7093 = vmatpush.bf16.msra.mxu1 %v13450_v60  ;;  %v13666_v44 = vor.u32 %v17088_v36, %v13665_v30  ;;  %v13594_v60 = vor.u32 %v17070_v51, %v13593_v45  ;;  %v6885_v14 = vpop.f32.mrf.mxu3  ;;  %v13721_v30 = vld [vmem:[#allocation3 + $0xaa0] sm:$0xf]  ;;  %v17102_v36 = vld [vmem:[#allocation3 + $0xaa4] sm:$0xf0]  ;;  %v17160_v45 = vld [vmem:[#allocation3 + $0xc74] sm:$0xf0] }
  0xe1   : > { %7129 = vmatpush.bf16.msrb.mxu0 %v13690_v49  ;;  %v14050_v49 = vor.u32 %v17184_v39, %v14049_v37  ;;  %v14034_v37 = vor.u32 %v17180_v13, %v14033_v12  ;;  %v17178_v39 = vld [vmem:[#allocation3 + $0xd04] sm:$0xf0]  ;;  %v16710_v51 = vld [vmem:[%s19271_s28 + $0x4c] sm:$0xf]  ;;  %v14329_v12 = vld [vmem:[#allocation3 + $0xf60] sm:$0xf] }
  0xe2   : > { %7115 = vmatpush.bf16.msrb.mxu3 %v13626_v48  ;;  %v17106_v48 = vld [vmem:[#allocation3 + $0xac4] sm:$0xf0]  ;;  %v15057_v47 = vld [vmem:[#allocation3 + $0x1510] sm:$0xf] }
  0xe3   : > { %7213 = vmatpush.bf16.msrb.mxu2 %v14074_v54  ;;  %7094 = vmatmul.bf16.vlgmr.msra.gmra.mxu1 %v19370_v9  ;;  %v14041_v54 = vld [vmem:[#allocation3 + $0xd20] sm:$0xf]  ;;  %v13738_v58 = vor.u32 %v17106_v48, %v13737_v46  ;;  %v14337_v46 = vld [vmem:[#allocation3 + $0xf70] sm:$0xf]  ;;  %v17256_v48 = vld [vmem:[#allocation3 + $0xf74] sm:$0xf0] }
  0xe4   : > { %7142 = vmatpush.bf16.msrb.mxu1 %v13762_v1  ;;  %v13729_v1 = vld [vmem:[#allocation3 + $0xab0] sm:$0xf]  ;;  %v14042_v5 = vor.u32 %v17182_v56, %v14041_v54  ;;  %v17142_v6 = vld [vmem:[#allocation3 + $0xbe4] sm:$0xf0] }
  0xe5   : > { %7130 = vmatpush.bf16.msrb.mxu0 %v13682_v4  ;;  %v6871_v4 = vpop.f32.mrf.mxu1  ;;  %v13713_v56 = vld [vmem:[#allocation3 + $0xa90] sm:$0xf]  ;;  %v17254_v13 = vld [vmem:[#allocation3 + $0xf64] sm:$0xf0] }
  0xe6   : > { %7116 = vmatpush.bf16.msrb.mxu3 %v13618_v3  ;;  %v17104_v3 = vld [vmem:[#allocation3 + $0xab4] sm:$0xf0]  ;;  %v6872_v11 = vadd.f32 %v6871_v4, %v6858_v59  ;;  %v14026_v59 = vor.u32 %v17178_v39, %v14025_v29  ;;  %v14338_v4 = vor.u32 %v17256_v48, %v14337_v46  ;;  %v13937_v39 = vld [vmem:[#allocation3 + $0xc50] sm:$0xf]  ;;  %v16711_v48 = vld [vmem:[%s19271_s28 + $0x54] sm:$0xf] }
  0xe7   : > { %7214 = vmatpush.bf16.msrb.mxu2 %v14066_v8  ;;  %v17084_v8 = vld [vmem:[#allocation3 + $0xa14] sm:$0xf0]  ;;  %v13730_v15 = vor.u32 %v17104_v3, %v13729_v1  ;;  %v16750_v9 = vld [vmem:[%s19271_s28 + $0x184] sm:$0xf0] }
  0xe8   : > { %7143 = vmatpush.bf16.msrb.mxu1 %v13754_v18  ;;  %v13577_v18 = vld [vmem:[#allocation3 + $0x980] sm:$0xf]  ;;  %v19378_v23 = vadd.f32 %v6885_v14, %v6872_v11  ;;  %v16744_v1 = vld [vmem:[%s19271_s28 + $0x154] sm:$0xf0]  ;;  %v17158_v11 = vld [vmem:[#allocation3 + $0xc64] sm:$0xf0]  ;;  %v13714_v14 = vor.u32 %v17100_v57, %v13713_v56  ;;  %v19397_v57 = vpop.f32.mrf.mxu3 }
  0xe9   : > { %7131 = vmatpush.bf16.msrb.mxu0 %v13674_v21  ;;  %v17082_v21 = vld [vmem:[#allocation3 + $0xa04] sm:$0xf0]  ;;  %v13578_v53 = vor.u32 %v17066_v19, %v13577_v18 }
  0xea   : > { %7117 = vmatpush.bf16.msrb.mxu3 %v13610_v20  ;;  %v13641_v20 = vld [vmem:[#allocation3 + $0xa00] sm:$0xf]  ;;  %v17098_v18 = vld [vmem:[#allocation3 + $0xa84] sm:$0xf0] }
  0xeb   : > { %7215 = vmatpush.bf16.msrb.mxu2 %v14058_v28  ;;  %v13650_v28 = vor.u32 %v17084_v8, %v13649_v7  ;;  %v13642_v54 = vor.u32 %v17082_v21, %v13641_v20  ;;  %v13945_v7 = vld [vmem:[#allocation3 + $0xc60] sm:$0xf]  ;;  %v19386_v8 = vor.u32 %v16710_v51, %v12195_v52  ;;  %v19390_v20 = vor.u32 %v16744_v1, %v12225_v0  ;;  %v17154_v1 = vld [vmem:[#allocation3 + $0xc44] sm:$0xf0] }
  0xec   : > { %7144 = vmatpush.bf16.msrb.mxu1 %v13746_v40  ;;  %v13889_v40 = vld [vmem:[#allocation3 + $0xbf0] sm:$0xf]  ;;  %v13946_v29 = vor.u32 %v17158_v11, %v13945_v7  ;;  %v14009_v52 = vld [vmem:[#allocation3 + $0xce0] sm:$0xf] }
  0xed   : > { %7132 = vmatpush.bf16.msrb.mxu0 %v13666_v44  ;;  %v13953_v44 = vld [vmem:[#allocation3 + $0xc70] sm:$0xf]  ;;  %20719 = vst [vmem:[#allocation42_spill] sm:$0xff] %v19386_v8 }
  0xee   : > { %7118 = vmatpush.bf16.msrb.mxu3 %v13602_v42  ;;  %v17144_v42 = vld [vmem:[#allocation3 + $0xbf4] sm:$0xf0]  ;;  %v13954_v3 = vor.u32 %v17160_v45, %v13953_v44  ;;  %20721 = vst [vmem:[#allocation44_spill] sm:$0xff] %v19390_v20  ;;  %v14001_v11 = vld [vmem:[#allocation3 + $0xcd0] sm:$0xf] }
  0xef   : > { %7216 = vmatpush.bf16.msrb.mxu2 %v14050_v49  ;;  %v13722_v49 = vor.u32 %v17102_v36, %v13721_v30  ;;  %v14330_v30 = vor.u32 %v17254_v13, %v14329_v12  ;;  %v13873_v36 = vld [vmem:[#allocation3 + $0xbd0] sm:$0xf]  ;;  %v17252_v44 = vld [vmem:[#allocation3 + $0xf54] sm:$0xf0] }
  0xf0   : > { %7145 = vmatpush.bf16.msrb.mxu1 %v13738_v58  ;;  %v12201_v58 = vld [vmem:[%s19271_s28 + $0x50] sm:$0xf]  ;;  %v17172_v12 = vld [vmem:[#allocation3 + $0xcd4] sm:$0xf0] }
  0xf1   : > { %7133 = vmatpush.bf16.msrb.mxu0 %v13658_v63  ;;  %v16741_v63 = vld [vmem:[%s19271_s28 + $0x13c] sm:$0xf0] }
  0xf2   : > { %7119 = vmatpush.bf16.msrb.mxu3 %v13594_v60  ;;  %v13890_v60 = vor.u32 %v17144_v42, %v13889_v40  ;;  %v19388_v19 = vor.u32 %v16741_v63, %v12201_v58  ;;  %v17156_v40 = vld [vmem:[#allocation3 + $0xc54] sm:$0xf0]  ;;  %v14321_v42 = vld [vmem:[#allocation3 + $0xf50] sm:$0xf]  ;;  %v19399_v58 = vpop.f32.mrf.mxu0  ;;  %v13929_v63 = vld [vmem:[#allocation3 + $0xc40] sm:$0xf] }
  0xf3   : > { %7217 = vmatpush.bf16.msrb.mxu2 %v14042_v5  ;;  %v13881_v5 = vld [vmem:[#allocation3 + $0xbe0] sm:$0xf]  ;;  %v14322_v56 = vor.u32 %v17252_v44, %v14321_v42  ;;  %v13930_v13 = vor.u32 %v17154_v1, %v13929_v63  ;;  %v17168_v63 = vld [vmem:[#allocation3 + $0xcb4] sm:$0xf0] }
  0xf4   : > { %7146 = vmatpush.bf16.msrb.mxu1 %v13730_v15  ;;  %v13705_v15 = vld [vmem:[#allocation3 + $0xa80] sm:$0xf]  ;;  %20720 = vst [vmem:[#allocation43_spill] sm:$0xff] %v19388_v19  ;;  %v13882_v21 = vor.u32 %v17142_v6, %v13881_v5  ;;  %v19403_v5 = vpop.f32.mrf.mxu1 }
  0xf5   : > { %7134 = vmatpush.bf16.msrb.mxu0 %v13650_v28  ;;  %v17176_v28 = vld [vmem:[#allocation3 + $0xcf4] sm:$0xf0]  ;;  %v13706_v45 = vor.u32 %v17098_v18, %v13705_v15  ;;  %v13857_v15 = vld [vmem:[#allocation3 + $0xbb0] sm:$0xf]  ;;  %v13849_v44 = vld [vmem:[#allocation3 + $0xba0] sm:$0xf] }
  0xf6   : > { %7120 = vmatpush.bf16.msrb.mxu3 %v13586_v25  ;;  %v14017_v25 = vld [vmem:[#allocation3 + $0xcf0] sm:$0xf]  ;;  %v17136_v18 = vld [vmem:[#allocation3 + $0xbb4] sm:$0xf0] }
  0xf7   : > { %7218 = vmatpush.bf16.msrb.mxu2 %v14034_v37  ;;  %v17140_v37 = vld [vmem:[#allocation3 + $0xbd4] sm:$0xf0]  ;;  %v14018_v46 = vor.u32 %v17176_v28, %v14017_v25  ;;  %v14305_v28 = vld [vmem:[#allocation3 + $0xf30] sm:$0xf] }
  0xf8   : > { %7147 = vmatpush.bf16.msrb.mxu1 %v13722_v49  ;;  %v12203_v49 = vld [vmem:[%s19271_s28 + $0x140] sm:$0xf0]  ;;  %v13874_v51 = vor.u32 %v17140_v37, %v13873_v36  ;;  %v17152_v25 = vld [vmem:[#allocation3 + $0xc34] sm:$0xf0]  ;;  %v13858_v36 = vor.u32 %v17136_v18, %v13857_v15  ;;  %v13993_v37 = vld [vmem:[#allocation3 + $0xcc0] sm:$0xf]  ;;  %v6941_v18 = vpop.f32.mrf.mxu2 }
  0xf9   : > { %7135 = vmatpush.bf16.msrb.mxu0 %v13642_v54  ;;  %v13938_v54 = vor.u32 %v17156_v40, %v13937_v39  ;;  %v19401_v0 = vor.u32 %v16711_v48, %v12203_v49  ;;  %v17170_v39 = vld [vmem:[#allocation3 + $0xcc4] sm:$0xf0]  ;;  %v14297_v49 = vld [vmem:[#allocation3 + $0xf20] sm:$0xf]  ;;  %v17244_v15 = vld [vmem:[#allocation3 + $0xf14] sm:$0xf0] }
  0xfa   : > { %7121 = vmatpush.bf16.msrb.mxu3 %v13578_v53  ;;  %v17174_v53 = vld [vmem:[#allocation3 + $0xce4] sm:$0xf0] }
  0xfb   : > { %7219 = vmatpush.bf16.msrb.mxu2 %v14026_v59  ;;  %v13865_v59 = vld [vmem:[#allocation3 + $0xbc0] sm:$0xf]  ;;  %20722 = vst [vmem:[#allocation45_spill] sm:$0xff] %v19401_v0  ;;  %v14010_v6 = vor.u32 %v17174_v53, %v14009_v52  ;;  %v17150_v48 = vld [vmem:[#allocation3 + $0xc24] sm:$0xf0]  ;;  %v6913_v53 = vpop.f32.mrf.mxu0 }
  0xfc   : > { %7148 = vmatpush.bf16.msrb.mxu1 %v13714_v14  ;;  %7136 = vmatmul.bf16.vlgmr.msrb.gmra.mxu0 %v19388_v19  ;;  %v17270_v19 = vld [vmem:[#allocation3 + $0xfe4] sm:$0xf0] }
  0xfd   : > { %7184 = vmatpush.bf16.msra.mxu0 %v13954_v3  ;;  %7122 = vmatmul.bf16.vlgmr.msrb.gmra.mxu3 %v19386_v8  ;;  %v14313_v3 = vld [vmem:[#allocation3 + $0xf40] sm:$0xf]  ;;  %v12273_v8 = vld [vmem:[%s19271_s28 + $0x98] sm:$0xf] }
  0xfe   : > { %7170 = vmatpush.bf16.msra.mxu3 %v13890_v60  ;;  %7220 = vmatmul.bf16.vlgmr.msrb.gmra.mxu2 %v19390_v20  ;;  %v17138_v60 = vld [vmem:[#allocation3 + $0xbc4] sm:$0xf0]  ;;  %v14393_v20 = vld [vmem:[#allocation3 + $0xfe0] sm:$0xf] }
  0xff   : > { %7268 = vmatpush.bf16.msra.mxu2 %v14338_v4  ;;  %v17250_v4 = vld [vmem:[#allocation3 + $0xf44] sm:$0xf0]  ;;  %v13866_v7 = vor.u32 %v17138_v60, %v13865_v59  ;;  %v13985_v60 = vld [vmem:[#allocation3 + $0xcb0] sm:$0xf] }
 0x100   : > { %7149 = vmatpush.bf16.msrb.mxu1 %v13706_v45  ;;  %v14314_v14 = vor.u32 %v17250_v4, %v14313_v3  ;;  %v17134_v45 = vld [vmem:[#allocation3 + $0xba4] sm:$0xf0]  ;;  %v6899_v52 = vpop.f32.mrf.mxu3  ;;  %v6927_v4 = vpop.f32.mrf.mxu1 }
 0x101   : > { %7185 = vmatpush.bf16.msra.mxu0 %v13946_v29  ;;  %v17248_v29 = vld [vmem:[#allocation3 + $0xf34] sm:$0xf0]  ;;  %v13850_v59 = vor.u32 %v17134_v45, %v13849_v44  ;;  %v14281_v44 = vld [vmem:[#allocation3 + $0xf00] sm:$0xf]  ;;  %v17242_v45 = vld [vmem:[#allocation3 + $0xf04] sm:$0xf0] }
 0x102   : > { %7171 = vmatpush.bf16.msra.mxu3 %v13882_v21  ;;  %v13921_v21 = vld [vmem:[#allocation3 + $0xc30] sm:$0xf]  ;;  %v14306_v42 = vor.u32 %v17248_v29, %v14305_v28 }
 0x103   : > { %7269 = vmatpush.bf16.msra.mxu2 %v14330_v30  ;;  %7150 = vmatmul.bf16.vlgmr.msrb.gmra.mxu1 %v19401_v0  ;;  %v14002_v30 = vor.u32 %v17172_v12, %v14001_v11  ;;  %v13922_v40 = vor.u32 %v17152_v25, %v13921_v21  ;;  %v13905_v11 = vld [vmem:[#allocation3 + $0xc10] sm:$0xf]  ;;  %v13986_v21 = vor.u32 %v17168_v63, %v13985_v60  ;;  %v13833_v25 = vld [vmem:[#allocation3 + $0xb80] sm:$0xf]  ;;  %v16712_v60 = vld [vmem:[%s19271_s28 + $0x5c] sm:$0xf] }
 0x104   : > { %7198 = vmatpush.bf16.msra.mxu1 %v14018_v46  ;;  %v13913_v46 = vld [vmem:[#allocation3 + $0xc20] sm:$0xf]  ;;  %v12211_v63 = vld [vmem:[%s19271_s28 + $0x148] sm:$0xf0] }
 0x105   : > { %7186 = vmatpush.bf16.msra.mxu0 %v13938_v54  ;;  %v13994_v54 = vor.u32 %v17170_v39, %v13993_v37  ;;  %v13914_v1 = vor.u32 %v17150_v48, %v13913_v46  ;;  %v17166_v37 = vld [vmem:[#allocation3 + $0xca4] sm:$0xf0]  ;;  %v14145_v48 = vld [vmem:[#allocation3 + $0xdf0] sm:$0xf] }
 0x106   : > { %7172 = vmatpush.bf16.msra.mxu3 %v13874_v51  ;;  %v17246_v51 = vld [vmem:[#allocation3 + $0xf24] sm:$0xf0] }
 0x107   : > { %7270 = vmatpush.bf16.msra.mxu2 %v14322_v56  ;;  %v6900_v56 = vadd.f32 %v6899_v52, %v19378_v23  ;;  %v14298_v3 = vor.u32 %v17246_v51, %v14297_v49  ;;  %v17130_v23 = vld [vmem:[#allocation3 + $0xb84] sm:$0xf0]  ;;  %v17208_v49 = vld [vmem:[#allocation3 + $0xdf4] sm:$0xf0]  ;;  %v14209_v51 = vld [vmem:[#allocation3 + $0xe70] sm:$0xf] }
 0x108   : > { %7199 = vmatpush.bf16.msra.mxu1 %v14010_v6  ;;  %v13841_v6 = vld [vmem:[#allocation3 + $0xb90] sm:$0xf]  ;;  %v17224_v52 = vld [vmem:[#allocation3 + $0xe74] sm:$0xf0] }
 0x109   : > { %7187 = vmatpush.bf16.msra.mxu0 %v13930_v13  ;;  %v6914_v12 = vadd.f32 %v6913_v53, %v6900_v56  ;;  %v17148_v13 = vld [vmem:[#allocation3 + $0xc14] sm:$0xf0]  ;;  %v14593_v53 = vld [vmem:[#allocation3 + $0x1170] sm:$0xf] }
 0x10a   : > { %7173 = vmatpush.bf16.msra.mxu3 %v13866_v7  ;;  %v17132_v7 = vld [vmem:[#allocation3 + $0xb94] sm:$0xf0]  ;;  %v13906_v39 = vor.u32 %v17148_v13, %v13905_v11  ;;  %v16743_v11 = vld [vmem:[%s19271_s28 + $0x14c] sm:$0xf0]  ;;  %v14210_v13 = vor.u32 %v17224_v52, %v14209_v51 }
 0x10b   : > { %7271 = vmatpush.bf16.msra.mxu2 %v14314_v14  ;;  %v14289_v14 = vld [vmem:[#allocation3 + $0xf10] sm:$0xf]  ;;  %v6928_v28 = vadd.f32 %v6927_v4, %v6914_v12  ;;  %v13842_v29 = vor.u32 %v17132_v7, %v13841_v6  ;;  %v14282_v4 = vor.u32 %v17242_v45, %v14281_v44  ;;  %v17164_v6 = vld [vmem:[#allocation3 + $0xc94] sm:$0xf0]  ;;  %v12217_v7 = vld [vmem:[%s19271_s28 + $0x60] sm:$0xf]  ;;  %v14146_v12 = vor.u32 %v17208_v49, %v14145_v48 }
 0x10c   : > { %7200 = vmatpush.bf16.msra.mxu1 %v14002_v30  ;;  %v13897_v30 = vld [vmem:[#allocation3 + $0xc00] sm:$0xf]  ;;  %v17162_v44 = vld [vmem:[#allocation3 + $0xc84] sm:$0xf0]  ;;  %v17204_v51 = vld [vmem:[#allocation3 + $0xdd4] sm:$0xf0] }
 0x10d   : > { %7188 = vmatpush.bf16.msra.mxu0 %v13922_v40  ;;  %v14290_v40 = vor.u32 %v17244_v15, %v14289_v14  ;;  %v19407_v46 = vadd.f32 %v6941_v18, %v6928_v28  ;;  %v14137_v14 = vld [vmem:[#allocation3 + $0xde0] sm:$0xf]  ;;  %v12241_v15 = vld [vmem:[%s19271_s28 + $0x78] sm:$0xf]  ;;  %v16746_v18 = vld [vmem:[%s19271_s28 + $0x164] sm:$0xf0]  ;;  %v19415_v28 = vor.u32 %v16712_v60, %v12211_v63 }
 0x10e   : > { %7174 = vmatpush.bf16.msra.mxu3 %v13858_v36  ;;  %v13977_v36 = vld [vmem:[#allocation3 + $0xca0] sm:$0xf]  ;;  %v19419_v45 = vor.u32 %v16746_v18, %v12241_v15  ;;  %v14273_v52 = vld [vmem:[#allocation3 + $0xef0] sm:$0xf]  ;;  %v17316_v63 = vld [vmem:[#allocation3 + $0x1154] sm:$0xf0] }
 0x10f   : > { %7272 = vmatpush.bf16.msra.mxu2 %v14306_v42  ;;  %v17146_v42 = vld [vmem:[#allocation3 + $0xc04] sm:$0xf0]  ;;  %v13978_v56 = vor.u32 %v17166_v37, %v13977_v36  ;;  %20723 = vst [vmem:[#allocation46_spill] sm:$0xff] %v19415_v28  ;;  %v14585_v36 = vld [vmem:[#allocation3 + $0x1160] sm:$0xf] }
 0x110   : > { %7201 = vmatpush.bf16.msra.mxu1 %v13994_v54  ;;  %v17320_v54 = vld [vmem:[#allocation3 + $0x1174] sm:$0xf0]  ;;  %v17318_v37 = vld [vmem:[#allocation3 + $0x1164] sm:$0xf0]  ;;  %20725 = vst [vmem:[#allocation48_spill] sm:$0xff] %v19419_v45 }
 0x111   : > { %7189 = vmatpush.bf16.msra.mxu0 %v13914_v1  ;;  %v13969_v1 = vld [vmem:[#allocation3 + $0xc90] sm:$0xf] }
 0x112   : > { %7175 = vmatpush.bf16.msra.mxu3 %v13850_v59  ;;  %v13834_v59 = vor.u32 %v17130_v23, %v13833_v25  ;;  %v17206_v25 = vld [vmem:[#allocation3 + $0xde4] sm:$0xf0]  ;;  %v14201_v23 = vld [vmem:[#allocation3 + $0xe60] sm:$0xf]  ;;  %v14577_v60 = vld [vmem:[#allocation3 + $0x1150] sm:$0xf] }
 0x113   : > { %7273 = vmatpush.bf16.msra.mxu2 %v14298_v3  ;;  %v13898_v3 = vor.u32 %v17146_v42, %v13897_v30  ;;  %v13970_v30 = vor.u32 %v17164_v6, %v13969_v1  ;;  %v13961_v42 = vld [vmem:[#allocation3 + $0xc80] sm:$0xf]  ;;  %v14138_v48 = vor.u32 %v17206_v25, %v14137_v14  ;;  %v17238_v14 = vld [vmem:[#allocation3 + $0xee4] sm:$0xf0]  ;;  %v14578_v15 = vor.u32 %v17316_v63, %v14577_v60  ;;  %v19435_v60 = vpop.f32.mrf.mxu2  ;;  %v14561_v63 = vld [vmem:[#allocation3 + $0x1130] sm:$0xf] }
 0x114   : > { %7202 = vmatpush.bf16.msra.mxu1 %v13986_v21  ;;  %v14594_v21 = vor.u32 %v17320_v54, %v14593_v53  ;;  %v17240_v53 = vld [vmem:[#allocation3 + $0xef4] sm:$0xf0]  ;;  %v14586_v54 = vor.u32 %v17318_v37, %v14585_v36  ;;  %v13962_v1 = vor.u32 %v17162_v44, %v13961_v42  ;;  %v14185_v25 = vld [vmem:[#allocation3 + $0xe40] sm:$0xf]  ;;  %v19430_v36 = vpop.f32.mrf.mxu0  ;;  %v19432_v42 = vpop.f32.mrf.mxu1 }
 0x115   : > { %7190 = vmatpush.bf16.msra.mxu0 %v13906_v39  ;;  %v19417_v39 = vor.u32 %v16743_v11, %v12217_v7  ;;  %v14274_v6 = vor.u32 %v17240_v53, %v14273_v52  ;;  %v14569_v37 = vld [vmem:[#allocation3 + $0x1140] sm:$0xf]  ;;  %v17236_v52 = vld [vmem:[#allocation3 + $0xed4] sm:$0xf0] }
 0x116   : > { %7176 = vmatpush.bf16.msra.mxu3 %v13842_v29  ;;  %v17222_v29 = vld [vmem:[#allocation3 + $0xe64] sm:$0xf0] }
 0x117   : > { %7274 = vmatpush.bf16.msra.mxu2 %v14290_v40  ;;  %20724 = vst [vmem:[#allocation47_spill] sm:$0xff] %v19417_v39  ;;  %v14129_v40 = vld [vmem:[#allocation3 + $0xdd0] sm:$0xf]  ;;  %v14202_v49 = vor.u32 %v17222_v29, %v14201_v23  ;;  %v17218_v23 = vld [vmem:[#allocation3 + $0xe44] sm:$0xf0]  ;;  %v19428_v29 = vpop.f32.mrf.mxu3 }
 0x118   : > { %7203 = vmatpush.bf16.msra.mxu1 %v13978_v56  ;;  %v14193_v56 = vld [vmem:[#allocation3 + $0xe50] sm:$0xf]  ;;  %v14130_v7 = vor.u32 %v17204_v51, %v14129_v40 }
 0x119   : > { %7191 = vmatpush.bf16.msra.mxu0 %v13898_v3  ;;  %v16713_v3 = vld [vmem:[%s19271_s28 + $0x64] sm:$0xf]  ;;  %v14257_v51 = vld [vmem:[#allocation3 + $0xed0] sm:$0xf] }
 0x11a   : > { %7177 = vmatpush.bf16.msra.mxu3 %v13834_v59  ;;  %v17220_v59 = vld [vmem:[#allocation3 + $0xe54] sm:$0xf0] }
 0x11b   : > { %7275 = vmatpush.bf16.msra.mxu2 %v14282_v4  ;;  %v12219_v4 = vld [vmem:[%s19271_s28 + $0x150] sm:$0xf0]  ;;  %v14194_v11 = vor.u32 %v17220_v59, %v14193_v56  ;;  %v14177_v56 = vld [vmem:[#allocation3 + $0xe30] sm:$0xf]  ;;  %v17216_v59 = vld [vmem:[#allocation3 + $0xe34] sm:$0xf0] }
 0x11c   : > { %7204 = vmatpush.bf16.msra.mxu1 %v13970_v30  ;;  %7192 = vmatmul.bf16.vlgmr.msra.gmra.mxu0 %v19417_v39  ;;  %v19426_v18 = vor.u32 %v16713_v3, %v12219_v4  ;;  %v17314_v30 = vld [vmem:[#allocation3 + $0x1144] sm:$0xf0]  ;;  %v14258_v3 = vor.u32 %v17236_v52, %v14257_v51  ;;  %v14097_v51 = vld [vmem:[#allocation3 + $0xd90] sm:$0xf]  ;;  %v17308_v39 = vld [vmem:[#allocation3 + $0x1114] sm:$0xf0] }
 0x11d   : > { %7240 = vmatpush.bf16.msrb.mxu0 %v14210_v13  ;;  %7178 = vmatmul.bf16.vlgmr.msra.gmra.mxu3 %v19415_v28  ;;  %v14265_v13 = vld [vmem:[#allocation3 + $0xee0] sm:$0xf]  ;;  %v14570_v53 = vor.u32 %v17314_v30, %v14569_v37  ;;  %v17310_v30 = vld [vmem:[#allocation3 + $0x1124] sm:$0xf0]  ;;  %v14241_v52 = vld [vmem:[#allocation3 + $0xeb0] sm:$0xf] }
 0x11e   : > { %7226 = vmatpush.bf16.msrb.mxu3 %v14146_v12  ;;  %7276 = vmatmul.bf16.vlgmr.msra.gmra.mxu2 %v19419_v45  ;;  %v14121_v12 = vld [vmem:[#allocation3 + $0xdc0] sm:$0xf]  ;;  %20726 = vst [vmem:[#allocation49_spill] sm:$0xff] %v19426_v18  ;;  %v14266_v40 = vor.u32 %v17238_v14, %v14265_v13  ;;  %v17198_v14 = vld [vmem:[#allocation3 + $0xda4] sm:$0xf0] }
 0x11f   : > { %7324 = vmatpush.bf16.msrb.mxu2 %v14594_v21  ;;  %v17202_v21 = vld [vmem:[#allocation3 + $0xdc4] sm:$0xf0]  ;;  %v14553_v37 = vld [vmem:[#allocation3 + $0x1120] sm:$0xf]  ;;  %v14545_v45 = vld [vmem:[#allocation3 + $0x1110] sm:$0xf] }
 0x120   : > { %7205 = vmatpush.bf16.msra.mxu1 %v13962_v1  ;;  %v14122_v44 = vor.u32 %v17202_v21, %v14121_v12  ;;  %v17312_v1 = vld [vmem:[#allocation3 + $0x1134] sm:$0xf0]  ;;  %v17234_v12 = vld [vmem:[#allocation3 + $0xec4] sm:$0xf0] }
 0x121   : > { %7241 = vmatpush.bf16.msrb.mxu0 %v14202_v49  ;;  %v14113_v49 = vld [vmem:[#allocation3 + $0xdb0] sm:$0xf]  ;;  %v14562_v13 = vor.u32 %v17312_v1, %v14561_v63  ;;  %v17214_v21 = vld [vmem:[#allocation3 + $0xe24] sm:$0xf0]  ;;  %v17212_v1 = vld [vmem:[#allocation3 + $0xe14] sm:$0xf0] }
 0x122   : > { %7227 = vmatpush.bf16.msrb.mxu3 %v14138_v48  ;;  %v14186_v48 = vor.u32 %v17218_v23, %v14185_v25  ;;  %v6955_v25 = vpop.f32.mrf.mxu3  ;;  %v6969_v23 = vpop.f32.mrf.mxu0  ;;  %v14161_v63 = vld [vmem:[#allocation3 + $0xe10] sm:$0xf]  ;;  %v16748_v28 = vld [vmem:[%s19271_s28 + $0x174] sm:$0xf0] }
 0x123   : > { %7325 = vmatpush.bf16.msrb.mxu2 %v14586_v54  ;;  %7206 = vmatmul.bf16.vlgmr.msra.gmra.mxu1 %v19426_v18  ;;  %v17200_v54 = vld [vmem:[#allocation3 + $0xdb4] sm:$0xf0]  ;;  %v6956_v41 = vadd.f32 %v6955_v25, %v19407_v46  ;;  %v6997_v18 = vpop.f32.mrf.mxu2  ;;  %v14546_v25 = vor.u32 %v17308_v39, %v14545_v45  ;;  %v14225_v39 = vld [vmem:[#allocation3 + $0xe90] sm:$0xf] }
 0x124   : > { %7254 = vmatpush.bf16.msrb.mxu1 %v14274_v6  ;;  %v14114_v4 = vor.u32 %v17200_v54, %v14113_v49  ;;  %v14178_v6 = vor.u32 %v17216_v59, %v14177_v56  ;;  %v6983_v49 = vpop.f32.mrf.mxu1  ;;  %v14554_v56 = vor.u32 %v17310_v30, %v14553_v37  ;;  %v17196_v59 = vld [vmem:[#allocation3 + $0xd94] sm:$0xf0]  ;;  %v14401_v37 = vld [vmem:[#allocation3 + $0xff0] sm:$0xf] }
 0x125   : > { %7242 = vmatpush.bf16.msrb.mxu0 %v14194_v11  ;;  %v14249_v11 = vld [vmem:[#allocation3 + $0xec0] sm:$0xf]  ;;  %v6970_v54 = vadd.f32 %v6969_v23, %v6956_v41  ;;  %v17306_v23 = vld [vmem:[#allocation3 + $0x1104] sm:$0xf0]  ;;  %v17272_v30 = vld [vmem:[#allocation3 + $0xff4] sm:$0xf0] }
 0x126   : > { %7228 = vmatpush.bf16.msrb.mxu3 %v14130_v7  ;;  %v14105_v7 = vld [vmem:[#allocation3 + $0xda0] sm:$0xf]  ;;  %v17228_v45 = vld [vmem:[#allocation3 + $0xe94] sm:$0xf0] }
 0x127   : > { %7326 = vmatpush.bf16.msrb.mxu2 %v14578_v15  ;;  %v14169_v15 = vld [vmem:[#allocation3 + $0xe20] sm:$0xf]  ;;  %v6984_v46 = vadd.f32 %v6983_v49, %v6970_v54  ;;  %v17288_v49 = vld [vmem:[#allocation3 + $0x1074] sm:$0xf0] }
 0x128   : > { %7255 = vmatpush.bf16.msrb.mxu1 %v14266_v40  ;;  %v14250_v40 = vor.u32 %v17234_v12, %v14249_v11  ;;  %v17210_v11 = vld [vmem:[#allocation3 + $0xe04] sm:$0xf0]  ;;  %v14098_v12 = vor.u32 %v17196_v59, %v14097_v51  ;;  %v14537_v41 = vld [vmem:[#allocation3 + $0x1100] sm:$0xf]  ;;  %v16714_v51 = vld [vmem:[%s19271_s28 + $0x6c] sm:$0xf] }
 0x129   : > { %7243 = vmatpush.bf16.msrb.mxu0 %v14186_v48  ;;  %v14170_v48 = vor.u32 %v17214_v21, %v14169_v15  ;;  %v17230_v15 = vld [vmem:[#allocation3 + $0xea4] sm:$0xf0]  ;;  %v19438_v21 = vadd.f32 %v6997_v18, %v6984_v46  ;;  %v14538_v59 = vor.u32 %v17306_v23, %v14537_v41  ;;  %v14394_v23 = vor.u32 %v17270_v19, %v14393_v20  ;;  %v16715_v20 = vld [vmem:[%s19271_s28 + $0x74] sm:$0xf] }
 0x12a   : > { %7229 = vmatpush.bf16.msrb.mxu3 %v14122_v44  ;;  %v14106_v44 = vor.u32 %v17198_v14, %v14105_v7  ;;  %v14153_v7 = vld [vmem:[#allocation3 + $0xe00] sm:$0xf]  ;;  %v14162_v14 = vor.u32 %v17212_v1, %v14161_v63  ;;  %v14402_v63 = vor.u32 %v17272_v30, %v14401_v37  ;;  %v12257_v46 = vld [vmem:[%s19271_s28 + $0x88] sm:$0xf]  ;;  %v14529_v37 = vld [vmem:[#allocation3 + $0x10f0] sm:$0xf] }
 0x12b   : > { %7327 = vmatpush.bf16.msrb.mxu2 %v14570_v53  ;;  %v17232_v53 = vld [vmem:[#allocation3 + $0xeb4] sm:$0xf0]  ;;  %v14154_v54 = vor.u32 %v17210_v11, %v14153_v7  ;;  %v16745_v1 = vld [vmem:[%s19271_s28 + $0x15c] sm:$0xf0]  ;;  %v14226_v7 = vor.u32 %v17228_v45, %v14225_v39  ;;  %v17302_v45 = vld [vmem:[#allocation3 + $0x10e4] sm:$0xf0] }
 0x12c   : > { %7256 = vmatpush.bf16.msrb.mxu1 %v14258_v3  ;;  %v14242_v3 = vor.u32 %v17232_v53, %v14241_v52  ;;  %v14849_v52 = vld [vmem:[#allocation3 + $0x1370] sm:$0xf]  ;;  %v12227_v53 = vld [vmem:[%s19271_s28 + $0x158] sm:$0xf0]  ;;  %v14217_v11 = vld [vmem:[#allocation3 + $0xe80] sm:$0xf] }
 0x12d   : > { %7244 = vmatpush.bf16.msrb.mxu0 %v14178_v6  ;;  %v17194_v6 = vld [vmem:[#allocation3 + $0xd84] sm:$0xf0]  ;;  %v17304_v30 = vld [vmem:[#allocation3 + $0x10f4] sm:$0xf0]  ;;  %v14521_v39 = vld [vmem:[#allocation3 + $0x10e0] sm:$0xf] }
 0x12e   : > { %7230 = vmatpush.bf16.msrb.mxu3 %v14114_v4  ;;  %v14089_v4 = vld [vmem:[#allocation3 + $0xd80] sm:$0xf]  ;;  %v14530_v19 = vor.u32 %v17304_v30, %v14529_v37  ;;  %v17300_v37 = vld [vmem:[#allocation3 + $0x10d4] sm:$0xf0]  ;;  %v19463_v30 = vpop.f32.mrf.mxu1 }
 0x12f   : > { %7328 = vmatpush.bf16.msrb.mxu2 %v14562_v13  ;;  %v14233_v13 = vld [vmem:[#allocation3 + $0xea0] sm:$0xf]  ;;  %v14090_v18 = vor.u32 %v17194_v6, %v14089_v4  ;;  %v17382_v6 = vld [vmem:[#allocation3 + $0x1364] sm:$0xf0] }
 0x130   : > { %7257 = vmatpush.bf16.msrb.mxu1 %v14250_v40  ;;  %v14465_v40 = vld [vmem:[#allocation3 + $0x1070] sm:$0xf]  ;;  %v14841_v4 = vld [vmem:[#allocation3 + $0x1360] sm:$0xf] }
 0x131   : > { %7245 = vmatpush.bf16.msrb.mxu0 %v14170_v48  ;;  %v14234_v48 = vor.u32 %v17230_v15, %v14233_v13  ;;  %v14457_v13 = vld [vmem:[#allocation3 + $0x1060] sm:$0xf]  ;;  %v19446_v15 = vor.u32 %v16714_v51, %v12227_v53  ;;  %v17284_v51 = vld [vmem:[#allocation3 + $0x1054] sm:$0xf0] }
 0x132   : > { %7231 = vmatpush.bf16.msrb.mxu3 %v14106_v44  ;;  %v17384_v44 = vld [vmem:[#allocation3 + $0x1374] sm:$0xf0] }
 0x133   : > { %7329 = vmatpush.bf16.msrb.mxu2 %v14554_v56  ;;  %v12233_v56 = vld [vmem:[%s19271_s28 + $0x70] sm:$0xf]  ;;  %v14850_v0 = vor.u32 %v17384_v44, %v14849_v52  ;;  %20727 = vst [vmem:[#allocation50_spill] sm:$0xff] %v19446_v15  ;;  %v17268_v44 = vld [vmem:[#allocation3 + $0xfd4] sm:$0xf0] }
 0x134   : > { %7258 = vmatpush.bf16.msrb.mxu1 %v14242_v3  ;;  %v14466_v3 = vor.u32 %v17288_v49, %v14465_v40  ;;  %v19448_v41 = vor.u32 %v16745_v1, %v12233_v56  ;;  %v14842_v49 = vor.u32 %v17382_v6, %v14841_v4  ;;  %v14385_v52 = vld [vmem:[#allocation3 + $0xfd0] sm:$0xf]  ;;  %v17380_v53 = vld [vmem:[#allocation3 + $0x1354] sm:$0xf0]  ;;  %v17266_v1 = vld [vmem:[#allocation3 + $0xfc4] sm:$0xf0]  ;;  %v19459_v6 = vpop.f32.mrf.mxu3 }
 0x135   : > { %7246 = vmatpush.bf16.msrb.mxu0 %v14162_v14  ;;  %v17226_v14 = vld [vmem:[#allocation3 + $0xe84] sm:$0xf0] }
 0x136   : > { %7232 = vmatpush.bf16.msrb.mxu3 %v14098_v12  ;;  %v17286_v12 = vld [vmem:[#allocation3 + $0x1064] sm:$0xf0]  ;;  %20728 = vst [vmem:[#allocation51_spill] sm:$0xff] %v19448_v41 }
 0x137   : > { %7330 = vmatpush.bf16.msrb.mxu2 %v14546_v25  ;;  %v19450_v25 = vor.u32 %v16748_v28, %v12257_v46  ;;  %v14458_v40 = vor.u32 %v17286_v12, %v14457_v13  ;;  %v14833_v28 = vld [vmem:[#allocation3 + $0x1350] sm:$0xf]  ;;  %v14441_v46 = vld [vmem:[#allocation3 + $0x1040] sm:$0xf]  ;;  %v17282_v13 = vld [vmem:[#allocation3 + $0x1044] sm:$0xf0] }
 0x138   : > { %7259 = vmatpush.bf16.msrb.mxu1 %v14234_v48  ;;  %v14449_v48 = vld [vmem:[#allocation3 + $0x1050] sm:$0xf]  ;;  %v14825_v12 = vld [vmem:[#allocation3 + $0x1340] sm:$0xf]  ;;  %v17378_v4 = vld [vmem:[#allocation3 + $0x1344] sm:$0xf0] }
 0x139   : > { %7247 = vmatpush.bf16.msrb.mxu0 %v14154_v54  ;;  %20729 = vst [vmem:[#allocation52_spill] sm:$0xff] %v19450_v25  ;;  %v12235_v54 = vld [vmem:[%s19271_s28 + $0x160] sm:$0xf0]  ;;  %v14450_v56 = vor.u32 %v17284_v51, %v14449_v48  ;;  %v14433_v48 = vld [vmem:[#allocation3 + $0x1030] sm:$0xf] }
 0x13a   : > { %7233 = vmatpush.bf16.msrb.mxu3 %v14090_v18  ;;  %v14218_v18 = vor.u32 %v17226_v14, %v14217_v11  ;;  %v14522_v11 = vor.u32 %v17302_v45, %v14521_v39  ;;  %v17280_v51 = vld [vmem:[#allocation3 + $0x1034] sm:$0xf0] }
 0x13b   : > { %7331 = vmatpush.bf16.msrb.mxu2 %v14538_v59  ;;  %v14834_v59 = vor.u32 %v17380_v53, %v14833_v28  ;;  %v14817_v28 = vld [vmem:[#allocation3 + $0x1330] sm:$0xf]  ;;  %v17376_v53 = vld [vmem:[#allocation3 + $0x1334] sm:$0xf0]  ;;  %v14434_v39 = vor.u32 %v17280_v51, %v14433_v48 }
 0x13c   : > { %7260 = vmatpush.bf16.msrb.mxu1 %v14226_v7  ;;  %7248 = vmatmul.bf16.vlgmr.msrb.gmra.mxu0 %v19448_v41  ;;  %v19461_v7 = vpop.f32.mrf.mxu0  ;;  %v14818_v45 = vor.u32 %v17376_v53, %v14817_v28  ;;  %v17260_v48 = vld [vmem:[#allocation3 + $0xf94] sm:$0xf0]  ;;  %v14417_v51 = vld [vmem:[#allocation3 + $0x1010] sm:$0xf] }
 0x13d   : > { %7296 = vmatpush.bf16.msra.mxu0 %v14466_v3  ;;  %7234 = vmatmul.bf16.vlgmr.msrb.gmra.mxu3 %v19446_v15  ;;  %v19457_v3 = vor.u32 %v16715_v20, %v12235_v54  ;;  %v14505_v54 = vld [vmem:[#allocation3 + $0x10c0] sm:$0xf]  ;;  %v17276_v53 = vld [vmem:[#allocation3 + $0x1014] sm:$0xf0] }
 0x13e   : > { %7282 = vmatpush.bf16.msra.mxu3 %v14402_v63  ;;  %7332 = vmatmul.bf16.vlgmr.msrb.gmra.mxu2 %v19450_v25  ;;  %v14377_v63 = vld [vmem:[#allocation3 + $0xfc0] sm:$0xf]  ;;  %v14801_v25 = vld [vmem:[#allocation3 + $0x1310] sm:$0xf] }
 0x13f   : > { %7380 = vmatpush.bf16.msra.mxu2 %v14850_v0  ;;  %v14386_v0 = vor.u32 %v17268_v44, %v14385_v52  ;;  %20730 = vst [vmem:[#allocation53_spill] sm:$0xff] %v19457_v3  ;;  %v14378_v14 = vor.u32 %v17266_v1, %v14377_v63  ;;  %v14369_v52 = vld [vmem:[#allocation3 + $0xfb0] sm:$0xf]  ;;  %v17264_v44 = vld [vmem:[#allocation3 + $0xfb4] sm:$0xf0] }
 0x140   : > { %7261 = vmatpush.bf16.msrb.mxu1 %v14218_v18  ;;  %v19466_v18 = vpop.f32.mrf.mxu2  ;;  %v14370_v20 = vor.u32 %v17264_v44, %v14369_v52  ;;  %v14425_v63 = vld [vmem:[#allocation3 + $0x1020] sm:$0xf]  ;;  %v17278_v1 = vld [vmem:[#allocation3 + $0x1024] sm:$0xf0]  ;;  %v7039_v52 = vpop.f32.mrf.mxu1  ;;  %v14353_v44 = vld [vmem:[#allocation3 + $0xf90] sm:$0xf] }
 0x141   : > { %7297 = vmatpush.bf16.msra.mxu0 %v14458_v40  ;;  %v14442_v40 = vor.u32 %v17282_v13, %v14441_v46  ;;  %v14809_v46 = vld [vmem:[#allocation3 + $0x1320] sm:$0xf]  ;;  %v17374_v13 = vld [vmem:[#allocation3 + $0x1324] sm:$0xf0] }
 0x142   : > { %7283 = vmatpush.bf16.msra.mxu3 %v14394_v23  ;;  %v14513_v23 = vld [vmem:[#allocation3 + $0x10d0] sm:$0xf]  ;;  %v14649_v15 = vld [vmem:[#allocation3 + $0x11e0] sm:$0xf] }
 0x143   : > { %7381 = vmatpush.bf16.msra.mxu2 %v14842_v49  ;;  %v14826_v49 = vor.u32 %v17378_v4, %v14825_v12  ;;  %7262 = vmatmul.bf16.vlgmr.msrb.gmra.mxu1 %v19457_v3  ;;  %v7011_v12 = vpop.f32.mrf.mxu3 }
 0x144   : > { %7310 = vmatpush.bf16.msra.mxu1 %v14530_v19  ;;  %v14514_v19 = vor.u32 %v17300_v37, %v14513_v23  ;;  %v7025_v4 = vpop.f32.mrf.mxu0  ;;  %v14497_v23 = vld [vmem:[#allocation3 + $0x10b0] sm:$0xf]  ;;  %v17296_v37 = vld [vmem:[#allocation3 + $0x10b4] sm:$0xf0] }
 0x145   : > { %7298 = vmatpush.bf16.msra.mxu0 %v14450_v56  ;;  %v14361_v56 = vld [vmem:[#allocation3 + $0xfa0] sm:$0xf] }
 0x146   : > { %7284 = vmatpush.bf16.msra.mxu3 %v14386_v0  ;;  %v17298_v0 = vld [vmem:[#allocation3 + $0x10c4] sm:$0xf0] }
 0x147   : > { %7382 = vmatpush.bf16.msra.mxu2 %v14834_v59  ;;  %v17262_v59 = vld [vmem:[#allocation3 + $0xfa4] sm:$0xf0]  ;;  %v14506_v3 = vor.u32 %v17298_v0, %v14505_v54  ;;  %v14345_v0 = vld [vmem:[#allocation3 + $0xf80] sm:$0xf] }
 0x148   : > { %7311 = vmatpush.bf16.msra.mxu1 %v14522_v11  ;;  %v7012_v11 = vadd.f32 %v7011_v12, %v19438_v21  ;;  %v7053_v54 = vpop.f32.mrf.mxu2  ;;  %v17258_v21 = vld [vmem:[#allocation3 + $0xf84] sm:$0xf0]  ;;  %v14793_v12 = vld [vmem:[#allocation3 + $0x1300] sm:$0xf] }
 0x149   : > { %7299 = vmatpush.bf16.msra.mxu0 %v14442_v40  ;;  %v14426_v40 = vor.u32 %v17278_v1, %v14425_v63  ;;  %v17294_v63 = vld [vmem:[#allocation3 + $0x10a4] sm:$0xf0]  ;;  %v14418_v1 = vor.u32 %v17276_v53, %v14417_v51  ;;  %v14481_v51 = vld [vmem:[#allocation3 + $0x1090] sm:$0xf] }
 0x14a   : > { %7285 = vmatpush.bf16.msra.mxu3 %v14378_v14  ;;  %v14362_v14 = vor.u32 %v17262_v59, %v14361_v56  ;;  %v7026_v28 = vadd.f32 %v7025_v4, %v7012_v11  ;;  %v14354_v59 = vor.u32 %v17260_v48, %v14353_v44  ;;  %v17370_v4 = vld [vmem:[#allocation3 + $0x1304] sm:$0xf0]  ;;  %v14657_v11 = vld [vmem:[#allocation3 + $0x11f0] sm:$0xf]  ;;  %v17448_v44 = vld [vmem:[#allocation3 + $0x1574] sm:$0xf0] }
 0x14b   : > { %7383 = vmatpush.bf16.msra.mxu2 %v14826_v49  ;;  %v14810_v49 = vor.u32 %v17374_v13, %v14809_v46  ;;  %v17274_v13 = vld [vmem:[#allocation3 + $0x1004] sm:$0xf0]  ;;  %v12243_v48 = vld [vmem:[%s19271_s28 + $0x168] sm:$0xf0]  ;;  %v14794_v53 = vor.u32 %v17370_v4, %v14793_v12  ;;  %v14641_v12 = vld [vmem:[#allocation3 + $0x11d0] sm:$0xf] }
 0x14c   : > { %7312 = vmatpush.bf16.msra.mxu1 %v14514_v19  ;;  %v17372_v19 = vld [vmem:[#allocation3 + $0x1314] sm:$0xf0]  ;;  %v7040_v56 = vadd.f32 %v7039_v52, %v7026_v28  ;;  %v15105_v52 = vld [vmem:[#allocation3 + $0x1570] sm:$0xf]  ;;  %v14473_v4 = vld [vmem:[#allocation3 + $0x1080] sm:$0xf] }
 0x14d   : > { %7300 = vmatpush.bf16.msra.mxu0 %v14434_v39  ;;  %v14409_v39 = vld [vmem:[#allocation3 + $0x1000] sm:$0xf]  ;;  %v14802_v46 = vor.u32 %v17372_v19, %v14801_v25  ;;  %v14346_v25 = vor.u32 %v17258_v21, %v14345_v0  ;;  %v17292_v19 = vld [vmem:[#allocation3 + $0x1094] sm:$0xf0]  ;;  %v17334_v0 = vld [vmem:[#allocation3 + $0x11e4] sm:$0xf0] }
 0x14e   : > { %7286 = vmatpush.bf16.msra.mxu3 %v14370_v20  ;;  %v14498_v20 = vor.u32 %v17296_v37, %v14497_v23  ;;  %v17336_v23 = vld [vmem:[#allocation3 + $0x11f4] sm:$0xf0]  ;;  %v14721_v37 = vld [vmem:[#allocation3 + $0x1270] sm:$0xf]  ;;  %v14410_v28 = vor.u32 %v17274_v13, %v14409_v39  ;;  %v14713_v21 = vld [vmem:[#allocation3 + $0x1260] sm:$0xf]  ;;  %v14482_v39 = vor.u32 %v17292_v19, %v14481_v51 }
 0x14f   : > { %7384 = vmatpush.bf16.msra.mxu2 %v14818_v45  ;;  %v14489_v45 = vld [vmem:[#allocation3 + $0x10a0] sm:$0xf]  ;;  %v15089_v51 = vld [vmem:[#allocation3 + $0x1550] sm:$0xf] }
 0x150   : > { %7313 = vmatpush.bf16.msra.mxu1 %v14506_v3  ;;  %v19469_v3 = vadd.f32 %v7053_v54, %v7040_v56  ;;  %v12249_v54 = vld [vmem:[%s19271_s28 + $0x80] sm:$0xf]  ;;  %v16747_v56 = vld [vmem:[%s19271_s28 + $0x16c] sm:$0xf0] }
 0x151   : > { %7301 = vmatpush.bf16.msra.mxu0 %v14426_v40  ;;  %v14490_v40 = vor.u32 %v17294_v63, %v14489_v45  ;;  %v15106_v45 = vor.u32 %v17448_v44, %v15105_v52  ;;  %v17350_v63 = vld [vmem:[#allocation3 + $0x1264] sm:$0xf0]  ;;  %v19479_v13 = vor.u32 %v16747_v56, %v12249_v54  ;;  %v17332_v52 = vld [vmem:[#allocation3 + $0x11d4] sm:$0xf0]  ;;  %v14785_v44 = vld [vmem:[#allocation3 + $0x12f0] sm:$0xf] }
 0x152   : > { %7287 = vmatpush.bf16.msra.mxu3 %v14362_v14  ;;  %v17352_v14 = vld [vmem:[#allocation3 + $0x1274] sm:$0xf0]  ;;  %v14633_v54 = vld [vmem:[#allocation3 + $0x11c0] sm:$0xf] }
 0x153   : > { %7385 = vmatpush.bf16.msra.mxu2 %v14810_v49  ;;  %v16716_v49 = vld [vmem:[%s19271_s28 + $0x7c] sm:$0xf]  ;;  %v14722_v41 = vor.u32 %v17352_v14, %v14721_v37  ;;  %20732 = vst [vmem:[#allocation55_spill] sm:$0xff] %v19479_v13  ;;  %v14650_v37 = vor.u32 %v17334_v0, %v14649_v15  ;;  %v14714_v14 = vor.u32 %v17350_v63, %v14713_v21  ;;  %v14777_v56 = vld [vmem:[#allocation3 + $0x12e0] sm:$0xf] }
 0x154   : > { %7314 = vmatpush.bf16.msra.mxu1 %v14498_v20  ;;  %v14658_v20 = vor.u32 %v17336_v23, %v14657_v11  ;;  %v17290_v11 = vld [vmem:[#allocation3 + $0x1084] sm:$0xf0]  ;;  %v19481_v23 = vor.u32 %v16750_v9, %v12273_v8  ;;  %v16717_v8 = vld [vmem:[%s19271_s28 + $0x84] sm:$0xf]  ;;  %v14697_v63 = vld [vmem:[#allocation3 + $0x1240] sm:$0xf] }
 0x155   : > { %7302 = vmatpush.bf16.msra.mxu0 %v14418_v1  ;;  %v15097_v1 = vld [vmem:[#allocation3 + $0x1560] sm:$0xf]  ;;  %v14474_v9 = vor.u32 %v17290_v11, %v14473_v4  ;;  %v17330_v21 = vld [vmem:[#allocation3 + $0x11c4] sm:$0xf0] }
 0x156   : > { %7288 = vmatpush.bf16.msra.mxu3 %v14354_v59  ;;  %v19477_v59 = vor.u32 %v16716_v49, %v12243_v48  ;;  %20733 = vst [vmem:[#allocation56_spill] sm:$0xff] %v19481_v23  ;;  %v14705_v49 = vld [vmem:[#allocation3 + $0x1250] sm:$0xf]  ;;  %v17348_v48 = vld [vmem:[#allocation3 + $0x1254] sm:$0xf0] }
 0x157   : > { %7386 = vmatpush.bf16.msra.mxu2 %v14802_v46  ;;  %v17446_v46 = vld [vmem:[#allocation3 + $0x1564] sm:$0xf0]  ;;  %v14706_v19 = vor.u32 %v17348_v48, %v14705_v49  ;;  %v15081_v4 = vld [vmem:[#allocation3 + $0x1540] sm:$0xf]  ;;  %v17328_v48 = vld [vmem:[#allocation3 + $0x11b4] sm:$0xf0] }
 0x158   : > { %7315 = vmatpush.bf16.msra.mxu1 %v14490_v40  ;;  %20731 = vst [vmem:[#allocation54_spill] sm:$0xff] %v19477_v59  ;;  %v17368_v40 = vld [vmem:[#allocation3 + $0x12f4] sm:$0xf0]  ;;  %v17442_v11 = vld [vmem:[#allocation3 + $0x1544] sm:$0xf0] }
 0x159   : > { %7303 = vmatpush.bf16.msra.mxu0 %v14410_v28  ;;  %v17444_v28 = vld [vmem:[#allocation3 + $0x1554] sm:$0xf0]  ;;  %v14786_v15 = vor.u32 %v17368_v40, %v14785_v44  ;;  %v14625_v44 = vld [vmem:[#allocation3 + $0x11b0] sm:$0xf]  ;;  %v15082_v49 = vor.u32 %v17442_v11, %v15081_v4 }
 0x15a   : > { %7289 = vmatpush.bf16.msra.mxu3 %v14346_v25  ;;  %v15098_v25 = vor.u32 %v17446_v46, %v15097_v1  ;;  %v17346_v1 = vld [vmem:[#allocation3 + $0x1244] sm:$0xf0]  ;;  %v19490_v46 = vpop.f32.mrf.mxu3  ;;  %v14769_v40 = vld [vmem:[#allocation3 + $0x12d0] sm:$0xf] }
 0x15b   : > { %7387 = vmatpush.bf16.msra.mxu2 %v14794_v53  ;;  %v14642_v53 = vor.u32 %v17332_v52, %v14641_v12  ;;  %v14698_v52 = vor.u32 %v17346_v1, %v14697_v63  ;;  %v14681_v63 = vld [vmem:[#allocation3 + $0x1220] sm:$0xf]  ;;  %v17342_v1 = vld [vmem:[#allocation3 + $0x1224] sm:$0xf0] }
 0x15c   : > { %7316 = vmatpush.bf16.msra.mxu1 %v14482_v39  ;;  %7304 = vmatmul.bf16.vlgmr.msra.gmra.mxu0 %v19479_v13  ;;  %v19492_v39 = vpop.f32.mrf.mxu0 }
 0x15d   : > { %7352 = vmatpush.bf16.msrb.mxu0 %v14722_v41  ;;  %7290 = vmatmul.bf16.vlgmr.msra.gmra.mxu3 %v19477_v59  ;;  %v12251_v41 = vld [vmem:[%s19271_s28 + $0x170] sm:$0xf0] }
 0x15e   : > { %7338 = vmatpush.bf16.msrb.mxu3 %v14658_v20  ;;  %7388 = vmatmul.bf16.vlgmr.msra.gmra.mxu2 %v19481_v23  ;;  %v17366_v20 = vld [vmem:[#allocation3 + $0x12e4] sm:$0xf0]  ;;  %v19488_v0 = vor.u32 %v16717_v8, %v12251_v41  ;;  %v15073_v8 = vld [vmem:[#allocation3 + $0x1530] sm:$0xf]  ;;  %v17440_v41 = vld [vmem:[#allocation3 + $0x1534] sm:$0xf0] }
 0x15f   : > { %7436 = vmatpush.bf16.msrb.mxu2 %v15106_v45  ;;  %v15090_v45 = vor.u32 %v17444_v28, %v15089_v51  ;;  %v14778_v12 = vor.u32 %v17366_v20, %v14777_v56  ;;  %v14689_v51 = vld [vmem:[#allocation3 + $0x1230] sm:$0xf]  ;;  %v17344_v28 = vld [vmem:[#allocation3 + $0x1234] sm:$0xf0]  ;;  %v14761_v56 = vld [vmem:[#allocation3 + $0x12c0] sm:$0xf] }
 0x160   : > { %20734 = vst [vmem:[#allocation57_spill] sm:$0xff] %v19488_v0  ;;  %7317 = vmatpush.bf16.msra.mxu1 %v14474_v9  ;;  %v19497_v9 = vpop.f32.mrf.mxu2  ;;  %v17362_v20 = vld [vmem:[#allocation3 + $0x12c4] sm:$0xf0] }
 0x161   : > { %7353 = vmatpush.bf16.msrb.mxu0 %v14714_v14  ;;  %v14634_v14 = vor.u32 %v17330_v21, %v14633_v54  ;;  %v14617_v54 = vld [vmem:[#allocation3 + $0x11a0] sm:$0xf]  ;;  %v17326_v21 = vld [vmem:[#allocation3 + $0x11a4] sm:$0xf0] }
 0x162   : > { %7339 = vmatpush.bf16.msrb.mxu3 %v14650_v37  ;;  %v19494_v37 = vpop.f32.mrf.mxu1  ;;  %v7067_v4 = vpop.f32.mrf.mxu3  ;;  %v17438_v23 = vld [vmem:[#allocation3 + $0x1524] sm:$0xf0] }
 0x163   : > { %7437 = vmatpush.bf16.msrb.mxu2 %v15098_v25  ;;  %v17364_v25 = vld [vmem:[#allocation3 + $0x12d4] sm:$0xf0]  ;;  %7318 = vmatmul.bf16.vlgmr.msra.gmra.mxu1 %v19488_v0  ;;  %v15065_v0 = vld [vmem:[#allocation3 + $0x1520] sm:$0xf]  ;;  %v7068_v13 = vadd.f32 %v7067_v4, %v19469_v3  ;;  %v14913_v4 = vld [vmem:[#allocation3 + $0x13f0] sm:$0xf] }
 0x164   : > { %7366 = vmatpush.bf16.msrb.mxu1 %v14786_v15  ;;  %v14770_v15 = vor.u32 %v17364_v25, %v14769_v40  ;;  %v7081_v11 = vpop.f32.mrf.mxu0  ;;  %v14609_v40 = vld [vmem:[#allocation3 + $0x1190] sm:$0xf] }
 0x165   : > { %7354 = vmatpush.bf16.msrb.mxu0 %v14706_v19  ;;  %v14690_v19 = vor.u32 %v17344_v28, %v14689_v51  ;;  %v14753_v25 = vld [vmem:[#allocation3 + $0x12b0] sm:$0xf]  ;;  %v15066_v51 = vor.u32 %v17438_v23, %v15065_v0  ;;  %v17324_v28 = vld [vmem:[#allocation3 + $0x1194] sm:$0xf0]  ;;  %v14745_v23 = vld [vmem:[#allocation3 + $0x12a0] sm:$0xf] }
 0x166   : > { %7340 = vmatpush.bf16.msrb.mxu3 %v14642_v53  ;;  %v14626_v53 = vor.u32 %v17328_v48, %v14625_v44  ;;  %v7082_v48 = vadd.f32 %v7081_v11, %v7068_v13  ;;  %v15049_v13 = vld [vmem:[#allocation3 + $0x1500] sm:$0xf]  ;;  %v17358_v0 = vld [vmem:[#allocation3 + $0x12a4] sm:$0xf0]  ;;  %v17400_v11 = vld [vmem:[#allocation3 + $0x13f4] sm:$0xf0] }
 0x167   : > { %7438 = vmatpush.bf16.msrb.mxu2 %v15090_v45  ;;  %v15074_v45 = vor.u32 %v17440_v41, %v15073_v8  ;;  %v14673_v8 = vld [vmem:[#allocation3 + $0x1210] sm:$0xf]  ;;  %v17340_v41 = vld [vmem:[#allocation3 + $0x1214] sm:$0xf0] }
 0x168   : > { %7367 = vmatpush.bf16.msrb.mxu1 %v14778_v12  ;;  %v14762_v12 = vor.u32 %v17362_v20, %v14761_v56  ;;  %v7109_v59 = vpop.f32.mrf.mxu2  ;;  %v17338_v56 = vld [vmem:[#allocation3 + $0x1204] sm:$0xf0]  ;;  %v14610_v20 = vor.u32 %v17324_v28, %v14609_v40  ;;  %v16718_v40 = vld [vmem:[%s19271_s28 + $0x8c] sm:$0xf] }
 0x169   : > { %7355 = vmatpush.bf16.msrb.mxu0 %v14698_v52  ;;  %v14682_v52 = vor.u32 %v17342_v1, %v14681_v63  ;;  %v15058_v63 = vor.u32 %v17436_v43, %v15057_v47  ;;  %v17434_v1 = vld [vmem:[#allocation3 + $0x1504] sm:$0xf0]  ;;  %v14737_v43 = vld [vmem:[#allocation3 + $0x1290] sm:$0xf]  ;;  %v17356_v47 = vld [vmem:[#allocation3 + $0x1294] sm:$0xf0] }
 0x16a   : > { %7341 = vmatpush.bf16.msrb.mxu3 %v14634_v14  ;;  %v14618_v14 = vor.u32 %v17326_v21, %v14617_v54  ;;  %v7095_v44 = vpop.f32.mrf.mxu1  ;;  %v14665_v54 = vld [vmem:[#allocation3 + $0x1200] sm:$0xf]  ;;  %v14674_v21 = vor.u32 %v17340_v41, %v14673_v8  ;;  %v15050_v28 = vor.u32 %v17434_v1, %v15049_v13  ;;  %v14914_v8 = vor.u32 %v17400_v11, %v14913_v4  ;;  %v15041_v4 = vld [vmem:[#allocation3 + $0x14f0] sm:$0xf]  ;;  %v17432_v11 = vld [vmem:[#allocation3 + $0x14f4] sm:$0xf0] }
 0x16b   : > { %7439 = vmatpush.bf16.msrb.mxu2 %v15082_v49  ;;  %v17360_v49 = vld [vmem:[#allocation3 + $0x12b4] sm:$0xf0]  ;;  %v7096_v3 = vadd.f32 %v7095_v44, %v7082_v48  ;;  %v14666_v48 = vor.u32 %v17338_v56, %v14665_v54  ;;  %v16749_v41 = vld [vmem:[%s19271_s28 + $0x17c] sm:$0xf0]  ;;  %v14738_v54 = vor.u32 %v17356_v47, %v14737_v43  ;;  %v14906_v1 = vor.u32 %v17398_v31, %v14905_v33  ;;  %v16719_v33 = vld [vmem:[%s19271_s28 + $0x94] sm:$0xf] }
 0x16c   : > { %7368 = vmatpush.bf16.msrb.mxu1 %v14770_v15  ;;  %v14754_v15 = vor.u32 %v17360_v49, %v14753_v25  ;;  %v17416_v44 = vld [vmem:[#allocation3 + $0x1474] sm:$0xf0]  ;;  %v15361_v25 = vld [vmem:[#allocation3 + $0x1770] sm:$0xf]  ;;  %v12259_v49 = vld [vmem:[%s19271_s28 + $0x178] sm:$0xf0]  ;;  %v15042_v31 = vor.u32 %v17432_v11, %v15041_v4 }
 0x16d   : > { %7356 = vmatpush.bf16.msrb.mxu0 %v14690_v19  ;;  %v17322_v19 = vld [vmem:[#allocation3 + $0x1184] sm:$0xf0]  ;;  %v14729_v56 = vld [vmem:[#allocation3 + $0x1280] sm:$0xf]  ;;  %v17428_v4 = vld [vmem:[#allocation3 + $0x14d4] sm:$0xf0] }
 0x16e   : > { %7342 = vmatpush.bf16.msrb.mxu3 %v14626_v53  ;;  %v14601_v53 = vld [vmem:[#allocation3 + $0x1180] sm:$0xf]  ;;  %v17430_v47 = vld [vmem:[#allocation3 + $0x14e4] sm:$0xf0] }
 0x16f   : > { %7440 = vmatpush.bf16.msrb.mxu2 %v15074_v45  ;;  %v19500_v45 = vadd.f32 %v7109_v59, %v7096_v3  ;;  %v14602_v59 = vor.u32 %v17322_v19, %v14601_v53  ;;  %v12289_v3 = vld [vmem:[%s19271_s28 + $0xa8] sm:$0xf]  ;;  %v15353_v53 = vld [vmem:[#allocation3 + $0x1760] sm:$0xf] }
 0x170   : > { %7369 = vmatpush.bf16.msrb.mxu1 %v14762_v12  ;;  %v14977_v12 = vld [vmem:[#allocation3 + $0x1470] sm:$0xf]  ;;  %v17510_v19 = vld [vmem:[#allocation3 + $0x1764] sm:$0xf0]  ;;  %v15033_v43 = vld [vmem:[#allocation3 + $0x14e0] sm:$0xf] }
 0x171   : > { %7357 = vmatpush.bf16.msrb.mxu0 %v14682_v52  ;;  %v14746_v52 = vor.u32 %v17358_v0, %v14745_v23  ;;  %v14969_v23 = vld [vmem:[#allocation3 + $0x1460] sm:$0xf]  ;;  %v19508_v0 = vor.u32 %v16718_v40, %v12259_v49  ;;  %v17412_v40 = vld [vmem:[#allocation3 + $0x1454] sm:$0xf0] }
 0x172   : > { %7343 = vmatpush.bf16.msrb.mxu3 %v14618_v14  ;;  %v17512_v14 = vld [vmem:[#allocation3 + $0x1774] sm:$0xf0]  ;;  %v19525_v11 = vpop.f32.mrf.mxu1 }
 0x173   : > { %7441 = vmatpush.bf16.msrb.mxu2 %v15066_v51  ;;  %v12265_v51 = vld [vmem:[%s19271_s28 + $0x90] sm:$0xf]  ;;  %v15362_v61 = vor.u32 %v17512_v14, %v15361_v25  ;;  %20735 = vst [vmem:[#allocation58_spill] sm:$0xff] %v19508_v0  ;;  %v17396_v14 = vld [vmem:[#allocation3 + $0x13d4] sm:$0xf0] }
 0x174   : > { %7370 = vmatpush.bf16.msrb.mxu1 %v14754_v15  ;;  %v14978_v15 = vor.u32 %v17416_v44, %v14977_v12  ;;  %v19510_v13 = vor.u32 %v16749_v41, %v12265_v51  ;;  %v15354_v44 = vor.u32 %v17510_v19, %v15353_v53  ;;  %v14897_v25 = vld [vmem:[#allocation3 + $0x13d0] sm:$0xf]  ;;  %v17508_v49 = vld [vmem:[#allocation3 + $0x1754] sm:$0xf0]  ;;  %v17394_v41 = vld [vmem:[#allocation3 + $0x13c4] sm:$0xf0]  ;;  %v19521_v19 = vpop.f32.mrf.mxu3 }
 0x175   : > { %7358 = vmatpush.bf16.msrb.mxu0 %v14674_v21  ;;  %v17354_v21 = vld [vmem:[#allocation3 + $0x1284] sm:$0xf0] }
 0x176   : > { %7344 = vmatpush.bf16.msrb.mxu3 %v14610_v20  ;;  %v17414_v20 = vld [vmem:[#allocation3 + $0x1464] sm:$0xf0]  ;;  %20736 = vst [vmem:[#allocation59_spill] sm:$0xff] %v19510_v13 }
 0x177   : > { %7442 = vmatpush.bf16.msrb.mxu2 %v15058_v63  ;;  %v19512_v63 = vor.u32 %v16752_v34, %v12289_v3  ;;  %v14970_v12 = vor.u32 %v17414_v20, %v14969_v23  ;;  %v15345_v34 = vld [vmem:[#allocation3 + $0x1750] sm:$0xf]  ;;  %v14953_v3 = vld [vmem:[#allocation3 + $0x1440] sm:$0xf]  ;;  %v17410_v23 = vld [vmem:[#allocation3 + $0x1444] sm:$0xf0] }
 0x178   : > { %7371 = vmatpush.bf16.msrb.mxu1 %v14746_v52  ;;  %v14961_v52 = vld [vmem:[#allocation3 + $0x1450] sm:$0xf]  ;;  %v15337_v20 = vld [vmem:[#allocation3 + $0x1740] sm:$0xf]  ;;  %v17506_v53 = vld [vmem:[#allocation3 + $0x1744] sm:$0xf0] }
 0x179   : > { %7359 = vmatpush.bf16.msrb.mxu0 %v14666_v48  ;;  %20737 = vst [vmem:[#allocation60_spill] sm:$0xff] %v19512_v63  ;;  %v12267_v48 = vld [vmem:[%s19271_s28 + $0x180] sm:$0xf0]  ;;  %v14962_v51 = vor.u32 %v17412_v40, %v14961_v52  ;;  %v14945_v52 = vld [vmem:[#allocation3 + $0x1430] sm:$0xf] }
 0x17a   : > { %7345 = vmatpush.bf16.msrb.mxu3 %v14602_v59  ;;  %v14730_v59 = vor.u32 %v17354_v21, %v14729_v56  ;;  %v15034_v56 = vor.u32 %v17430_v47, %v15033_v43  ;;  %v17408_v40 = vld [vmem:[#allocation3 + $0x1434] sm:$0xf0] }
 0x17b   : > { %7443 = vmatpush.bf16.msrb.mxu2 %v15050_v28  ;;  %v15346_v28 = vor.u32 %v17508_v49, %v15345_v34  ;;  %v15329_v34 = vld [vmem:[#allocation3 + $0x1730] sm:$0xf]  ;;  %v17504_v49 = vld [vmem:[#allocation3 + $0x1734] sm:$0xf0]  ;;  %v14946_v43 = vor.u32 %v17408_v40, %v14945_v52 }
 0x17c   : > { %7372 = vmatpush.bf16.msrb.mxu1 %v14738_v54  ;;  %7360 = vmatmul.bf16.vlgmr.msrb.gmra.mxu0 %v19510_v13  ;;  %v19523_v54 = vpop.f32.mrf.mxu0  ;;  %v15330_v47 = vor.u32 %v17504_v49, %v15329_v34  ;;  %v17388_v52 = vld [vmem:[#allocation3 + $0x1394] sm:$0xf0]  ;;  %v14929_v40 = vld [vmem:[#allocation3 + $0x1410] sm:$0xf] }
 0x17d   : > { %7408 = vmatpush.bf16.msra.mxu0 %v14978_v15  ;;  %7346 = vmatmul.bf16.vlgmr.msrb.gmra.mxu3 %v19508_v0  ;;  %v19519_v15 = vor.u32 %v16719_v33, %v12267_v48  ;;  %v15017_v48 = vld [vmem:[#allocation3 + $0x14c0] sm:$0xf]  ;;  %v17404_v49 = vld [vmem:[#allocation3 + $0x1414] sm:$0xf0] }
 0x17e   : > { %7394 = vmatpush.bf16.msra.mxu3 %v14914_v8  ;;  %7444 = vmatmul.bf16.vlgmr.msrb.gmra.mxu2 %v19512_v63  ;;  %v14889_v8 = vld [vmem:[#allocation3 + $0x13c0] sm:$0xf]  ;;  %v15313_v63 = vld [vmem:[#allocation3 + $0x1710] sm:$0xf] }
 0x17f   : > { %7492 = vmatpush.bf16.msra.mxu2 %v15362_v61  ;;  %v14898_v61 = vor.u32 %v17396_v14, %v14897_v25  ;;  %20738 = vst [vmem:[#allocation61_spill] sm:$0xff] %v19519_v15  ;;  %v14890_v21 = vor.u32 %v17394_v41, %v14889_v8  ;;  %v14881_v25 = vld [vmem:[#allocation3 + $0x13b0] sm:$0xf]  ;;  %v17392_v14 = vld [vmem:[#allocation3 + $0x13b4] sm:$0xf0] }
 0x180   : > { %7373 = vmatpush.bf16.msrb.mxu1 %v14730_v59  ;;  %v19528_v59 = vpop.f32.mrf.mxu2  ;;  %v14882_v33 = vor.u32 %v17392_v14, %v14881_v25  ;;  %v14937_v8 = vld [vmem:[#allocation3 + $0x1420] sm:$0xf]  ;;  %v17406_v41 = vld [vmem:[#allocation3 + $0x1424] sm:$0xf0]  ;;  %v7151_v25 = vpop.f32.mrf.mxu1  ;;  %v14865_v14 = vld [vmem:[#allocation3 + $0x1390] sm:$0xf] }
 0x181   : > { %7409 = vmatpush.bf16.msra.mxu0 %v14970_v12  ;;  %v14954_v12 = vor.u32 %v17410_v23, %v14953_v3  ;;  %v15321_v3 = vld [vmem:[#allocation3 + $0x1720] sm:$0xf]  ;;  %v17502_v23 = vld [vmem:[#allocation3 + $0x1724] sm:$0xf0] }
 0x182   : > { %7395 = vmatpush.bf16.msra.mxu3 %v14906_v1  ;;  %v15025_v1 = vld [vmem:[#allocation3 + $0x14d0] sm:$0xf]  ;;  %v15161_v0 = vld [vmem:[#allocation3 + $0x15e0] sm:$0xf] }
 0x183   : > { %7493 = vmatpush.bf16.msra.mxu2 %v15354_v44  ;;  %v15338_v44 = vor.u32 %v17506_v53, %v15337_v20  ;;  %7374 = vmatmul.bf16.vlgmr.msrb.gmra.mxu1 %v19519_v15  ;;  %v7123_v20 = vpop.f32.mrf.mxu3 }
 0x184   : > { %7422 = vmatpush.bf16.msra.mxu1 %v15042_v31  ;;  %v15026_v31 = vor.u32 %v17428_v4, %v15025_v1  ;;  %v7137_v53 = vpop.f32.mrf.mxu0  ;;  %v15009_v1 = vld [vmem:[#allocation3 + $0x14b0] sm:$0xf]  ;;  %v17424_v4 = vld [vmem:[#allocation3 + $0x14b4] sm:$0xf0] }
 0x185   : > { %7410 = vmatpush.bf16.msra.mxu0 %v14962_v51  ;;  %v14873_v51 = vld [vmem:[#allocation3 + $0x13a0] sm:$0xf] }
 0x186   : > { %7396 = vmatpush.bf16.msra.mxu3 %v14898_v61  ;;  %v17426_v61 = vld [vmem:[#allocation3 + $0x14c4] sm:$0xf0] }
 0x187   : > { %7494 = vmatpush.bf16.msra.mxu2 %v15346_v28  ;;  %v17390_v28 = vld [vmem:[#allocation3 + $0x13a4] sm:$0xf0]  ;;  %v15018_v15 = vor.u32 %v17426_v61, %v15017_v48  ;;  %v14857_v61 = vld [vmem:[#allocation3 + $0x1380] sm:$0xf] }
 0x188   : > { %7423 = vmatpush.bf16.msra.mxu1 %v15034_v56  ;;  %v7124_v56 = vadd.f32 %v7123_v20, %v19500_v45  ;;  %v7165_v48 = vpop.f32.mrf.mxu2  ;;  %v17386_v45 = vld [vmem:[#allocation3 + $0x1384] sm:$0xf0]  ;;  %v15305_v20 = vld [vmem:[#allocation3 + $0x1700] sm:$0xf] }
 0x189   : > { %7411 = vmatpush.bf16.msra.mxu0 %v14954_v12  ;;  %v14938_v12 = vor.u32 %v17406_v41, %v14937_v8  ;;  %v17422_v8 = vld [vmem:[#allocation3 + $0x14a4] sm:$0xf0]  ;;  %v14930_v41 = vor.u32 %v17404_v49, %v14929_v40  ;;  %v14993_v40 = vld [vmem:[#allocation3 + $0x1490] sm:$0xf] }
 0x18a   : > { %7397 = vmatpush.bf16.msra.mxu3 %v14890_v21  ;;  %v14874_v21 = vor.u32 %v17390_v28, %v14873_v51  ;;  %v7138_v34 = vadd.f32 %v7137_v53, %v7124_v56  ;;  %v14866_v28 = vor.u32 %v17388_v52, %v14865_v14  ;;  %v17498_v53 = vld [vmem:[#allocation3 + $0x1704] sm:$0xf0]  ;;  %v15169_v56 = vld [vmem:[#allocation3 + $0x15f0] sm:$0xf]  ;;  %v17576_v14 = vld [vmem:[#allocation3 + $0x1974] sm:$0xf0] }
 0x18b   : > { %7495 = vmatpush.bf16.msra.mxu2 %v15338_v44  ;;  %v15322_v44 = vor.u32 %v17502_v23, %v15321_v3  ;;  %v17402_v23 = vld [vmem:[#allocation3 + $0x1404] sm:$0xf0]  ;;  %v12275_v52 = vld [vmem:[%s19271_s28 + $0x188] sm:$0xf0]  ;;  %v15306_v49 = vor.u32 %v17498_v53, %v15305_v20  ;;  %v15153_v20 = vld [vmem:[#allocation3 + $0x15d0] sm:$0xf] }
 0x18c   : > { %7424 = vmatpush.bf16.msra.mxu1 %v15026_v31  ;;  %v17500_v31 = vld [vmem:[#allocation3 + $0x1714] sm:$0xf0]  ;;  %v7152_v51 = vadd.f32 %v7151_v25, %v7138_v34  ;;  %v15617_v25 = vld [vmem:[#allocation3 + $0x1970] sm:$0xf]  ;;  %v14985_v53 = vld [vmem:[#allocation3 + $0x1480] sm:$0xf] }
 0x18d   : > { %7412 = vmatpush.bf16.msra.mxu0 %v14946_v43  ;;  %v14921_v43 = vld [vmem:[#allocation3 + $0x1400] sm:$0xf]  ;;  %v15314_v3 = vor.u32 %v17500_v31, %v15313_v63  ;;  %v14858_v63 = vor.u32 %v17386_v45, %v14857_v61  ;;  %v17420_v31 = vld [vmem:[#allocation3 + $0x1494] sm:$0xf0]  ;;  %v17462_v61 = vld [vmem:[#allocation3 + $0x15e4] sm:$0xf0] }
 0x18e   : > { %7398 = vmatpush.bf16.msra.mxu3 %v14882_v33  ;;  %v15010_v33 = vor.u32 %v17424_v4, %v15009_v1  ;;  %v17464_v1 = vld [vmem:[#allocation3 + $0x15f4] sm:$0xf0]  ;;  %v15233_v4 = vld [vmem:[#allocation3 + $0x1670] sm:$0xf]  ;;  %v14922_v34 = vor.u32 %v17402_v23, %v14921_v43  ;;  %v15225_v45 = vld [vmem:[#allocation3 + $0x1660] sm:$0xf]  ;;  %v14994_v43 = vor.u32 %v17420_v31, %v14993_v40 }
 0x18f   : > { %7496 = vmatpush.bf16.msra.mxu2 %v15330_v47  ;;  %v15001_v47 = vld [vmem:[#allocation3 + $0x14a0] sm:$0xf]  ;;  %v15601_v40 = vld [vmem:[#allocation3 + $0x1950] sm:$0xf] }
 0x190   : > { %7425 = vmatpush.bf16.msra.mxu1 %v15018_v15  ;;  %v19531_v15 = vadd.f32 %v7165_v48, %v7152_v51  ;;  %v12281_v48 = vld [vmem:[%s19271_s28 + $0xa0] sm:$0xf]  ;;  %v16751_v51 = vld [vmem:[%s19271_s28 + $0x18c] sm:$0xf0] }
 0x191   : > { %7413 = vmatpush.bf16.msra.mxu0 %v14938_v12  ;;  %v15002_v12 = vor.u32 %v17422_v8, %v15001_v47  ;;  %v15618_v47 = vor.u32 %v17576_v14, %v15617_v25  ;;  %v17478_v8 = vld [vmem:[#allocation3 + $0x1664] sm:$0xf0]  ;;  %v19541_v23 = vor.u32 %v16751_v51, %v12281_v48  ;;  %v17460_v25 = vld [vmem:[#allocation3 + $0x15d4] sm:$0xf0]  ;;  %v15297_v14 = vld [vmem:[#allocation3 + $0x16f0] sm:$0xf] }
 0x192   : > { %7399 = vmatpush.bf16.msra.mxu3 %v14874_v21  ;;  %v17480_v21 = vld [vmem:[#allocation3 + $0x1674] sm:$0xf0]  ;;  %v15145_v48 = vld [vmem:[#allocation3 + $0x15c0] sm:$0xf] }
 0x193   : > { %7497 = vmatpush.bf16.msra.mxu2 %v15322_v44  ;;  %v16720_v44 = vld [vmem:[%s19271_s28 + $0x9c] sm:$0xf]  ;;  %v15234_v13 = vor.u32 %v17480_v21, %v15233_v4  ;;  %20740 = vst [vmem:[#allocation63_spill] sm:$0xff] %v19541_v23  ;;  %v15162_v4 = vor.u32 %v17462_v61, %v15161_v0  ;;  %v15226_v21 = vor.u32 %v17478_v8, %v15225_v45  ;;  %v15289_v51 = vld [vmem:[#allocation3 + $0x16e0] sm:$0xf] }
 0x194   : > { %7426 = vmatpush.bf16.msra.mxu1 %v15010_v33  ;;  %v15170_v33 = vor.u32 %v17464_v1, %v15169_v56  ;;  %v17418_v56 = vld [vmem:[#allocation3 + $0x1484] sm:$0xf0]  ;;  %v19543_v1 = vor.u32 %v16754_v55, %v12305_v22  ;;  %v16721_v22 = vld [vmem:[%s19271_s28 + $0xa4] sm:$0xf]  ;;  %v15209_v8 = vld [vmem:[#allocation3 + $0x1640] sm:$0xf] }
 0x195   : > { %7414 = vmatpush.bf16.msra.mxu0 %v14930_v41  ;;  %v15609_v41 = vld [vmem:[#allocation3 + $0x1960] sm:$0xf]  ;;  %v14986_v55 = vor.u32 %v17418_v56, %v14985_v53  ;;  %v17458_v45 = vld [vmem:[#allocation3 + $0x15c4] sm:$0xf0] }
 0x196   : > { %7400 = vmatpush.bf16.msra.mxu3 %v14866_v28  ;;  %v19539_v28 = vor.u32 %v16720_v44, %v12275_v52  ;;  %20741 = vst [vmem:[#allocation64_spill] sm:$0xff] %v19543_v1  ;;  %v15217_v44 = vld [vmem:[#allocation3 + $0x1650] sm:$0xf]  ;;  %v17476_v52 = vld [vmem:[#allocation3 + $0x1654] sm:$0xf0] }
 0x197   : > { %7498 = vmatpush.bf16.msra.mxu2 %v15314_v3  ;;  %v17574_v3 = vld [vmem:[#allocation3 + $0x1964] sm:$0xf0]  ;;  %v15218_v31 = vor.u32 %v17476_v52, %v15217_v44  ;;  %v15593_v53 = vld [vmem:[#allocation3 + $0x1940] sm:$0xf]  ;;  %v17456_v52 = vld [vmem:[#allocation3 + $0x15b4] sm:$0xf0] }
 0x198   : > { %7427 = vmatpush.bf16.msra.mxu1 %v15002_v12  ;;  %20739 = vst [vmem:[#allocation62_spill] sm:$0xff] %v19539_v28  ;;  %v17496_v12 = vld [vmem:[#allocation3 + $0x16f4] sm:$0xf0]  ;;  %v17570_v56 = vld [vmem:[#allocation3 + $0x1944] sm:$0xf0] }
 0x199   : > { %7415 = vmatpush.bf16.msra.mxu0 %v14922_v34  ;;  %v17572_v34 = vld [vmem:[#allocation3 + $0x1954] sm:$0xf0]  ;;  %v15298_v0 = vor.u32 %v17496_v12, %v15297_v14  ;;  %v15137_v14 = vld [vmem:[#allocation3 + $0x15b0] sm:$0xf]  ;;  %v15594_v44 = vor.u32 %v17570_v56, %v15593_v53 }
 0x19a   : > { %7401 = vmatpush.bf16.msra.mxu3 %v14858_v63  ;;  %v15610_v63 = vor.u32 %v17574_v3, %v15609_v41  ;;  %v17474_v41 = vld [vmem:[#allocation3 + $0x1644] sm:$0xf0]  ;;  %v19552_v3 = vpop.f32.mrf.mxu3  ;;  %v15281_v12 = vld [vmem:[#allocation3 + $0x16d0] sm:$0xf] }
 0x19b   : > { %7499 = vmatpush.bf16.msra.mxu2 %v15306_v49  ;;  %v15154_v49 = vor.u32 %v17460_v25, %v15153_v20  ;;  %v15210_v25 = vor.u32 %v17474_v41, %v15209_v8  ;;  %v15193_v8 = vld [vmem:[#allocation3 + $0x1620] sm:$0xf]  ;;  %v17470_v41 = vld [vmem:[#allocation3 + $0x1624] sm:$0xf0] }
 0x19c   : > { %7428 = vmatpush.bf16.msra.mxu1 %v14994_v43  ;;  %7416 = vmatmul.bf16.vlgmr.msra.gmra.mxu0 %v19541_v23  ;;  %v19554_v43 = vpop.f32.mrf.mxu0 }
 0x19d   : > { %7464 = vmatpush.bf16.msrb.mxu0 %v15234_v13  ;;  %7402 = vmatmul.bf16.vlgmr.msra.gmra.mxu3 %v19539_v28  ;;  %v12283_v13 = vld [vmem:[%s19271_s28 + $0x190] sm:$0xf0] }
 0x19e   : > { %7450 = vmatpush.bf16.msrb.mxu3 %v15170_v33  ;;  %7500 = vmatmul.bf16.vlgmr.msra.gmra.mxu2 %v19543_v1  ;;  %v17494_v33 = vld [vmem:[#allocation3 + $0x16e4] sm:$0xf0]  ;;  %v19550_v61 = vor.u32 %v16721_v22, %v12283_v13  ;;  %v15585_v22 = vld [vmem:[#allocation3 + $0x1930] sm:$0xf]  ;;  %v17568_v13 = vld [vmem:[#allocation3 + $0x1934] sm:$0xf0] }
 0x19f   : > { %7548 = vmatpush.bf16.msrb.mxu2 %v15618_v47  ;;  %v15602_v47 = vor.u32 %v17572_v34, %v15601_v40  ;;  %v15290_v20 = vor.u32 %v17494_v33, %v15289_v51  ;;  %v15201_v40 = vld [vmem:[#allocation3 + $0x1630] sm:$0xf]  ;;  %v17472_v34 = vld [vmem:[#allocation3 + $0x1634] sm:$0xf0]  ;;  %v15273_v51 = vld [vmem:[#allocation3 + $0x16c0] sm:$0xf] }
 0x1a0   : > { %20742 = vst [vmem:[#allocation65_spill] sm:$0xff] %v19550_v61  ;;  %7429 = vmatpush.bf16.msra.mxu1 %v14986_v55  ;;  %v19559_v55 = vpop.f32.mrf.mxu2  ;;  %v17490_v33 = vld [vmem:[#allocation3 + $0x16c4] sm:$0xf0] }
 0x1a1   : > { %7465 = vmatpush.bf16.msrb.mxu0 %v15226_v21  ;;  %v15146_v21 = vor.u32 %v17458_v45, %v15145_v48  ;;  %v15129_v48 = vld [vmem:[#allocation3 + $0x15a0] sm:$0xf]  ;;  %v17454_v45 = vld [vmem:[#allocation3 + $0x15a4] sm:$0xf0] }
 0x1a2   : > { %7451 = vmatpush.bf16.msrb.mxu3 %v15162_v4  ;;  %v19556_v4 = vpop.f32.mrf.mxu1  ;;  %v7179_v53 = vpop.f32.mrf.mxu3  ;;  %v17566_v1 = vld [vmem:[#allocation3 + $0x1924] sm:$0xf0] }
 0x1a3   : > { %7549 = vmatpush.bf16.msrb.mxu2 %v15610_v63  ;;  %v17492_v63 = vld [vmem:[#allocation3 + $0x16d4] sm:$0xf0]  ;;  %7430 = vmatmul.bf16.vlgmr.msra.gmra.mxu1 %v19550_v61  ;;  %v15577_v61 = vld [vmem:[#allocation3 + $0x1920] sm:$0xf]  ;;  %v7180_v23 = vadd.f32 %v7179_v53, %v19531_v15  ;;  %v15425_v53 = vld [vmem:[#allocation3 + $0x17f0] sm:$0xf] }
 0x1a4   : > { %7478 = vmatpush.bf16.msrb.mxu1 %v15298_v0  ;;  %v15282_v0 = vor.u32 %v17492_v63, %v15281_v12  ;;  %v7193_v56 = vpop.f32.mrf.mxu0  ;;  %v15121_v12 = vld [vmem:[#allocation3 + $0x1590] sm:$0xf] }
 0x1a5   : > { %7466 = vmatpush.bf16.msrb.mxu0 %v15218_v31  ;;  %v15202_v31 = vor.u32 %v17472_v34, %v15201_v40  ;;  %v15265_v63 = vld [vmem:[#allocation3 + $0x16b0] sm:$0xf]  ;;  %v15578_v40 = vor.u32 %v17566_v1, %v15577_v61  ;;  %v17452_v34 = vld [vmem:[#allocation3 + $0x1594] sm:$0xf0]  ;;  %v15257_v1 = vld [vmem:[#allocation3 + $0x16a0] sm:$0xf] }
 0x1a6   : > { %7452 = vmatpush.bf16.msrb.mxu3 %v15154_v49  ;;  %v15138_v49 = vor.u32 %v17456_v52, %v15137_v14  ;;  %v7194_v52 = vadd.f32 %v7193_v56, %v7180_v23  ;;  %v15561_v23 = vld [vmem:[#allocation3 + $0x1900] sm:$0xf]  ;;  %v17486_v61 = vld [vmem:[#allocation3 + $0x16a4] sm:$0xf0]  ;;  %v17528_v56 = vld [vmem:[#allocation3 + $0x17f4] sm:$0xf0] }
 0x1a7   : > { %7550 = vmatpush.bf16.msrb.mxu2 %v15602_v47  ;;  %v15586_v47 = vor.u32 %v17568_v13, %v15585_v22  ;;  %v15185_v22 = vld [vmem:[#allocation3 + $0x1610] sm:$0xf]  ;;  %v17468_v13 = vld [vmem:[#allocation3 + $0x1614] sm:$0xf0] }
 0x1a8   : > { %7479 = vmatpush.bf16.msrb.mxu1 %v15290_v20  ;;  %v15274_v20 = vor.u32 %v17490_v33, %v15273_v51  ;;  %v7221_v28 = vpop.f32.mrf.mxu2  ;;  %v17466_v51 = vld [vmem:[#allocation3 + $0x1604] sm:$0xf0]  ;;  %v15122_v33 = vor.u32 %v17452_v34, %v15121_v12  ;;  %v16722_v12 = vld [vmem:[%s19271_s28 + $0xac] sm:$0xf] }
 0x1a9   : > { %7467 = vmatpush.bf16.msrb.mxu0 %v15210_v25  ;;  %v15194_v25 = vor.u32 %v17470_v41, %v15193_v8  ;;  %v15570_v8 = vor.u32 %v17564_v24, %v15569_v38  ;;  %v17562_v41 = vld [vmem:[#allocation3 + $0x1904] sm:$0xf0]  ;;  %v15249_v24 = vld [vmem:[#allocation3 + $0x1690] sm:$0xf]  ;;  %v17484_v38 = vld [vmem:[#allocation3 + $0x1694] sm:$0xf0] }
 0x1aa   : > { %7453 = vmatpush.bf16.msrb.mxu3 %v15146_v21  ;;  %v15130_v21 = vor.u32 %v17454_v45, %v15129_v48  ;;  %v7207_v14 = vpop.f32.mrf.mxu1  ;;  %v15177_v48 = vld [vmem:[#allocation3 + $0x1600] sm:$0xf]  ;;  %v15186_v45 = vor.u32 %v17468_v13, %v15185_v22  ;;  %v15562_v34 = vor.u32 %v17562_v41, %v15561_v23  ;;  %v15426_v22 = vor.u32 %v17528_v56, %v15425_v53  ;;  %v15553_v53 = vld [vmem:[#allocation3 + $0x18f0] sm:$0xf]  ;;  %v17560_v56 = vld [vmem:[#allocation3 + $0x18f4] sm:$0xf0] }
 0x1ab   : > { %7551 = vmatpush.bf16.msrb.mxu2 %v15594_v44  ;;  %v17488_v44 = vld [vmem:[#allocation3 + $0x16b4] sm:$0xf0]  ;;  %v7208_v15 = vadd.f32 %v7207_v14, %v7194_v52  ;;  %v15178_v52 = vor.u32 %v17466_v51, %v15177_v48  ;;  %v16753_v13 = vld [vmem:[%s19271_s28 + $0x19c] sm:$0xf0]  ;;  %v15250_v48 = vor.u32 %v17484_v38, %v15249_v24  ;;  %v15418_v41 = vor.u32 %v17526_v35, %v15417_v2  ;;  %v16723_v2 = vld [vmem:[%s19271_s28 + $0xb4] sm:$0xf] }
 0x1ac   : > { %7480 = vmatpush.bf16.msrb.mxu1 %v15282_v0  ;;  %v15266_v0 = vor.u32 %v17488_v44, %v15265_v63  ;;  %v17544_v14 = vld [vmem:[#allocation3 + $0x1874] sm:$0xf0]  ;;  %v15873_v63 = vld [vmem:[#allocation3 + $0x1b70] sm:$0xf]  ;;  %v12291_v44 = vld [vmem:[%s19271_s28 + $0x198] sm:$0xf0]  ;;  %v15554_v35 = vor.u32 %v17560_v56, %v15553_v53 }
 0x1ad   : > { %7468 = vmatpush.bf16.msrb.mxu0 %v15202_v31  ;;  %v17450_v31 = vld [vmem:[#allocation3 + $0x1584] sm:$0xf0]  ;;  %v15241_v51 = vld [vmem:[#allocation3 + $0x1680] sm:$0xf]  ;;  %v17556_v53 = vld [vmem:[#allocation3 + $0x18d4] sm:$0xf0] }
 0x1ae   : > { %7454 = vmatpush.bf16.msrb.mxu3 %v15138_v49  ;;  %v15113_v49 = vld [vmem:[#allocation3 + $0x1580] sm:$0xf]  ;;  %v17558_v38 = vld [vmem:[#allocation3 + $0x18e4] sm:$0xf0] }
 0x1af   : > { %7552 = vmatpush.bf16.msrb.mxu2 %v15586_v47  ;;  %v19562_v47 = vadd.f32 %v7221_v28, %v7208_v15  ;;  %v15114_v28 = vor.u32 %v17450_v31, %v15113_v49  ;;  %v12321_v15 = vld [vmem:[%s19271_s28 + $0xc8] sm:$0xf]  ;;  %v15865_v49 = vld [vmem:[#allocation3 + $0x1b60] sm:$0xf] }
 0x1b0   : > { %7481 = vmatpush.bf16.msrb.mxu1 %v15274_v20  ;;  %v15489_v20 = vld [vmem:[#allocation3 + $0x1870] sm:$0xf]  ;;  %v17638_v31 = vld [vmem:[#allocation3 + $0x1b64] sm:$0xf0]  ;;  %v15545_v24 = vld [vmem:[#allocation3 + $0x18e0] sm:$0xf] }
 0x1b1   : > { %7469 = vmatpush.bf16.msrb.mxu0 %v15194_v25  ;;  %v15258_v25 = vor.u32 %v17486_v61, %v15257_v1  ;;  %v15481_v1 = vld [vmem:[#allocation3 + $0x1860] sm:$0xf]  ;;  %v19570_v61 = vor.u32 %v16722_v12, %v12291_v44  ;;  %v17540_v12 = vld [vmem:[#allocation3 + $0x1854] sm:$0xf0] }
 0x1b2   : > { %7455 = vmatpush.bf16.msrb.mxu3 %v15130_v21  ;;  %v17640_v21 = vld [vmem:[#allocation3 + $0x1b74] sm:$0xf0]  ;;  %v19587_v56 = vpop.f32.mrf.mxu1 }
 0x1b3   : > { %7553 = vmatpush.bf16.msrb.mxu2 %v15578_v40  ;;  %v12297_v40 = vld [vmem:[%s19271_s28 + $0xb0] sm:$0xf]  ;;  %v15874_v62 = vor.u32 %v17640_v21, %v15873_v63  ;;  %20743 = vst [vmem:[#allocation66_spill] sm:$0xff] %v19570_v61  ;;  %v17524_v21 = vld [vmem:[#allocation3 + $0x17d4] sm:$0xf0] }
 0x1b4   : > { %7482 = vmatpush.bf16.msrb.mxu1 %v15266_v0  ;;  %v15490_v0 = vor.u32 %v17544_v14, %v15489_v20  ;;  %v19572_v23 = vor.u32 %v16753_v13, %v12297_v40  ;;  %v15866_v14 = vor.u32 %v17638_v31, %v15865_v49  ;;  %v15409_v63 = vld [vmem:[#allocation3 + $0x17d0] sm:$0xf]  ;;  %v17636_v44 = vld [vmem:[#allocation3 + $0x1b54] sm:$0xf0]  ;;  %v17522_v13 = vld [vmem:[#allocation3 + $0x17c4] sm:$0xf0]  ;;  %v19583_v31 = vpop.f32.mrf.mxu3 }
 0x1b5   : > { %7470 = vmatpush.bf16.msrb.mxu0 %v15186_v45  ;;  %v17482_v45 = vld [vmem:[#allocation3 + $0x1684] sm:$0xf0]  ;;  %20748 = vst [vmem:[#allocation71_spill] sm:$0xff] %v19587_v56  ;;  %v15929_v56 = vld [vmem:[#allocation3 + $0x1be0] sm:$0xf] }
 0x1b6   : > { %7456 = vmatpush.bf16.msrb.mxu3 %v15122_v33  ;;  %v17542_v33 = vld [vmem:[#allocation3 + $0x1864] sm:$0xf0]  ;;  %20744 = vst [vmem:[#allocation67_spill] sm:$0xff] %v19572_v23 }
 0x1b7   : > { %7554 = vmatpush.bf16.msrb.mxu2 %v15570_v8  ;;  %v19574_v8 = vor.u32 %v16756_v16, %v12321_v15  ;;  %v15482_v20 = vor.u32 %v17542_v33, %v15481_v1  ;;  %v15857_v16 = vld [vmem:[#allocation3 + $0x1b50] sm:$0xf]  ;;  %v15465_v15 = vld [vmem:[#allocation3 + $0x1840] sm:$0xf]  ;;  %v17538_v1 = vld [vmem:[#allocation3 + $0x1844] sm:$0xf0] }
 0x1b8   : > { %7483 = vmatpush.bf16.msrb.mxu1 %v15258_v25  ;;  %v15473_v25 = vld [vmem:[#allocation3 + $0x1850] sm:$0xf]  ;;  %v15849_v33 = vld [vmem:[#allocation3 + $0x1b40] sm:$0xf]  ;;  %v17634_v49 = vld [vmem:[#allocation3 + $0x1b44] sm:$0xf0] }
 0x1b9   : > { %7471 = vmatpush.bf16.msrb.mxu0 %v15178_v52  ;;  %20745 = vst [vmem:[#allocation68_spill] sm:$0xff] %v19574_v8  ;;  %v12299_v52 = vld [vmem:[%s19271_s28 + $0x1a0] sm:$0xf0]  ;;  %v15474_v40 = vor.u32 %v17540_v12, %v15473_v25  ;;  %v15457_v25 = vld [vmem:[#allocation3 + $0x1830] sm:$0xf] }
 0x1ba   : > { %7457 = vmatpush.bf16.msrb.mxu3 %v15114_v28  ;;  %v15242_v28 = vor.u32 %v17482_v45, %v15241_v51  ;;  %v15546_v51 = vor.u32 %v17558_v38, %v15545_v24  ;;  %v17536_v12 = vld [vmem:[#allocation3 + $0x1834] sm:$0xf0] }
 0x1bb   : > { %7555 = vmatpush.bf16.msrb.mxu2 %v15562_v34  ;;  %v15858_v34 = vor.u32 %v17636_v44, %v15857_v16  ;;  %v15841_v16 = vld [vmem:[#allocation3 + $0x1b30] sm:$0xf]  ;;  %v17632_v44 = vld [vmem:[#allocation3 + $0x1b34] sm:$0xf0]  ;;  %v15458_v24 = vor.u32 %v17536_v12, %v15457_v25 }
 0x1bc   : > { %7484 = vmatpush.bf16.msrb.mxu1 %v15250_v48  ;;  %7472 = vmatmul.bf16.vlgmr.msrb.gmra.mxu0 %v19572_v23  ;;  %v19585_v48 = vpop.f32.mrf.mxu0  ;;  %v15842_v38 = vor.u32 %v17632_v44, %v15841_v16  ;;  %v17516_v25 = vld [vmem:[#allocation3 + $0x1794] sm:$0xf0]  ;;  %v15441_v12 = vld [vmem:[#allocation3 + $0x1810] sm:$0xf] }
 0x1bd   : > { %7520 = vmatpush.bf16.msra.mxu0 %v15490_v0  ;;  %7458 = vmatmul.bf16.vlgmr.msrb.gmra.mxu3 %v19570_v61  ;;  %v19581_v0 = vor.u32 %v16723_v2, %v12299_v52  ;;  %20747 = vst [vmem:[#allocation70_spill] sm:$0xff] %v19585_v48  ;;  %v15529_v52 = vld [vmem:[#allocation3 + $0x18c0] sm:$0xf]  ;;  %v17532_v44 = vld [vmem:[#allocation3 + $0x1814] sm:$0xf0] }
 0x1be   : > { %7506 = vmatpush.bf16.msra.mxu3 %v15426_v22  ;;  %7556 = vmatmul.bf16.vlgmr.msrb.gmra.mxu2 %v19574_v8  ;;  %v15401_v22 = vld [vmem:[#allocation3 + $0x17c0] sm:$0xf]  ;;  %v15825_v8 = vld [vmem:[#allocation3 + $0x1b10] sm:$0xf]  ;;  %v17654_v48 = vld [vmem:[#allocation3 + $0x1be4] sm:$0xf0] }
 0x1bf   : > { %7604 = vmatpush.bf16.msra.mxu2 %v15874_v62  ;;  %v15410_v62 = vor.u32 %v17524_v21, %v15409_v63  ;;  %20746 = vst [vmem:[#allocation69_spill] sm:$0xff] %v19581_v0  ;;  %v15402_v45 = vor.u32 %v17522_v13, %v15401_v22  ;;  %v15393_v63 = vld [vmem:[#allocation3 + $0x17b0] sm:$0xf]  ;;  %v17520_v21 = vld [vmem:[#allocation3 + $0x17b4] sm:$0xf0] }
 0x1c0   : > { %7485 = vmatpush.bf16.msrb.mxu1 %v15242_v28  ;;  %v19590_v28 = vpop.f32.mrf.mxu2  ;;  %v15394_v2 = vor.u32 %v17520_v21, %v15393_v63  ;;  %v15449_v22 = vld [vmem:[#allocation3 + $0x1820] sm:$0xf]  ;;  %v17534_v13 = vld [vmem:[#allocation3 + $0x1824] sm:$0xf0]  ;;  %v7263_v63 = vpop.f32.mrf.mxu1  ;;  %v15377_v21 = vld [vmem:[#allocation3 + $0x1790] sm:$0xf] }
 0x1c1   : > { %7521 = vmatpush.bf16.msra.mxu0 %v15482_v20  ;;  %v15466_v20 = vor.u32 %v17538_v1, %v15465_v15  ;;  %20749 = vst [vmem:[#allocation72_spill] sm:$0xff] %v19590_v28  ;;  %v15833_v15 = vld [vmem:[#allocation3 + $0x1b20] sm:$0xf]  ;;  %v17630_v1 = vld [vmem:[#allocation3 + $0x1b24] sm:$0xf0] }
 0x1c2   : > { %7507 = vmatpush.bf16.msra.mxu3 %v15418_v41  ;;  %v15537_v41 = vld [vmem:[#allocation3 + $0x18d0] sm:$0xf]  ;;  %v15673_v61 = vld [vmem:[#allocation3 + $0x19e0] sm:$0xf]  ;;  %v16758_v28 = vld [vmem:[%s19271_s28 + $0x1c4] sm:$0xf0] }
 0x1c3   : > { %7605 = vmatpush.bf16.msra.mxu2 %v15866_v14  ;;  %v15850_v14 = vor.u32 %v17634_v49, %v15849_v33  ;;  %7486 = vmatmul.bf16.vlgmr.msrb.gmra.mxu1 %v19581_v0  ;;  %v7235_v33 = vpop.f32.mrf.mxu3 }
 0x1c4   : > { %7534 = vmatpush.bf16.msra.mxu1 %v15554_v35  ;;  %v15538_v35 = vor.u32 %v17556_v53, %v15537_v41  ;;  %v7249_v49 = vpop.f32.mrf.mxu0  ;;  %v15521_v41 = vld [vmem:[#allocation3 + $0x18b0] sm:$0xf]  ;;  %v17552_v53 = vld [vmem:[#allocation3 + $0x18b4] sm:$0xf0] }
 0x1c5   : > { %7522 = vmatpush.bf16.msra.mxu0 %v15474_v40  ;;  %v15385_v40 = vld [vmem:[#allocation3 + $0x17a0] sm:$0xf] }
 0x1c6   : > { %7508 = vmatpush.bf16.msra.mxu3 %v15410_v62  ;;  %v17554_v62 = vld [vmem:[#allocation3 + $0x18c4] sm:$0xf0] }
 0x1c7   : > { %7606 = vmatpush.bf16.msra.mxu2 %v15858_v34  ;;  %v17518_v34 = vld [vmem:[#allocation3 + $0x17a4] sm:$0xf0]  ;;  %v15530_v0 = vor.u32 %v17554_v62, %v15529_v52  ;;  %v15369_v62 = vld [vmem:[#allocation3 + $0x1780] sm:$0xf] }
 0x1c8   : > { %7535 = vmatpush.bf16.msra.mxu1 %v15546_v51  ;;  %v7236_v51 = vadd.f32 %v7235_v33, %v19562_v47  ;;  %v7277_v52 = vpop.f32.mrf.mxu2  ;;  %v17514_v47 = vld [vmem:[#allocation3 + $0x1784] sm:$0xf0]  ;;  %v15817_v33 = vld [vmem:[#allocation3 + $0x1b00] sm:$0xf] }
 0x1c9   : > { %7523 = vmatpush.bf16.msra.mxu0 %v15466_v20  ;;  %v15450_v20 = vor.u32 %v17534_v13, %v15449_v22  ;;  %v17550_v22 = vld [vmem:[#allocation3 + $0x18a4] sm:$0xf0]  ;;  %v15442_v13 = vor.u32 %v17532_v44, %v15441_v12  ;;  %v15505_v12 = vld [vmem:[#allocation3 + $0x1890] sm:$0xf] }
 0x1ca   : > { %7509 = vmatpush.bf16.msra.mxu3 %v15402_v45  ;;  %v15386_v45 = vor.u32 %v17518_v34, %v15385_v40  ;;  %v7250_v16 = vadd.f32 %v7249_v49, %v7236_v51  ;;  %v15378_v34 = vor.u32 %v17516_v25, %v15377_v21  ;;  %v17626_v49 = vld [vmem:[#allocation3 + $0x1b04] sm:$0xf0]  ;;  %v15681_v51 = vld [vmem:[#allocation3 + $0x19f0] sm:$0xf]  ;;  %v17704_v21 = vld [vmem:[#allocation3 + $0x1d74] sm:$0xf0] }
 0x1cb   : > { %7607 = vmatpush.bf16.msra.mxu2 %v15850_v14  ;;  %v15834_v14 = vor.u32 %v17630_v1, %v15833_v15  ;;  %v17530_v1 = vld [vmem:[#allocation3 + $0x1804] sm:$0xf0]  ;;  %v12307_v25 = vld [vmem:[%s19271_s28 + $0x1a8] sm:$0xf0]  ;;  %v15818_v44 = vor.u32 %v17626_v49, %v15817_v33  ;;  %v15665_v33 = vld [vmem:[#allocation3 + $0x19d0] sm:$0xf] }
 0x1cc   : > { %7536 = vmatpush.bf16.msra.mxu1 %v15538_v35  ;;  %v17628_v35 = vld [vmem:[#allocation3 + $0x1b14] sm:$0xf0]  ;;  %v7264_v40 = vadd.f32 %v7263_v63, %v7250_v16  ;;  %v16129_v63 = vld [vmem:[#allocation3 + $0x1d70] sm:$0xf]  ;;  %v15497_v49 = vld [vmem:[#allocation3 + $0x1880] sm:$0xf] }
 0x1cd   : > { %7524 = vmatpush.bf16.msra.mxu0 %v15458_v24  ;;  %v15433_v24 = vld [vmem:[#allocation3 + $0x1800] sm:$0xf]  ;;  %v15826_v15 = vor.u32 %v17628_v35, %v15825_v8  ;;  %v15370_v8 = vor.u32 %v17514_v47, %v15369_v62  ;;  %v17548_v35 = vld [vmem:[#allocation3 + $0x1894] sm:$0xf0]  ;;  %v17590_v62 = vld [vmem:[#allocation3 + $0x19e4] sm:$0xf0] }
 0x1ce   : > { %7510 = vmatpush.bf16.msra.mxu3 %v15394_v2  ;;  %v15522_v2 = vor.u32 %v17552_v53, %v15521_v41  ;;  %v17592_v41 = vld [vmem:[#allocation3 + $0x19f4] sm:$0xf0]  ;;  %v15745_v53 = vld [vmem:[#allocation3 + $0x1a70] sm:$0xf]  ;;  %v15434_v16 = vor.u32 %v17530_v1, %v15433_v24  ;;  %v15737_v47 = vld [vmem:[#allocation3 + $0x1a60] sm:$0xf]  ;;  %v15506_v24 = vor.u32 %v17548_v35, %v15505_v12 }
 0x1cf   : > { %7608 = vmatpush.bf16.msra.mxu2 %v15842_v38  ;;  %v15513_v38 = vld [vmem:[#allocation3 + $0x18a0] sm:$0xf]  ;;  %v16113_v12 = vld [vmem:[#allocation3 + $0x1d50] sm:$0xf] }
 0x1d0   : > { %7537 = vmatpush.bf16.msra.mxu1 %v15530_v0  ;;  %v19593_v0 = vadd.f32 %v7277_v52, %v7264_v40  ;;  %v12313_v52 = vld [vmem:[%s19271_s28 + $0xc0] sm:$0xf]  ;;  %v16755_v40 = vld [vmem:[%s19271_s28 + $0x1ac] sm:$0xf0] }
 0x1d1   : > { %7525 = vmatpush.bf16.msra.mxu0 %v15450_v20  ;;  %v15514_v20 = vor.u32 %v17550_v22, %v15513_v38  ;;  %v16130_v38 = vor.u32 %v17704_v21, %v16129_v63  ;;  %v17606_v22 = vld [vmem:[#allocation3 + $0x1a64] sm:$0xf0]  ;;  %v19603_v1 = vor.u32 %v16755_v40, %v12313_v52  ;;  %v17588_v63 = vld [vmem:[#allocation3 + $0x19d4] sm:$0xf0]  ;;  %v15809_v21 = vld [vmem:[#allocation3 + $0x1af0] sm:$0xf] }
 0x1d2   : > { %7511 = vmatpush.bf16.msra.mxu3 %v15386_v45  ;;  %v17608_v45 = vld [vmem:[#allocation3 + $0x1a74] sm:$0xf0]  ;;  %v15657_v52 = vld [vmem:[#allocation3 + $0x19c0] sm:$0xf] }
 0x1d3   : > { %7609 = vmatpush.bf16.msra.mxu2 %v15834_v14  ;;  %v16724_v14 = vld [vmem:[%s19271_s28 + $0xbc] sm:$0xf]  ;;  %v15746_v23 = vor.u32 %v17608_v45, %v15745_v53  ;;  %20751 = vst [vmem:[#allocation74_spill] sm:$0xff] %v19603_v1  ;;  %v15674_v53 = vor.u32 %v17590_v62, %v15673_v61  ;;  %v15738_v45 = vor.u32 %v17606_v22, %v15737_v47  ;;  %v15801_v40 = vld [vmem:[#allocation3 + $0x1ae0] sm:$0xf] }
 0x1d4   : > { %7538 = vmatpush.bf16.msra.mxu1 %v15522_v2  ;;  %v15682_v2 = vor.u32 %v17592_v41, %v15681_v51  ;;  %v17546_v51 = vld [vmem:[#allocation3 + $0x1884] sm:$0xf0]  ;;  %v19605_v41 = vor.u32 %v16758_v28, %v12337_v27  ;;  %v12315_v28 = vld [vmem:[%s19271_s28 + $0x1b0] sm:$0xf0]  ;;  %v15721_v22 = vld [vmem:[#allocation3 + $0x1a40] sm:$0xf] }
 0x1d5   : > { %7526 = vmatpush.bf16.msra.mxu0 %v15442_v13  ;;  %v16121_v13 = vld [vmem:[#allocation3 + $0x1d60] sm:$0xf]  ;;  %v15498_v27 = vor.u32 %v17546_v51, %v15497_v49  ;;  %v17586_v47 = vld [vmem:[#allocation3 + $0x19c4] sm:$0xf0] }
 0x1d6   : > { %7512 = vmatpush.bf16.msra.mxu3 %v15378_v34  ;;  %v19601_v34 = vor.u32 %v16724_v14, %v12307_v25  ;;  %20752 = vst [vmem:[#allocation75_spill] sm:$0xff] %v19605_v41  ;;  %v15729_v14 = vld [vmem:[#allocation3 + $0x1a50] sm:$0xf]  ;;  %v17604_v25 = vld [vmem:[#allocation3 + $0x1a54] sm:$0xf0] }
 0x1d7   : > { %7610 = vmatpush.bf16.msra.mxu2 %v15826_v15  ;;  %v17702_v15 = vld [vmem:[#allocation3 + $0x1d64] sm:$0xf0]  ;;  %v15730_v35 = vor.u32 %v17604_v25, %v15729_v14  ;;  %v16105_v49 = vld [vmem:[#allocation3 + $0x1d40] sm:$0xf]  ;;  %v17584_v25 = vld [vmem:[#allocation3 + $0x19b4] sm:$0xf0] }
 0x1d8   : > { %7539 = vmatpush.bf16.msra.mxu1 %v15514_v20  ;;  %20750 = vst [vmem:[#allocation73_spill] sm:$0xff] %v19601_v34  ;;  %v17624_v20 = vld [vmem:[#allocation3 + $0x1af4] sm:$0xf0]  ;;  %v17698_v51 = vld [vmem:[#allocation3 + $0x1d44] sm:$0xf0] }
 0x1d9   : > { %7527 = vmatpush.bf16.msra.mxu0 %v15434_v16  ;;  %v17700_v16 = vld [vmem:[#allocation3 + $0x1d54] sm:$0xf0]  ;;  %v15810_v61 = vor.u32 %v17624_v20, %v15809_v21  ;;  %v15649_v21 = vld [vmem:[#allocation3 + $0x19b0] sm:$0xf]  ;;  %v16106_v14 = vor.u32 %v17698_v51, %v16105_v49 }
 0x1da   : > { %7513 = vmatpush.bf16.msra.mxu3 %v15370_v8  ;;  %v16122_v8 = vor.u32 %v17702_v15, %v16121_v13  ;;  %v17602_v13 = vld [vmem:[#allocation3 + $0x1a44] sm:$0xf0]  ;;  %v19614_v15 = vpop.f32.mrf.mxu3  ;;  %v15793_v20 = vld [vmem:[#allocation3 + $0x1ad0] sm:$0xf] }
 0x1db   : > { %7611 = vmatpush.bf16.msra.mxu2 %v15818_v44  ;;  %v15666_v44 = vor.u32 %v17588_v63, %v15665_v33  ;;  %20754 = vst [vmem:[#allocation77_spill] sm:$0xff] %v19614_v15  ;;  %v15722_v63 = vor.u32 %v17602_v13, %v15721_v22  ;;  %v15705_v22 = vld [vmem:[#allocation3 + $0x1a20] sm:$0xf]  ;;  %v17598_v13 = vld [vmem:[#allocation3 + $0x1a24] sm:$0xf0] }
 0x1dc   : > { %7540 = vmatpush.bf16.msra.mxu1 %v15506_v24  ;;  %7528 = vmatmul.bf16.vlgmr.msra.gmra.mxu0 %v19603_v1  ;;  %v19616_v24 = vpop.f32.mrf.mxu0 }
 0x1dd   : > { %7576 = vmatpush.bf16.msrb.mxu0 %v15746_v23  ;;  %7514 = vmatmul.bf16.vlgmr.msra.gmra.mxu3 %v19601_v34  ;;  %v16725_v23 = vld [vmem:[%s19271_s28 + $0xc4] sm:$0xf]  ;;  %20755 = vst [vmem:[#allocation78_spill] sm:$0xff] %v19616_v24  ;;  %v12353_v24 = vld [vmem:[%s19271_s28 + $0xe8] sm:$0xf] }
 0x1de   : > { %7562 = vmatpush.bf16.msrb.mxu3 %v15682_v2  ;;  %7612 = vmatmul.bf16.vlgmr.msra.gmra.mxu2 %v19605_v41  ;;  %v17622_v2 = vld [vmem:[#allocation3 + $0x1ae4] sm:$0xf0]  ;;  %v19612_v62 = vor.u32 %v16725_v23, %v12315_v28  ;;  %v16097_v23 = vld [vmem:[#allocation3 + $0x1d30] sm:$0xf]  ;;  %v17696_v28 = vld [vmem:[#allocation3 + $0x1d34] sm:$0xf0] }
 0x1df   : > { %7660 = vmatpush.bf16.msrb.mxu2 %v16130_v38  ;;  %v16114_v38 = vor.u32 %v17700_v16, %v16113_v12  ;;  %v15802_v33 = vor.u32 %v17622_v2, %v15801_v40  ;;  %v15713_v12 = vld [vmem:[#allocation3 + $0x1a30] sm:$0xf]  ;;  %v17600_v16 = vld [vmem:[#allocation3 + $0x1a34] sm:$0xf0]  ;;  %v15785_v40 = vld [vmem:[#allocation3 + $0x1ac0] sm:$0xf] }
 0x1e0   : > { %20753 = vst [vmem:[#allocation76_spill] sm:$0xff] %v19612_v62  ;;  %7541 = vmatpush.bf16.msra.mxu1 %v15498_v27  ;;  %v19621_v27 = vpop.f32.mrf.mxu2  ;;  %v17618_v2 = vld [vmem:[#allocation3 + $0x1ac4] sm:$0xf0] }
 0x1e1   : > { %7577 = vmatpush.bf16.msrb.mxu0 %v15738_v45  ;;  %v15658_v45 = vor.u32 %v17586_v47, %v15657_v52  ;;  %20757 = vst [vmem:[#allocation80_spill] sm:$0xff] %v19621_v27  ;;  %v15641_v52 = vld [vmem:[#allocation3 + $0x19a0] sm:$0xf]  ;;  %v17582_v47 = vld [vmem:[#allocation3 + $0x19a4] sm:$0xf0] }
 0x1e2   : > { %7563 = vmatpush.bf16.msrb.mxu3 %v15674_v53  ;;  %v19618_v53 = vpop.f32.mrf.mxu1  ;;  %v7291_v49 = vpop.f32.mrf.mxu3  ;;  %v17694_v41 = vld [vmem:[#allocation3 + $0x1d24] sm:$0xf0]  ;;  %v16081_v27 = vld [vmem:[#allocation3 + $0x1d10] sm:$0xf] }
 0x1e3   : > { %7661 = vmatpush.bf16.msrb.mxu2 %v16122_v8  ;;  %20756 = vst [vmem:[#allocation79_spill] sm:$0xff] %v19618_v53  ;;  %v17620_v8 = vld [vmem:[#allocation3 + $0x1ad4] sm:$0xf0]  ;;  %7542 = vmatmul.bf16.vlgmr.msra.gmra.mxu1 %v19612_v62  ;;  %v16089_v62 = vld [vmem:[#allocation3 + $0x1d20] sm:$0xf]  ;;  %v7292_v1 = vadd.f32 %v7291_v49, %v19593_v0 }
 0x1e4   : > { %7590 = vmatpush.bf16.msrb.mxu1 %v15810_v61  ;;  %v15794_v61 = vor.u32 %v17620_v8, %v15793_v20  ;;  %v7305_v51 = vpop.f32.mrf.mxu0  ;;  %v15633_v20 = vld [vmem:[#allocation3 + $0x1990] sm:$0xf]  ;;  %v17692_v53 = vld [vmem:[#allocation3 + $0x1d14] sm:$0xf0] }
 0x1e5   : > { %7578 = vmatpush.bf16.msrb.mxu0 %v15730_v35  ;;  %v15714_v35 = vor.u32 %v17600_v16, %v15713_v12  ;;  %v15777_v8 = vld [vmem:[#allocation3 + $0x1ab0] sm:$0xf]  ;;  %v16090_v12 = vor.u32 %v17694_v41, %v16089_v62  ;;  %v17580_v16 = vld [vmem:[#allocation3 + $0x1994] sm:$0xf0]  ;;  %v15769_v41 = vld [vmem:[#allocation3 + $0x1aa0] sm:$0xf] }
 0x1e6   : > { %7564 = vmatpush.bf16.msrb.mxu3 %v15666_v44  ;;  %v15650_v44 = vor.u32 %v17584_v25, %v15649_v21  ;;  %v7306_v25 = vadd.f32 %v7305_v51, %v7292_v1  ;;  %v16073_v1 = vld [vmem:[#allocation3 + $0x1d00] sm:$0xf]  ;;  %v17614_v62 = vld [vmem:[#allocation3 + $0x1aa4] sm:$0xf0]  ;;  %v15937_v49 = vld [vmem:[#allocation3 + $0x1bf0] sm:$0xf] }
 0x1e7   : > { %7662 = vmatpush.bf16.msrb.mxu2 %v16114_v38  ;;  %v16098_v38 = vor.u32 %v17696_v28, %v16097_v23  ;;  %v15697_v23 = vld [vmem:[#allocation3 + $0x1a10] sm:$0xf]  ;;  %v17596_v28 = vld [vmem:[#allocation3 + $0x1a14] sm:$0xf0] }
 0x1e8   : > { %7591 = vmatpush.bf16.msrb.mxu1 %v15802_v33  ;;  %v15786_v33 = vor.u32 %v17618_v2, %v15785_v40  ;;  %v7333_v34 = vpop.f32.mrf.mxu2  ;;  %v17594_v40 = vld [vmem:[#allocation3 + $0x1a04] sm:$0xf0]  ;;  %v15634_v2 = vor.u32 %v17580_v16, %v15633_v20  ;;  %v17656_v51 = vld [vmem:[#allocation3 + $0x1bf4] sm:$0xf0]  ;;  %v16726_v20 = vld [vmem:[%s19271_s28 + $0xcc] sm:$0xf] }
 0x1e9   : > { %7579 = vmatpush.bf16.msrb.mxu0 %v15722_v63  ;;  %v15706_v63 = vor.u32 %v17598_v13, %v15705_v22  ;;  %v16082_v22 = vor.u32 %v17692_v53, %v16081_v27  ;;  %v17690_v13 = vld [vmem:[#allocation3 + $0x1d04] sm:$0xf0]  ;;  %v17612_v16 = vld [vmem:[#allocation3 + $0x1a94] sm:$0xf0] }
 0x1ea   : > { %7565 = vmatpush.bf16.msrb.mxu3 %v15658_v45  ;;  %v15642_v45 = vor.u32 %v17582_v47, %v15641_v52  ;;  %v7319_v21 = vpop.f32.mrf.mxu1  ;;  %v15689_v52 = vld [vmem:[#allocation3 + $0x1a00] sm:$0xf]  ;;  %v15698_v47 = vor.u32 %v17596_v28, %v15697_v23  ;;  %v12329_v23 = vld [vmem:[%s19271_s28 + $0xd0] sm:$0xf]  ;;  %v16074_v28 = vor.u32 %v17690_v13, %v16073_v1  ;;  %v17610_v1 = vld [vmem:[#allocation3 + $0x1a84] sm:$0xf0] }
 0x1eb   : > { %7663 = vmatpush.bf16.msrb.mxu2 %v16106_v14  ;;  %v17616_v14 = vld [vmem:[#allocation3 + $0x1ab4] sm:$0xf0]  ;;  %v7320_v0 = vadd.f32 %v7319_v21, %v7306_v25  ;;  %v20758_v25 = vperm.slane %v19372_v26, 0  ;;  %v15690_v27 = vor.u32 %v17594_v40, %v15689_v52  ;;  %v15993_v26 = vld [vmem:[#allocation3 + $0x1c60] sm:$0xf] }
 0x1ec   : > { %7592 = vmatpush.bf16.msrb.mxu1 %v15794_v61  ;;  %v15778_v61 = vor.u32 %v17616_v14, %v15777_v8  ;;  %v17672_v21 = vld [vmem:[#allocation3 + $0x1c74] sm:$0xf0]  ;;  %v16807_v8 = vld [vmem:[#allocation3 + $0x174] sm:$0xf]  ;;  %v12323_v14 = vld [vmem:[%s19271_s28 + $0x1b8] sm:$0xf0] }
 0x1ed   : > { %7580 = vmatpush.bf16.msrb.mxu0 %v15714_v35  ;;  %v17578_v35 = vld [vmem:[#allocation3 + $0x1984] sm:$0xf0] }
 0x1ee   : > { %7566 = vmatpush.bf16.msrb.mxu3 %v15650_v44  ;;  %v15625_v44 = vld [vmem:[#allocation3 + $0x1980] sm:$0xf] }
 0x1ef   : > { %7664 = vmatpush.bf16.msrb.mxu2 %v16098_v38  ;;  %v19624_v38 = vadd.f32 %v7333_v34, %v7320_v0  ;;  %v6860_v34 = vadd.f32 %v19399_v58, %v20758_v25  ;;  %v15626_v53 = vor.u32 %v17578_v35, %v15625_v44  ;;  %v15938_v0 = vor.u32 %v17656_v51, %v15937_v49  ;;  %v16805_v44 = vld [vmem:[#allocation3 + $0x164] sm:$0xf]  ;;  %v12539_v35 = vld [vmem:[#allocation3 + $0x168] sm:$0xf0]  ;;  %v16065_v51 = vld [vmem:[#allocation3 + $0x1cf0] sm:$0xf] }
 0x1f0   : > { %7593 = vmatpush.bf16.msrb.mxu1 %v15786_v33  ;;  %v16001_v33 = vld [vmem:[#allocation3 + $0x1c70] sm:$0xf]  ;;  %v19635_v58 = vor.u32 %v16726_v20, %v12323_v14  ;;  %v15930_v49 = vor.u32 %v17654_v48, %v15929_v56  ;;  %v17668_v20 = vld [vmem:[#allocation3 + $0x1c54] sm:$0xf0]  ;;  %v12531_v14 = vld [vmem:[#allocation3 + $0x158] sm:$0xf0] }
 0x1f1   : > { %7581 = vmatpush.bf16.msrb.mxu0 %v15706_v63  ;;  %v15770_v63 = vor.u32 %v17614_v62, %v15769_v41  ;;  %v16760_v41 = vld [vmem:[%s19271_s28 + $0x1d4] sm:$0xf0]  ;;  %v16002_v62 = vor.u32 %v17672_v21, %v16001_v33  ;;  %v6874_v40 = vadd.f32 %v19403_v5, %v6860_v34  ;;  %v15921_v5 = vld [vmem:[#allocation3 + $0x1bd0] sm:$0xf]  ;;  %v16727_v34 = vld [vmem:[%s19271_s28 + $0xd4] sm:$0xf] }
 0x1f2   : > { %7567 = vmatpush.bf16.msrb.mxu3 %v15642_v45  ;;  %v12547_v45 = vld [vmem:[#allocation3 + $0x178] sm:$0xf0]  ;;  %v19640_v13 = vor.u32 %v16760_v41, %v12353_v24  ;;  %v17688_v33 = vld [vmem:[#allocation3 + $0x1cf4] sm:$0xf0]  ;;  %v16803_v24 = vld [vmem:[#allocation3 + $0x154] sm:$0xf] }
 0x1f3   : > { %7665 = vmatpush.bf16.msrb.mxu2 %v16090_v12  ;;  %v15761_v12 = vld [vmem:[#allocation3 + $0x1a90] sm:$0xf]  ;;  %v12550_v15 = vor.u32 %v16807_v8, %v12547_v45  ;;  %v12542_v8 = vor.u32 %v16805_v44, %v12539_v35  ;;  %v17652_v45 = vld [vmem:[#allocation3 + $0x1bd4] sm:$0xf0]  ;;  %v6888_v48 = vadd.f32 %v19397_v57, %v6874_v40  ;;  %v16066_v56 = vor.u32 %v17688_v33, %v16065_v51  ;;  %v15977_v57 = vld [vmem:[#allocation3 + $0x1c40] sm:$0xf]  ;;  %v19651_v44 = vpop.f32.mrf.mxu3  ;;  %v19653_v35 = vpop.f32.mrf.mxu0 }
 0x1f4   : > { %7594 = vmatpush.bf16.msrb.mxu1 %v15778_v61  ;;  %v16757_v61 = vld [vmem:[%s19271_s28 + $0x1bc] sm:$0xf0]  ;;  %v15762_v52 = vor.u32 %v17612_v16, %v15761_v12  ;;  %v17686_v12 = vld [vmem:[#allocation3 + $0x1ce4] sm:$0xf0]  ;;  %v16049_v40 = vld [vmem:[#allocation3 + $0x1cd0] sm:$0xf] }
 0x1f5   : > { %7582 = vmatpush.bf16.msrb.mxu0 %v15698_v47  ;;  %v15753_v47 = vld [vmem:[#allocation3 + $0x1a80] sm:$0xf]  ;;  %v6902_v16 = vadd.f32 %v19428_v29, %v6888_v48  ;;  %v17682_v48 = vld [vmem:[#allocation3 + $0x1cc4] sm:$0xf0] }
 0x1f6   : > { %7568 = vmatpush.bf16.msrb.mxu3 %v15634_v2  ;;  %v17670_v2 = vld [vmem:[#allocation3 + $0x1c64] sm:$0xf0]  ;;  %v15754_v25 = vor.u32 %v17610_v1, %v15753_v47  ;;  %v17684_v47 = vld [vmem:[#allocation3 + $0x1cd4] sm:$0xf0] }
 0x1f7   : > { %7666 = vmatpush.bf16.msrb.mxu2 %v16082_v22  ;;  %v19638_v22 = vor.u32 %v16757_v61, %v12329_v23  ;;  %v15994_v21 = vor.u32 %v17670_v2, %v15993_v26  ;;  %v17650_v61 = vld [vmem:[#allocation3 + $0x1bc4] sm:$0xf0]  ;;  %v16801_v26 = vld [vmem:[#allocation3 + $0x144] sm:$0xf]  ;;  %v12523_v2 = vld [vmem:[#allocation3 + $0x148] sm:$0xf0]  ;;  %v6916_v1 = vadd.f32 %v19430_v36, %v6902_v16 }
 0x1f8   : > { %7595 = vmatpush.bf16.msrb.mxu1 %v15770_v63  ;;  %v15985_v63 = vld [vmem:[#allocation3 + $0x1c50] sm:$0xf]  ;;  %v12526_v33 = vor.u32 %v16801_v26, %v12523_v2  ;;  %v17662_v16 = vld [vmem:[#allocation3 + $0x1c24] sm:$0xf0] }
 0x1f9   : > { %7583 = vmatpush.bf16.msrb.mxu0 %v15690_v27  ;;  %v16057_v27 = vld [vmem:[#allocation3 + $0x1ce0] sm:$0xf]  ;;  %v15986_v23 = vor.u32 %v17668_v20, %v15985_v63  ;;  %v16799_v63 = vld [vmem:[#allocation3 + $0x134] sm:$0xf]  ;;  %v12515_v20 = vld [vmem:[#allocation3 + $0x138] sm:$0xf0] }
 0x1fa   : > { %7569 = vmatpush.bf16.msrb.mxu3 %v15626_v53  ;;  %v15922_v53 = vor.u32 %v17652_v45, %v15921_v5  ;;  %v15969_v5 = vld [vmem:[#allocation3 + $0x1c30] sm:$0xf]  ;;  %v17664_v45 = vld [vmem:[#allocation3 + $0x1c34] sm:$0xf0] }
 0x1fb   : > { %7667 = vmatpush.bf16.msrb.mxu2 %v16074_v28  ;;  %v12534_v28 = vor.u32 %v16803_v24, %v12531_v14  ;;  %v19659_v24 = vpop.f32.mrf.mxu2  ;;  %v16050_v14 = vor.u32 %v17684_v47, %v16049_v40  ;;  %v16033_v2 = vld [vmem:[#allocation3 + $0x1cb0] sm:$0xf] }
 0x1fc   : > { %7596 = vmatpush.bf16.msrb.mxu1 %v15762_v52  ;;  %7584 = vmatmul.bf16.vlgmr.msrb.gmra.mxu0 %v19638_v22  ;;  %v16058_v52 = vor.u32 %v17686_v12, %v16057_v27  ;;  %v17646_v27 = vld [vmem:[#allocation3 + $0x1ba4] sm:$0xf0]  ;;  %v15961_v12 = vld [vmem:[#allocation3 + $0x1c20] sm:$0xf] }
 0x1fd   : > { %7632 = vmatpush.bf16.msra.mxu0 %v16002_v62  ;;  %7570 = vmatmul.bf16.vlgmr.msrb.gmra.mxu3 %v19635_v58  ;;  %v17666_v62 = vld [vmem:[#allocation3 + $0x1c44] sm:$0xf0] }
 0x1fe   : > { %7618 = vmatpush.bf16.msra.mxu3 %v15938_v0  ;;  %7668 = vmatmul.bf16.vlgmr.msrb.gmra.mxu2 %v19640_v13  ;;  %v15913_v0 = vld [vmem:[#allocation3 + $0x1bc0] sm:$0xf]  ;;  %v15978_v51 = vor.u32 %v17666_v62, %v15977_v57 }
 0x1ff   : > { %7716 = vmatpush.bf16.msra.mxu2 %v12550_v15  ;;  %v12331_v15 = vld [vmem:[%s19271_s28 + $0x1c0] sm:$0xf0]  ;;  %v15914_v29 = vor.u32 %v17650_v61, %v15913_v0  ;;  %v7361_v61 = vpop.f32.mrf.mxu0 }
 0x200   : > { %7597 = vmatpush.bf16.msrb.mxu1 %v15754_v25  ;;  %v19649_v41 = vor.u32 %v16727_v34, %v12331_v15  ;;  %v16041_v25 = vld [vmem:[#allocation3 + $0x1cc0] sm:$0xf]  ;;  %v15970_v34 = vor.u32 %v17664_v45, %v15969_v5  ;;  %v12518_v15 = vor.u32 %v16799_v63, %v12515_v20  ;;  %v7347_v0 = vpop.f32.mrf.mxu3  ;;  %v16795_v5 = vld [vmem:[#allocation3 + $0x114] sm:$0xf]  ;;  %v12499_v45 = vld [vmem:[#allocation3 + $0x118] sm:$0xf0] }
 0x201   : > { %7633 = vmatpush.bf16.msra.mxu0 %v15994_v21  ;;  %v15905_v21 = vld [vmem:[#allocation3 + $0x1bb0] sm:$0xf]  ;;  %v16042_v57 = vor.u32 %v17682_v48, %v16041_v25  ;;  %v7348_v62 = vadd.f32 %v7347_v0, %v19624_v38  ;;  %v15945_v48 = vld [vmem:[#allocation3 + $0x1c00] sm:$0xf]  ;;  %v16775_v0 = vld [vmem:[#allocation3 + $0x74] sm:$0xf] }
 0x202   : > { %7619 = vmatpush.bf16.msra.mxu3 %v15930_v49  ;;  %v19656_v49 = vpop.f32.mrf.mxu1 }
 0x203   : > { %7717 = vmatpush.bf16.msra.mxu2 %v12542_v8  ;;  %v17648_v8 = vld [vmem:[#allocation3 + $0x1bb4] sm:$0xf0]  ;;  %7598 = vmatmul.bf16.vlgmr.msrb.gmra.mxu1 %v19649_v41  ;;  %v7389_v38 = vpop.f32.mrf.mxu2 }
 0x204   : > { %7646 = vmatpush.bf16.msra.mxu1 %v16066_v56  ;;  %v15906_v36 = vor.u32 %v17648_v8, %v15905_v21  ;;  %v6930_v56 = vadd.f32 %v19432_v42, %v6916_v1  ;;  %v17680_v42 = vld [vmem:[#allocation3 + $0x1cb4] sm:$0xf0]  ;;  %v15889_v1 = vld [vmem:[#allocation3 + $0x1b90] sm:$0xf]  ;;  %v7362_v21 = vadd.f32 %v7361_v61, %v7348_v62  ;;  %v16871_v62 = vld [vmem:[#allocation3 + $0x374] sm:$0xf] }
 0x205   : > { %7634 = vmatpush.bf16.msra.mxu0 %v15986_v23  ;;  %v16797_v23 = vld [vmem:[#allocation3 + $0x124] sm:$0xf]  ;;  %v17660_v8 = vld [vmem:[#allocation3 + $0x1c14] sm:$0xf0]  ;;  %v16034_v20 = vor.u32 %v17680_v42, %v16033_v2 }
 0x206   : > { %7620 = vmatpush.bf16.msra.mxu3 %v15922_v53  ;;  %v15897_v53 = vld [vmem:[#allocation3 + $0x1ba0] sm:$0xf] }
 0x207   : > { %7718 = vmatpush.bf16.msra.mxu2 %v12534_v28  ;;  %v12507_v28 = vld [vmem:[#allocation3 + $0x128] sm:$0xf0]  ;;  %v15898_v26 = vor.u32 %v17646_v27, %v15897_v53  ;;  %v12502_v53 = vor.u32 %v16795_v5, %v12499_v45  ;;  %v17658_v27 = vld [vmem:[#allocation3 + $0x1c04] sm:$0xf0]  ;;  %v16185_v5 = vld [vmem:[#allocation3 + $0x1de0] sm:$0xf] }
 0x208   : > { %7647 = vmatpush.bf16.msra.mxu1 %v16058_v52  ;;  %v6944_v52 = vadd.f32 %v19435_v60, %v6930_v56  ;;  %v12510_v40 = vor.u32 %v16797_v23, %v12507_v28  ;;  %v16025_v56 = vld [vmem:[#allocation3 + $0x1ca0] sm:$0xf]  ;;  %v16193_v23 = vld [vmem:[#allocation3 + $0x1df0] sm:$0xf]  ;;  %v17720_v28 = vld [vmem:[#allocation3 + $0x1df4] sm:$0xf0] }
 0x209   : > { %7635 = vmatpush.bf16.msra.mxu0 %v15978_v51  ;;  %v17644_v51 = vld [vmem:[#allocation3 + $0x1b94] sm:$0xf0] }
 0x20a   : > { %7621 = vmatpush.bf16.msra.mxu3 %v15914_v29  ;;  %v15962_v29 = vor.u32 %v17662_v16, %v15961_v12  ;;  %v7375_v47 = vpop.f32.mrf.mxu1  ;;  %v6958_v63 = vadd.f32 %v19459_v6, %v6944_v52  ;;  %v15890_v25 = vor.u32 %v17644_v51, %v15889_v1  ;;  %v16793_v12 = vld [vmem:[#allocation3 + $0x104] sm:$0xf]  ;;  %v12491_v6 = vld [vmem:[#allocation3 + $0x108] sm:$0xf0]  ;;  %v16728_v52 = vld [vmem:[%s19271_s28 + $0xdc] sm:$0xf] }
 0x20b   : > { %7719 = vmatpush.bf16.msra.mxu2 %v12526_v33  ;;  %v15953_v33 = vld [vmem:[#allocation3 + $0x1c10] sm:$0xf]  ;;  %v7376_v60 = vadd.f32 %v7375_v47, %v7362_v21  ;;  %v15946_v47 = vor.u32 %v17658_v27, %v15945_v48  ;;  %v12494_v1 = vor.u32 %v16793_v12, %v12491_v6  ;;  %v17676_v51 = vld [vmem:[#allocation3 + $0x1c94] sm:$0xf0]  ;;  %v16791_v6 = vld [vmem:[#allocation3 + $0xf4] sm:$0xf] }
 0x20c   : > { %7648 = vmatpush.bf16.msra.mxu1 %v16050_v14  ;;  %v15881_v14 = vld [vmem:[#allocation3 + $0x1b80] sm:$0xf]  ;;  %v6972_v61 = vadd.f32 %v19461_v7, %v6958_v63  ;;  %v16759_v21 = vld [vmem:[%s19271_s28 + $0x1cc] sm:$0xf0]  ;;  %v16194_v7 = vor.u32 %v17720_v28, %v16193_v23  ;;  %v17716_v12 = vld [vmem:[#allocation3 + $0x1dd4] sm:$0xf0] }
 0x20d   : > { %7636 = vmatpush.bf16.msra.mxu0 %v15970_v34  ;;  %v17678_v34 = vld [vmem:[#allocation3 + $0x1ca4] sm:$0xf0]  ;;  %v19665_v16 = vadd.f32 %v7389_v38, %v7376_v60  ;;  %v16869_v60 = vld [vmem:[#allocation3 + $0x364] sm:$0xf]  ;;  %v12483_v23 = vld [vmem:[#allocation3 + $0xf8] sm:$0xf0] }
 0x20e   : > { %7622 = vmatpush.bf16.msra.mxu3 %v15906_v36  ;;  %v17642_v36 = vld [vmem:[#allocation3 + $0x1b84] sm:$0xf0]  ;;  %v16026_v2 = vor.u32 %v17678_v34, %v16025_v56  ;;  %v6986_v45 = vadd.f32 %v19463_v30, %v6972_v61  ;;  %v16177_v34 = vld [vmem:[#allocation3 + $0x1dd0] sm:$0xf]  ;;  %v16771_v61 = vld [vmem:[#allocation3 + $0x54] sm:$0xf] }
 0x20f   : > { %7720 = vmatpush.bf16.msra.mxu2 %v12518_v15  ;;  %v15954_v15 = vor.u32 %v17660_v8, %v15953_v33  ;;  %v15882_v42 = vor.u32 %v17642_v36, %v15881_v14  ;;  %v12345_v33 = vld [vmem:[%s19271_s28 + $0xe0] sm:$0xf]  ;;  %v16773_v14 = vld [vmem:[#allocation3 + $0x64] sm:$0xf]  ;;  %v12411_v36 = vld [vmem:[#allocation3 + $0x68] sm:$0xf0] }
 0x210   : > { %7649 = vmatpush.bf16.msra.mxu1 %v16042_v57  ;;  %v12419_v57 = vld [vmem:[#allocation3 + $0x78] sm:$0xf0]  ;;  %v19675_v56 = vor.u32 %v16759_v21, %v12345_v33  ;;  %v12414_v27 = vor.u32 %v16773_v14, %v12411_v36  ;;  %v7000_v28 = vadd.f32 %v19466_v18, %v6986_v45  ;;  %v16178_v18 = vor.u32 %v17716_v12, %v16177_v34  ;;  %v12475_v33 = vld [vmem:[#allocation3 + $0xe8] sm:$0xf0]  ;;  %v16161_v34 = vld [vmem:[#allocation3 + $0x1db0] sm:$0xf] }
 0x211   : > { %7637 = vmatpush.bf16.msra.mxu0 %v15962_v29  ;;  %v12339_v29 = vld [vmem:[%s19271_s28 + $0x1c8] sm:$0xf0]  ;;  %v12422_v8 = vor.u32 %v16775_v0, %v12419_v57  ;;  %v12403_v57 = vld [vmem:[#allocation3 + $0x58] sm:$0xf0]  ;;  %v16767_v12 = vld [vmem:[#allocation3 + $0x34] sm:$0xf] }
 0x212   : > { %7623 = vmatpush.bf16.msra.mxu3 %v15898_v26  ;;  %v12803_v26 = vld [vmem:[#allocation3 + $0x378] sm:$0xf0]  ;;  %v19673_v38 = vor.u32 %v16728_v52, %v12339_v29  ;;  %v12347_v52 = vld [vmem:[%s19271_s28 + $0x1d0] sm:$0xf0]  ;;  %v7014_v29 = vadd.f32 %v19490_v46, %v7000_v28  ;;  %v12395_v45 = vld [vmem:[#allocation3 + $0x48] sm:$0xf0]  ;;  %v19688_v46 = vpop.f32.mrf.mxu0 }
 0x213   : > { %7721 = vmatpush.bf16.msra.mxu2 %v12510_v40  ;;  %v16017_v40 = vld [vmem:[#allocation3 + $0x1c90] sm:$0xf]  ;;  %v12806_v63 = vor.u32 %v16871_v62, %v12803_v26  ;;  %v16867_v62 = vld [vmem:[#allocation3 + $0x354] sm:$0xf]  ;;  %v12787_v26 = vld [vmem:[#allocation3 + $0x358] sm:$0xf0] }
 0x214   : > { %7650 = vmatpush.bf16.msra.mxu1 %v16034_v20  ;;  %v17718_v20 = vld [vmem:[#allocation3 + $0x1de4] sm:$0xf0]  ;;  %v16018_v48 = vor.u32 %v17676_v51, %v16017_v40  ;;  %v12486_v40 = vor.u32 %v16791_v6, %v12483_v23  ;;  %v16789_v51 = vld [vmem:[#allocation3 + $0xe4] sm:$0xf]  ;;  %v12790_v21 = vor.u32 %v16867_v62, %v12787_v26  ;;  %v7028_v14 = vadd.f32 %v19492_v39, %v7014_v29  ;;  %v12387_v6 = vld [vmem:[#allocation3 + $0x38] sm:$0xf0]  ;;  %v19694_v23 = vpop.f32.mrf.mxu2 }
 0x215   : > { %7638 = vmatpush.bf16.msra.mxu0 %v15954_v15  ;;  %v16009_v15 = vld [vmem:[#allocation3 + $0x1c80] sm:$0xf]  ;;  %v16186_v30 = vor.u32 %v17718_v20, %v16185_v5  ;;  %v16769_v5 = vld [vmem:[#allocation3 + $0x44] sm:$0xf]  ;;  %v12779_v20 = vld [vmem:[#allocation3 + $0x348] sm:$0xf0]  ;;  %v12478_v36 = vor.u32 %v16789_v51, %v12475_v33  ;;  %v12390_v62 = vor.u32 %v16767_v12, %v12387_v6 }
 0x216   : > { %7624 = vmatpush.bf16.msra.mxu3 %v15890_v25  ;;  %v12795_v25 = vld [vmem:[#allocation3 + $0x368] sm:$0xf0]  ;;  %v16863_v39 = vld [vmem:[#allocation3 + $0x334] sm:$0xf]  ;;  %v12771_v28 = vld [vmem:[#allocation3 + $0x338] sm:$0xf0] }
 0x217   : > { %7722 = vmatpush.bf16.msra.mxu2 %v12502_v53  ;;  %v17674_v53 = vld [vmem:[#allocation3 + $0x1c84] sm:$0xf0]  ;;  %v12798_v0 = vor.u32 %v16869_v60, %v12795_v25  ;;  %v19691_v60 = vpop.f32.mrf.mxu1  ;;  %v16153_v26 = vld [vmem:[#allocation3 + $0x1da0] sm:$0xf]  ;;  %v16861_v51 = vld [vmem:[#allocation3 + $0x324] sm:$0xf] }
 0x218   : > { %7651 = vmatpush.bf16.msra.mxu1 %v16026_v2  ;;  %v16010_v2 = vor.u32 %v17674_v53, %v16009_v15  ;;  %v16787_v15 = vld [vmem:[#allocation3 + $0xd4] sm:$0xf]  ;;  %v12467_v53 = vld [vmem:[#allocation3 + $0xd8] sm:$0xf0]  ;;  %v17710_v29 = vld [vmem:[#allocation3 + $0x1da4] sm:$0xf0] }
 0x219   : > { %7639 = vmatpush.bf16.msra.mxu0 %v15946_v47  ;;  %v12406_v47 = vor.u32 %v16771_v61, %v12403_v57  ;;  %v12470_v61 = vor.u32 %v16787_v15, %v12467_v53  ;;  %v12763_v33 = vld [vmem:[#allocation3 + $0x328] sm:$0xf0]  ;;  %v17708_v15 = vld [vmem:[#allocation3 + $0x1d94] sm:$0xf0]  ;;  %v16763_v53 = vld [vmem:[#allocation3 + $0x14] sm:$0xf] }
 0x21a   : > { %7625 = vmatpush.bf16.msra.mxu3 %v15882_v42  ;;  %v16729_v42 = vld [vmem:[%s19271_s28 + $0xe4] sm:$0xf] }
 0x21b   : > { %7723 = vmatpush.bf16.msra.mxu2 %v12494_v1  ;;  %v16169_v1 = vld [vmem:[#allocation3 + $0x1dc0] sm:$0xf] }
 0x21c   : > { %7652 = vmatpush.bf16.msra.mxu1 %v16018_v48  ;;  %7640 = vmatmul.bf16.vlgmr.msra.gmra.mxu0 %v19675_v56  ;;  %v12398_v48 = vor.u32 %v16769_v5, %v12395_v45  ;;  %v16154_v5 = vor.u32 %v17710_v29, %v16153_v26  ;;  %v12443_v26 = vld [vmem:[#allocation3 + $0xa8] sm:$0xf0]  ;;  %v16857_v29 = vld [vmem:[#allocation3 + $0x304] sm:$0xf] }
 0x21d   : > { %7688 = vmatpush.bf16.msrb.mxu0 %v12422_v8  ;;  %7626 = vmatmul.bf16.vlgmr.msra.gmra.mxu3 %v19673_v38  ;;  %v17714_v8 = vld [vmem:[#allocation3 + $0x1dc4] sm:$0xf0] }
 0x21e   : > { %7674 = vmatpush.bf16.msrb.mxu3 %v16194_v7  ;;  %7724 = vmatmul.bf16.vlgmr.msra.gmra.mxu2 %v19275_v50  ;;  %v19684_v7 = vor.u32 %v16729_v42, %v12347_v52  ;;  %v16865_v50 = vld [vmem:[#allocation3 + $0x344] sm:$0xf]  ;;  %v16170_v25 = vor.u32 %v17714_v8, %v16169_v1  ;;  %v12459_v42 = vld [vmem:[#allocation3 + $0xc8] sm:$0xf0]  ;;  %v12774_v52 = vor.u32 %v16863_v39, %v12771_v28  ;;  %v7417_v1 = vpop.f32.mrf.mxu0  ;;  %v16137_v39 = vld [vmem:[#allocation3 + $0x1d80] sm:$0xf] }
 0x21f   : > { %7772 = vmatpush.bf16.msrb.mxu2 %v12806_v63  ;;  %v19686_v63 = vpop.f32.mrf.mxu3  ;;  %v17706_v28 = vld [vmem:[#allocation3 + $0x1d84] sm:$0xf0] }
 0x220   : > { %7653 = vmatpush.bf16.msra.mxu1 %v16010_v2  ;;  %v16785_v2 = vld [vmem:[#allocation3 + $0xc4] sm:$0xf] }
 0x221   : > { %7689 = vmatpush.bf16.msrb.mxu0 %v12414_v27  ;;  %v17712_v27 = vld [vmem:[#allocation3 + $0x1db4] sm:$0xf0]  ;;  %v12462_v8 = vor.u32 %v16785_v2, %v12459_v42 }
 0x222   : > { %7675 = vmatpush.bf16.msrb.mxu3 %v16186_v30  ;;  %v12782_v30 = vor.u32 %v16865_v50, %v12779_v20  ;;  %v16162_v57 = vor.u32 %v17712_v27, %v16161_v34  ;;  %v7431_v50 = vpop.f32.mrf.mxu1  ;;  %v16145_v20 = vld [vmem:[#allocation3 + $0x1d90] sm:$0xf]  ;;  %v12766_v34 = vor.u32 %v16861_v51, %v12763_v33  ;;  %v12755_v27 = vld [vmem:[#allocation3 + $0x318] sm:$0xf0]  ;;  %v16935_v33 = vld [vmem:[#allocation3 + $0x574] sm:$0xf] }
 0x223   : > { %7773 = vmatpush.bf16.msrb.mxu2 %v12798_v0  ;;  %7654 = vmatmul.bf16.vlgmr.msra.gmra.mxu1 %v19684_v7  ;;  %v7042_v0 = vadd.f32 %v19494_v37, %v7028_v14  ;;  %v16783_v14 = vld [vmem:[#allocation3 + $0xb4] sm:$0xf]  ;;  %v12675_v51 = vld [vmem:[#allocation3 + $0x278] sm:$0xf0] }
 0x224   : > { %7702 = vmatpush.bf16.msrb.mxu1 %v12486_v40  ;;  %v16765_v40 = vld [vmem:[#allocation3 + $0x24] sm:$0xf] }
 0x225   : > { %7690 = vmatpush.bf16.msrb.mxu0 %v12406_v47  ;;  %v7056_v37 = vadd.f32 %v19497_v9, %v7042_v0  ;;  %v12371_v9 = vld [vmem:[#allocation3 + $0x18] sm:$0xf0]  ;;  %v16761_v0 = vld [vmem:[#allocation3 + $0x4] sm:$0xf] }
 0x226   : > { %7676 = vmatpush.bf16.msrb.mxu3 %v16178_v18  ;;  %v12379_v18 = vld [vmem:[#allocation3 + $0x28] sm:$0xf0] }
 0x227   : > { %7774 = vmatpush.bf16.msrb.mxu2 %v12790_v21  ;;  %v7403_v47 = vpop.f32.mrf.mxu3  ;;  %v12382_v45 = vor.u32 %v16765_v40, %v12379_v18  ;;  %v12747_v40 = vld [vmem:[#allocation3 + $0x308] sm:$0xf0]  ;;  %v16823_v18 = vld [vmem:[#allocation3 + $0x1f4] sm:$0xf] }
 0x228   : > { %7703 = vmatpush.bf16.msrb.mxu1 %v12478_v36  ;;  %v7404_v21 = vadd.f32 %v7403_v47, %v19665_v16  ;;  %v12451_v36 = vld [vmem:[#allocation3 + $0xb8] sm:$0xf0]  ;;  %v16859_v16 = vld [vmem:[#allocation3 + $0x314] sm:$0xf] }
 0x229   : > { %7691 = vmatpush.bf16.msrb.mxu0 %v12398_v48  ;;  %v12454_v6 = vor.u32 %v16783_v14, %v12451_v36  ;;  %v12611_v47 = vld [vmem:[#allocation3 + $0x1f8] sm:$0xf0]  ;;  %v12750_v36 = vor.u32 %v16857_v29, %v12747_v40 }
 0x22a   : > { %7677 = vmatpush.bf16.msrb.mxu3 %v16170_v25  ;;  %v7070_v25 = vadd.f32 %v19521_v19, %v7056_v37  ;;  %v7418_v48 = vadd.f32 %v7417_v1, %v7404_v21  ;;  %v12363_v19 = vld [vmem:[#allocation3 + $0x8] sm:$0xf0]  ;;  %v16839_v1 = vld [vmem:[#allocation3 + $0x274] sm:$0xf]  ;;  %v13059_v37 = vld [vmem:[#allocation3 + $0x578] sm:$0xf0] }
 0x22b   : > { %7775 = vmatpush.bf16.msrb.mxu2 %v12782_v30  ;;  %v7445_v30 = vpop.f32.mrf.mxu2  ;;  %v12659_v40 = vld [vmem:[#allocation3 + $0x258] sm:$0xf0] }
 0x22c   : > { %7704 = vmatpush.bf16.msrb.mxu1 %v12470_v61  ;;  %v7432_v12 = vadd.f32 %v7431_v50, %v7418_v48  ;;  %v16146_v61 = vor.u32 %v17708_v15, %v16145_v20  ;;  %v7084_v2 = vadd.f32 %v19523_v54, %v7070_v25  ;;  %v12366_v54 = vor.u32 %v16761_v0, %v12363_v19  ;;  %v16779_v50 = vld [vmem:[#allocation3 + $0x94] sm:$0xf]  ;;  %v12435_v20 = vld [vmem:[#allocation3 + $0x98] sm:$0xf0]  ;;  %v16821_v15 = vld [vmem:[#allocation3 + $0x1e4] sm:$0xf] }
 0x22d   : > { %7692 = vmatpush.bf16.msrb.mxu0 %v12390_v62  ;;  %v16781_v62 = vld [vmem:[#allocation3 + $0xa4] sm:$0xf]  ;;  %v12614_v25 = vor.u32 %v16823_v18, %v12611_v47  ;;  %v12678_v48 = vor.u32 %v16839_v1, %v12675_v51  ;;  %v16931_v18 = vld [vmem:[#allocation3 + $0x554] sm:$0xf] }
 0x22e   : > { %7678 = vmatpush.bf16.msrb.mxu3 %v16162_v57  ;;  %v12374_v57 = vor.u32 %v16763_v53, %v12371_v9  ;;  %v19701_v42 = vadd.f32 %v7445_v30, %v7432_v12  ;;  %v12446_v21 = vor.u32 %v16781_v62, %v12443_v26  ;;  %v7098_v14 = vadd.f32 %v19525_v11, %v7084_v2  ;;  %v12603_v53 = vld [vmem:[#allocation3 + $0x1e8] sm:$0xf0]  ;;  %v16837_v9 = vld [vmem:[#allocation3 + $0x264] sm:$0xf]  ;;  %v16819_v26 = vld [vmem:[#allocation3 + $0x1d4] sm:$0xf] }
 0x22f   : > { %7776 = vmatpush.bf16.msrb.mxu2 %v12774_v52  ;;  %v12758_v52 = vor.u32 %v16859_v16, %v12755_v27  ;;  %v12667_v16 = vld [vmem:[#allocation3 + $0x268] sm:$0xf0]  ;;  %v16933_v27 = vld [vmem:[#allocation3 + $0x564] sm:$0xf]  ;;  %v12606_v0 = vor.u32 %v16821_v15, %v12603_v53  ;;  %v12595_v2 = vld [vmem:[#allocation3 + $0x1d8] sm:$0xf0]  ;;  %v19718_v15 = vpop.f32.mrf.mxu1 }
 0x230   : > { %7705 = vmatpush.bf16.msrb.mxu1 %v12462_v8  ;;  %v16730_v8 = vld [vmem:[%s19271_s28 + $0xec] sm:$0xf]  ;;  %v7112_v11 = vadd.f32 %v19528_v59, %v7098_v14  ;;  %v12670_v19 = vor.u32 %v16837_v9, %v12667_v16  ;;  %v13043_v59 = vld [vmem:[#allocation3 + $0x558] sm:$0xf0]  ;;  %v12598_v51 = vor.u32 %v16819_v26, %v12595_v2  ;;  %v16815_v9 = vld [vmem:[#allocation3 + $0x1b4] sm:$0xf] }
 0x231   : > { %7693 = vmatpush.bf16.msrb.mxu0 %v12382_v45  ;;  %v12355_v45 = vld [vmem:[%s19271_s28 + $0x1d8] sm:$0xf0]  ;;  %v13051_v12 = vld [vmem:[#allocation3 + $0x568] sm:$0xf0]  ;;  %v16813_v2 = vld [vmem:[#allocation3 + $0x1a4] sm:$0xf]  ;;  %s20413_s28 = scalar_lea.vmem %s20638_s12, %s18385_s26 }
 0x232   : > { %7679 = vmatpush.bf16.msrb.mxu3 %v16154_v5  ;;  %v16138_v5 = vor.u32 %v17706_v28, %v16137_v39  ;;  %v19706_v30 = vor.u32 %v16730_v8, %v12355_v45  ;;  %v16777_v39 = vld [vmem:[#allocation3 + $0x84] sm:$0xf]  ;;  %v12427_v28 = vld [vmem:[#allocation3 + $0x88] sm:$0xf0]  ;;  %v13054_v62 = vor.u32 %v16933_v27, %v13051_v12  ;;  %v7126_v29 = vadd.f32 %v19552_v3, %v7112_v11  ;;  %v12579_v16 = vld [vmem:[#allocation3 + $0x1b8] sm:$0xf0] }
 0x233   : > { %7777 = vmatpush.bf16.msrb.mxu2 %v12766_v34  ;;  %v13062_v34 = vor.u32 %v16935_v33, %v13059_v37  ;;  %v12430_v47 = vor.u32 %v16777_v39, %v12427_v28  ;;  %v16853_v33 = vld [vmem:[#allocation3 + $0x2e4] sm:$0xf]  ;;  %v12731_v37 = vld [vmem:[#allocation3 + $0x2e8] sm:$0xf0]  ;;  %v13046_v3 = vor.u32 %v16931_v18, %v13043_v59  ;;  %v16831_v27 = vld [vmem:[#allocation3 + $0x234] sm:$0xf]  ;;  %v19722_v11 = vpop.f32.mrf.mxu2 }
 0x234   : > { %7706 = vmatpush.bf16.msrb.mxu1 %v12454_v6  ;;  %v12438_v6 = vor.u32 %v16779_v50, %v12435_v20  ;;  %v16817_v8 = vld [vmem:[#allocation3 + $0x1c4] sm:$0xf]  ;;  %v7140_v45 = vadd.f32 %v19554_v43, %v7126_v29  ;;  %v12651_v50 = vld [vmem:[#allocation3 + $0x248] sm:$0xf0]  ;;  %v16927_v39 = vld [vmem:[#allocation3 + $0x534] sm:$0xf] }
 0x235   : > { %7694 = vmatpush.bf16.msrb.mxu0 %v12374_v57  ;;  %v12739_v57 = vld [vmem:[#allocation3 + $0x2f8] sm:$0xf0]  ;;  %v16929_v20 = vld [vmem:[#allocation3 + $0x544] sm:$0xf]  ;;  %v13035_v14 = vld [vmem:[#allocation3 + $0x548] sm:$0xf0] }
 0x236   : > { %7680 = vmatpush.bf16.msrb.mxu3 %v16146_v61  ;;  %v16855_v61 = vld [vmem:[#allocation3 + $0x2f4] sm:$0xf]  ;;  %v13038_v43 = vor.u32 %v16929_v20, %v13035_v14  ;;  %v7154_v12 = vadd.f32 %v19556_v4, %v7140_v45  ;;  %v13027_v28 = vld [vmem:[#allocation3 + $0x538] sm:$0xf0]  ;;  %v16829_v4 = vld [vmem:[#allocation3 + $0x224] sm:$0xf] }
 0x237   : > { %7778 = vmatpush.bf16.msrb.mxu2 %v12758_v52  ;;  %v16835_v52 = vld [vmem:[#allocation3 + $0x254] sm:$0xf]  ;;  %v12742_v1 = vor.u32 %v16855_v61, %v12739_v57  ;;  %v12582_v61 = vor.u32 %v16815_v9, %v12579_v16  ;;  %v16849_v57 = vld [vmem:[#allocation3 + $0x2c4] sm:$0xf]  ;;  %v13030_v26 = vor.u32 %v16927_v39, %v13027_v28  ;;  %v12563_v45 = vld [vmem:[#allocation3 + $0x198] sm:$0xf0] }
 0x238   : > { %7707 = vmatpush.bf16.msrb.mxu1 %v12446_v21  ;;  %v12662_v21 = vor.u32 %v16835_v52, %v12659_v40  ;;  %v12571_v52 = vld [vmem:[#allocation3 + $0x1a8] sm:$0xf0]  ;;  %v7168_v29 = vadd.f32 %v19559_v55, %v7154_v12  ;;  %v16925_v18 = vld [vmem:[#allocation3 + $0x524] sm:$0xf]  ;;  %v12627_v14 = vld [vmem:[#allocation3 + $0x218] sm:$0xf0] }
 0x239   : > { %7695 = vmatpush.bf16.msrb.mxu0 %v12366_v54  ;;  %v16833_v54 = vld [vmem:[#allocation3 + $0x244] sm:$0xf]  ;;  %v12635_v40 = vld [vmem:[#allocation3 + $0x228] sm:$0xf0] }
 0x23a   : > { %7681 = vmatpush.bf16.msrb.mxu3 %v16138_v5  ;;  %v12587_v5 = vld [vmem:[#allocation3 + $0x1c8] sm:$0xf0]  ;;  %v12654_v53 = vor.u32 %v16833_v54, %v12651_v50  ;;  %v16811_v54 = vld [vmem:[#allocation3 + $0x194] sm:$0xf]  ;;  %v16825_v28 = vld [vmem:[#allocation3 + $0x204] sm:$0xf] }
 0x23b   : > { %7779 = vmatpush.bf16.msrb.mxu2 %v12750_v36  ;;  %v12734_v36 = vor.u32 %v16853_v33, %v12731_v37  ;;  %v12574_v37 = vor.u32 %v16813_v2, %v12571_v52  ;;  %v16827_v50 = vld [vmem:[#allocation3 + $0x214] sm:$0xf]  ;;  %v12566_v9 = vor.u32 %v16811_v54, %v12563_v45  ;;  %v12555_v16 = vld [vmem:[#allocation3 + $0x188] sm:$0xf0]  ;;  %v12931_v52 = vld [vmem:[#allocation3 + $0x478] sm:$0xf0] }
 0x23c   : > { %7708 = vmatpush.bf16.msrb.mxu1 %v12438_v6  ;;  %7696 = vmatmul.bf16.vlgmr.msrb.gmra.mxu0 %v19280_v10  ;;  %v19714_v10 = vpop.f32.mrf.mxu3  ;;  %v12643_v6 = vld [vmem:[#allocation3 + $0x238] sm:$0xf0]  ;;  %v12699_v12 = vld [vmem:[#allocation3 + $0x2a8] sm:$0xf0]  ;;  %v16903_v2 = vld [vmem:[#allocation3 + $0x474] sm:$0xf] }
 0x23d   : > { %7744 = vmatpush.bf16.msra.mxu0 %v12678_v48  ;;  %7682 = vmatmul.bf16.vlgmr.msrb.gmra.mxu3 %v19706_v30  ;;  %v16851_v48 = vld [vmem:[#allocation3 + $0x2d4] sm:$0xf]  ;;  %v12923_v54 = vld [vmem:[#allocation3 + $0x468] sm:$0xf0]  ;;  %v16997_v45 = vld [vmem:[#allocation3 + $0x764] sm:$0xf] }
 0x23e   : > { %7730 = vmatpush.bf16.msra.mxu3 %v12614_v25  ;;  %7780 = vmatmul.bf16.vlgmr.msrb.gmra.mxu2 %v19290_v32  ;;  %v19716_v32 = vpop.f32.mrf.mxu0  ;;  %v12590_v25 = vor.u32 %v16817_v8, %v12587_v5  ;;  %v12638_v8 = vor.u32 %v16829_v4, %v12635_v40  ;;  %v16999_v4 = vld [vmem:[#allocation3 + $0x774] sm:$0xf] }
 0x23f   : > { %7828 = vmatpush.bf16.msra.mxu2 %v13062_v34  ;;  %v12723_v34 = vld [vmem:[#allocation3 + $0x2d8] sm:$0xf0] }
 0x240   : > { %7709 = vmatpush.bf16.msrb.mxu1 %v12430_v47  ;;  %v7487_v55 = vpop.f32.mrf.mxu1  ;;  %v20760_v40 = vld [vmem:[#allocation71_spill] sm:$0xff] }
 0x241   : > { %7745 = vmatpush.bf16.msra.mxu0 %v12670_v19  ;;  %v12715_v19 = vld [vmem:[#allocation3 + $0x2c8] sm:$0xf0] }
 0x242   : > { %7731 = vmatpush.bf16.msra.mxu3 %v12606_v0  ;;  %v12726_v0 = vor.u32 %v16851_v48, %v12723_v34  ;;  %v16809_v34 = vld [vmem:[#allocation3 + $0x184] sm:$0xf] }
 0x243   : > { %7829 = vmatpush.bf16.msra.mxu2 %v13054_v62  ;;  %7710 = vmatmul.bf16.vlgmr.msrb.gmra.mxu1 %v19285_v17  ;;  %v12646_v62 = vor.u32 %v16831_v27, %v12643_v6  ;;  %v13019_v17 = vld [vmem:[#allocation3 + $0x528] sm:$0xf0]  ;;  %v16845_v27 = vld [vmem:[#allocation3 + $0x2a4] sm:$0xf]  ;;  %v12630_v6 = vor.u32 %v16827_v50, %v12627_v14 }
 0x244   : > { %7758 = vmatpush.bf16.msra.mxu1 %v12742_v1  ;;  %v7459_v59 = vpop.f32.mrf.mxu3  ;;  %v12718_v1 = vor.u32 %v16849_v57, %v12715_v19  ;;  %v13022_v5 = vor.u32 %v16925_v18, %v13019_v17  ;;  %v13003_v19 = vld [vmem:[#allocation3 + $0x508] sm:$0xf0]  ;;  %v12558_v17 = vor.u32 %v16809_v34, %v12555_v16  ;;  %v12995_v34 = vld [vmem:[#allocation3 + $0x4f8] sm:$0xf0]  ;;  %v16883_v16 = vld [vmem:[#allocation3 + $0x3d4] sm:$0xf] }
 0x245   : > { %7746 = vmatpush.bf16.msra.mxu0 %v12662_v21  ;;  %v7460_v33 = vadd.f32 %v7459_v59, %v19701_v42  ;;  %v16847_v21 = vld [vmem:[#allocation3 + $0x2b4] sm:$0xf]  ;;  %v13315_v59 = vld [vmem:[#allocation3 + $0x778] sm:$0xf0] }
 0x246   : > { %7732 = vmatpush.bf16.msra.mxu3 %v12598_v51  ;;  %v7473_v47 = vpop.f32.mrf.mxu0  ;;  %v7182_v51 = vadd.f32 %v19583_v31, %v7168_v29  ;;  %v7501_v31 = vpop.f32.mrf.mxu2  ;;  %v20759_v42 = vld [vmem:[#allocation70_spill] sm:$0xff]  ;;  %v12702_v29 = vor.u32 %v16845_v27, %v12699_v12  ;;  %v12851_v12 = vld [vmem:[#allocation3 + $0x3d8] sm:$0xf0] }
 0x247   : > { %7830 = vmatpush.bf16.msra.mxu2 %v13046_v3  ;;  %v12707_v3 = vld [vmem:[#allocation3 + $0x2b8] sm:$0xf0]  ;;  %v7474_v20 = vadd.f32 %v7473_v47, %v7460_v33  ;;  %v16843_v47 = vld [vmem:[#allocation3 + $0x294] sm:$0xf] }
 0x248   : > { %7759 = vmatpush.bf16.msra.mxu1 %v12734_v36  ;;  %v16923_v36 = vld [vmem:[#allocation3 + $0x514] sm:$0xf]  ;;  %v12710_v48 = vor.u32 %v16847_v21, %v12707_v3  ;;  %v12934_v21 = vor.u32 %v16903_v2, %v12931_v52  ;;  %v16885_v3 = vld [vmem:[#allocation3 + $0x3e4] sm:$0xf]  ;;  %v12987_v52 = vld [vmem:[#allocation3 + $0x4e8] sm:$0xf0] }
 0x249   : > { %7747 = vmatpush.bf16.msra.mxu0 %v12654_v53  ;;  %v7196_v53 = vadd.f32 %v20759_v42, %v7182_v51  ;;  %v20762_v42 = vld [vmem:[#allocation77_spill] sm:$0xff] }
 0x24a   : > { %7733 = vmatpush.bf16.msra.mxu3 %v12590_v25  ;;  %v13011_v25 = vld [vmem:[#allocation3 + $0x518] sm:$0xf0]  ;;  %v16917_v2 = vld [vmem:[#allocation3 + $0x4e4] sm:$0xf] }
 0x24b   : > { %7831 = vmatpush.bf16.msra.mxu2 %v13038_v43  ;;  %v7488_v43 = vadd.f32 %v7487_v55, %v7474_v20  ;;  %v13014_v39 = vor.u32 %v16923_v36, %v13011_v25  ;;  %v7210_v18 = vadd.f32 %v20760_v40, %v7196_v53  ;;  %v16901_v55 = vld [vmem:[#allocation3 + $0x464] sm:$0xf]  ;;  %v13307_v36 = vld [vmem:[#allocation3 + $0x768] sm:$0xf0] }
 0x24c   : > { %7760 = vmatpush.bf16.msra.mxu1 %v12726_v0  ;;  %v12619_v0 = vld [vmem:[#allocation3 + $0x208] sm:$0xf0]  ;;  %v20761_v20 = vld [vmem:[#allocation72_spill] sm:$0xff]  ;;  %v13310_v27 = vor.u32 %v16997_v45, %v13307_v36  ;;  %v20767_v45 = vld [vmem:[#allocation79_spill] sm:$0xff] }
 0x24d   : > { %7748 = vmatpush.bf16.msra.mxu0 %v12646_v62  ;;  %v19728_v57 = vadd.f32 %v7501_v31, %v7488_v43  ;;  %v16887_v62 = vld [vmem:[#allocation3 + $0x3f4] sm:$0xf]  ;;  %v12622_v51 = vor.u32 %v16825_v28, %v12619_v0  ;;  %v7224_v14 = vadd.f32 %v20761_v20, %v7210_v18  ;;  %v16841_v25 = vld [vmem:[#allocation3 + $0x284] sm:$0xf]  ;;  %v12683_v31 = vld [vmem:[#allocation3 + $0x288] sm:$0xf0]  ;;  %v12854_v18 = vor.u32 %v16883_v16, %v12851_v12  ;;  %v19742_v20 = vpop.f32.mrf.mxu1 }
 0x24e   : > { %7734 = vmatpush.bf16.msra.mxu3 %v12582_v61  ;;  %v16921_v61 = vld [vmem:[#allocation3 + $0x504] sm:$0xf]  ;;  %v12686_v28 = vor.u32 %v16841_v25, %v12683_v31  ;;  %v16995_v0 = vld [vmem:[#allocation3 + $0x754] sm:$0xf]  ;;  %v13283_v16 = vld [vmem:[#allocation3 + $0x738] sm:$0xf0] }
 0x24f   : > { %7832 = vmatpush.bf16.msra.mxu2 %v13030_v26  ;;  %v12867_v26 = vld [vmem:[#allocation3 + $0x3f8] sm:$0xf0]  ;;  %v13006_v33 = vor.u32 %v16921_v61, %v13003_v19  ;;  %v7238_v53 = vadd.f32 %v20762_v42, %v7224_v14  ;;  %v16879_v25 = vld [vmem:[#allocation3 + $0x3b4] sm:$0xf]  ;;  %v16913_v12 = vld [vmem:[#allocation3 + $0x4c4] sm:$0xf] }
 0x250   : > { %7761 = vmatpush.bf16.msra.mxu1 %v12718_v1  ;;  %v12691_v1 = vld [vmem:[#allocation3 + $0x298] sm:$0xf0] }
 0x251   : > { %7749 = vmatpush.bf16.msra.mxu0 %v12638_v8  ;;  %v12859_v8 = vld [vmem:[#allocation3 + $0x3e8] sm:$0xf0]  ;;  %v12694_v50 = vor.u32 %v16843_v47, %v12691_v1  ;;  %v13299_v61 = vld [vmem:[#allocation3 + $0x758] sm:$0xf0] }
 0x252   : > { %7735 = vmatpush.bf16.msra.mxu3 %v12574_v37  ;;  %v12870_v37 = vor.u32 %v16887_v62, %v12867_v26  ;;  %v12862_v43 = vor.u32 %v16885_v3, %v12859_v8  ;;  %v20763_v62 = vld [vmem:[#allocation26_spill] sm:$0xff]  ;;  %v20764_v26 = vld [vmem:[#allocation27_spill] sm:$0xff]  ;;  %v13302_v47 = vor.u32 %v16995_v0, %v13299_v61  ;;  %v16993_v3 = vld [vmem:[#allocation3 + $0x744] sm:$0xf] }
 0x253   : > { %7833 = vmatpush.bf16.msra.mxu2 %v13022_v5  ;;  %v13318_v5 = vor.u32 %v16999_v4, %v13315_v59  ;;  %v20765_v4 = vld [vmem:[#allocation29_spill] sm:$0xff]  ;;  %v12899_v42 = vld [vmem:[#allocation3 + $0x438] sm:$0xf0] }
 0x254   : > { %7762 = vmatpush.bf16.msra.mxu1 %v12710_v48  ;;  %v16919_v48 = vld [vmem:[#allocation3 + $0x4f4] sm:$0xf]  ;;  %v16881_v59 = vld [vmem:[#allocation3 + $0x3c4] sm:$0xf]  ;;  %v12843_v1 = vld [vmem:[#allocation3 + $0x3c8] sm:$0xf0] }
 0x255   : > { %7750 = vmatpush.bf16.msra.mxu0 %v12630_v6  ;;  %v16899_v6 = vld [vmem:[#allocation3 + $0x454] sm:$0xf]  ;;  %v12998_v19 = vor.u32 %v16919_v48, %v12995_v34  ;;  %v13291_v8 = vld [vmem:[#allocation3 + $0x748] sm:$0xf0]  ;;  %v12846_v14 = vor.u32 %v16881_v59, %v12843_v1  ;;  %v12835_v48 = vld [vmem:[#allocation3 + $0x3b8] sm:$0xf0] }
 0x256   : > { %7736 = vmatpush.bf16.msra.mxu3 %v12566_v9  ;;  %v12926_v9 = vor.u32 %v16901_v55, %v12923_v54  ;;  %v16915_v55 = vld [vmem:[#allocation3 + $0x4d4] sm:$0xf]  ;;  %v12979_v54 = vld [vmem:[#allocation3 + $0x4d8] sm:$0xf0]  ;;  %v13294_v31 = vor.u32 %v16993_v3, %v13291_v8  ;;  %v12838_v0 = vor.u32 %v16879_v25, %v12835_v48 }
 0x257   : > { %7834 = vmatpush.bf16.msra.mxu2 %v13014_v39  ;;  %v12915_v39 = vld [vmem:[#allocation3 + $0x458] sm:$0xf0]  ;;  %v16895_v34 = vld [vmem:[#allocation3 + $0x434] sm:$0xf] }
 0x258   : > { %7763 = vmatpush.bf16.msra.mxu1 %v12702_v29  ;;  %v20766_v29 = vld [vmem:[#allocation78_spill] sm:$0xff]  ;;  %v12902_v61 = vor.u32 %v16895_v34, %v12899_v42  ;;  %v16909_v34 = vld [vmem:[#allocation3 + $0x4a4] sm:$0xf] }
 0x259   : > { %7751 = vmatpush.bf16.msra.mxu0 %v12622_v51  ;;  %v7252_v40 = vadd.f32 %v20766_v29, %v7238_v53  ;;  %v16897_v51 = vld [vmem:[#allocation3 + $0x444] sm:$0xf]  ;;  %v16911_v1 = vld [vmem:[#allocation3 + $0x4b4] sm:$0xf]  ;;  %v12955_v42 = vld [vmem:[#allocation3 + $0x4a8] sm:$0xf0] }
 0x25a   : > { %7737 = vmatpush.bf16.msra.mxu3 %v12558_v17  ;;  %v12918_v17 = vor.u32 %v16899_v6, %v12915_v39  ;;  %v20768_v53 = vld [vmem:[#allocation28_spill] sm:$0xff]  ;;  %v12971_v6 = vld [vmem:[#allocation3 + $0x4c8] sm:$0xf0]  ;;  %v16987_v25 = vld [vmem:[#allocation3 + $0x714] sm:$0xf] }
 0x25b   : > { %7835 = vmatpush.bf16.msra.mxu2 %v13006_v33  ;;  %v12907_v33 = vld [vmem:[#allocation3 + $0x448] sm:$0xf0]  ;;  %v20769_v39 = vld [vmem:[#allocation80_spill] sm:$0xff]  ;;  %v12974_v59 = vor.u32 %v16913_v12, %v12971_v6 }
 0x25c   : > { %7764 = vmatpush.bf16.msra.mxu1 %v12694_v50  ;;  %7752 = vmatmul.bf16.vlgmr.msra.gmra.mxu0 %v20764_v26  ;;  %v7266_v50 = vadd.f32 %v20767_v45, %v7252_v40  ;;  %v12910_v36 = vor.u32 %v16897_v51, %v12907_v33  ;;  %v12827_v26 = vld [vmem:[#allocation3 + $0x3a8] sm:$0xf0]  ;;  %v12963_v51 = vld [vmem:[#allocation3 + $0x4b8] sm:$0xf0]  ;;  %v16891_v45 = vld [vmem:[#allocation3 + $0x414] sm:$0xf] }
 0x25d   : > { %7800 = vmatpush.bf16.msrb.mxu0 %v12934_v21  ;;  %7738 = vmatmul.bf16.vlgmr.msra.gmra.mxu3 %v20763_v62  ;;  %v19739_v21 = vpop.f32.mrf.mxu0  ;;  %v16889_v12 = vld [vmem:[#allocation3 + $0x404] sm:$0xf] }
 0x25e   : > { %7786 = vmatpush.bf16.msrb.mxu3 %v12870_v37  ;;  %7836 = vmatmul.bf16.vlgmr.msra.gmra.mxu2 %v20765_v4  ;;  %v19737_v37 = vpop.f32.mrf.mxu3 }
 0x25f   : > { %7884 = vmatpush.bf16.msrb.mxu2 %v13318_v5  ;;  %v12990_v5 = vor.u32 %v16917_v2, %v12987_v52  ;;  %v16893_v2 = vld [vmem:[#allocation3 + $0x424] sm:$0xf]  ;;  %v12891_v52 = vld [vmem:[#allocation3 + $0x428] sm:$0xf0] }
 0x260   : > { %7765 = vmatpush.bf16.msra.mxu1 %v12686_v28  ;;  %v7280_v28 = vadd.f32 %v20769_v39, %v7266_v50  ;;  %v12894_v3 = vor.u32 %v16893_v2, %v12891_v52  ;;  %v7543_v8 = vpop.f32.mrf.mxu1  ;;  %v12883_v50 = vld [vmem:[#allocation3 + $0x418] sm:$0xf0]  ;;  %v12958_v2 = vor.u32 %v16909_v34, %v12955_v42  ;;  %v16947_v34 = vld [vmem:[#allocation3 + $0x5d4] sm:$0xf] }
 0x261   : > { %7801 = vmatpush.bf16.msrb.mxu0 %v12926_v9  ;;  %v16991_v9 = vld [vmem:[#allocation3 + $0x734] sm:$0xf]  ;;  %v13187_v52 = vld [vmem:[#allocation3 + $0x678] sm:$0xf0] }
 0x262   : > { %7787 = vmatpush.bf16.msrb.mxu3 %v12862_v43  ;;  %v19745_v43 = vpop.f32.mrf.mxu2  ;;  %v13286_v62 = vor.u32 %v16991_v9, %v13283_v16  ;;  %v7294_v4 = vadd.f32 %v19651_v44, %v7280_v28  ;;  %v12819_v44 = vld [vmem:[#allocation3 + $0x398] sm:$0xf0]  ;;  %v12886_v9 = vor.u32 %v16891_v45, %v12883_v50  ;;  %v16873_v16 = vld [vmem:[#allocation3 + $0x384] sm:$0xf] }
 0x263   : > { %7885 = vmatpush.bf16.msrb.mxu2 %v13310_v27  ;;  %7766 = vmatmul.bf16.vlgmr.msra.gmra.mxu1 %v20768_v53  ;;  %v12982_v27 = vor.u32 %v16915_v55, %v12979_v54  ;;  %v16985_v28 = vld [vmem:[#allocation3 + $0x704] sm:$0xf]  ;;  %v13107_v42 = vld [vmem:[#allocation3 + $0x5d8] sm:$0xf0] }
 0x264   : > { %7814 = vmatpush.bf16.msrb.mxu1 %v12998_v19  ;;  %v16877_v19 = vld [vmem:[#allocation3 + $0x3a4] sm:$0xf] }
 0x265   : > { %7802 = vmatpush.bf16.msrb.mxu0 %v12918_v17  ;;  %v7529_v40 = vpop.f32.mrf.mxu0  ;;  %v13275_v17 = vld [vmem:[#allocation3 + $0x728] sm:$0xf0]  ;;  %v12830_v33 = vor.u32 %v16877_v19, %v12827_v26  ;;  %v16951_v19 = vld [vmem:[#allocation3 + $0x5f4] sm:$0xf] }
 0x266   : > { %7788 = vmatpush.bf16.msrb.mxu3 %v12854_v18  ;;  %v7515_v29 = vpop.f32.mrf.mxu3  ;;  %v16989_v18 = vld [vmem:[#allocation3 + $0x724] sm:$0xf]  ;;  %v16967_v26 = vld [vmem:[#allocation3 + $0x674] sm:$0xf] }
 0x267   : > { %7886 = vmatpush.bf16.msrb.mxu2 %v13302_v47  ;;  %v7516_v47 = vadd.f32 %v7515_v29, %v19728_v57  ;;  %v13278_v54 = vor.u32 %v16989_v18, %v13275_v17  ;;  %v13267_v57 = vld [vmem:[#allocation3 + $0x718] sm:$0xf0]  ;;  %v16907_v17 = vld [vmem:[#allocation3 + $0x494] sm:$0xf] }
 0x268   : > { %7815 = vmatpush.bf16.msrb.mxu1 %v12990_v5  ;;  %v16875_v5 = vld [vmem:[#allocation3 + $0x394] sm:$0xf]  ;;  %v13270_v39 = vor.u32 %v16987_v25, %v13267_v57  ;;  %v13571_v29 = vld [vmem:[#allocation3 + $0x978] sm:$0xf0] }
 0x269   : > { %7803 = vmatpush.bf16.msrb.mxu0 %v12910_v36  ;;  %v7530_v55 = vadd.f32 %v7529_v40, %v7516_v47  ;;  %v12822_v53 = vor.u32 %v16875_v5, %v12819_v44  ;;  %v16965_v5 = vld [vmem:[#allocation3 + $0x664] sm:$0xf]  ;;  %v13563_v44 = vld [vmem:[#allocation3 + $0x968] sm:$0xf0]  ;;  %v13251_v57 = vld [vmem:[#allocation3 + $0x6f8] sm:$0xf0] }
 0x26a   : > { %7789 = vmatpush.bf16.msrb.mxu3 %v12846_v14  ;;  %v7308_v14 = vadd.f32 %v19653_v35, %v7294_v4  ;;  %v7557_v36 = vpop.f32.mrf.mxu2  ;;  %v12875_v35 = vld [vmem:[#allocation3 + $0x408] sm:$0xf0]  ;;  %v17063_v4 = vld [vmem:[#allocation3 + $0x974] sm:$0xf] }
 0x26b   : > { %7887 = vmatpush.bf16.msrb.mxu2 %v13294_v31  ;;  %v12966_v31 = vor.u32 %v16911_v1, %v12963_v51  ;;  %v7544_v48 = vadd.f32 %v7543_v8, %v7530_v55  ;;  %v12878_v18 = vor.u32 %v16889_v12, %v12875_v35  ;;  %v13115_v8 = vld [vmem:[#allocation3 + $0x5e8] sm:$0xf0]  ;;  %v20771_v35 = vld [vmem:[#allocation31_spill] sm:$0xff] }
 0x26c   : > { %7816 = vmatpush.bf16.msrb.mxu1 %v12982_v27  ;;  %v12811_v27 = vld [vmem:[#allocation3 + $0x388] sm:$0xf0] }
 0x26d   : > { %7804 = vmatpush.bf16.msrb.mxu0 %v12902_v61  ;;  %v19751_v6 = vadd.f32 %v7557_v36, %v7544_v48  ;;  %v7322_v61 = vadd.f32 %v19656_v49, %v7308_v14  ;;  %v12814_v40 = vor.u32 %v16873_v16, %v12811_v27  ;;  %v13190_v49 = vor.u32 %v16967_v26, %v13187_v52  ;;  %v13179_v55 = vld [vmem:[#allocation3 + $0x668] sm:$0xf0]  ;;  %v16905_v14 = vld [vmem:[#allocation3 + $0x484] sm:$0xf]  ;;  %v17059_v16 = vld [vmem:[#allocation3 + $0x954] sm:$0xf] }
 0x26e   : > { %7790 = vmatpush.bf16.msrb.mxu3 %v12838_v0  ;;  %v13259_v0 = vld [vmem:[#allocation3 + $0x708] sm:$0xf0]  ;;  %v13555_v27 = vld [vmem:[#allocation3 + $0x958] sm:$0xf0]  ;;  %v16945_v52 = vld [vmem:[#allocation3 + $0x5c4] sm:$0xf] }
 0x26f   : > { %7888 = vmatpush.bf16.msrb.mxu2 %v13286_v62  ;;  %v13123_v62 = vld [vmem:[#allocation3 + $0x5f8] sm:$0xf0]  ;;  %v13262_v47 = vor.u32 %v16985_v28, %v13259_v0  ;;  %v7336_v51 = vadd.f32 %v19659_v24, %v7322_v61  ;;  %v12939_v36 = vld [vmem:[#allocation3 + $0x488] sm:$0xf0]  ;;  %v16983_v24 = vld [vmem:[#allocation3 + $0x6f4] sm:$0xf]  ;;  %v13110_v61 = vor.u32 %v16947_v34, %v13107_v42 }
 0x270   : > { %7817 = vmatpush.bf16.msrb.mxu1 %v12974_v59  ;;  %v12947_v59 = vld [vmem:[#allocation3 + $0x498] sm:$0xf0]  ;;  %v13126_v1 = vor.u32 %v16951_v19, %v13123_v62  ;;  %v12942_v12 = vor.u32 %v16905_v14, %v12939_v36  ;;  %v13254_v28 = vor.u32 %v16983_v24, %v13251_v57  ;;  %v16981_v19 = vld [vmem:[#allocation3 + $0x6e4] sm:$0xf]  ;;  %v13243_v62 = vld [vmem:[#allocation3 + $0x6e8] sm:$0xf0] }
 0x271   : > { %7805 = vmatpush.bf16.msrb.mxu0 %v12894_v3  ;;  %v16949_v3 = vld [vmem:[#allocation3 + $0x5e4] sm:$0xf]  ;;  %v12950_v45 = vor.u32 %v16907_v17, %v12947_v59  ;;  %v7350_v50 = vadd.f32 %v19686_v63, %v7336_v51  ;;  %v13171_v63 = vld [vmem:[#allocation3 + $0x658] sm:$0xf0]  ;;  %v19761_v59 = vpop.f32.mrf.mxu3 }
 0x272   : > { %7791 = vmatpush.bf16.msrb.mxu3 %v12830_v33  ;;  %v13574_v33 = vor.u32 %v17063_v4, %v13571_v29  ;;  %v13118_v25 = vor.u32 %v16949_v3, %v13115_v8  ;;  %v20772_v0 = vld [vmem:[#allocation32_spill] sm:$0xff]  ;;  %v13099_v4 = vld [vmem:[#allocation3 + $0x5c8] sm:$0xf0]  ;;  %v19765_v3 = vpop.f32.mrf.mxu1 }
 0x273   : > { %7889 = vmatpush.bf16.msrb.mxu2 %v13278_v54  ;;  %v17061_v54 = vld [vmem:[#allocation3 + $0x964] sm:$0xf]  ;;  %v13102_v51 = vor.u32 %v16945_v52, %v13099_v4  ;;  %v13539_v14 = vld [vmem:[#allocation3 + $0x938] sm:$0xf0]  ;;  %v16939_v4 = vld [vmem:[#allocation3 + $0x594] sm:$0xf] }
 0x274   : > { %7818 = vmatpush.bf16.msrb.mxu1 %v12966_v31  ;;  %v13182_v31 = vor.u32 %v16965_v5, %v13179_v55  ;;  %v13566_v48 = vor.u32 %v17061_v54, %v13563_v44  ;;  %v16961_v29 = vld [vmem:[#allocation3 + $0x644] sm:$0xf]  ;;  %v16943_v55 = vld [vmem:[#allocation3 + $0x5b4] sm:$0xf]  ;;  %v13091_v54 = vld [vmem:[#allocation3 + $0x5b8] sm:$0xf0] }
 0x275   : > { %7806 = vmatpush.bf16.msrb.mxu0 %v12886_v9  ;;  %v20770_v9 = vld [vmem:[#allocation30_spill] sm:$0xff]  ;;  %v13094_v57 = vor.u32 %v16943_v55, %v13091_v54 }
 0x276   : > { %7792 = vmatpush.bf16.msrb.mxu3 %v12822_v53  ;;  %v16963_v53 = vld [vmem:[#allocation3 + $0x654] sm:$0xf] }
 0x277   : > { %7890 = vmatpush.bf16.msrb.mxu2 %v13270_v39  ;;  %v7364_v39 = vadd.f32 %v19688_v46, %v7350_v50  ;;  %v13174_v26 = vor.u32 %v16963_v53, %v13171_v63  ;;  %v13547_v46 = vld [vmem:[#allocation3 + $0x948] sm:$0xf0]  ;;  %v16959_v44 = vld [vmem:[#allocation3 + $0x634] sm:$0xf] }
 0x278   : > { %7819 = vmatpush.bf16.msrb.mxu1 %v12958_v2  ;;  %v13558_v2 = vor.u32 %v17059_v16, %v13555_v27  ;;  %v17055_v50 = vld [vmem:[#allocation3 + $0x934] sm:$0xf]  ;;  %v13083_v63 = vld [vmem:[#allocation3 + $0x5a8] sm:$0xf0]  ;;  %v16957_v16 = vld [vmem:[#allocation3 + $0x624] sm:$0xf] }
 0x279   : > { %7807 = vmatpush.bf16.msrb.mxu0 %v12878_v18  ;;  %v17057_v18 = vld [vmem:[#allocation3 + $0x944] sm:$0xf]  ;;  %v7378_v17 = vadd.f32 %v19691_v60, %v7364_v39  ;;  %v13542_v53 = vor.u32 %v17055_v50, %v13539_v14  ;;  %v13147_v27 = vld [vmem:[#allocation3 + $0x628] sm:$0xf0] }
 0x27a   : > { %7793 = vmatpush.bf16.msrb.mxu3 %v12814_v40  ;;  %v13163_v40 = vld [vmem:[#allocation3 + $0x648] sm:$0xf0]  ;;  %v13550_v5 = vor.u32 %v17057_v18, %v13547_v46  ;;  %v13139_v46 = vld [vmem:[#allocation3 + $0x618] sm:$0xf0] }
 0x27b   : > { %7891 = vmatpush.bf16.msrb.mxu2 %v13262_v47  ;;  %v19763_v47 = vpop.f32.mrf.mxu0  ;;  %v13166_v8 = vor.u32 %v16961_v29, %v13163_v40  ;;  %v20773_v60 = vld [vmem:[#allocation33_spill] sm:$0xff]  ;;  %v7392_v36 = vadd.f32 %v19694_v23, %v7378_v17  ;;  %v13075_v29 = vld [vmem:[#allocation3 + $0x598] sm:$0xf0]  ;;  %v16955_v40 = vld [vmem:[#allocation3 + $0x614] sm:$0xf] }
 0x27c   : > { %7820 = vmatpush.bf16.msrb.mxu1 %v12950_v45  ;;  %7808 = vmatmul.bf16.vlgmr.msrb.gmra.mxu0 %v20771_v35  ;;  %v13155_v45 = vld [vmem:[#allocation3 + $0x638] sm:$0xf0]  ;;  %v13531_v23 = vld [vmem:[#allocation3 + $0x928] sm:$0xf0]  ;;  %v17051_v17 = vld [vmem:[#allocation3 + $0x914] sm:$0xf]  ;;  %v13142_v54 = vor.u32 %v16955_v40, %v13139_v46 }
 0x27d   : > { %7856 = vmatpush.bf16.msra.mxu0 %v13190_v49  ;;  %7794 = vmatmul.bf16.vlgmr.msrb.gmra.mxu3 %v20770_v9  ;;  %v16979_v49 = vld [vmem:[#allocation3 + $0x6d4] sm:$0xf]  ;;  %v7406_v34 = vadd.f32 %v19714_v10, %v7392_v36  ;;  %v13158_v42 = vor.u32 %v16959_v44, %v13155_v45  ;;  %v16941_v9 = vld [vmem:[#allocation3 + $0x5a4] sm:$0xf]  ;;  %v13219_v10 = vld [vmem:[#allocation3 + $0x6b8] sm:$0xf0] }
 0x27e   : > { %7842 = vmatpush.bf16.msra.mxu3 %v13126_v1  ;;  %7892 = vmatmul.bf16.vlgmr.msrb.gmra.mxu2 %v20772_v0  ;;  %v13246_v1 = vor.u32 %v16981_v19, %v13243_v62  ;;  %v16975_v19 = vld [vmem:[#allocation3 + $0x6b4] sm:$0xf]  ;;  %v16953_v45 = vld [vmem:[#allocation3 + $0x604] sm:$0xf]  ;;  %v13131_v50 = vld [vmem:[#allocation3 + $0x608] sm:$0xf0] }
 0x27f   : > { %7940 = vmatpush.bf16.msra.mxu2 %v13574_v33  ;;  %v13235_v33 = vld [vmem:[#allocation3 + $0x6d8] sm:$0xf0]  ;;  %v7420_v62 = vadd.f32 %v19716_v32, %v7406_v34  ;;  %v16973_v32 = vld [vmem:[#allocation3 + $0x6a4] sm:$0xf]  ;;  %v17047_v46 = vld [vmem:[#allocation3 + $0x8f4] sm:$0xf] }
 0x280   : > { %7821 = vmatpush.bf16.msrb.mxu1 %v12942_v12  ;;  %v13238_v24 = vor.u32 %v16979_v49, %v13235_v33  ;;  %v17053_v12 = vld [vmem:[#allocation3 + $0x924] sm:$0xf]  ;;  %v7571_v39 = vpop.f32.mrf.mxu3  ;;  %v7599_v52 = vpop.f32.mrf.mxu1  ;;  %v13078_v33 = vor.u32 %v16939_v4, %v13075_v29  ;;  %v13443_v34 = vld [vmem:[#allocation3 + $0x878] sm:$0xf0]  ;;  %v13195_v4 = vld [vmem:[#allocation3 + $0x688] sm:$0xf0] }
 0x281   : > { %7857 = vmatpush.bf16.msra.mxu0 %v13182_v31  ;;  %v16977_v31 = vld [vmem:[#allocation3 + $0x6c4] sm:$0xf]  ;;  %v7572_v0 = vadd.f32 %v7571_v39, %v19751_v6  ;;  %v13222_v6 = vor.u32 %v16975_v19, %v13219_v10  ;;  %v7434_v55 = vadd.f32 %v19718_v15, %v7420_v62  ;;  %v17127_v15 = vld [vmem:[#allocation3 + $0xb74] sm:$0xf]  ;;  %v13371_v19 = vld [vmem:[#allocation3 + $0x7e8] sm:$0xf0] }
 0x282   : > { %7843 = vmatpush.bf16.msra.mxu3 %v13118_v25  ;;  %v19769_v25 = vpop.f32.mrf.mxu2  ;;  %v17049_v36 = vld [vmem:[#allocation3 + $0x904] sm:$0xf]  ;;  %v13435_v62 = vld [vmem:[#allocation3 + $0x868] sm:$0xf0] }
 0x283   : > { %7941 = vmatpush.bf16.msra.mxu2 %v13566_v48  ;;  %7822 = vmatmul.bf16.vlgmr.msrb.gmra.mxu1 %v20773_v60  ;;  %v13227_v48 = vld [vmem:[#allocation3 + $0x6c8] sm:$0xf0]  ;;  %v7585_v35 = vpop.f32.mrf.mxu0  ;;  %v17029_v10 = vld [vmem:[#allocation3 + $0x864] sm:$0xf] }
 0x284   : > { %7870 = vmatpush.bf16.msra.mxu1 %v13254_v28  ;;  %v13230_v28 = vor.u32 %v16977_v31, %v13227_v48  ;;  %v7586_v18 = vadd.f32 %v7585_v35, %v7572_v0  ;;  %v13067_v60 = vld [vmem:[#allocation3 + $0x588] sm:$0xf0]  ;;  %v13379_v31 = vld [vmem:[#allocation3 + $0x7f8] sm:$0xf0]  ;;  %v17031_v48 = vld [vmem:[#allocation3 + $0x874] sm:$0xf]  ;;  %v13438_v40 = vor.u32 %v17029_v10, %v13435_v62 }
 0x285   : > { %7858 = vmatpush.bf16.msra.mxu0 %v13174_v26  ;;  %v13150_v26 = vor.u32 %v16957_v16, %v13147_v27  ;;  %v13134_v16 = vor.u32 %v16953_v45, %v13131_v50  ;;  %v13446_v35 = vor.u32 %v17031_v48, %v13443_v34  ;;  %v17009_v45 = vld [vmem:[#allocation3 + $0x7c4] sm:$0xf]  ;;  %v13419_v34 = vld [vmem:[#allocation3 + $0x848] sm:$0xf0]  ;;  %v13411_v10 = vld [vmem:[#allocation3 + $0x838] sm:$0xf0] }
 0x286   : > { %7844 = vmatpush.bf16.msra.mxu3 %v13110_v61  ;;  %v13086_v61 = vor.u32 %v16941_v9, %v13083_v63  ;;  %v7600_v49 = vadd.f32 %v7599_v52, %v7586_v18  ;;  %v13827_v9 = vld [vmem:[#allocation3 + $0xb78] sm:$0xf0]  ;;  %v7448_v63 = vadd.f32 %v19722_v11, %v7434_v55  ;;  %v16969_v52 = vld [vmem:[#allocation3 + $0x684] sm:$0xf]  ;;  %v17011_v18 = vld [vmem:[#allocation3 + $0x7d4] sm:$0xf] }
 0x287   : > { %7942 = vmatpush.bf16.msra.mxu2 %v13558_v2  ;;  %v13534_v2 = vor.u32 %v17053_v12, %v13531_v23  ;;  %v16971_v12 = vld [vmem:[#allocation3 + $0x694] sm:$0xf]  ;;  %v13203_v23 = vld [vmem:[#allocation3 + $0x698] sm:$0xf0]  ;;  %v17045_v50 = vld [vmem:[#allocation3 + $0x8e4] sm:$0xf] }
 0x288   : > { %7871 = vmatpush.bf16.msra.mxu1 %v13246_v1  ;;  %v13523_v1 = vld [vmem:[#allocation3 + $0x918] sm:$0xf0]  ;;  %v7462_v0 = vadd.f32 %v19737_v37, %v7448_v63  ;;  %v13206_v11 = vor.u32 %v16971_v12, %v13203_v23  ;;  %v17025_v48 = vld [vmem:[#allocation3 + $0x844] sm:$0xf]  ;;  %v17007_v12 = vld [vmem:[#allocation3 + $0x7b4] sm:$0xf] }
 0x289   : > { %7859 = vmatpush.bf16.msra.mxu0 %v13166_v8  ;;  %v16937_v8 = vld [vmem:[#allocation3 + $0x584] sm:$0xf]  ;;  %v13526_v44 = vor.u32 %v17051_v17, %v13523_v1  ;;  %v13507_v37 = vld [vmem:[#allocation3 + $0x8f8] sm:$0xf0]  ;;  %v20774_v1 = vld [vmem:[#allocation34_spill] sm:$0xff] }
 0x28a   : > { %7845 = vmatpush.bf16.msra.mxu3 %v13102_v51  ;;  %v7613_v51 = vpop.f32.mrf.mxu2  ;;  %v7476_v17 = vadd.f32 %v19739_v21, %v7462_v0  ;;  %v20775_v55 = vld [vmem:[#allocation35_spill] sm:$0xff] }
 0x28b   : > { %7943 = vmatpush.bf16.msra.mxu2 %v13550_v5  ;;  %v13211_v5 = vld [vmem:[#allocation3 + $0x6a8] sm:$0xf0]  ;;  %v19775_v14 = vadd.f32 %v7613_v51, %v7600_v49  ;;  %v17027_v49 = vld [vmem:[#allocation3 + $0x854] sm:$0xf] }
 0x28c   : > { %7872 = vmatpush.bf16.msra.mxu1 %v13238_v24  ;;  %v13515_v24 = vld [vmem:[#allocation3 + $0x908] sm:$0xf0]  ;;  %v17043_v23 = vld [vmem:[#allocation3 + $0x8d4] sm:$0xf] }
 0x28d   : > { %7860 = vmatpush.bf16.msra.mxu0 %v13158_v42  ;;  %v13214_v42 = vor.u32 %v16973_v32, %v13211_v5  ;;  %v13518_v27 = vor.u32 %v17049_v36, %v13515_v24  ;;  %v13811_v32 = vld [vmem:[#allocation3 + $0xb58] sm:$0xf0]  ;;  %v13198_v5 = vor.u32 %v16969_v52, %v13195_v4  ;;  %v13499_v36 = vld [vmem:[#allocation3 + $0x8e8] sm:$0xf0]  ;;  %v7490_v24 = vadd.f32 %v19742_v20, %v7476_v17  ;;  %v17021_v17 = vld [vmem:[#allocation3 + $0x824] sm:$0xf] }
 0x28e   : > { %7846 = vmatpush.bf16.msra.mxu3 %v13094_v57  ;;  %v17015_v57 = vld [vmem:[#allocation3 + $0x7f4] sm:$0xf]  ;;  %v13502_v63 = vor.u32 %v17045_v50, %v13499_v36  ;;  %v13422_v20 = vor.u32 %v17025_v48, %v13419_v34  ;;  %v13331_v36 = vld [vmem:[#allocation3 + $0x798] sm:$0xf0] }
 0x28f   : > { %7944 = vmatpush.bf16.msra.mxu2 %v13542_v53  ;;  %v13070_v53 = vor.u32 %v16937_v8, %v13067_v60  ;;  %v13382_v39 = vor.u32 %v17015_v57, %v13379_v31  ;;  %v17123_v8 = vld [vmem:[#allocation3 + $0xb54] sm:$0xf]  ;;  %v13355_v31 = vld [vmem:[#allocation3 + $0x7c8] sm:$0xf0]  ;;  %v13779_v48 = vld [vmem:[#allocation3 + $0xb18] sm:$0xf0] }
 0x290   : > { %7873 = vmatpush.bf16.msra.mxu1 %v13230_v28  ;;  %v17013_v28 = vld [vmem:[#allocation3 + $0x7e4] sm:$0xf]  ;;  %v13814_v57 = vor.u32 %v17123_v8, %v13811_v32 }
 0x291   : > { %7861 = vmatpush.bf16.msra.mxu0 %v13150_v26  ;;  %v17125_v26 = vld [vmem:[#allocation3 + $0xb64] sm:$0xf]  ;;  %v13374_v29 = vor.u32 %v17013_v28, %v13371_v19  ;;  %v17023_v19 = vld [vmem:[#allocation3 + $0x834] sm:$0xf] }
 0x292   : > { %7847 = vmatpush.bf16.msra.mxu3 %v13086_v61  ;;  %v13830_v61 = vor.u32 %v17127_v15, %v13827_v9  ;;  %v17121_v15 = vld [vmem:[#allocation3 + $0xb44] sm:$0xf]  ;;  %v13803_v9 = vld [vmem:[#allocation3 + $0xb48] sm:$0xf0]  ;;  %v19792_v62 = vpop.f32.mrf.mxu2 }
 0x293   : > { %7945 = vmatpush.bf16.msra.mxu2 %v13534_v2  ;;  %v13819_v2 = vld [vmem:[#allocation3 + $0xb68] sm:$0xf0]  ;;  %v13806_v0 = vor.u32 %v17121_v15, %v13803_v9  ;;  %v17001_v9 = vld [vmem:[#allocation3 + $0x784] sm:$0xf] }
 0x294   : > { %7874 = vmatpush.bf16.msra.mxu1 %v13222_v6  ;;  %v13822_v51 = vor.u32 %v17125_v26, %v13819_v2  ;;  %v13363_v6 = vld [vmem:[#allocation3 + $0x7d8] sm:$0xf0]  ;;  %v20777_v28 = vld [vmem:[#allocation37_spill] sm:$0xff]  ;;  %v17119_v26 = vld [vmem:[#allocation3 + $0xb34] sm:$0xf] }
 0x295   : > { %7862 = vmatpush.bf16.msra.mxu0 %v13142_v54  ;;  %v13510_v54 = vor.u32 %v17047_v46, %v13507_v37  ;;  %v13366_v60 = vor.u32 %v17011_v18, %v13363_v6  ;;  %v13795_v2 = vld [vmem:[#allocation3 + $0xb38] sm:$0xf0]  ;;  %v13483_v18 = vld [vmem:[#allocation3 + $0x8c8] sm:$0xf0] }
 0x296   : > { %7848 = vmatpush.bf16.msra.mxu3 %v13078_v33  ;;  %v13427_v33 = vld [vmem:[#allocation3 + $0x858] sm:$0xf0]  ;;  %v13798_v46 = vor.u32 %v17119_v26, %v13795_v2  ;;  %v13339_v37 = vld [vmem:[#allocation3 + $0x7a8] sm:$0xf0]  ;;  %v17095_v26 = vld [vmem:[#allocation3 + $0xa74] sm:$0xf] }
 0x297   : > { %7946 = vmatpush.bf16.msra.mxu2 %v13526_v44  ;;  %v20776_v44 = vld [vmem:[#allocation36_spill] sm:$0xff]  ;;  %v13430_v21 = vor.u32 %v17027_v49, %v13427_v33  ;;  %v13787_v33 = vld [vmem:[#allocation3 + $0xb28] sm:$0xf0] }
 0x298   : > { %7875 = vmatpush.bf16.msra.mxu1 %v13214_v42  ;;  %v19784_v42 = vpop.f32.mrf.mxu3  ;;  %v17117_v49 = vld [vmem:[#allocation3 + $0xb24] sm:$0xf] }
 0x299   : > { %7863 = vmatpush.bf16.msra.mxu0 %v13134_v16  ;;  %v19788_v16 = vpop.f32.mrf.mxu1  ;;  %v13790_v50 = vor.u32 %v17117_v49, %v13787_v33  ;;  %v17077_v49 = vld [vmem:[#allocation3 + $0x9e4] sm:$0xf] }
 0x29a   : > { %7849 = vmatpush.bf16.msra.mxu3 %v13070_v53  ;;  %v19786_v53 = vpop.f32.mrf.mxu0  ;;  %v17093_v33 = vld [vmem:[#allocation3 + $0xa64] sm:$0xf] }
 0x29b   : > { %7947 = vmatpush.bf16.msra.mxu2 %v13518_v27  ;;  %v13358_v27 = vor.u32 %v17009_v45, %v13355_v31  ;;  %v7669_v31 = vpop.f32.mrf.mxu2 }
 0x29c   : > { %7876 = vmatpush.bf16.msra.mxu1 %v13206_v11  ;;  %7864 = vmatmul.bf16.vlgmr.msra.gmra.mxu0 %v20775_v55 }
 0x29d   : > { %7912 = vmatpush.bf16.msrb.mxu0 %v13446_v35  ;;  %7850 = vmatmul.bf16.vlgmr.msra.gmra.mxu3 %v20774_v1  ;;  %v7504_v35 = vadd.f32 %v19745_v43, %v7490_v24  ;;  %v17005_v43 = vld [vmem:[#allocation3 + $0x7a4] sm:$0xf]  ;;  %v13403_v1 = vld [vmem:[#allocation3 + $0x828] sm:$0xf0]  ;;  %v17019_v24 = vld [vmem:[#allocation3 + $0x814] sm:$0xf] }
 0x29e   : > { %7898 = vmatpush.bf16.msrb.mxu3 %v13382_v39  ;;  %7948 = vmatmul.bf16.vlgmr.msra.gmra.mxu2 %v20776_v44  ;;  %v13491_v39 = vld [vmem:[#allocation3 + $0x8d8] sm:$0xf0]  ;;  %v13406_v55 = vor.u32 %v17021_v17, %v13403_v1  ;;  %v17003_v44 = vld [vmem:[#allocation3 + $0x794] sm:$0xf] }
 0x29f   : > { %7996 = vmatpush.bf16.msrb.mxu2 %v13830_v61  ;;  %v13347_v61 = vld [vmem:[#allocation3 + $0x7b8] sm:$0xf0]  ;;  %v7518_v11 = vadd.f32 %v19761_v59, %v7504_v35  ;;  %v13494_v52 = vor.u32 %v17043_v23, %v13491_v39  ;;  %v17037_v23 = vld [vmem:[#allocation3 + $0x8a4] sm:$0xf]  ;;  %v13467_v39 = vld [vmem:[#allocation3 + $0x8a8] sm:$0xf0] }
 0x2a0   : > { %7877 = vmatpush.bf16.msra.mxu1 %v13198_v5  ;;  %v13350_v4 = vor.u32 %v17007_v12, %v13347_v61  ;;  %v13342_v5 = vor.u32 %v17005_v43, %v13339_v37  ;;  %v17017_v12 = vld [vmem:[#allocation3 + $0x804] sm:$0xf] }
 0x2a1   : > { %7913 = vmatpush.bf16.msrb.mxu0 %v13438_v40  ;;  %v17041_v40 = vld [vmem:[#allocation3 + $0x8c4] sm:$0xf]  ;;  %v7532_v59 = vadd.f32 %v19763_v47, %v7518_v11  ;;  %v17115_v47 = vld [vmem:[#allocation3 + $0xb14] sm:$0xf]  ;;  %v13699_v11 = vld [vmem:[#allocation3 + $0xa78] sm:$0xf0] }
 0x2a2   : > { %7899 = vmatpush.bf16.msrb.mxu3 %v13374_v29  ;;  %v13414_v29 = vor.u32 %v17023_v19, %v13411_v10  ;;  %v7641_v6 = vpop.f32.mrf.mxu0  ;;  %v13486_v32 = vor.u32 %v17041_v40, %v13483_v18  ;;  %v17113_v61 = vld [vmem:[#allocation3 + $0xb04] sm:$0xf]  ;;  %v13771_v19 = vld [vmem:[#allocation3 + $0xb08] sm:$0xf0]  ;;  %v13635_v10 = vld [vmem:[#allocation3 + $0x9f8] sm:$0xf0] }
 0x2a3   : > { %7997 = vmatpush.bf16.msrb.mxu2 %v13822_v51  ;;  %7878 = vmatmul.bf16.vlgmr.msra.gmra.mxu1 %v20777_v28  ;;  %v7627_v51 = vpop.f32.mrf.mxu3  ;;  %v13782_v28 = vor.u32 %v17115_v47, %v13779_v48  ;;  %v17035_v18 = vld [vmem:[#allocation3 + $0x894] sm:$0xf]  ;;  %v13774_v17 = vor.u32 %v17113_v61, %v13771_v19  ;;  %v13683_v47 = vld [vmem:[#allocation3 + $0xa58] sm:$0xf0]  ;;  %v13611_v61 = vld [vmem:[#allocation3 + $0x9c8] sm:$0xf0] }
 0x2a4   : > { %7926 = vmatpush.bf16.msrb.mxu1 %v13510_v54  ;;  %v7628_v8 = vadd.f32 %v7627_v51, %v19775_v14  ;;  %v7655_v54 = vpop.f32.mrf.mxu1  ;;  %v7546_v14 = vadd.f32 %v19765_v3, %v7532_v59  ;;  %v17079_v3 = vld [vmem:[#allocation3 + $0x9f4] sm:$0xf]  ;;  %v13702_v51 = vor.u32 %v17095_v26, %v13699_v11  ;;  %v13691_v59 = vld [vmem:[#allocation3 + $0xa68] sm:$0xf0]  ;;  %v17089_v19 = vld [vmem:[#allocation3 + $0xa44] sm:$0xf] }
 0x2a5   : > { %7914 = vmatpush.bf16.msrb.mxu0 %v13430_v21  ;;  %v13475_v21 = vld [vmem:[#allocation3 + $0x8b8] sm:$0xf0]  ;;  %v13638_v1 = vor.u32 %v17079_v3, %v13635_v10  ;;  %v17187_v48 = vld [vmem:[#allocation3 + $0xd54] sm:$0xf]  ;;  %v13675_v3 = vld [vmem:[#allocation3 + $0xa48] sm:$0xf0] }
 0x2a6   : > { %7900 = vmatpush.bf16.msrb.mxu3 %v13366_v60  ;;  %v17039_v60 = vld [vmem:[#allocation3 + $0x8b4] sm:$0xf]  ;;  %v7642_v45 = vadd.f32 %v7641_v6, %v7628_v8  ;;  %v7560_v2 = vadd.f32 %v19769_v25, %v7546_v14  ;;  %v13627_v25 = vld [vmem:[#allocation3 + $0x9e8] sm:$0xf0]  ;;  %v17189_v8 = vld [vmem:[#allocation3 + $0xd64] sm:$0xf] }
 0x2a7   : > { %7998 = vmatpush.bf16.msrb.mxu2 %v13814_v57  ;;  %v13395_v57 = vld [vmem:[#allocation3 + $0x818] sm:$0xf0]  ;;  %v13478_v15 = vor.u32 %v17039_v60, %v13475_v21  ;;  %v17111_v60 = vld [vmem:[#allocation3 + $0xaf4] sm:$0xf]  ;;  %v17185_v10 = vld [vmem:[#allocation3 + $0xd44] sm:$0xf] }
 0x2a8   : > { %7927 = vmatpush.bf16.msrb.mxu1 %v13502_v63  ;;  %v7656_v34 = vadd.f32 %v7655_v54, %v7642_v45  ;;  %v13323_v63 = vld [vmem:[#allocation3 + $0x788] sm:$0xf0]  ;;  %v7574_v37 = vadd.f32 %v19784_v42, %v7560_v2  ;;  %v13630_v42 = vor.u32 %v17077_v49, %v13627_v25  ;;  %v13763_v21 = vld [vmem:[#allocation3 + $0xaf8] sm:$0xf0]  ;;  %v13694_v45 = vor.u32 %v17093_v33, %v13691_v59  ;;  %v17183_v49 = vld [vmem:[#allocation3 + $0xd34] sm:$0xf]  ;;  %v7671_v33 = vpop.f32.mrf.mxu2 }
 0x2a9   : > { %7915 = vmatpush.bf16.msrb.mxu0 %v13422_v20  ;;  %v13398_v20 = vor.u32 %v17019_v24, %v13395_v57  ;;  %v13326_v43 = vor.u32 %v17001_v9, %v13323_v63  ;;  %v13451_v54 = vld [vmem:[#allocation3 + $0x888] sm:$0xf0]  ;;  %v13619_v24 = vld [vmem:[#allocation3 + $0x9d8] sm:$0xf0]  ;;  %v17091_v57 = vld [vmem:[#allocation3 + $0xa54] sm:$0xf] }
 0x2aa   : > { %7901 = vmatpush.bf16.msrb.mxu3 %v13358_v27  ;;  %v13334_v27 = vor.u32 %v17003_v44, %v13331_v36  ;;  %v19798_v35 = vadd.f32 %v7669_v31, %v7656_v34  ;;  %v7588_v44 = vadd.f32 %v19786_v53, %v7574_v37  ;;  %v17075_v36 = vld [vmem:[#allocation3 + $0x9d4] sm:$0xf]  ;;  %v14067_v14 = vld [vmem:[#allocation3 + $0xd58] sm:$0xf0]  ;;  %v14059_v26 = vld [vmem:[#allocation3 + $0xd48] sm:$0xf0] }
 0x2ab   : > { %7999 = vmatpush.bf16.msrb.mxu2 %v13806_v0  ;;  %v13387_v0 = vld [vmem:[#allocation3 + $0x808] sm:$0xf0]  ;;  %v20779_v53 = vld [vmem:[#allocation39_spill] sm:$0xff]  ;;  %v20780_v9 = vld [vmem:[#allocation40_spill] sm:$0xff]  ;;  %v7629_v2 = vpop.f32.mrf.mxu3 }
 0x2ac   : > { %7928 = vmatpush.bf16.msrb.mxu1 %v13494_v52  ;;  %v17191_v52 = vld [vmem:[#allocation3 + $0xd74] sm:$0xf]  ;;  %v13390_v40 = vor.u32 %v17017_v12, %v13387_v0  ;;  %v7602_v63 = vadd.f32 %v19788_v16, %v7588_v44  ;;  %v13755_v12 = vld [vmem:[#allocation3 + $0xae8] sm:$0xf0]  ;;  %v17073_v0 = vld [vmem:[#allocation3 + $0x9c4] sm:$0xf] }
 0x2ad   : > { %7916 = vmatpush.bf16.msrb.mxu0 %v13414_v29  ;;  %v13470_v29 = vor.u32 %v17037_v23, %v13467_v39  ;;  %v20778_v31 = vld [vmem:[#allocation38_spill] sm:$0xff]  ;;  %v7643_v23 = vpop.f32.mrf.mxu0  ;;  %v13686_v39 = vor.u32 %v17091_v57, %v13683_v47  ;;  %v13603_v37 = vld [vmem:[#allocation3 + $0x9b8] sm:$0xf0]  ;;  %v19809_v59 = vld [vmem:[#allocation5] sm:$0x3] }
 0x2ae   : > { %7902 = vmatpush.bf16.msrb.mxu3 %v13350_v4  ;;  %v14083_v4 = vld [vmem:[#allocation3 + $0xd78] sm:$0xf0]  ;;  %v7616_v16 = vadd.f32 %v19792_v62, %v7602_v63  ;;  %v14043_v57 = vld [vmem:[#allocation3 + $0xd28] sm:$0xf0] }
 0x2af   : > { %8000 = vmatpush.bf16.msrb.mxu2 %v13798_v46  ;;  %v13459_v46 = vld [vmem:[#allocation3 + $0x898] sm:$0xf0]  ;;  %v14086_v6 = vor.u32 %v17191_v52, %v14083_v4  ;;  %v13614_v52 = vor.u32 %v17073_v0, %v13611_v61  ;;  %v17107_v4 = vld [vmem:[#allocation3 + $0xad4] sm:$0xf] }
 0x2b0   : > { %7929 = vmatpush.bf16.msrb.mxu1 %v13486_v32  ;;  %v14075_v32 = vld [vmem:[#allocation3 + $0xd68] sm:$0xf0]  ;;  %v14051_v25 = vld [vmem:[#allocation3 + $0xd38] sm:$0xf0]  ;;  %v17179_v0 = vld [vmem:[#allocation3 + $0xd14] sm:$0xf] }
 0x2b1   : > { %7917 = vmatpush.bf16.msrb.mxu0 %v13406_v55  ;;  %v17033_v55 = vld [vmem:[#allocation3 + $0x884] sm:$0xf]  ;;  %v14054_v44 = vor.u32 %v17183_v49, %v14051_v25  ;;  %v14035_v61 = vld [vmem:[#allocation3 + $0xd18] sm:$0xf0] }
 0x2b2   : > { %7903 = vmatpush.bf16.msrb.mxu3 %v13342_v5  ;;  %v13462_v5 = vor.u32 %v17035_v18, %v13459_v46  ;;  %v13454_v34 = vor.u32 %v17033_v55, %v13451_v54  ;;  %v14062_v18 = vor.u32 %v17185_v10, %v14059_v26  ;;  %v17071_v46 = vld [vmem:[#allocation3 + $0x9b4] sm:$0xf]  ;;  %v13739_v55 = vld [vmem:[#allocation3 + $0xac8] sm:$0xf0]  ;;  %v17065_v26 = vld [vmem:[#allocation3 + $0x984] sm:$0xf] }
 0x2b3   : > { %8001 = vmatpush.bf16.msrb.mxu2 %v13790_v50  ;;  %v14078_v50 = vor.u32 %v17189_v8, %v14075_v32  ;;  %v20692_v8 = vperm.slane %v19809_v59, 1  ;;  %v13606_v32 = vor.u32 %v17071_v46, %v13603_v37  ;;  %v17177_v46 = vld [vmem:[#allocation3 + $0xd04] sm:$0xf]  ;;  %v14027_v37 = vld [vmem:[#allocation3 + $0xd08] sm:$0xf0] }
 0x2b4   : > { %7930 = vmatpush.bf16.msrb.mxu1 %v13478_v15  ;;  %v13766_v15 = vor.u32 %v17111_v60, %v13763_v21  ;;  %v13595_v60 = vld [vmem:[#allocation3 + $0x9a8] sm:$0xf0]  ;;  %v17085_v21 = vld [vmem:[#allocation3 + $0xa24] sm:$0xf]  ;;  %v13955_v49 = vld [vmem:[#allocation3 + $0xc78] sm:$0xf0] }
 0x2b5   : > { %7918 = vmatpush.bf16.msrb.mxu0 %v13398_v20  ;;  %v17109_v20 = vld [vmem:[#allocation3 + $0xae4] sm:$0xf] }
 0x2b6   : > { %7904 = vmatpush.bf16.msrb.mxu3 %v13334_v27  ;;  %v13622_v27 = vor.u32 %v17075_v36, %v13619_v24  ;;  %v13758_v11 = vor.u32 %v17109_v20, %v13755_v12  ;;  %v13659_v36 = vld [vmem:[#allocation3 + $0xa28] sm:$0xf0]  ;;  %v17181_v24 = vld [vmem:[#allocation3 + $0xd24] sm:$0xf]  ;;  %v13587_v20 = vld [vmem:[#allocation3 + $0x998] sm:$0xf0] }
 0x2b7   : > { %8002 = vmatpush.bf16.msrb.mxu2 %v13782_v28  ;;  %v14070_v28 = vor.u32 %v17187_v48, %v14067_v14  ;;  %v14046_v63 = vor.u32 %v17181_v24, %v14043_v57  ;;  %v17083_v12 = vld [vmem:[#allocation3 + $0xa14] sm:$0xf]  ;;  %v13883_v57 = vld [vmem:[#allocation3 + $0xbe8] sm:$0xf0] }
 0x2b8   : > { %7931 = vmatpush.bf16.msrb.mxu1 %v13470_v29  ;;  %v13747_v29 = vld [vmem:[#allocation3 + $0xad8] sm:$0xf0] }
 0x2b9   : > { %7919 = vmatpush.bf16.msrb.mxu0 %v13390_v40  ;;  %v13678_v40 = vor.u32 %v17089_v19, %v13675_v3  ;;  %v13750_v62 = vor.u32 %v17107_v4, %v13747_v29  ;;  %v14038_v4 = vor.u32 %v17179_v0, %v14035_v61  ;;  %v13579_v29 = vld [vmem:[#allocation3 + $0x988] sm:$0xf0]  ;;  %v13875_v0 = vld [vmem:[#allocation3 + $0xbd8] sm:$0xf0]  ;;  %v17155_v61 = vld [vmem:[#allocation3 + $0xc54] sm:$0xf] }
 0x2ba   : > { %7905 = vmatpush.bf16.msrb.mxu3 %v13326_v43  ;;  %v7657_v43 = vpop.f32.mrf.mxu1 }
 0x2bb   : > { %8003 = vmatpush.bf16.msrb.mxu2 %v13774_v17  ;;  %v17087_v17 = vld [vmem:[#allocation3 + $0xa34] sm:$0xf] }
 0x2bc   : > { %7932 = vmatpush.bf16.msrb.mxu1 %v13462_v5  ;;  %7920 = vmatmul.bf16.vlgmr.msrb.gmra.mxu0 %v20779_v53  ;;  %v17105_v5 = vld [vmem:[#allocation3 + $0xac4] sm:$0xf]  ;;  %v17103_v53 = vld [vmem:[#allocation3 + $0xab4] sm:$0xf] }
 0x2bd   : > { %7968 = vmatpush.bf16.msra.mxu0 %v13702_v51  ;;  %7906 = vmatmul.bf16.vlgmr.msrb.gmra.mxu3 %v20778_v31  ;;  %v20781_v51 = vld [vmem:[#allocation41_spill] sm:$0xff]  ;;  %v13742_v48 = vor.u32 %v17105_v5, %v13739_v55  ;;  %v17255_v5 = vld [vmem:[#allocation3 + $0xf74] sm:$0xf]  ;;  %v14339_v55 = vld [vmem:[#allocation3 + $0xf78] sm:$0xf0] }
 0x2be   : > { %7954 = vmatpush.bf16.msra.mxu3 %v13638_v1  ;;  %8004 = vmatmul.bf16.vlgmr.msrb.gmra.mxu2 %v20780_v9  ;;  %v7630_v1 = vadd.f32 %v7629_v2, %v7616_v16  ;;  %v13662_v9 = vor.u32 %v17085_v21, %v13659_v36  ;;  %v17101_v2 = vld [vmem:[#allocation3 + $0xaa4] sm:$0xf]  ;;  %v14342_v24 = vor.u32 %v17255_v5, %v14339_v55  ;;  %v17171_v5 = vld [vmem:[#allocation3 + $0xcd4] sm:$0xf]  ;;  %v14003_v55 = vld [vmem:[#allocation3 + $0xcd8] sm:$0xf0] }
 0x2bf   : > { %8052 = vmatpush.bf16.msra.mxu2 %v14086_v6  ;;  %v13667_v6 = vld [vmem:[#allocation3 + $0xa38] sm:$0xf0]  ;;  %v17141_v36 = vld [vmem:[#allocation3 + $0xbe4] sm:$0xf] }
 0x2c0   : > { %7933 = vmatpush.bf16.msrb.mxu1 %v13454_v34  ;;  %v13670_v54 = vor.u32 %v17087_v17, %v13667_v6  ;;  %v7683_v47 = vpop.f32.mrf.mxu3  ;;  %v17143_v17 = vld [vmem:[#allocation3 + $0xbf4] sm:$0xf] }
 0x2c1   : > { %7969 = vmatpush.bf16.msra.mxu0 %v13694_v45  ;;  %v7697_v45 = vpop.f32.mrf.mxu0  ;;  %v19815_v14 = vadd.f32 %v7683_v47, %v19798_v35  ;;  %v7725_v35 = vpop.f32.mrf.mxu2  ;;  %v17159_v6 = vld [vmem:[#allocation3 + $0xc74] sm:$0xf]  ;;  %v13947_v47 = vld [vmem:[#allocation3 + $0xc68] sm:$0xf0] }
 0x2c2   : > { %7955 = vmatpush.bf16.msra.mxu3 %v13630_v42  ;;  %v17069_v42 = vld [vmem:[#allocation3 + $0x9a4] sm:$0xf]  ;;  %v7698_v31 = vadd.f32 %v7697_v45, %v20692_v8  ;;  %v15483_v8 = vld [vmem:[#allocation3 + $0x1868] sm:$0xf0] }
 0x2c3   : > { %8053 = vmatpush.bf16.msra.mxu2 %v14078_v50  ;;  %7934 = vmatmul.bf16.vlgmr.msrb.gmra.mxu1 %v20781_v51  ;;  %v7644_v50 = vadd.f32 %v7643_v23, %v7630_v1  ;;  %v13598_v34 = vor.u32 %v17069_v42, %v13595_v60  ;;  %v7711_v23 = vpop.f32.mrf.mxu1  ;;  %v13891_v51 = vld [vmem:[#allocation3 + $0xbf8] sm:$0xf0]  ;;  %v17099_v42 = vld [vmem:[#allocation3 + $0xa94] sm:$0xf]  ;;  %v8528_v60 = vmax.f32 %v19815_v14, 0.0  ;;  %v13886_v14 = vor.u32 %v17141_v36, %v13883_v57 }
 0x2c4   : > { %7982 = vmatpush.bf16.msra.mxu1 %v13766_v15  ;;  %v13731_v15 = vld [vmem:[#allocation3 + $0xab8] sm:$0xf0]  ;;  %v7712_v19 = vadd.f32 %v7711_v23, %v7698_v31  ;;  %v13894_v45 = vor.u32 %v17143_v17, %v13891_v51  ;;  %v17157_v31 = vld [vmem:[#allocation3 + $0xc64] sm:$0xf]  ;;  %v13931_v17 = vld [vmem:[#allocation3 + $0xc48] sm:$0xf0]  ;;  %v14006_v36 = vor.u32 %v17171_v5, %v14003_v55 }
 0x2c5   : > { %7970 = vmatpush.bf16.msra.mxu0 %v13686_v39  ;;  %v7658_v39 = vadd.f32 %v7657_v43, %v7644_v50  ;;  %v13734_v3 = vor.u32 %v17103_v53, %v13731_v15  ;;  %v17081_v43 = vld [vmem:[#allocation3 + $0xa04] sm:$0xf]  ;;  %v13958_v50 = vor.u32 %v17159_v6, %v13955_v49  ;;  %v14331_v53 = vld [vmem:[#allocation3 + $0xf68] sm:$0xf0]  ;;  %v14019_v23 = vld [vmem:[#allocation3 + $0xcf8] sm:$0xf0] }
 0x2c6   : > { %7956 = vmatpush.bf16.msra.mxu3 %v13622_v27  ;;  %v17067_v27 = vld [vmem:[#allocation3 + $0x994] sm:$0xf]  ;;  %v19817_v16 = vadd.f32 %v7725_v35, %v7712_v19  ;;  %v13939_v19 = vld [vmem:[#allocation3 + $0xc58] sm:$0xf0]  ;;  %v14315_v51 = vld [vmem:[#allocation3 + $0xf48] sm:$0xf0] }
 0x2c7   : > { %8054 = vmatpush.bf16.msra.mxu2 %v14070_v28  ;;  %v13651_v28 = vld [vmem:[#allocation3 + $0xa18] sm:$0xf0]  ;;  %v13590_v10 = vor.u32 %v17067_v27, %v13587_v20  ;;  %v13950_v27 = vor.u32 %v17157_v31, %v13947_v47  ;;  %v17139_v20 = vld [vmem:[#allocation3 + $0xbd4] sm:$0xf]  ;;  %v17133_v47 = vld [vmem:[#allocation3 + $0xba4] sm:$0xf] }
 0x2c8   : > { %7983 = vmatpush.bf16.msra.mxu1 %v13758_v11  ;;  %v13723_v11 = vld [vmem:[#allocation3 + $0xaa8] sm:$0xf0]  ;;  %v7685_v1 = vpop.f32.mrf.mxu3  ;;  %v14323_v35 = vld [vmem:[#allocation3 + $0xf58] sm:$0xf0] }
 0x2c9   : > { %7971 = vmatpush.bf16.msra.mxu0 %v13678_v40  ;;  %v13643_v40 = vld [vmem:[#allocation3 + $0xa08] sm:$0xf0]  ;;  %v13726_v25 = vor.u32 %v17101_v2, %v13723_v11  ;;  %v20784_v11 = vld [vmem:[#allocation44_spill] sm:$0xff]  ;;  %v19825_v49 = vpop.f32.mrf.mxu0 }
 0x2ca   : > { %7957 = vmatpush.bf16.msra.mxu3 %v13614_v52  ;;  %v13654_v52 = vor.u32 %v17083_v12, %v13651_v28  ;;  %v17175_v12 = vld [vmem:[#allocation3 + $0xcf4] sm:$0xf]  ;;  %v14283_v5 = vld [vmem:[#allocation3 + $0xf08] sm:$0xf0] }
 0x2cb   : > { %8055 = vmatpush.bf16.msra.mxu2 %v14062_v18  ;;  %v7672_v18 = vadd.f32 %v7671_v33, %v7658_v39  ;;  %v13715_v33 = vld [vmem:[#allocation3 + $0xa98] sm:$0xf0]  ;;  %v20782_v39 = vld [vmem:[#allocation42_spill] sm:$0xff]  ;;  %v14022_v2 = vor.u32 %v17175_v12, %v14019_v23 }
 0x2cc   : > { %7984 = vmatpush.bf16.msra.mxu1 %v13750_v62  ;;  %v13718_v15 = vor.u32 %v17099_v42, %v13715_v33  ;;  %v13859_v42 = vld [vmem:[#allocation3 + $0xbb8] sm:$0xf0]  ;;  %v17151_v33 = vld [vmem:[#allocation3 + $0xc34] sm:$0xf] }
 0x2cd   : > { %7972 = vmatpush.bf16.msra.mxu0 %v13670_v54  ;;  %v7686_v62 = vadd.f32 %v7685_v1, %v7672_v18  ;;  %v13646_v54 = vor.u32 %v17081_v43, %v13643_v40  ;;  %v17173_v43 = vld [vmem:[#allocation3 + $0xce4] sm:$0xf]  ;;  %v14011_v40 = vld [vmem:[#allocation3 + $0xce8] sm:$0xf0] }
 0x2ce   : > { %7958 = vmatpush.bf16.msra.mxu3 %v13606_v32  ;;  %v13582_v32 = vor.u32 %v17065_v26, %v13579_v29  ;;  %v20783_v26 = vld [vmem:[#allocation43_spill] sm:$0xff]  ;;  %v17137_v29 = vld [vmem:[#allocation3 + $0xbc4] sm:$0xf]  ;;  %v14014_v6 = vor.u32 %v17173_v43, %v14011_v40 }
 0x2cf   : > { %8056 = vmatpush.bf16.msra.mxu2 %v14054_v44  ;;  %v14030_v44 = vor.u32 %v17177_v46, %v14027_v37  ;;  %v8530_v21 = vmax.f32 %v7686_v62, 0.0  ;;  %v13867_v46 = vld [vmem:[#allocation3 + $0xbc8] sm:$0xf0]  ;;  %v17153_v37 = vld [vmem:[#allocation3 + $0xc44] sm:$0xf] }
 0x2d0   : > { %7985 = vmatpush.bf16.msra.mxu1 %v13742_v48  ;;  %v17249_v1 = vld [vmem:[#allocation3 + $0xf44] sm:$0xf]  ;;  %v13934_v62 = vor.u32 %v17153_v37, %v13931_v17 }
 0x2d1   : > { %7973 = vmatpush.bf16.msra.mxu0 %v13662_v9  ;;  %v19820_v48 = vpack.c.bf16 %v8530_v21, %v8528_v60  ;;  %v17097_v9 = vld [vmem:[#allocation3 + $0xa84] sm:$0xf]  ;;  %v13923_v60 = vld [vmem:[#allocation3 + $0xc38] sm:$0xf0]  ;;  %v19828_v21 = vpop.f32.mrf.mxu1 }
 0x2d2   : > { %7959 = vmatpush.bf16.msra.mxu3 %v13598_v34  ;;  %v17253_v34 = vld [vmem:[#allocation3 + $0xf64] sm:$0xf]  ;;  %v13926_v31 = vor.u32 %v17151_v33, %v13923_v60  ;;  %v14211_v60 = vld [vmem:[#allocation3 + $0xe78] sm:$0xf0] }
 0x2d3   : > { %8057 = vmatpush.bf16.msra.mxu2 %v14046_v63  ;;  %v13707_v63 = vld [vmem:[#allocation3 + $0xa88] sm:$0xf0]  ;;  %v14334_v28 = vor.u32 %v17253_v34, %v14331_v53  ;;  %v17169_v34 = vld [vmem:[#allocation3 + $0xcc4] sm:$0xf] }
 0x2d4   : > { %7986 = vmatpush.bf16.msra.mxu1 %v13734_v3  ;;  %v17251_v3 = vld [vmem:[#allocation3 + $0xf54] sm:$0xf]  ;;  %v13995_v53 = vld [vmem:[#allocation3 + $0xcc8] sm:$0xf0]  ;;  %v17129_v40 = vld [vmem:[#allocation3 + $0xb84] sm:$0xf] }
 0x2d5   : > { %7974 = vmatpush.bf16.msra.mxu0 %v13654_v52  ;;  %v13878_v52 = vor.u32 %v17139_v20, %v13875_v0  ;;  %v14326_v18 = vor.u32 %v17251_v3, %v14323_v35  ;;  %v14299_v20 = vld [vmem:[#allocation3 + $0xf28] sm:$0xf0]  ;;  %v13998_v12 = vor.u32 %v17169_v34, %v13995_v53  ;;  %v17131_v0 = vld [vmem:[#allocation3 + $0xb94] sm:$0xf]  ;;  %v13971_v34 = vld [vmem:[#allocation3 + $0xc98] sm:$0xf0] }
 0x2d6   : > { %7960 = vmatpush.bf16.msra.mxu3 %v13590_v10  ;;  %v13710_v10 = vor.u32 %v17097_v9, %v13707_v63  ;;  %v13851_v9 = vld [vmem:[#allocation3 + $0xba8] sm:$0xf0]  ;;  %v17149_v63 = vld [vmem:[#allocation3 + $0xc24] sm:$0xf] }
 0x2d7   : > { %8058 = vmatpush.bf16.msra.mxu2 %v14038_v4  ;;  %v13942_v4 = vor.u32 %v17155_v61, %v13939_v19  ;;  %v17167_v61 = vld [vmem:[#allocation3 + $0xcb4] sm:$0xf]  ;;  %v13987_v19 = vld [vmem:[#allocation3 + $0xcb8] sm:$0xf0] }
 0x2d8   : > { %7987 = vmatpush.bf16.msra.mxu1 %v13726_v25  ;;  %v13870_v25 = vor.u32 %v17137_v29, %v13867_v46  ;;  %v13990_v43 = vor.u32 %v17167_v61, %v13987_v19  ;;  %v13963_v61 = vld [vmem:[#allocation3 + $0xc88] sm:$0xf0] }
 0x2d9   : > { %7975 = vmatpush.bf16.msra.mxu0 %v13646_v54  ;;  %v20785_v54 = vld [vmem:[#allocation45_spill] sm:$0xff] }
 0x2da   : > { %7961 = vmatpush.bf16.msra.mxu3 %v13582_v32  ;;  %v17135_v32 = vld [vmem:[#allocation3 + $0xbb4] sm:$0xf] }
 0x2db   : > { %8059 = vmatpush.bf16.msra.mxu2 %v14030_v44  ;;  %v14318_v44 = vor.u32 %v17249_v1, %v14315_v51  ;;  %v13862_v57 = vor.u32 %v17135_v32, %v13859_v42  ;;  %v17145_v1 = vld [vmem:[#allocation3 + $0xc04] sm:$0xf]  ;;  %v13979_v51 = vld [vmem:[#allocation3 + $0xca8] sm:$0xf0]  ;;  %v17223_v42 = vld [vmem:[#allocation3 + $0xe74] sm:$0xf] }
 0x2dc   : > { %7988 = vmatpush.bf16.msra.mxu1 %v13718_v15  ;;  %7976 = vmatmul.bf16.vlgmr.msra.gmra.mxu0 %v20783_v26  ;;  %v17147_v26 = vld [vmem:[#allocation3 + $0xc14] sm:$0xf]  ;;  %v17241_v32 = vld [vmem:[#allocation3 + $0xf04] sm:$0xf] }
 0x2dd   : > { %8024 = vmatpush.bf16.msrb.mxu0 %v13958_v50  ;;  %7962 = vmatmul.bf16.vlgmr.msra.gmra.mxu3 %v20782_v39  ;;  %v14307_v50 = vld [vmem:[#allocation3 + $0xf38] sm:$0xf0]  ;;  %v13854_v39 = vor.u32 %v17133_v47, %v13851_v9  ;;  %v17163_v47 = vld [vmem:[#allocation3 + $0xc94] sm:$0xf]  ;;  %v14286_v53 = vor.u32 %v17241_v32, %v14283_v5  ;;  %v14214_v9 = vor.u32 %v17223_v42, %v14211_v60  ;;  %v17201_v32 = vld [vmem:[#allocation3 + $0xdc4] sm:$0xf] }
 0x2de   : > { %8010 = vmatpush.bf16.msrb.mxu3 %v13894_v45  ;;  %8060 = vmatmul.bf16.vlgmr.msra.gmra.mxu2 %v20784_v11  ;;  %v17247_v45 = vld [vmem:[#allocation3 + $0xf34] sm:$0xf]  ;;  %v7753_v11 = vpop.f32.mrf.mxu0  ;;  %v14123_v5 = vld [vmem:[#allocation3 + $0xdc8] sm:$0xf0] }
 0x2df   : > { %8108 = vmatpush.bf16.msrb.mxu2 %v14342_v24  ;;  %v19830_v24 = vpop.f32.mrf.mxu2  ;;  %v14310_v15 = vor.u32 %v17247_v45, %v14307_v50  ;;  %v17319_v45 = vld [vmem:[#allocation3 + $0x1174] sm:$0xf]  ;;  %v14595_v50 = vld [vmem:[#allocation3 + $0x1178] sm:$0xf0]  ;;  %v14571_v42 = vld [vmem:[#allocation3 + $0x1148] sm:$0xf0] }
 0x2e0   : > { %7989 = vmatpush.bf16.msra.mxu1 %v13710_v10  ;;  %v7739_v23 = vpop.f32.mrf.mxu3  ;;  %v13843_v10 = vld [vmem:[#allocation3 + $0xb98] sm:$0xf0]  ;;  %v7767_v46 = vpop.f32.mrf.mxu1 }
 0x2e1   : > { %8025 = vmatpush.bf16.msrb.mxu0 %v13950_v27  ;;  %v17245_v27 = vld [vmem:[#allocation3 + $0xf24] sm:$0xf]  ;;  %v7740_v3 = vadd.f32 %v7739_v23, %v19817_v16  ;;  %v13846_v37 = vor.u32 %v17131_v0, %v13843_v10 }
 0x2e2   : > { %8011 = vmatpush.bf16.msrb.mxu3 %v13886_v14  ;;  %v13915_v14 = vld [vmem:[#allocation3 + $0xc28] sm:$0xf0]  ;;  %v14302_v35 = vor.u32 %v17245_v27, %v14299_v20  ;;  %v17165_v16 = vld [vmem:[#allocation3 + $0xca4] sm:$0xf] }
 0x2e3   : > { %8109 = vmatpush.bf16.msrb.mxu2 %v14334_v28  ;;  %7990 = vmatmul.bf16.vlgmr.msra.gmra.mxu1 %v20785_v54  ;;  %v13918_v28 = vor.u32 %v17149_v63, %v13915_v14  ;;  %v7754_v29 = vadd.f32 %v7753_v11, %v7740_v3  ;;  %v17207_v54 = vld [vmem:[#allocation3 + $0xdf4] sm:$0xf]  ;;  %v14598_v63 = vor.u32 %v17319_v45, %v14595_v50  ;;  %v17205_v14 = vld [vmem:[#allocation3 + $0xde4] sm:$0xf]  ;;  %v14139_v27 = vld [vmem:[#allocation3 + $0xde8] sm:$0xf0] }
 0x2e4   : > { %8038 = vmatpush.bf16.msrb.mxu1 %v14022_v2  ;;  %v13907_v2 = vld [vmem:[#allocation3 + $0xc18] sm:$0xf0]  ;;  %v17221_v20 = vld [vmem:[#allocation3 + $0xe64] sm:$0xf]  ;;  %v14142_v19 = vor.u32 %v17205_v14, %v14139_v27  ;;  %v17239_v3 = vld [vmem:[#allocation3 + $0xef4] sm:$0xf]  ;;  %v14126_v50 = vor.u32 %v17201_v32, %v14123_v5 }
 0x2e5   : > { %8026 = vmatpush.bf16.msrb.mxu0 %v13942_v4  ;;  %v14291_v4 = vld [vmem:[#allocation3 + $0xf18] sm:$0xf0]  ;;  %v13910_v17 = vor.u32 %v17147_v26, %v13907_v2  ;;  %v17317_v23 = vld [vmem:[#allocation3 + $0x1164] sm:$0xf]  ;;  %v17203_v2 = vld [vmem:[#allocation3 + $0xdd4] sm:$0xf] }
 0x2e6   : > { %8012 = vmatpush.bf16.msrb.mxu3 %v13878_v52  ;;  %v17243_v52 = vld [vmem:[#allocation3 + $0xf14] sm:$0xf]  ;;  %v17161_v0 = vld [vmem:[#allocation3 + $0xc84] sm:$0xf]  ;;  %v14131_v11 = vld [vmem:[#allocation3 + $0xdd8] sm:$0xf0]  ;;  %v19840_v60 = vpop.f32.mrf.mxu0 }
 0x2e7   : > { %8110 = vmatpush.bf16.msrb.mxu2 %v14326_v18  ;;  %v13835_v18 = vld [vmem:[#allocation3 + $0xb88] sm:$0xf0]  ;;  %v7781_v55 = vpop.f32.mrf.mxu2  ;;  %v14179_v14 = vld [vmem:[#allocation3 + $0xe38] sm:$0xf0]  ;;  %v17311_v27 = vld [vmem:[#allocation3 + $0x1134] sm:$0xf] }
 0x2e8   : > { %8039 = vmatpush.bf16.msrb.mxu1 %v14014_v6  ;;  %v7768_v6 = vadd.f32 %v7767_v46, %v7754_v29  ;;  %v14195_v29 = vld [vmem:[#allocation3 + $0xe58] sm:$0xf0]  ;;  %v17307_v32 = vld [vmem:[#allocation3 + $0x1114] sm:$0xf] }
 0x2e9   : > { %8027 = vmatpush.bf16.msrb.mxu0 %v13934_v62  ;;  %v13899_v62 = vld [vmem:[#allocation3 + $0xc08] sm:$0xf0]  ;;  %v20787_v46 = vld [vmem:[#allocation47_spill] sm:$0xff] }
 0x2ea   : > { %8013 = vmatpush.bf16.msrb.mxu3 %v13870_v25  ;;  %v14294_v25 = vor.u32 %v17243_v52, %v14291_v4  ;;  %v19833_v33 = vadd.f32 %v7781_v55, %v7768_v6  ;;  %v17219_v52 = vld [vmem:[#allocation3 + $0xe54] sm:$0xf]  ;;  %v17217_v55 = vld [vmem:[#allocation3 + $0xe44] sm:$0xf]  ;;  %v14547_v5 = vld [vmem:[#allocation3 + $0x1118] sm:$0xf0] }
 0x2eb   : > { %8111 = vmatpush.bf16.msrb.mxu2 %v14318_v44  ;;  %v14147_v44 = vld [vmem:[#allocation3 + $0xdf8] sm:$0xf0]  ;;  %v20786_v4 = vld [vmem:[#allocation46_spill] sm:$0xff]  ;;  %v14198_v6 = vor.u32 %v17219_v52, %v14195_v29 }
 0x2ec   : > { %8040 = vmatpush.bf16.msrb.mxu1 %v14006_v36  ;;  %v13982_v36 = vor.u32 %v17165_v16, %v13979_v51  ;;  %v17237_v16 = vld [vmem:[#allocation3 + $0xee4] sm:$0xf]  ;;  %v14267_v51 = vld [vmem:[#allocation3 + $0xee8] sm:$0xf0] }
 0x2ed   : > { %8028 = vmatpush.bf16.msrb.mxu0 %v13926_v31  ;;  %v13902_v31 = vor.u32 %v17145_v1, %v13899_v62  ;;  %v14134_v1 = vor.u32 %v17203_v2, %v14131_v11  ;;  %v19838_v62 = vpop.f32.mrf.mxu3  ;;  %v14270_v45 = vor.u32 %v17237_v16, %v14267_v51  ;;  %v17309_v2 = vld [vmem:[#allocation3 + $0x1124] sm:$0xf]  ;;  %v14555_v11 = vld [vmem:[#allocation3 + $0x1128] sm:$0xf0]  ;;  %v14099_v16 = vld [vmem:[#allocation3 + $0xd98] sm:$0xf0] }
 0x2ee   : > { %8014 = vmatpush.bf16.msrb.mxu3 %v13862_v57  ;;  %v13838_v57 = vor.u32 %v17129_v40, %v13835_v18  ;;  %v14579_v40 = vld [vmem:[#allocation3 + $0x1158] sm:$0xf0]  ;;  %v13966_v18 = vor.u32 %v17161_v0, %v13963_v61  ;;  %v14251_v0 = vld [vmem:[#allocation3 + $0xec8] sm:$0xf0]  ;;  %v17211_v51 = vld [vmem:[#allocation3 + $0xe14] sm:$0xf] }
 0x2ef   : > { %8112 = vmatpush.bf16.msrb.mxu2 %v14310_v15  ;;  %v14150_v15 = vor.u32 %v17207_v54, %v14147_v44  ;;  %v14187_v54 = vld [vmem:[#allocation3 + $0xe48] sm:$0xf0]  ;;  %v17313_v44 = vld [vmem:[#allocation3 + $0x1144] sm:$0xf] }
 0x2f0   : > { %8041 = vmatpush.bf16.msrb.mxu1 %v13998_v12  ;;  %v14203_v12 = vld [vmem:[#allocation3 + $0xe68] sm:$0xf0] }
 0x2f1   : > { %8029 = vmatpush.bf16.msrb.mxu0 %v13918_v28  ;;  %v13974_v28 = vor.u32 %v17163_v47, %v13971_v34  ;;  %v14206_v10 = vor.u32 %v17221_v20, %v14203_v12  ;;  %v14574_v47 = vor.u32 %v17313_v44, %v14571_v42  ;;  %v19842_v34 = vpop.f32.mrf.mxu1  ;;  %v14563_v20 = vld [vmem:[#allocation3 + $0x1138] sm:$0xf0]  ;;  %v19845_v12 = vpop.f32.mrf.mxu2  ;;  %v17193_v42 = vld [vmem:[#allocation3 + $0xd84] sm:$0xf] }
 0x2f2   : > { %8015 = vmatpush.bf16.msrb.mxu3 %v13854_v39  ;;  %v14587_v39 = vld [vmem:[#allocation3 + $0x1168] sm:$0xf0] }
 0x2f3   : > { %8113 = vmatpush.bf16.msrb.mxu2 %v14302_v35  ;;  %v14275_v35 = vld [vmem:[#allocation3 + $0xef8] sm:$0xf0]  ;;  %v14590_v26 = vor.u32 %v17317_v23, %v14587_v39 }
 0x2f4   : > { %8042 = vmatpush.bf16.msrb.mxu1 %v13990_v43  ;;  %v17315_v43 = vld [vmem:[#allocation3 + $0x1154] sm:$0xf] }
 0x2f5   : > { %8030 = vmatpush.bf16.msrb.mxu0 %v13910_v17  ;;  %v20788_v17 = vld [vmem:[#allocation48_spill] sm:$0xff] }
 0x2f6   : > { %8016 = vmatpush.bf16.msrb.mxu3 %v13846_v37  ;;  %v14278_v37 = vor.u32 %v17239_v3, %v14275_v35  ;;  %v17197_v3 = vld [vmem:[#allocation3 + $0xda4] sm:$0xf]  ;;  %v14107_v35 = vld [vmem:[#allocation3 + $0xda8] sm:$0xf0] }
 0x2f7   : > { %8114 = vmatpush.bf16.msrb.mxu2 %v14294_v25  ;;  %v14582_v25 = vor.u32 %v17315_v43, %v14579_v40  ;;  %v14110_v43 = vor.u32 %v17197_v3, %v14107_v35  ;;  %v17231_v40 = vld [vmem:[#allocation3 + $0xeb4] sm:$0xf] }
 0x2f8   : > { %8043 = vmatpush.bf16.msrb.mxu1 %v13982_v36  ;;  %v17235_v36 = vld [vmem:[#allocation3 + $0xed4] sm:$0xf] }
 0x2f9   : > { %8031 = vmatpush.bf16.msrb.mxu0 %v13902_v31  ;;  %v14190_v31 = vor.u32 %v17217_v55, %v14187_v54 }
 0x2fa   : > { %8017 = vmatpush.bf16.msrb.mxu3 %v13838_v57  ;;  %v14259_v57 = vld [vmem:[#allocation3 + $0xed8] sm:$0xf0] }
 0x2fb   : > { %8115 = vmatpush.bf16.msrb.mxu2 %v14286_v53  ;;  %v17199_v53 = vld [vmem:[#allocation3 + $0xdb4] sm:$0xf]  ;;  %v14262_v23 = vor.u32 %v17235_v36, %v14259_v57  ;;  %v7837_v36 = vpop.f32.mrf.mxu2 }
 0x2fc   : > { %8044 = vmatpush.bf16.msrb.mxu1 %v13974_v28  ;;  %8032 = vmatmul.bf16.vlgmr.msrb.gmra.mxu0 %v20787_v46  ;;  %v17233_v28 = vld [vmem:[#allocation3 + $0xec4] sm:$0xf]  ;;  %v7809_v46 = vpop.f32.mrf.mxu0 }
 0x2fd   : > { %8080 = vmatpush.bf16.msra.mxu0 %v14214_v9  ;;  %8018 = vmatmul.bf16.vlgmr.msrb.gmra.mxu3 %v20786_v4  ;;  %v17215_v9 = vld [vmem:[#allocation3 + $0xe34] sm:$0xf]  ;;  %v14254_v4 = vor.u32 %v17233_v28, %v14251_v0 }
 0x2fe   : > { %8066 = vmatpush.bf16.msra.mxu3 %v14150_v15  ;;  %8116 = vmatmul.bf16.vlgmr.msrb.gmra.mxu2 %v20788_v17  ;;  %v14115_v15 = vld [vmem:[#allocation3 + $0xdb8] sm:$0xf0]  ;;  %v14182_v61 = vor.u32 %v17215_v9, %v14179_v14  ;;  %v14558_v17 = vor.u32 %v17309_v2, %v14555_v11  ;;  %v14539_v14 = vld [vmem:[#allocation3 + $0x1108] sm:$0xf0] }
 0x2ff   : > { %8164 = vmatpush.bf16.msra.mxu2 %v14598_v63  ;;  %v20789_v63 = vld [vmem:[#allocation49_spill] sm:$0xff]  ;;  %v14118_v39 = vor.u32 %v17199_v53, %v14115_v15 }
 0x300   : > { %8045 = vmatpush.bf16.msrb.mxu1 %v13966_v18  ;;  %v7795_v52 = vpop.f32.mrf.mxu3  ;;  %v14243_v18 = vld [vmem:[#allocation3 + $0xeb8] sm:$0xf0]  ;;  %v7823_v55 = vpop.f32.mrf.mxu1  ;;  %v17209_v53 = vld [vmem:[#allocation3 + $0xe04] sm:$0xf]  ;;  %v14155_v15 = vld [vmem:[#allocation3 + $0xe08] sm:$0xf0] }
 0x301   : > { %8081 = vmatpush.bf16.msra.mxu0 %v14206_v10  ;;  %v17213_v10 = vld [vmem:[#allocation3 + $0xe24] sm:$0xf]  ;;  %v7796_v29 = vadd.f32 %v7795_v52, %v19833_v33  ;;  %v14246_v54 = vor.u32 %v17231_v40, %v14243_v18  ;;  %v14158_v3 = vor.u32 %v17209_v53, %v14155_v15  ;;  %v14459_v40 = vld [vmem:[#allocation3 + $0x1068] sm:$0xf0] }
 0x302   : > { %8067 = vmatpush.bf16.msra.mxu3 %v14142_v19  ;;  %v14566_v19 = vor.u32 %v17311_v27, %v14563_v20  ;;  %v17271_v27 = vld [vmem:[#allocation3 + $0xff4] sm:$0xf]  ;;  %v14403_v20 = vld [vmem:[#allocation3 + $0xff8] sm:$0xf0]  ;;  %v17269_v52 = vld [vmem:[#allocation3 + $0xfe4] sm:$0xf] }
 0x303   : > { %8165 = vmatpush.bf16.msra.mxu2 %v14590_v26  ;;  %8046 = vmatmul.bf16.vlgmr.msrb.gmra.mxu1 %v20789_v63  ;;  %v14171_v26 = vld [vmem:[#allocation3 + $0xe28] sm:$0xf0]  ;;  %v17305_v63 = vld [vmem:[#allocation3 + $0x1104] sm:$0xf]  ;;  %v14406_v2 = vor.u32 %v17271_v27, %v14403_v20 }
 0x304   : > { %8094 = vmatpush.bf16.msra.mxu1 %v14278_v37  ;;  %v14174_v37 = vor.u32 %v17213_v10, %v14171_v26  ;;  %v14542_v35 = vor.u32 %v17305_v63, %v14539_v14  ;;  %v17227_v10 = vld [vmem:[#allocation3 + $0xe94] sm:$0xf]  ;;  %v14227_v26 = vld [vmem:[#allocation3 + $0xe98] sm:$0xf0]  ;;  %v17381_v18 = vld [vmem:[#allocation3 + $0x1364] sm:$0xf] }
 0x305   : > { %8082 = vmatpush.bf16.msra.mxu0 %v14198_v6  ;;  %v7810_v6 = vadd.f32 %v7809_v46, %v7796_v29  ;;  %v14395_v29 = vld [vmem:[#allocation3 + $0xfe8] sm:$0xf0]  ;;  %v17265_v15 = vld [vmem:[#allocation3 + $0xfc4] sm:$0xf] }
 0x306   : > { %8068 = vmatpush.bf16.msra.mxu3 %v14134_v1  ;;  %v17195_v1 = vld [vmem:[#allocation3 + $0xd94] sm:$0xf]  ;;  %v14843_v46 = vld [vmem:[#allocation3 + $0x1368] sm:$0xf0]  ;;  %v17301_v63 = vld [vmem:[#allocation3 + $0x10e4] sm:$0xf] }
 0x307   : > { %8166 = vmatpush.bf16.msra.mxu2 %v14582_v25  ;;  %v14163_v25 = vld [vmem:[#allocation3 + $0xe18] sm:$0xf0]  ;;  %v7824_v33 = vadd.f32 %v7823_v55, %v7810_v6  ;;  %v14102_v44 = vor.u32 %v17195_v1, %v14099_v16  ;;  %v14219_v1 = vld [vmem:[#allocation3 + $0xe88] sm:$0xf0]  ;;  %v14398_v16 = vor.u32 %v17269_v52, %v14395_v29  ;;  %v17267_v6 = vld [vmem:[#allocation3 + $0xfd4] sm:$0xf]  ;;  %v14846_v55 = vor.u32 %v17381_v18, %v14843_v46  ;;  %v19860_v46 = vpop.f32.mrf.mxu2 }
 0x308   : > { %8095 = vmatpush.bf16.msra.mxu1 %v14270_v45  ;;  %v17229_v45 = vld [vmem:[#allocation3 + $0xea4] sm:$0xf]  ;;  %v14166_v57 = vor.u32 %v17211_v51, %v14163_v25  ;;  %v17303_v25 = vld [vmem:[#allocation3 + $0x10f4] sm:$0xf]  ;;  %v14523_v14 = vld [vmem:[#allocation3 + $0x10e8] sm:$0xf0] }
 0x309   : > { %8083 = vmatpush.bf16.msra.mxu0 %v14190_v31  ;;  %v14550_v31 = vor.u32 %v17307_v32, %v14547_v5  ;;  %v19848_v9 = vadd.f32 %v7837_v36, %v7824_v33  ;;  %v14531_v32 = vld [vmem:[#allocation3 + $0x10f8] sm:$0xf0]  ;;  %v20790_v5 = vld [vmem:[#allocation50_spill] sm:$0xff] }
 0x30a   : > { %8069 = vmatpush.bf16.msra.mxu3 %v14126_v50  ;;  %v14235_v50 = vld [vmem:[#allocation3 + $0xea8] sm:$0xf0]  ;;  %v17283_v33 = vld [vmem:[#allocation3 + $0x1054] sm:$0xf]  ;;  %v14515_v52 = vld [vmem:[#allocation3 + $0x10d8] sm:$0xf0] }
 0x30b   : > { %8167 = vmatpush.bf16.msra.mxu2 %v14574_v47  ;;  %v14091_v47 = vld [vmem:[#allocation3 + $0xd88] sm:$0xf0]  ;;  %v14238_v28 = vor.u32 %v17229_v45, %v14235_v50  ;;  %v14835_v45 = vld [vmem:[#allocation3 + $0x1358] sm:$0xf0] }
 0x30c   : > { %8096 = vmatpush.bf16.msra.mxu1 %v14262_v23  ;;  %v17287_v23 = vld [vmem:[#allocation3 + $0x1074] sm:$0xf]  ;;  %v14094_v0 = vor.u32 %v17193_v42, %v14091_v47  ;;  %v14379_v20 = vld [vmem:[#allocation3 + $0xfc8] sm:$0xf0]  ;;  %v14435_v18 = vld [vmem:[#allocation3 + $0x1038] sm:$0xf0] }
 0x30d   : > { %8084 = vmatpush.bf16.msra.mxu0 %v14182_v61  ;;  %v17383_v61 = vld [vmem:[#allocation3 + $0x1374] sm:$0xf] }
 0x30e   : > { %8070 = vmatpush.bf16.msra.mxu3 %v14118_v39  ;;  %v14467_v39 = vld [vmem:[#allocation3 + $0x1078] sm:$0xf0]  ;;  %v17379_v42 = vld [vmem:[#allocation3 + $0x1354] sm:$0xf] }
 0x30f   : > { %8168 = vmatpush.bf16.msra.mxu2 %v14566_v19  ;;  %v14851_v19 = vld [vmem:[#allocation3 + $0x1378] sm:$0xf0]  ;;  %v14470_v11 = vor.u32 %v17287_v23, %v14467_v39  ;;  %v14838_v27 = vor.u32 %v17379_v42, %v14835_v45  ;;  %v17281_v23 = vld [vmem:[#allocation3 + $0x1044] sm:$0xf]  ;;  %v14443_v39 = vld [vmem:[#allocation3 + $0x1048] sm:$0xf0] }
 0x310   : > { %8097 = vmatpush.bf16.msra.mxu1 %v14254_v4  ;;  %v14854_v4 = vor.u32 %v17383_v61, %v14851_v19  ;;  %v20791_v36 = vld [vmem:[#allocation51_spill] sm:$0xff]  ;;  %v17377_v61 = vld [vmem:[#allocation3 + $0x1344] sm:$0xf]  ;;  %v14827_v19 = vld [vmem:[#allocation3 + $0x1348] sm:$0xf0] }
 0x311   : > { %8085 = vmatpush.bf16.msra.mxu0 %v14174_v37  ;;  %v14230_v37 = vor.u32 %v17227_v10, %v14227_v26  ;;  %v14382_v10 = vor.u32 %v17265_v15, %v14379_v20  ;;  %v14446_v26 = vor.u32 %v17281_v23, %v14443_v39  ;;  %v14830_v29 = vor.u32 %v17377_v61, %v14827_v19  ;;  %v17373_v45 = vld [vmem:[#allocation3 + $0x1324] sm:$0xf]  ;;  %v17259_v15 = vld [vmem:[#allocation3 + $0xf94] sm:$0xf]  ;;  %v14355_v23 = vld [vmem:[#allocation3 + $0xf98] sm:$0xf0]  ;;  %v7893_v19 = vpop.f32.mrf.mxu2 }
 0x312   : > { %8071 = vmatpush.bf16.msra.mxu3 %v14110_v43  ;;  %v17285_v43 = vld [vmem:[#allocation3 + $0x1064] sm:$0xf]  ;;  %v17275_v39 = vld [vmem:[#allocation3 + $0x1014] sm:$0xf]  ;;  %v14419_v61 = vld [vmem:[#allocation3 + $0x1018] sm:$0xf0] }
 0x313   : > { %8169 = vmatpush.bf16.msra.mxu2 %v14558_v17  ;;  %v17225_v17 = vld [vmem:[#allocation3 + $0xe84] sm:$0xf]  ;;  %v14462_v51 = vor.u32 %v17285_v43, %v14459_v40  ;;  %v14371_v43 = vld [vmem:[#allocation3 + $0xfb8] sm:$0xf0]  ;;  %v17279_v40 = vld [vmem:[#allocation3 + $0x1034] sm:$0xf] }
 0x314   : > { %8098 = vmatpush.bf16.msra.mxu1 %v14246_v54  ;;  %v14387_v54 = vld [vmem:[#allocation3 + $0xfd8] sm:$0xf0]  ;;  %v14222_v50 = vor.u32 %v17225_v17, %v14219_v1 }
 0x315   : > { %8086 = vmatpush.bf16.msra.mxu0 %v14166_v57  ;;  %v14534_v57 = vor.u32 %v17303_v25, %v14531_v32  ;;  %v14390_v47 = vor.u32 %v17267_v6, %v14387_v54  ;;  %v14819_v17 = vld [vmem:[#allocation3 + $0x1338] sm:$0xf0]  ;;  %v17261_v6 = vld [vmem:[#allocation3 + $0xfa4] sm:$0xf]  ;;  %v14507_v32 = vld [vmem:[#allocation3 + $0x10c8] sm:$0xf0] }
 0x316   : > { %8072 = vmatpush.bf16.msra.mxu3 %v14102_v44  ;;  %v14451_v44 = vld [vmem:[#allocation3 + $0x1058] sm:$0xf0]  ;;  %v17297_v25 = vld [vmem:[#allocation3 + $0x10c4] sm:$0xf] }
 0x317   : > { %8170 = vmatpush.bf16.msra.mxu2 %v14550_v31  ;;  %v20792_v31 = vld [vmem:[#allocation52_spill] sm:$0xff]  ;;  %v14454_v53 = vor.u32 %v17283_v33, %v14451_v44  ;;  %v14427_v33 = vld [vmem:[#allocation3 + $0x1028] sm:$0xf0] }
 0x318   : > { %8099 = vmatpush.bf16.msra.mxu1 %v14238_v28  ;;  %v19853_v28 = vpop.f32.mrf.mxu3  ;;  %v17277_v54 = vld [vmem:[#allocation3 + $0x1024] sm:$0xf] }
 0x319   : > { %8087 = vmatpush.bf16.msra.mxu0 %v14158_v3  ;;  %v14526_v3 = vor.u32 %v17301_v63, %v14523_v14  ;;  %v17295_v63 = vld [vmem:[#allocation3 + $0x10b4] sm:$0xf]  ;;  %v14499_v14 = vld [vmem:[#allocation3 + $0x10b8] sm:$0xf0] }
 0x31a   : > { %8073 = vmatpush.bf16.msra.mxu3 %v14094_v0  ;;  %v19855_v0 = vpop.f32.mrf.mxu0 }
 0x31b   : > { %8171 = vmatpush.bf16.msra.mxu2 %v14542_v35  ;;  %v19857_v35 = vpop.f32.mrf.mxu1 }
 0x31c   : > { %8100 = vmatpush.bf16.msra.mxu1 %v14230_v37  ;;  %8088 = vmatmul.bf16.vlgmr.msra.gmra.mxu0 %v20791_v36  ;;  %v17375_v37 = vld [vmem:[#allocation3 + $0x1334] sm:$0xf] }
 0x31d   : > { %8136 = vmatpush.bf16.msrb.mxu0 %v14470_v11  ;;  %8074 = vmatmul.bf16.vlgmr.msra.gmra.mxu3 %v20790_v5  ;;  %v17299_v11 = vld [vmem:[#allocation3 + $0x10d4] sm:$0xf]  ;;  %v14822_v5 = vor.u32 %v17375_v37, %v14819_v17  ;;  %v14411_v17 = vld [vmem:[#allocation3 + $0x1008] sm:$0xf0] }
 0x31e   : > { %8122 = vmatpush.bf16.msrb.mxu3 %v14406_v2  ;;  %8172 = vmatmul.bf16.vlgmr.msra.gmra.mxu2 %v20792_v31  ;;  %v17263_v2 = vld [vmem:[#allocation3 + $0xfb4] sm:$0xf]  ;;  %v14518_v1 = vor.u32 %v17299_v11, %v14515_v52  ;;  %v14347_v11 = vld [vmem:[#allocation3 + $0xf88] sm:$0xf0]  ;;  %v14358_v52 = vor.u32 %v17259_v15, %v14355_v23  ;;  %v17349_v15 = vld [vmem:[#allocation3 + $0x1264] sm:$0xf] }
 0x31f   : > { %8220 = vmatpush.bf16.msrb.mxu2 %v14854_v4  ;;  %v20793_v4 = vld [vmem:[#allocation53_spill] sm:$0xff] }
 0x320   : > { %8101 = vmatpush.bf16.msra.mxu1 %v14222_v50  ;;  %v7851_v44 = vpop.f32.mrf.mxu3  ;;  %v14811_v50 = vld [vmem:[#allocation3 + $0x1328] sm:$0xf0]  ;;  %v17289_v23 = vld [vmem:[#allocation3 + $0x1084] sm:$0xf] }
 0x321   : > { %8137 = vmatpush.bf16.msrb.mxu0 %v14462_v51  ;;  %v14438_v51 = vor.u32 %v17279_v40, %v14435_v18  ;;  %v7852_v36 = vadd.f32 %v7851_v44, %v19848_v9  ;;  %v14814_v20 = vor.u32 %v17373_v45, %v14811_v50  ;;  %v14491_v40 = vld [vmem:[#allocation3 + $0x10a8] sm:$0xf0]  ;;  %v14483_v45 = vld [vmem:[#allocation3 + $0x1098] sm:$0xf0] }
 0x322   : > { %8123 = vmatpush.bf16.msrb.mxu3 %v14398_v16  ;;  %v14374_v16 = vor.u32 %v17263_v2, %v14371_v43  ;;  %v7865_v42 = vpop.f32.mrf.mxu0  ;;  %v17257_v2 = vld [vmem:[#allocation3 + $0xf84] sm:$0xf] }
 0x323   : > { %8221 = vmatpush.bf16.msrb.mxu2 %v14846_v55  ;;  %8102 = vmatmul.bf16.vlgmr.msra.gmra.mxu1 %v20793_v4  ;;  %v14363_v55 = vld [vmem:[#allocation3 + $0xfa8] sm:$0xf0]  ;;  %v14422_v4 = vor.u32 %v17275_v39, %v14419_v61  ;;  %v17293_v43 = vld [vmem:[#allocation3 + $0x10a4] sm:$0xf] }
 0x324   : > { %8150 = vmatpush.bf16.msrb.mxu1 %v14534_v57  ;;  %v14510_v57 = vor.u32 %v17297_v25, %v14507_v32  ;;  %v14366_v31 = vor.u32 %v17261_v6, %v14363_v55  ;;  %v14659_v6 = vld [vmem:[#allocation3 + $0x11f8] sm:$0xf0]  ;;  %v17351_v25 = vld [vmem:[#allocation3 + $0x1274] sm:$0xf]  ;;  %v14475_v39 = vld [vmem:[#allocation3 + $0x1088] sm:$0xf0] }
 0x325   : > { %8138 = vmatpush.bf16.msrb.mxu0 %v14454_v53  ;;  %v7879_v53 = vpop.f32.mrf.mxu1  ;;  %v14723_v32 = vld [vmem:[#allocation3 + $0x1278] sm:$0xf0] }
 0x326   : > { %8124 = vmatpush.bf16.msrb.mxu3 %v14390_v47  ;;  %v14430_v47 = vor.u32 %v17277_v54, %v14427_v33  ;;  %v15107_v55 = vld [vmem:[#allocation3 + $0x1578] sm:$0xf0]  ;;  %v14494_v54 = vor.u32 %v17293_v43, %v14491_v40  ;;  %v14350_v33 = vor.u32 %v17257_v2, %v14347_v11  ;;  %v17347_v11 = vld [vmem:[#allocation3 + $0x1254] sm:$0xf]  ;;  %v14478_v40 = vor.u32 %v17289_v23, %v14475_v39  ;;  %v20797_v23 = vld [vmem:[#allocation57_spill] sm:$0xff] }
 0x327   : > { %8222 = vmatpush.bf16.msrb.mxu2 %v14838_v27  ;;  %v7866_v27 = vadd.f32 %v7865_v42, %v7852_v36  ;;  %v17291_v42 = vld [vmem:[#allocation3 + $0x1094] sm:$0xf]  ;;  %v14643_v2 = vld [vmem:[#allocation3 + $0x11d8] sm:$0xf0] }
 0x328   : > { %8151 = vmatpush.bf16.msrb.mxu1 %v14526_v3  ;;  %v17371_v3 = vld [vmem:[#allocation3 + $0x1314] sm:$0xf]  ;;  %v15091_v43 = vld [vmem:[#allocation3 + $0x1558] sm:$0xf0] }
 0x329   : > { %8139 = vmatpush.bf16.msrb.mxu0 %v14446_v26  ;;  %v7880_v9 = vadd.f32 %v7879_v53, %v7866_v27  ;;  %v14502_v26 = vor.u32 %v17295_v63, %v14499_v14  ;;  %v14651_v53 = vld [vmem:[#allocation3 + $0x11e8] sm:$0xf0]  ;;  %v17445_v14 = vld [vmem:[#allocation3 + $0x1564] sm:$0xf]  ;;  %v14691_v39 = vld [vmem:[#allocation3 + $0x1238] sm:$0xf0] }
 0x32a   : > { %8125 = vmatpush.bf16.msrb.mxu3 %v14382_v10  ;;  %v14803_v10 = vld [vmem:[#allocation3 + $0x1318] sm:$0xf0]  ;;  %v14715_v63 = vld [vmem:[#allocation3 + $0x1268] sm:$0xf0] }
 0x32b   : > { %8223 = vmatpush.bf16.msrb.mxu2 %v14830_v29  ;;  %v17273_v29 = vld [vmem:[#allocation3 + $0x1004] sm:$0xf]  ;;  %v19863_v18 = vadd.f32 %v7893_v19, %v7880_v9  ;;  %v14806_v37 = vor.u32 %v17371_v3, %v14803_v10  ;;  %v15099_v27 = vld [vmem:[#allocation3 + $0x1568] sm:$0xf0]  ;;  %v17367_v19 = vld [vmem:[#allocation3 + $0x12f4] sm:$0xf]  ;;  %v14718_v10 = vor.u32 %v17349_v15, %v14715_v63 }
 0x32c   : > { %8152 = vmatpush.bf16.msrb.mxu1 %v14518_v1  ;;  %v17369_v1 = vld [vmem:[#allocation3 + $0x1304] sm:$0xf]  ;;  %v14414_v44 = vor.u32 %v17273_v29, %v14411_v17  ;;  %v14787_v3 = vld [vmem:[#allocation3 + $0x12f8] sm:$0xf0]  ;;  %v15102_v9 = vor.u32 %v17445_v14, %v15099_v27  ;;  %v17443_v29 = vld [vmem:[#allocation3 + $0x1554] sm:$0xf] }
 0x32d   : > { %8140 = vmatpush.bf16.msrb.mxu0 %v14438_v51  ;;  %v17335_v51 = vld [vmem:[#allocation3 + $0x11f4] sm:$0xf]  ;;  %v14790_v17 = vor.u32 %v17367_v19, %v14787_v3  ;;  %v14627_v27 = vld [vmem:[#allocation3 + $0x11b8] sm:$0xf0]  ;;  %v19875_v3 = vpop.f32.mrf.mxu2 }
 0x32e   : > { %8126 = vmatpush.bf16.msrb.mxu3 %v14374_v16  ;;  %v14795_v16 = vld [vmem:[#allocation3 + $0x1308] sm:$0xf0]  ;;  %v14662_v36 = vor.u32 %v17335_v51, %v14659_v6  ;;  %v17365_v51 = vld [vmem:[#allocation3 + $0x12e4] sm:$0xf]  ;;  %v17327_v14 = vld [vmem:[#allocation3 + $0x11b4] sm:$0xf] }
 0x32f   : > { %8224 = vmatpush.bf16.msrb.mxu2 %v14822_v5  ;;  %v17447_v5 = vld [vmem:[#allocation3 + $0x1574] sm:$0xf]  ;;  %v14798_v50 = vor.u32 %v17369_v1, %v14795_v16  ;;  %v20796_v1 = vld [vmem:[#allocation56_spill] sm:$0xff]  ;;  %v14779_v6 = vld [vmem:[#allocation3 + $0x12e8] sm:$0xf0] }
 0x330   : > { %8153 = vmatpush.bf16.msrb.mxu1 %v14510_v57  ;;  %v14726_v57 = vor.u32 %v17351_v25, %v14723_v32  ;;  %v15094_v32 = vor.u32 %v17443_v29, %v15091_v43  ;;  %v15075_v19 = vld [vmem:[#allocation3 + $0x1538] sm:$0xf0]  ;;  %v14619_v29 = vld [vmem:[#allocation3 + $0x11a8] sm:$0xf0]  ;;  %v17341_v43 = vld [vmem:[#allocation3 + $0x1224] sm:$0xf] }
 0x331   : > { %8141 = vmatpush.bf16.msrb.mxu0 %v14430_v47  ;;  %v17333_v47 = vld [vmem:[#allocation3 + $0x11e4] sm:$0xf] }
 0x332   : > { %8127 = vmatpush.bf16.msrb.mxu3 %v14366_v31  ;;  %v15110_v31 = vor.u32 %v17447_v5, %v15107_v55  ;;  %v14654_v61 = vor.u32 %v17333_v47, %v14651_v53  ;;  %v17329_v5 = vld [vmem:[#allocation3 + $0x11c4] sm:$0xf]  ;;  %v14635_v55 = vld [vmem:[#allocation3 + $0x11c8] sm:$0xf0]  ;;  %v14771_v47 = vld [vmem:[#allocation3 + $0x12d8] sm:$0xf0]  ;;  %v19872_v53 = vpop.f32.mrf.mxu1 }
 0x333   : > { %8225 = vmatpush.bf16.msrb.mxu2 %v14814_v20  ;;  %v14486_v20 = vor.u32 %v17291_v42, %v14483_v45  ;;  %v15083_v42 = vld [vmem:[#allocation3 + $0x1548] sm:$0xf0]  ;;  %v19868_v45 = vpop.f32.mrf.mxu3 }
 0x334   : > { %8154 = vmatpush.bf16.msrb.mxu1 %v14502_v26  ;;  %v17331_v26 = vld [vmem:[#allocation3 + $0x11d4] sm:$0xf] }
 0x335   : > { %8142 = vmatpush.bf16.msrb.mxu0 %v14422_v4  ;;  %v14707_v4 = vld [vmem:[#allocation3 + $0x1258] sm:$0xf0]  ;;  %v14646_v16 = vor.u32 %v17331_v26, %v14643_v2  ;;  %v17361_v26 = vld [vmem:[#allocation3 + $0x12c4] sm:$0xf]  ;;  %v14763_v2 = vld [vmem:[#allocation3 + $0x12c8] sm:$0xf0] }
 0x336   : > { %8128 = vmatpush.bf16.msrb.mxu3 %v14358_v52  ;;  %v20794_v52 = vld [vmem:[#allocation54_spill] sm:$0xff]  ;;  %v14710_v25 = vor.u32 %v17347_v11, %v14707_v4  ;;  %v17325_v4 = vld [vmem:[#allocation3 + $0x11a4] sm:$0xf] }
 0x337   : > { %8226 = vmatpush.bf16.msrb.mxu2 %v14806_v37  ;;  %v20795_v37 = vld [vmem:[#allocation55_spill] sm:$0xff] }
 0x338   : > { %8155 = vmatpush.bf16.msrb.mxu1 %v14494_v54  ;;  %v17345_v54 = vld [vmem:[#allocation3 + $0x1244] sm:$0xf] }
 0x339   : > { %8143 = vmatpush.bf16.msrb.mxu0 %v14414_v44  ;;  %v17441_v44 = vld [vmem:[#allocation3 + $0x1544] sm:$0xf] }
 0x33a   : > { %8129 = vmatpush.bf16.msrb.mxu3 %v14350_v33  ;;  %v14699_v33 = vld [vmem:[#allocation3 + $0x1248] sm:$0xf0]  ;;  %v15086_v63 = vor.u32 %v17441_v44, %v15083_v42  ;;  %v17323_v44 = vld [vmem:[#allocation3 + $0x1194] sm:$0xf]  ;;  %v14611_v42 = vld [vmem:[#allocation3 + $0x1198] sm:$0xf0] }
 0x33b   : > { %8227 = vmatpush.bf16.msrb.mxu2 %v14798_v50  ;;  %v19870_v50 = vpop.f32.mrf.mxu0  ;;  %v14702_v15 = vor.u32 %v17345_v54, %v14699_v33 }
 0x33c   : > { %8156 = vmatpush.bf16.msrb.mxu1 %v14486_v20  ;;  %8144 = vmatmul.bf16.vlgmr.msrb.gmra.mxu0 %v20795_v37  ;;  %v17343_v20 = vld [vmem:[#allocation3 + $0x1234] sm:$0xf]  ;;  %v17437_v37 = vld [vmem:[#allocation3 + $0x1524] sm:$0xf] }
 0x33d   : > { %8192 = vmatpush.bf16.msra.mxu0 %v14726_v57  ;;  %8130 = vmatmul.bf16.vlgmr.msrb.gmra.mxu3 %v20794_v52  ;;  %v14638_v57 = vor.u32 %v17329_v5, %v14635_v55  ;;  %v14694_v11 = vor.u32 %v17343_v20, %v14691_v39  ;;  %v14755_v5 = vld [vmem:[#allocation3 + $0x12b8] sm:$0xf0]  ;;  %v17321_v20 = vld [vmem:[#allocation3 + $0x1184] sm:$0xf]  ;;  %v14747_v39 = vld [vmem:[#allocation3 + $0x12a8] sm:$0xf0] }
 0x33e   : > { %8178 = vmatpush.bf16.msra.mxu3 %v14662_v36  ;;  %8228 = vmatmul.bf16.vlgmr.msrb.gmra.mxu2 %v20796_v1  ;;  %v14782_v36 = vor.u32 %v17365_v51, %v14779_v6  ;;  %v14766_v51 = vor.u32 %v17361_v26, %v14763_v2  ;;  %v14667_v26 = vld [vmem:[#allocation3 + $0x1208] sm:$0xf0] }
 0x33f   : > { %8276 = vmatpush.bf16.msra.mxu2 %v15110_v31  ;;  %v17363_v31 = vld [vmem:[#allocation3 + $0x12d4] sm:$0xf] }
 0x340   : > { %8157 = vmatpush.bf16.msrb.mxu1 %v14478_v40  ;;  %v14683_v40 = vld [vmem:[#allocation3 + $0x1228] sm:$0xf0]  ;;  %v7907_v1 = vpop.f32.mrf.mxu3  ;;  %v7935_v33 = vpop.f32.mrf.mxu1 }
 0x341   : > { %8193 = vmatpush.bf16.msra.mxu0 %v14718_v10  ;;  %v14774_v10 = vor.u32 %v17363_v31, %v14771_v47  ;;  %v7908_v6 = vadd.f32 %v7907_v1, %v19863_v18  ;;  %v14686_v55 = vor.u32 %v17341_v43, %v14683_v40  ;;  %v14675_v31 = vld [vmem:[#allocation3 + $0x1218] sm:$0xf0]  ;;  %v17435_v47 = vld [vmem:[#allocation3 + $0x1514] sm:$0xf] }
 0x342   : > { %8179 = vmatpush.bf16.msra.mxu3 %v14654_v61  ;;  %v17439_v61 = vld [vmem:[#allocation3 + $0x1534] sm:$0xf]  ;;  %v14979_v40 = vld [vmem:[#allocation3 + $0x1478] sm:$0xf0] }
 0x343   : > { %8277 = vmatpush.bf16.msra.mxu2 %v15102_v9  ;;  %8158 = vmatmul.bf16.vlgmr.msrb.gmra.mxu1 %v20797_v23  ;;  %v14630_v9 = vor.u32 %v17327_v14, %v14627_v27  ;;  %v15078_v52 = vor.u32 %v17439_v61, %v15075_v19  ;;  %v14614_v27 = vor.u32 %v17323_v44, %v14611_v42  ;;  %v17357_v23 = vld [vmem:[#allocation3 + $0x12a4] sm:$0xf]  ;;  %v17415_v43 = vld [vmem:[#allocation3 + $0x1474] sm:$0xf]  ;;  %v14907_v44 = vld [vmem:[#allocation3 + $0x13e8] sm:$0xf0] }
 0x344   : > { %8206 = vmatpush.bf16.msra.mxu1 %v14790_v17  ;;  %v15067_v17 = vld [vmem:[#allocation3 + $0x1528] sm:$0xf0]  ;;  %v17511_v1 = vld [vmem:[#allocation3 + $0x1774] sm:$0xf]  ;;  %v17413_v42 = vld [vmem:[#allocation3 + $0x1464] sm:$0xf] }
 0x345   : > { %8194 = vmatpush.bf16.msra.mxu0 %v14710_v25  ;;  %v14622_v25 = vor.u32 %v17325_v4, %v14619_v29  ;;  %v15070_v54 = vor.u32 %v17437_v37, %v15067_v17  ;;  %v17399_v4 = vld [vmem:[#allocation3 + $0x13f4] sm:$0xf]  ;;  %v14915_v29 = vld [vmem:[#allocation3 + $0x13f8] sm:$0xf0]  ;;  %v14750_v37 = vor.u32 %v17357_v23, %v14747_v39 }
 0x346   : > { %8180 = vmatpush.bf16.msra.mxu3 %v14646_v16  ;;  %v7921_v16 = vpop.f32.mrf.mxu0  ;;  %v15043_v23 = vld [vmem:[#allocation3 + $0x14f8] sm:$0xf0]  ;;  %v20798_v39 = vld [vmem:[#allocation58_spill] sm:$0xff] }
 0x347   : > { %8278 = vmatpush.bf16.msra.mxu2 %v15094_v32  ;;  %v17359_v32 = vld [vmem:[#allocation3 + $0x12b4] sm:$0xf] }
 0x348   : > { %8207 = vmatpush.bf16.msra.mxu1 %v14782_v36  ;;  %v17339_v36 = vld [vmem:[#allocation3 + $0x1214] sm:$0xf]  ;;  %v14758_v14 = vor.u32 %v17359_v32, %v14755_v5  ;;  %v14739_v32 = vld [vmem:[#allocation3 + $0x1298] sm:$0xf0]  ;;  %v14918_v5 = vor.u32 %v17399_v4, %v14915_v29 }
 0x349   : > { %8195 = vmatpush.bf16.msra.mxu0 %v14702_v15  ;;  %v15059_v15 = vld [vmem:[#allocation3 + $0x1518] sm:$0xf0]  ;;  %v14678_v61 = vor.u32 %v17339_v36, %v14675_v31  ;;  %v14971_v36 = vld [vmem:[#allocation3 + $0x1468] sm:$0xf0] }
 0x34a   : > { %8181 = vmatpush.bf16.msra.mxu3 %v14638_v57  ;;  %v7922_v57 = vadd.f32 %v7921_v16, %v7908_v6  ;;  %v15062_v19 = vor.u32 %v17435_v47, %v15059_v15  ;;  %v15363_v16 = vld [vmem:[#allocation3 + $0x1778] sm:$0xf0]  ;;  %v15355_v31 = vld [vmem:[#allocation3 + $0x1768] sm:$0xf0]  ;;  %v17353_v15 = vld [vmem:[#allocation3 + $0x1284] sm:$0xf] }
 0x34b   : > { %8279 = vmatpush.bf16.msra.mxu2 %v15086_v63  ;;  %v7949_v63 = vpop.f32.mrf.mxu2  ;;  %v20799_v4 = vld [vmem:[#allocation59_spill] sm:$0xff] }
 0x34c   : > { %8208 = vmatpush.bf16.msra.mxu1 %v14774_v10  ;;  %v7936_v18 = vadd.f32 %v7935_v33, %v7922_v57  ;;  %v14603_v10 = vld [vmem:[#allocation3 + $0x1188] sm:$0xf0]  ;;  %v15366_v33 = vor.u32 %v17511_v1, %v15363_v16  ;;  %v17509_v57 = vld [vmem:[#allocation3 + $0x1764] sm:$0xf] }
 0x34d   : > { %8196 = vmatpush.bf16.msra.mxu0 %v14694_v11  ;;  %v17433_v11 = vld [vmem:[#allocation3 + $0x1504] sm:$0xf]  ;;  %v14606_v17 = vor.u32 %v17321_v20, %v14603_v10  ;;  %v17431_v20 = vld [vmem:[#allocation3 + $0x14f4] sm:$0xf]  ;;  %v15035_v16 = vld [vmem:[#allocation3 + $0x14e8] sm:$0xf0] }
 0x34e   : > { %8182 = vmatpush.bf16.msra.mxu3 %v14630_v9  ;;  %v17337_v9 = vld [vmem:[#allocation3 + $0x1204] sm:$0xf]  ;;  %v19878_v2 = vadd.f32 %v7949_v63, %v7936_v18  ;;  %v14731_v63 = vld [vmem:[#allocation3 + $0x1288] sm:$0xf0]  ;;  %v14974_v18 = vor.u32 %v17413_v42, %v14971_v36  ;;  %v17411_v10 = vld [vmem:[#allocation3 + $0x1454] sm:$0xf]  ;;  %v15046_v29 = vor.u32 %v17431_v20, %v15043_v23  ;;  %v19887_v42 = vpop.f32.mrf.mxu1 }
 0x34f   : > { %8280 = vmatpush.bf16.msra.mxu2 %v15078_v52  ;;  %v15051_v52 = vld [vmem:[#allocation3 + $0x1508] sm:$0xf0]  ;;  %v17429_v1 = vld [vmem:[#allocation3 + $0x14e4] sm:$0xf]  ;;  %v14947_v20 = vld [vmem:[#allocation3 + $0x1438] sm:$0xf0] }
 0x350   : > { %8209 = vmatpush.bf16.msra.mxu1 %v14766_v51  ;;  %v14670_v51 = vor.u32 %v17337_v9, %v14667_v26  ;;  %v15054_v6 = vor.u32 %v17433_v11, %v15051_v52  ;;  %v14963_v9 = vld [vmem:[#allocation3 + $0x1458] sm:$0xf0]  ;;  %v17507_v26 = vld [vmem:[#allocation3 + $0x1754] sm:$0xf]  ;;  %v14734_v52 = vor.u32 %v17353_v15, %v14731_v63  ;;  %v20801_v63 = vld [vmem:[#allocation61_spill] sm:$0xff] }
 0x351   : > { %8197 = vmatpush.bf16.msra.mxu0 %v14686_v55  ;;  %v14982_v55 = vor.u32 %v17415_v43, %v14979_v40  ;;  %v15347_v11 = vld [vmem:[#allocation3 + $0x1758] sm:$0xf0] }
 0x352   : > { %8183 = vmatpush.bf16.msra.mxu3 %v14622_v25  ;;  %v17355_v25 = vld [vmem:[#allocation3 + $0x1294] sm:$0xf]  ;;  %v20800_v43 = vld [vmem:[#allocation60_spill] sm:$0xff] }
 0x353   : > { %8281 = vmatpush.bf16.msra.mxu2 %v15070_v54  ;;  %v17397_v54 = vld [vmem:[#allocation3 + $0x13e4] sm:$0xf]  ;;  %v14742_v47 = vor.u32 %v17355_v25, %v14739_v32  ;;  %v14955_v32 = vld [vmem:[#allocation3 + $0x1448] sm:$0xf0]  ;;  %v15027_v15 = vld [vmem:[#allocation3 + $0x14d8] sm:$0xf0]  ;;  %v19890_v23 = vpop.f32.mrf.mxu2 }
 0x354   : > { %8210 = vmatpush.bf16.msra.mxu1 %v14758_v14  ;;  %v14910_v14 = vor.u32 %v17397_v54, %v14907_v44  ;;  %v17409_v25 = vld [vmem:[#allocation3 + $0x1444] sm:$0xf]  ;;  %v15038_v44 = vor.u32 %v17429_v1, %v15035_v16  ;;  %v15323_v16 = vld [vmem:[#allocation3 + $0x1728] sm:$0xf0] }
 0x355   : > { %8198 = vmatpush.bf16.msra.mxu0 %v14678_v61  ;;  %v15358_v61 = vor.u32 %v17509_v57, %v15355_v31  ;;  %v17505_v54 = vld [vmem:[#allocation3 + $0x1744] sm:$0xf]  ;;  %v14958_v57 = vor.u32 %v17409_v25, %v14955_v32  ;;  %v17391_v31 = vld [vmem:[#allocation3 + $0x13b4] sm:$0xf] }
 0x356   : > { %8184 = vmatpush.bf16.msra.mxu3 %v14614_v27  ;;  %v17395_v27 = vld [vmem:[#allocation3 + $0x13d4] sm:$0xf]  ;;  %v17501_v1 = vld [vmem:[#allocation3 + $0x1724] sm:$0xf] }
 0x357   : > { %8282 = vmatpush.bf16.msra.mxu2 %v15062_v19  ;;  %v14899_v19 = vld [vmem:[#allocation3 + $0x13d8] sm:$0xf0] }
 0x358   : > { %8211 = vmatpush.bf16.msra.mxu1 %v14750_v37  ;;  %v14902_v40 = vor.u32 %v17395_v27, %v14899_v19  ;;  %v14966_v37 = vor.u32 %v17411_v10, %v14963_v9  ;;  %v17407_v27 = vld [vmem:[#allocation3 + $0x1434] sm:$0xf] }
 0x359   : > { %8199 = vmatpush.bf16.msra.mxu0 %v14670_v51  ;;  %v15350_v51 = vor.u32 %v17507_v26, %v15347_v11  ;;  %v14950_v9 = vor.u32 %v17407_v27, %v14947_v20  ;;  %v17389_v26 = vld [vmem:[#allocation3 + $0x13a4] sm:$0xf]  ;;  %v15315_v27 = vld [vmem:[#allocation3 + $0x1718] sm:$0xf0] }
 0x35a   : > { %8185 = vmatpush.bf16.msra.mxu3 %v14606_v17  ;;  %v17393_v17 = vld [vmem:[#allocation3 + $0x13c4] sm:$0xf] }
 0x35b   : > { %8283 = vmatpush.bf16.msra.mxu2 %v15054_v6  ;;  %v14891_v6 = vld [vmem:[#allocation3 + $0x13c8] sm:$0xf0]  ;;  %v17425_v11 = vld [vmem:[#allocation3 + $0x14c4] sm:$0xf] }
 0x35c   : > { %8212 = vmatpush.bf16.msra.mxu1 %v14742_v47  ;;  %8200 = vmatmul.bf16.vlgmr.msra.gmra.mxu0 %v20799_v4  ;;  %v14894_v36 = vor.u32 %v17393_v17, %v14891_v6  ;;  %v17427_v47 = vld [vmem:[#allocation3 + $0x14d4] sm:$0xf] }
 0x35d   : > { %8248 = vmatpush.bf16.msrb.mxu0 %v14982_v55  ;;  %8186 = vmatmul.bf16.vlgmr.msra.gmra.mxu3 %v20798_v39  ;;  %v19885_v55 = vpop.f32.mrf.mxu0  ;;  %v17503_v39 = vld [vmem:[#allocation3 + $0x1734] sm:$0xf]  ;;  %v15030_v19 = vor.u32 %v17427_v47, %v15027_v15  ;;  %v14867_v47 = vld [vmem:[#allocation3 + $0x1398] sm:$0xf0] }
 0x35e   : > { %8234 = vmatpush.bf16.msrb.mxu3 %v14918_v5  ;;  %8284 = vmatmul.bf16.vlgmr.msra.gmra.mxu2 %v20800_v43  ;;  %v19883_v5 = vpop.f32.mrf.mxu3  ;;  %v17405_v43 = vld [vmem:[#allocation3 + $0x1424] sm:$0xf]  ;;  %v17403_v15 = vld [vmem:[#allocation3 + $0x1414] sm:$0xf] }
 0x35f   : > { %8332 = vmatpush.bf16.msrb.mxu2 %v15366_v33  ;;  %v15339_v33 = vld [vmem:[#allocation3 + $0x1748] sm:$0xf0] }
 0x360   : > { %8213 = vmatpush.bf16.msra.mxu1 %v14734_v52  ;;  %v15019_v52 = vld [vmem:[#allocation3 + $0x14c8] sm:$0xf0] }
 0x361   : > { %8249 = vmatpush.bf16.msrb.mxu0 %v14974_v18  ;;  %v14883_v18 = vld [vmem:[#allocation3 + $0x13b8] sm:$0xf0]  ;;  %v15022_v6 = vor.u32 %v17425_v11, %v15019_v52  ;;  %v15003_v11 = vld [vmem:[#allocation3 + $0x14a8] sm:$0xf0] }
 0x362   : > { %8235 = vmatpush.bf16.msrb.mxu3 %v14910_v14  ;;  %v15342_v14 = vor.u32 %v17505_v54, %v15339_v33  ;;  %v14886_v10 = vor.u32 %v17391_v31, %v14883_v18  ;;  %v7991_v54 = vpop.f32.mrf.mxu1  ;;  %v17387_v33 = vld [vmem:[#allocation3 + $0x1394] sm:$0xf]  ;;  %v15326_v31 = vor.u32 %v17501_v1, %v15323_v16  ;;  %v15235_v16 = vld [vmem:[#allocation3 + $0x1678] sm:$0xf0] }
 0x363   : > { %8333 = vmatpush.bf16.msrb.mxu2 %v15358_v61  ;;  %8214 = vmatmul.bf16.vlgmr.msra.gmra.mxu1 %v20801_v63  ;;  %v15331_v61 = vld [vmem:[#allocation3 + $0x1738] sm:$0xf0]  ;;  %v17499_v18 = vld [vmem:[#allocation3 + $0x1714] sm:$0xf] }
 0x364   : > { %8262 = vmatpush.bf16.msrb.mxu1 %v15046_v29  ;;  %v15334_v4 = vor.u32 %v17503_v39, %v15331_v61  ;;  %v14875_v29 = vld [vmem:[#allocation3 + $0x13a8] sm:$0xf0]  ;;  %v14931_v63 = vld [vmem:[#allocation3 + $0x1418] sm:$0xf0]  ;;  %v17385_v39 = vld [vmem:[#allocation3 + $0x1384] sm:$0xf] }
 0x365   : > { %8250 = vmatpush.bf16.msrb.mxu0 %v14966_v37  ;;  %v7977_v17 = vpop.f32.mrf.mxu0  ;;  %v14878_v25 = vor.u32 %v17389_v26, %v14875_v29  ;;  %v14859_v61 = vld [vmem:[#allocation3 + $0x1388] sm:$0xf0]  ;;  %v17421_v26 = vld [vmem:[#allocation3 + $0x14a4] sm:$0xf]  ;;  %v17479_v1 = vld [vmem:[#allocation3 + $0x1674] sm:$0xf] }
 0x366   : > { %8236 = vmatpush.bf16.msrb.mxu3 %v14902_v40  ;;  %v14939_v40 = vld [vmem:[#allocation3 + $0x1428] sm:$0xf0]  ;;  %v7963_v37 = vpop.f32.mrf.mxu3 }
 0x367   : > { %8334 = vmatpush.bf16.msrb.mxu2 %v15350_v51  ;;  %v7964_v51 = vadd.f32 %v7963_v37, %v19878_v2  ;;  %v14942_v32 = vor.u32 %v17405_v43, %v14939_v40  ;;  %v14923_v29 = vld [vmem:[#allocation3 + $0x1408] sm:$0xf0]  ;;  %v17497_v43 = vld [vmem:[#allocation3 + $0x1704] sm:$0xf]  ;;  %v17463_v37 = vld [vmem:[#allocation3 + $0x15f4] sm:$0xf] }
 0x368   : > { %8263 = vmatpush.bf16.msrb.mxu1 %v15038_v44  ;;  %v17423_v44 = vld [vmem:[#allocation3 + $0x14b4] sm:$0xf]  ;;  %v15307_v40 = vld [vmem:[#allocation3 + $0x1708] sm:$0xf0] }
 0x369   : > { %8251 = vmatpush.bf16.msrb.mxu0 %v14958_v57  ;;  %v7978_v57 = vadd.f32 %v7977_v17, %v7964_v51  ;;  %v15171_v17 = vld [vmem:[#allocation3 + $0x15f8] sm:$0xf0]  ;;  %v17575_v51 = vld [vmem:[#allocation3 + $0x1974] sm:$0xf] }
 0x36a   : > { %8237 = vmatpush.bf16.msrb.mxu3 %v14894_v36  ;;  %v15011_v36 = vld [vmem:[#allocation3 + $0x14b8] sm:$0xf0] }
 0x36b   : > { %8335 = vmatpush.bf16.msrb.mxu2 %v15342_v14  ;;  %v8005_v14 = vpop.f32.mrf.mxu2  ;;  %v7992_v2 = vadd.f32 %v7991_v54, %v7978_v57  ;;  %v15014_v20 = vor.u32 %v17423_v44, %v15011_v36  ;;  %v14995_v44 = vld [vmem:[#allocation3 + $0x1498] sm:$0xf0]  ;;  %v15310_v36 = vor.u32 %v17497_v43, %v15307_v40  ;;  %v15174_v57 = vor.u32 %v17463_v37, %v15171_v17  ;;  %v17475_v43 = vld [vmem:[#allocation3 + $0x1654] sm:$0xf] }
 0x36c   : > { %8264 = vmatpush.bf16.msrb.mxu1 %v15030_v19  ;;  %v14870_v19 = vor.u32 %v17387_v33, %v14867_v47  ;;  %v17419_v33 = vld [vmem:[#allocation3 + $0x1494] sm:$0xf]  ;;  %v15219_v37 = vld [vmem:[#allocation3 + $0x1658] sm:$0xf0] }
 0x36d   : > { %8252 = vmatpush.bf16.msrb.mxu0 %v14950_v9  ;;  %v17401_v9 = vld [vmem:[#allocation3 + $0x1404] sm:$0xf]  ;;  %v19893_v52 = vadd.f32 %v8005_v14, %v7992_v2  ;;  %v15611_v2 = vld [vmem:[#allocation3 + $0x1968] sm:$0xf0]  ;;  %v17571_v17 = vld [vmem:[#allocation3 + $0x1954] sm:$0xf] }
 0x36e   : > { %8238 = vmatpush.bf16.msrb.mxu3 %v14886_v10  ;;  %v14934_v10 = vor.u32 %v17403_v15, %v14931_v63  ;;  %v14926_v54 = vor.u32 %v17401_v9, %v14923_v29  ;;  %v17461_v15 = vld [vmem:[#allocation3 + $0x15e4] sm:$0xf]  ;;  %v15163_v63 = vld [vmem:[#allocation3 + $0x15e8] sm:$0xf0]  ;;  %v15299_v9 = vld [vmem:[#allocation3 + $0x16f8] sm:$0xf0] }
 0x36f   : > { %8336 = vmatpush.bf16.msrb.mxu2 %v15334_v4  ;;  %v15318_v4 = vor.u32 %v17499_v18, %v15315_v27  ;;  %v17477_v14 = vld [vmem:[#allocation3 + $0x1664] sm:$0xf]  ;;  %v15227_v18 = vld [vmem:[#allocation3 + $0x1668] sm:$0xf0]  ;;  %v15155_v29 = vld [vmem:[#allocation3 + $0x15d8] sm:$0xf0] }
 0x370   : > { %8265 = vmatpush.bf16.msrb.mxu1 %v15022_v6  ;;  %v15619_v6 = vld [vmem:[#allocation3 + $0x1978] sm:$0xf0]  ;;  %v17573_v27 = vld [vmem:[#allocation3 + $0x1964] sm:$0xf]  ;;  %v20802_v40 = vld [vmem:[#allocation62_spill] sm:$0xff] }
 0x371   : > { %8253 = vmatpush.bf16.msrb.mxu0 %v14942_v32  ;;  %v14862_v32 = vor.u32 %v17385_v39, %v14859_v61  ;;  %v15622_v47 = vor.u32 %v17575_v51, %v15619_v6  ;;  %v14987_v39 = vld [vmem:[#allocation3 + $0x1488] sm:$0xf0]  ;;  %v15166_v61 = vor.u32 %v17461_v15, %v15163_v63  ;;  %v20803_v51 = vld [vmem:[#allocation63_spill] sm:$0xff]  ;;  %v17569_v63 = vld [vmem:[#allocation3 + $0x1944] sm:$0xf] }
 0x372   : > { %8239 = vmatpush.bf16.msrb.mxu3 %v14878_v25  ;;  %v15006_v25 = vor.u32 %v17421_v26, %v15003_v11  ;;  %v15230_v26 = vor.u32 %v17477_v14, %v15227_v18  ;;  %v15614_v11 = vor.u32 %v17573_v27, %v15611_v2  ;;  %v15211_v15 = vld [vmem:[#allocation3 + $0x1648] sm:$0xf0]  ;;  %v19898_v18 = vpop.f32.mrf.mxu3  ;;  %v19900_v27 = vpop.f32.mrf.mxu0 }
 0x373   : > { %8337 = vmatpush.bf16.msrb.mxu2 %v15326_v31  ;;  %v15238_v31 = vor.u32 %v17479_v1, %v15235_v16  ;;  %v15603_v1 = vld [vmem:[#allocation3 + $0x1958] sm:$0xf0]  ;;  %v15595_v14 = vld [vmem:[#allocation3 + $0x1948] sm:$0xf0]  ;;  %20805 = vst [vmem:[#allocation70_spill] sm:$0xff] %v19900_v27 }
 0x374   : > { %8266 = vmatpush.bf16.msrb.mxu1 %v15014_v20  ;;  %v14998_v20 = vor.u32 %v17419_v33, %v14995_v44  ;;  %v15291_v33 = vld [vmem:[#allocation3 + $0x16e8] sm:$0xf0]  ;;  %v15222_v44 = vor.u32 %v17475_v43, %v15219_v37  ;;  %v15203_v43 = vld [vmem:[#allocation3 + $0x1638] sm:$0xf0] }
 0x375   : > { %8254 = vmatpush.bf16.msrb.mxu0 %v14934_v10  ;;  %v17495_v10 = vld [vmem:[#allocation3 + $0x16f4] sm:$0xf]  ;;  %v15587_v37 = vld [vmem:[#allocation3 + $0x1938] sm:$0xf0] }
 0x376   : > { %8240 = vmatpush.bf16.msrb.mxu3 %v14870_v19  ;;  %v17417_v19 = vld [vmem:[#allocation3 + $0x1484] sm:$0xf]  ;;  %v15302_v6 = vor.u32 %v17495_v10, %v15299_v9  ;;  %v15598_v9 = vor.u32 %v17569_v63, %v15595_v14 }
 0x377   : > { %8338 = vmatpush.bf16.msrb.mxu2 %v15318_v4  ;;  %v17459_v4 = vld [vmem:[#allocation3 + $0x15d4] sm:$0xf]  ;;  %v14990_v16 = vor.u32 %v17417_v19, %v14987_v39  ;;  %v15283_v39 = vld [vmem:[#allocation3 + $0x16d8] sm:$0xf0] }
 0x378   : > { %8267 = vmatpush.bf16.msrb.mxu1 %v15006_v25  ;;  %v20804_v25 = vld [vmem:[#allocation64_spill] sm:$0xff]  ;;  %v17491_v19 = vld [vmem:[#allocation3 + $0x16d4] sm:$0xf] }
 0x379   : > { %8255 = vmatpush.bf16.msrb.mxu0 %v14926_v54  ;;  %v17493_v54 = vld [vmem:[#allocation3 + $0x16e4] sm:$0xf] }
 0x37a   : > { %8241 = vmatpush.bf16.msrb.mxu3 %v14862_v32  ;;  %v15158_v32 = vor.u32 %v17459_v4, %v15155_v29  ;;  %v15294_v2 = vor.u32 %v17493_v54, %v15291_v33  ;;  %v17471_v4 = vld [vmem:[#allocation3 + $0x1634] sm:$0xf]  ;;  %v20807_v29 = vld [vmem:[#allocation65_spill] sm:$0xff] }
 0x37b   : > { %8339 = vmatpush.bf16.msrb.mxu2 %v15310_v36  ;;  %v15606_v36 = vor.u32 %v17571_v17, %v15603_v1  ;;  %v19905_v17 = vpop.f32.mrf.mxu2  ;;  %v15286_v1 = vor.u32 %v17491_v19, %v15283_v39  ;;  %v17453_v54 = vld [vmem:[#allocation3 + $0x15a4] sm:$0xf]  ;;  %v15131_v33 = vld [vmem:[#allocation3 + $0x15a8] sm:$0xf0]  ;;  %v15267_v19 = vld [vmem:[#allocation3 + $0x16b8] sm:$0xf0] }
 0x37c   : > { %8268 = vmatpush.bf16.msrb.mxu1 %v14998_v20  ;;  %8256 = vmatmul.bf16.vlgmr.msrb.gmra.mxu0 %v20803_v51  ;;  %20808 = vst [vmem:[#allocation72_spill] sm:$0xff] %v19905_v17  ;;  %v17489_v51 = vld [vmem:[#allocation3 + $0x16c4] sm:$0xf] }
 0x37d   : > { %8304 = vmatpush.bf16.msra.mxu0 %v15238_v31  ;;  %8242 = vmatmul.bf16.vlgmr.msrb.gmra.mxu3 %v20802_v40  ;;  %v15147_v31 = vld [vmem:[#allocation3 + $0x15c8] sm:$0xf0]  ;;  %v17567_v40 = vld [vmem:[#allocation3 + $0x1934] sm:$0xf]  ;;  %v17701_v17 = vld [vmem:[#allocation3 + $0x1d64] sm:$0xf] }
 0x37e   : > { %8290 = vmatpush.bf16.msra.mxu3 %v15174_v57  ;;  %8340 = vmatmul.bf16.vlgmr.msrb.gmra.mxu2 %v20804_v25  ;;  %v17457_v57 = vld [vmem:[#allocation3 + $0x15c4] sm:$0xf]  ;;  %v15206_v25 = vor.u32 %v17471_v4, %v15203_v43  ;;  %v17467_v4 = vld [vmem:[#allocation3 + $0x1614] sm:$0xf]  ;;  %v15187_v43 = vld [vmem:[#allocation3 + $0x1618] sm:$0xf0] }
 0x37f   : > { %8388 = vmatpush.bf16.msra.mxu2 %v15622_v47  ;;  %v17473_v47 = vld [vmem:[#allocation3 + $0x1644] sm:$0xf]  ;;  %v15150_v20 = vor.u32 %v17457_v57, %v15147_v31  ;;  %v15579_v31 = vld [vmem:[#allocation3 + $0x1928] sm:$0xf0] }
 0x380   : > { %8269 = vmatpush.bf16.msrb.mxu1 %v14990_v16  ;;  %v15214_v10 = vor.u32 %v17473_v47, %v15211_v15  ;;  %v17565_v57 = vld [vmem:[#allocation3 + $0x1924] sm:$0xf]  ;;  %v8019_v47 = vpop.f32.mrf.mxu3  ;;  %v8033_v15 = vpop.f32.mrf.mxu0 }
 0x381   : > { %8305 = vmatpush.bf16.msra.mxu0 %v15230_v26  ;;  %v17455_v26 = vld [vmem:[#allocation3 + $0x15b4] sm:$0xf]  ;;  %v8020_v14 = vadd.f32 %v8019_v47, %v19893_v52  ;;  %v17561_v47 = vld [vmem:[#allocation3 + $0x1904] sm:$0xf] }
 0x382   : > { %8291 = vmatpush.bf16.msra.mxu3 %v15166_v61  ;;  %v19902_v61 = vpop.f32.mrf.mxu1 }
 0x383   : > { %8389 = vmatpush.bf16.msra.mxu2 %v15614_v11  ;;  %20806 = vst [vmem:[#allocation71_spill] sm:$0xff] %v19902_v61  ;;  %v15139_v11 = vld [vmem:[#allocation3 + $0x15b8] sm:$0xf0]  ;;  %8270 = vmatmul.bf16.vlgmr.msrb.gmra.mxu1 %v20807_v29  ;;  %v8034_v29 = vadd.f32 %v8033_v15, %v8020_v14  ;;  %v15563_v15 = vld [vmem:[#allocation3 + $0x1908] sm:$0xf0] }
 0x384   : > { %8318 = vmatpush.bf16.msra.mxu1 %v15302_v6  ;;  %v15142_v16 = vor.u32 %v17455_v26, %v15139_v11  ;;  %v15275_v6 = vld [vmem:[#allocation3 + $0x16c8] sm:$0xf0]  ;;  %v17451_v26 = vld [vmem:[#allocation3 + $0x1594] sm:$0xf]  ;;  %v15123_v11 = vld [vmem:[#allocation3 + $0x1598] sm:$0xf0] }
 0x385   : > { %8306 = vmatpush.bf16.msra.mxu0 %v15222_v44  ;;  %v17469_v44 = vld [vmem:[#allocation3 + $0x1624] sm:$0xf]  ;;  %v15278_v63 = vor.u32 %v17489_v51, %v15275_v6  ;;  %v15126_v51 = vor.u32 %v17451_v26, %v15123_v11  ;;  %v15427_v14 = vld [vmem:[#allocation3 + $0x17f8] sm:$0xf0]  ;;  %v17639_v26 = vld [vmem:[#allocation3 + $0x1b74] sm:$0xf]  ;;  %v15566_v11 = vor.u32 %v17561_v47, %v15563_v15 }
 0x386   : > { %8292 = vmatpush.bf16.msra.mxu3 %v15158_v32  ;;  %v15590_v32 = vor.u32 %v17567_v40, %v15587_v37  ;;  %v17563_v40 = vld [vmem:[#allocation3 + $0x1914] sm:$0xf]  ;;  %v15571_v37 = vld [vmem:[#allocation3 + $0x1918] sm:$0xf0]  ;;  %v17449_v6 = vld [vmem:[#allocation3 + $0x1584] sm:$0xf] }
 0x387   : > { %8390 = vmatpush.bf16.msra.mxu2 %v15606_v36  ;;  %v15195_v36 = vld [vmem:[#allocation3 + $0x1628] sm:$0xf0]  ;;  %v15555_v47 = vld [vmem:[#allocation3 + $0x18f8] sm:$0xf0] }
 0x388   : > { %8319 = vmatpush.bf16.msra.mxu1 %v15294_v2  ;;  %v15134_v2 = vor.u32 %v17453_v54, %v15131_v33  ;;  %v15198_v39 = vor.u32 %v17469_v44, %v15195_v36  ;;  %v17485_v54 = vld [vmem:[#allocation3 + $0x16a4] sm:$0xf]  ;;  %v15574_v33 = vor.u32 %v17563_v40, %v15571_v37  ;;  %v15115_v44 = vld [vmem:[#allocation3 + $0x1588] sm:$0xf0] }
 0x389   : > { %8307 = vmatpush.bf16.msra.mxu0 %v15214_v10  ;;  %v15582_v10 = vor.u32 %v17565_v57, %v15579_v31  ;;  %v17465_v36 = vld [vmem:[#allocation3 + $0x1604] sm:$0xf]  ;;  %v15179_v57 = vld [vmem:[#allocation3 + $0x1608] sm:$0xf0] }
 0x38a   : > { %8293 = vmatpush.bf16.msra.mxu3 %v15150_v20  ;;  %v17487_v20 = vld [vmem:[#allocation3 + $0x16b4] sm:$0xf]  ;;  %v17525_v37 = vld [vmem:[#allocation3 + $0x17e4] sm:$0xf]  ;;  %v16123_v61 = vld [vmem:[#allocation3 + $0x1d68] sm:$0xf0] }
 0x38b   : > { %8391 = vmatpush.bf16.msra.mxu2 %v15598_v9  ;;  %v8047_v9 = vpop.f32.mrf.mxu1  ;;  %v20809_v15 = vld [vmem:[#allocation66_spill] sm:$0xff] }
 0x38c   : > { %8320 = vmatpush.bf16.msra.mxu1 %v15286_v1  ;;  %v8061_v1 = vpop.f32.mrf.mxu2  ;;  %v8048_v52 = vadd.f32 %v8047_v9, %v8034_v29  ;;  %v15118_v9 = vor.u32 %v17449_v6, %v15115_v44  ;;  %v15251_v29 = vld [vmem:[#allocation3 + $0x1698] sm:$0xf0] }
 0x38d   : > { %8308 = vmatpush.bf16.msra.mxu0 %v15206_v25  ;;  %v15259_v25 = vld [vmem:[#allocation3 + $0x16a8] sm:$0xf0] }
 0x38e   : > { %8294 = vmatpush.bf16.msra.mxu3 %v15142_v16  ;;  %v15270_v16 = vor.u32 %v17487_v20, %v15267_v19  ;;  %v19908_v31 = vadd.f32 %v8061_v1, %v8048_v52  ;;  %v15491_v20 = vld [vmem:[#allocation3 + $0x1878] sm:$0xf0]  ;;  %v15262_v19 = vor.u32 %v17485_v54, %v15259_v25  ;;  %v17541_v52 = vld [vmem:[#allocation3 + $0x1864] sm:$0xf] }
 0x38f   : > { %8392 = vmatpush.bf16.msra.mxu2 %v15590_v32  ;;  %v15190_v32 = vor.u32 %v17467_v4, %v15187_v43  ;;  %v17483_v4 = vld [vmem:[#allocation3 + $0x1694] sm:$0xf]  ;;  %v17637_v54 = vld [vmem:[#allocation3 + $0x1b64] sm:$0xf]  ;;  %v15486_v44 = vor.u32 %v17541_v52, %v15483_v8  ;;  %v15467_v52 = vld [vmem:[#allocation3 + $0x1848] sm:$0xf0] }
 0x390   : > { %8321 = vmatpush.bf16.msra.mxu1 %v15278_v63  ;;  %v17527_v63 = vld [vmem:[#allocation3 + $0x17f4] sm:$0xf]  ;;  %v15254_v6 = vor.u32 %v17483_v4, %v15251_v29  ;;  %v17481_v25 = vld [vmem:[#allocation3 + $0x1684] sm:$0xf] }
 0x391   : > { %8309 = vmatpush.bf16.msra.mxu0 %v15198_v39  ;;  %v15875_v39 = vld [vmem:[#allocation3 + $0x1b78] sm:$0xf0]  ;;  %v15430_v43 = vor.u32 %v17527_v63, %v15427_v14  ;;  %v17521_v29 = vld [vmem:[#allocation3 + $0x17c4] sm:$0xf] }
 0x392   : > { %8295 = vmatpush.bf16.msra.mxu3 %v15134_v2  ;;  %v17543_v2 = vld [vmem:[#allocation3 + $0x1874] sm:$0xf]  ;;  %v15878_v1 = vor.u32 %v17639_v26, %v15875_v39  ;;  %v15411_v14 = vld [vmem:[#allocation3 + $0x17d8] sm:$0xf0] }
 0x393   : > { %8393 = vmatpush.bf16.msra.mxu2 %v15582_v10  ;;  %v15182_v10 = vor.u32 %v17465_v36, %v15179_v57  ;;  %v15494_v40 = vor.u32 %v17543_v2, %v15491_v20  ;;  %v17523_v36 = vld [vmem:[#allocation3 + $0x17d4] sm:$0xf]  ;;  %v15475_v20 = vld [vmem:[#allocation3 + $0x1858] sm:$0xf0] }
 0x394   : > { %8322 = vmatpush.bf16.msra.mxu1 %v15270_v16  ;;  %v15419_v16 = vld [vmem:[#allocation3 + $0x17e8] sm:$0xf0]  ;;  %v17559_v57 = vld [vmem:[#allocation3 + $0x18f4] sm:$0xf]  ;;  %v15414_v8 = vor.u32 %v17523_v36, %v15411_v14 }
 0x395   : > { %8310 = vmatpush.bf16.msra.mxu0 %v15190_v32  ;;  %v15243_v32 = vld [vmem:[#allocation3 + $0x1688] sm:$0xf0]  ;;  %v17539_v2 = vld [vmem:[#allocation3 + $0x1854] sm:$0xf] }
 0x396   : > { %8296 = vmatpush.bf16.msra.mxu3 %v15126_v51  ;;  %v15867_v51 = vld [vmem:[#allocation3 + $0x1b68] sm:$0xf0]  ;;  %v15246_v26 = vor.u32 %v17481_v25, %v15243_v32  ;;  %v20810_v39 = vld [vmem:[#allocation67_spill] sm:$0xff]  ;;  %v15478_v4 = vor.u32 %v17539_v2, %v15475_v20 }
 0x397   : > { %8394 = vmatpush.bf16.msra.mxu2 %v15574_v33  ;;  %v15422_v33 = vor.u32 %v17525_v37, %v15419_v16  ;;  %v15870_v63 = vor.u32 %v17637_v54, %v15867_v51  ;;  %v17537_v16 = vld [vmem:[#allocation3 + $0x1844] sm:$0xf]  ;;  %v19913_v54 = vpop.f32.mrf.mxu3  ;;  %v19915_v51 = vpop.f32.mrf.mxu0  ;;  %v15851_v25 = vld [vmem:[#allocation3 + $0x1b48] sm:$0xf0]  ;;  %v15395_v2 = vld [vmem:[#allocation3 + $0x17b8] sm:$0xf0] }
 0x398   : > { %8323 = vmatpush.bf16.msra.mxu1 %v15262_v19  ;;  %v17635_v19 = vld [vmem:[#allocation3 + $0x1b54] sm:$0xf]  ;;  %20812 = vst [vmem:[#allocation77_spill] sm:$0xff] %v19913_v54  ;;  %v15470_v36 = vor.u32 %v17537_v16, %v15467_v52  ;;  %v15451_v16 = vld [vmem:[#allocation3 + $0x1828] sm:$0xf0] }
 0x399   : > { %8311 = vmatpush.bf16.msra.mxu0 %v15182_v10  ;;  %v15558_v10 = vor.u32 %v17559_v57, %v15555_v47  ;;  %20813 = vst [vmem:[#allocation26_spill] sm:$0xff] %v19915_v51  ;;  %v17519_v57 = vld [vmem:[#allocation3 + $0x17b4] sm:$0xf]  ;;  %v15827_v54 = vld [vmem:[#allocation3 + $0x1b18] sm:$0xf0] }
 0x39a   : > { %8297 = vmatpush.bf16.msra.mxu3 %v15118_v9  ;;  %v15859_v9 = vld [vmem:[#allocation3 + $0x1b58] sm:$0xf0]  ;;  %v17555_v47 = vld [vmem:[#allocation3 + $0x18d4] sm:$0xf] }
 0x39b   : > { %8395 = vmatpush.bf16.msra.mxu2 %v15566_v11  ;;  %v20811_v11 = vld [vmem:[#allocation68_spill] sm:$0xff]  ;;  %v15862_v37 = vor.u32 %v17635_v19, %v15859_v9  ;;  %v17535_v20 = vld [vmem:[#allocation3 + $0x1834] sm:$0xf]  ;;  %v19920_v9 = vpop.f32.mrf.mxu2 }
 0x39c   : > { %8324 = vmatpush.bf16.msra.mxu1 %v15254_v6  ;;  %8312 = vmatmul.bf16.vlgmr.msra.gmra.mxu0 %v20810_v39  ;;  %v17633_v6 = vld [vmem:[#allocation3 + $0x1b44] sm:$0xf]  ;;  %v15459_v19 = vld [vmem:[#allocation3 + $0x1838] sm:$0xf0]  ;;  %20816 = vst [vmem:[#allocation29_spill] sm:$0xff] %v19920_v9 }
 0x39d   : > { %8360 = vmatpush.bf16.msrb.mxu0 %v15494_v40  ;;  %8298 = vmatmul.bf16.vlgmr.msra.gmra.mxu3 %v20809_v15  ;;  %v15547_v40 = vld [vmem:[#allocation3 + $0x18e8] sm:$0xf0]  ;;  %v15539_v15 = vld [vmem:[#allocation3 + $0x18d8] sm:$0xf0]  ;;  %v15854_v14 = vor.u32 %v17633_v6, %v15851_v25  ;;  %v17629_v25 = vld [vmem:[#allocation3 + $0x1b24] sm:$0xf] }
 0x39e   : > { %8346 = vmatpush.bf16.msrb.mxu3 %v15430_v43  ;;  %8396 = vmatmul.bf16.vlgmr.msra.gmra.mxu2 %v20811_v11  ;;  %v17557_v43 = vld [vmem:[#allocation3 + $0x18e4] sm:$0xf]  ;;  %v15843_v39 = vld [vmem:[#allocation3 + $0x1b38] sm:$0xf0]  ;;  %v15398_v11 = vor.u32 %v17519_v57, %v15395_v2  ;;  %v17627_v51 = vld [vmem:[#allocation3 + $0x1b14] sm:$0xf] }
 0x39f   : > { %8444 = vmatpush.bf16.msrb.mxu2 %v15878_v1  ;;  %v15403_v1 = vld [vmem:[#allocation3 + $0x17c8] sm:$0xf0]  ;;  %v15550_v32 = vor.u32 %v17557_v43, %v15547_v40  ;;  %v8089_v6 = vpop.f32.mrf.mxu0 }
 0x3a0   : > { %8325 = vmatpush.bf16.msra.mxu1 %v15246_v26  ;;  %v17631_v26 = vld [vmem:[#allocation3 + $0x1b34] sm:$0xf]  ;;  %v15531_v43 = vld [vmem:[#allocation3 + $0x18c8] sm:$0xf0]  ;;  %v8075_v52 = vpop.f32.mrf.mxu3 }
 0x3a1   : > { %8361 = vmatpush.bf16.msrb.mxu0 %v15486_v44  ;;  %v15406_v44 = vor.u32 %v17521_v29, %v15403_v1  ;;  %v17553_v29 = vld [vmem:[#allocation3 + $0x18c4] sm:$0xf]  ;;  %v15846_v40 = vor.u32 %v17631_v26, %v15843_v39  ;;  %v8076_v9 = vadd.f32 %v8075_v52, %v19908_v31  ;;  %v17531_v26 = vld [vmem:[#allocation3 + $0x1814] sm:$0xf]  ;;  %v15443_v39 = vld [vmem:[#allocation3 + $0x1818] sm:$0xf0] }
 0x3a2   : > { %8347 = vmatpush.bf16.msrb.mxu3 %v15422_v33  ;;  %v19917_v33 = vpop.f32.mrf.mxu1  ;;  %v17533_v1 = vld [vmem:[#allocation3 + $0x1824] sm:$0xf] }
 0x3a3   : > { %8445 = vmatpush.bf16.msrb.mxu2 %v15870_v63  ;;  %20814 = vst [vmem:[#allocation27_spill] sm:$0xff] %v19917_v33  ;;  %v20815_v63 = vld [vmem:[#allocation69_spill] sm:$0xff]  ;;  %v8090_v2 = vadd.f32 %v8089_v6, %v8076_v9  ;;  %v8117_v33 = vpop.f32.mrf.mxu2 }
 0x3a4   : > { %8374 = vmatpush.bf16.msrb.mxu1 %v15558_v10  ;;  %v15542_v10 = vor.u32 %v17555_v47, %v15539_v15  ;;  %v17515_v47 = vld [vmem:[#allocation3 + $0x1794] sm:$0xf]  ;;  %v17625_v52 = vld [vmem:[#allocation3 + $0x1b04] sm:$0xf]  ;;  %v15819_v6 = vld [vmem:[#allocation3 + $0x1b08] sm:$0xf0] }
 0x3a5   : > { %8362 = vmatpush.bf16.msrb.mxu0 %v15478_v4  ;;  %8326 = vmatmul.bf16.vlgmr.msra.gmra.mxu1 %v20815_v63  ;;  %v17517_v4 = vld [vmem:[#allocation3 + $0x17a4] sm:$0xf]  ;;  %v15835_v63 = vld [vmem:[#allocation3 + $0x1b28] sm:$0xf0]  ;;  %v17551_v15 = vld [vmem:[#allocation3 + $0x18b4] sm:$0xf] }
 0x3a6   : > { %8348 = vmatpush.bf16.msrb.mxu3 %v15414_v8  ;;  %v15462_v8 = vor.u32 %v17535_v20, %v15459_v19  ;;  %v15838_v20 = vor.u32 %v17629_v25, %v15835_v63  ;;  %v15379_v19 = vld [vmem:[#allocation3 + $0x1798] sm:$0xf0]  ;;  %v17591_v25 = vld [vmem:[#allocation3 + $0x19f4] sm:$0xf] }
 0x3a7   : > { %8446 = vmatpush.bf16.msrb.mxu2 %v15862_v37  ;;  %v15387_v37 = vld [vmem:[#allocation3 + $0x17a8] sm:$0xf0]  ;;  %v15683_v63 = vld [vmem:[#allocation3 + $0x19f8] sm:$0xf0] }
 0x3a8   : > { %8375 = vmatpush.bf16.msrb.mxu1 %v15550_v32  ;;  %v15534_v32 = vor.u32 %v17553_v29, %v15531_v43  ;;  %v15446_v29 = vor.u32 %v17531_v26, %v15443_v39  ;;  %v17529_v43 = vld [vmem:[#allocation3 + $0x1804] sm:$0xf]  ;;  %v15675_v39 = vld [vmem:[#allocation3 + $0x19e8] sm:$0xf0] }
 0x3a9   : > { %8363 = vmatpush.bf16.msrb.mxu0 %v15470_v36  ;;  %v15454_v36 = vor.u32 %v17533_v1, %v15451_v16  ;;  %v15830_v1 = vor.u32 %v17627_v51, %v15827_v54  ;;  %v15435_v16 = vld [vmem:[#allocation3 + $0x1808] sm:$0xf0]  ;;  %v15686_v54 = vor.u32 %v17591_v25, %v15683_v63  ;;  %v17589_v26 = vld [vmem:[#allocation3 + $0x19e4] sm:$0xf]  ;;  %v15731_v25 = vld [vmem:[#allocation3 + $0x1a58] sm:$0xf0] }
 0x3aa   : > { %8349 = vmatpush.bf16.msrb.mxu3 %v15406_v44  ;;  %v15390_v44 = vor.u32 %v17517_v4, %v15387_v37  ;;  %v8103_v57 = vpop.f32.mrf.mxu1  ;;  %v15382_v4 = vor.u32 %v17515_v47, %v15379_v19  ;;  %v17549_v37 = vld [vmem:[#allocation3 + $0x18a4] sm:$0xf]  ;;  %v17699_v63 = vld [vmem:[#allocation3 + $0x1d54] sm:$0xf] }
 0x3ab   : > { %8447 = vmatpush.bf16.msrb.mxu2 %v15854_v14  ;;  %v15523_v14 = vld [vmem:[#allocation3 + $0x18b8] sm:$0xf0]  ;;  %v8104_v31 = vadd.f32 %v8103_v57, %v8090_v2  ;;  %v17547_v2 = vld [vmem:[#allocation3 + $0x1894] sm:$0xf] }
 0x3ac   : > { %8376 = vmatpush.bf16.msrb.mxu1 %v15542_v10  ;;  %v15526_v10 = vor.u32 %v17551_v15, %v15523_v14  ;;  %v15747_v57 = vld [vmem:[#allocation3 + $0x1a78] sm:$0xf0]  ;;  %v17703_v15 = vld [vmem:[#allocation3 + $0x1d74] sm:$0xf]  ;;  %v15438_v14 = vor.u32 %v17529_v43, %v15435_v16 }
 0x3ad   : > { %8364 = vmatpush.bf16.msrb.mxu0 %v15462_v8  ;;  %v15371_v8 = vld [vmem:[#allocation3 + $0x1788] sm:$0xf0]  ;;  %v19923_v9 = vadd.f32 %v8117_v33, %v8104_v31  ;;  %v15822_v33 = vor.u32 %v17625_v52, %v15819_v6  ;;  %v17605_v31 = vld [vmem:[#allocation3 + $0x1a64] sm:$0xf]  ;;  %v15811_v43 = vld [vmem:[#allocation3 + $0x1af8] sm:$0xf0] }
 0x3ae   : > { %8350 = vmatpush.bf16.msrb.mxu3 %v15398_v11  ;;  %v17513_v11 = vld [vmem:[#allocation3 + $0x1784] sm:$0xf]  ;;  %v15667_v16 = vld [vmem:[#allocation3 + $0x19d8] sm:$0xf0]  ;;  %v17603_v52 = vld [vmem:[#allocation3 + $0x1a54] sm:$0xf] }
 0x3af   : > { %8448 = vmatpush.bf16.msrb.mxu2 %v15846_v40  ;;  %v15515_v40 = vld [vmem:[#allocation3 + $0x18a8] sm:$0xf0]  ;;  %v15374_v47 = vor.u32 %v17513_v11, %v15371_v8  ;;  %v15678_v8 = vor.u32 %v17589_v26, %v15675_v39  ;;  %v19928_v26 = vpop.f32.mrf.mxu3 }
 0x3b0   : > { %8377 = vmatpush.bf16.msrb.mxu1 %v15534_v32  ;;  %v17607_v32 = vld [vmem:[#allocation3 + $0x1a74] sm:$0xf]  ;;  %v15499_v11 = vld [vmem:[#allocation3 + $0x1888] sm:$0xf0] }
 0x3b1   : > { %8365 = vmatpush.bf16.msrb.mxu0 %v15454_v36  ;;  %v15518_v36 = vor.u32 %v17549_v37, %v15515_v40  ;;  %v15750_v51 = vor.u32 %v17607_v32, %v15747_v57  ;;  %v16126_v40 = vor.u32 %v17701_v17, %v16123_v61  ;;  %v20817_v6 = vld [vmem:[#allocation73_spill] sm:$0xff]  ;;  %v16115_v32 = vld [vmem:[#allocation3 + $0x1d58] sm:$0xf0]  ;;  %v15734_v61 = vor.u32 %v17603_v52, %v15731_v25 }
 0x3b2   : > { %8351 = vmatpush.bf16.msrb.mxu3 %v15390_v44  ;;  %v16131_v44 = vld [vmem:[#allocation3 + $0x1d78] sm:$0xf0]  ;;  %v16118_v17 = vor.u32 %v17699_v63, %v16115_v32  ;;  %v17617_v63 = vld [vmem:[#allocation3 + $0x1ac4] sm:$0xf]  ;;  %v15787_v32 = vld [vmem:[#allocation3 + $0x1ac8] sm:$0xf0] }
 0x3b3   : > { %8449 = vmatpush.bf16.msrb.mxu2 %v15838_v20  ;;  %v15507_v20 = vld [vmem:[#allocation3 + $0x1898] sm:$0xf0]  ;;  %v16134_v19 = vor.u32 %v17703_v15, %v16131_v44  ;;  %v20818_v15 = vld [vmem:[#allocation74_spill] sm:$0xff] }
 0x3b4   : > { %8378 = vmatpush.bf16.msrb.mxu1 %v15526_v10  ;;  %v15739_v10 = vld [vmem:[#allocation3 + $0x1a68] sm:$0xf0]  ;;  %v15510_v27 = vor.u32 %v17547_v2, %v15507_v20  ;;  %v17585_v20 = vld [vmem:[#allocation3 + $0x19c4] sm:$0xf]  ;;  %v16099_v52 = vld [vmem:[#allocation3 + $0x1d38] sm:$0xf0] }
 0x3b5   : > { %8366 = vmatpush.bf16.msrb.mxu0 %v15446_v29  ;;  %v17623_v29 = vld [vmem:[#allocation3 + $0x1af4] sm:$0xf]  ;;  %v15742_v37 = vor.u32 %v17605_v31, %v15739_v10  ;;  %v15803_v2 = vld [vmem:[#allocation3 + $0x1ae8] sm:$0xf0] }
 0x3b6   : > { %8352 = vmatpush.bf16.msrb.mxu3 %v15382_v4  ;;  %v17545_v4 = vld [vmem:[#allocation3 + $0x1884] sm:$0xf]  ;;  %v15814_v44 = vor.u32 %v17623_v29, %v15811_v43  ;;  %v17619_v10 = vld [vmem:[#allocation3 + $0x1ad4] sm:$0xf]  ;;  %v15651_v43 = vld [vmem:[#allocation3 + $0x19b8] sm:$0xf0] }
 0x3b7   : > { %8450 = vmatpush.bf16.msrb.mxu2 %v15830_v1  ;;  %v17587_v1 = vld [vmem:[#allocation3 + $0x19d4] sm:$0xf]  ;;  %v15502_v57 = vor.u32 %v17545_v4, %v15499_v11  ;;  %v15795_v4 = vld [vmem:[#allocation3 + $0x1ad8] sm:$0xf0] }
 0x3b8   : > { %8379 = vmatpush.bf16.msrb.mxu1 %v15518_v36  ;;  %v20819_v36 = vld [vmem:[#allocation75_spill] sm:$0xff] }
 0x3b9   : > { %8367 = vmatpush.bf16.msrb.mxu0 %v15438_v14  ;;  %v17621_v14 = vld [vmem:[#allocation3 + $0x1ae4] sm:$0xf]  ;;  %v17583_v29 = vld [vmem:[#allocation3 + $0x19b4] sm:$0xf] }
 0x3ba   : > { %8353 = vmatpush.bf16.msrb.mxu3 %v15374_v47  ;;  %v15670_v47 = vor.u32 %v17587_v1, %v15667_v16  ;;  %v15806_v39 = vor.u32 %v17621_v14, %v15803_v2  ;;  %v15715_v1 = vld [vmem:[#allocation3 + $0x1a38] sm:$0xf0]  ;;  %v17695_v16 = vld [vmem:[#allocation3 + $0x1d34] sm:$0xf]  ;;  %v15654_v25 = vor.u32 %v17583_v29, %v15651_v43  ;;  %v15707_v14 = vld [vmem:[#allocation3 + $0x1a28] sm:$0xf0] }
 0x3bb   : > { %8451 = vmatpush.bf16.msrb.mxu2 %v15822_v33  ;;  %v15659_v33 = vld [vmem:[#allocation3 + $0x19c8] sm:$0xf0]  ;;  %v17693_v2 = vld [vmem:[#allocation3 + $0x1d24] sm:$0xf]  ;;  %v16083_v29 = vld [vmem:[#allocation3 + $0x1d18] sm:$0xf0] }
 0x3bc   : > { %8380 = vmatpush.bf16.msrb.mxu1 %v15510_v27  ;;  %8368 = vmatmul.bf16.vlgmr.msrb.gmra.mxu0 %v20818_v15  ;;  %v17601_v27 = vld [vmem:[#allocation3 + $0x1a44] sm:$0xf]  ;;  %v15662_v31 = vor.u32 %v17585_v20, %v15659_v33  ;;  %v16102_v15 = vor.u32 %v17695_v16, %v16099_v52  ;;  %v15790_v20 = vor.u32 %v17617_v63, %v15787_v32  ;;  %v15691_v63 = vld [vmem:[#allocation3 + $0x1a08] sm:$0xf0]  ;;  %v20821_v32 = vperm.slane %v19809_v59, 1 }
 0x3bd   : > { %8416 = vmatpush.bf16.msra.mxu0 %v15750_v51  ;;  %8354 = vmatmul.bf16.vlgmr.msrb.gmra.mxu3 %v20817_v6  ;;  %v17697_v51 = vld [vmem:[#allocation3 + $0x1d44] sm:$0xf]  ;;  %v15798_v6 = vor.u32 %v17619_v10, %v15795_v4  ;;  %v15635_v10 = vld [vmem:[#allocation3 + $0x1998] sm:$0xf0]  ;;  %v17595_v4 = vld [vmem:[#allocation3 + $0x1a14] sm:$0xf] }
 0x3be   : > { %8402 = vmatpush.bf16.msra.mxu3 %v15686_v54  ;;  %8452 = vmatmul.bf16.vlgmr.msrb.gmra.mxu2 %v20819_v36  ;;  %v15723_v54 = vld [vmem:[#allocation3 + $0x1a48] sm:$0xf0]  ;;  %v15763_v59 = vld [vmem:[#allocation3 + $0x1a98] sm:$0xf0] }
 0x3bf   : > { %8500 = vmatpush.bf16.msra.mxu2 %v16134_v19  ;;  %v16107_v19 = vld [vmem:[#allocation3 + $0x1d48] sm:$0xf0]  ;;  %v15726_v11 = vor.u32 %v17601_v27, %v15723_v54  ;;  %v17615_v54 = vld [vmem:[#allocation3 + $0x1ab4] sm:$0xf] }
 0x3c0   : > { %8381 = vmatpush.bf16.msrb.mxu1 %v15502_v57  ;;  %v15643_v36 = vld [vmem:[#allocation3 + $0x19a8] sm:$0xf0] }
 0x3c1   : > { %8417 = vmatpush.bf16.msra.mxu0 %v15742_v37  ;;  %v17599_v37 = vld [vmem:[#allocation3 + $0x1a34] sm:$0xf] }
 0x3c2   : > { %8403 = vmatpush.bf16.msra.mxu3 %v15678_v8  ;;  %v16110_v8 = vor.u32 %v17697_v51, %v16107_v19  ;;  %v15718_v57 = vor.u32 %v17599_v37, %v15715_v1  ;;  %v15779_v51 = vld [vmem:[#allocation3 + $0x1ab8] sm:$0xf0]  ;;  %v15771_v1 = vld [vmem:[#allocation3 + $0x1aa8] sm:$0xf0] }
 0x3c3   : > { %8501 = vmatpush.bf16.msra.mxu2 %v16126_v40  ;;  %v20820_v40 = vld [vmem:[#allocation76_spill] sm:$0xff]  ;;  %v15782_v43 = vor.u32 %v17615_v54, %v15779_v51 }
 0x3c4   : > { %8430 = vmatpush.bf16.msra.mxu1 %v15814_v44  ;;  %v17581_v44 = vld [vmem:[#allocation3 + $0x19a4] sm:$0xf] }
 0x3c5   : > { %8418 = vmatpush.bf16.msra.mxu0 %v15734_v61  ;;  %8382 = vmatmul.bf16.vlgmr.msrb.gmra.mxu1 %v20820_v40  ;;  %v16091_v61 = vld [vmem:[#allocation3 + $0x1d28] sm:$0xf0]  ;;  %v15646_v27 = vor.u32 %v17581_v44, %v15643_v36  ;;  %v17577_v40 = vld [vmem:[#allocation3 + $0x1984] sm:$0xf]  ;;  %v17655_v36 = vld [vmem:[#allocation3 + $0x1bf4] sm:$0xf] }
 0x3c6   : > { %8404 = vmatpush.bf16.msra.mxu3 %v15670_v47  ;;  %v17597_v47 = vld [vmem:[#allocation3 + $0x1a24] sm:$0xf]  ;;  %v16075_v44 = vld [vmem:[#allocation3 + $0x1d08] sm:$0xf0] }
 0x3c7   : > { %8502 = vmatpush.bf16.msra.mxu2 %v16118_v17  ;;  %v8131_v17 = vpop.f32.mrf.mxu3  ;;  %v15710_v19 = vor.u32 %v17597_v47, %v15707_v14  ;;  %v15939_v47 = vld [vmem:[#allocation3 + $0x1bf8] sm:$0xf0]  ;;  %v17671_v14 = vld [vmem:[#allocation3 + $0x1c74] sm:$0xf] }
 0x3c8   : > { %8431 = vmatpush.bf16.msra.mxu1 %v15806_v39  ;;  %v19932_v33 = vadd.f32 %v8131_v17, %v19923_v9  ;;  %v16094_v39 = vor.u32 %v17693_v2, %v16091_v61  ;;  %v17613_v9 = vld [vmem:[#allocation3 + $0x1aa4] sm:$0xf]  ;;  %v16003_v2 = vld [vmem:[#allocation3 + $0x1c78] sm:$0xf0] }
 0x3c9   : > { %8419 = vmatpush.bf16.msra.mxu0 %v15726_v11  ;;  %v15699_v11 = vld [vmem:[#allocation3 + $0x1a18] sm:$0xf0]  ;;  %v15774_v61 = vor.u32 %v17613_v9, %v15771_v1  ;;  %v17609_v9 = vld [vmem:[#allocation3 + $0x1a84] sm:$0xf]  ;;  %v15755_v1 = vld [vmem:[#allocation3 + $0x1a88] sm:$0xf0] }
 0x3ca   : > { %8405 = vmatpush.bf16.msra.mxu3 %v15662_v31  ;;  %v17579_v31 = vld [vmem:[#allocation3 + $0x1994] sm:$0xf]  ;;  %v15702_v16 = vor.u32 %v17595_v4, %v15699_v11  ;;  %v15931_v11 = vld [vmem:[#allocation3 + $0x1be8] sm:$0xf0] }
 0x3cb   : > { %8503 = vmatpush.bf16.msra.mxu2 %v16110_v8  ;;  %v17691_v8 = vld [vmem:[#allocation3 + $0x1d14] sm:$0xf]  ;;  %v15638_v37 = vor.u32 %v17579_v31, %v15635_v10  ;;  %v16006_v31 = vor.u32 %v17671_v14, %v16003_v2  ;;  %v17653_v10 = vld [vmem:[#allocation3 + $0x1be4] sm:$0xf]  ;;  %v15758_v14 = vor.u32 %v17609_v9, %v15755_v1  ;;  %v16227_v9 = vld [vmem:[#allocation7 + $0x38] sm:$0xf0] }
 0x3cc   : > { %8432 = vmatpush.bf16.msra.mxu1 %v15798_v6  ;;  %v16086_v52 = vor.u32 %v17691_v8, %v16083_v29  ;;  %v15627_v6 = vld [vmem:[#allocation3 + $0x1988] sm:$0xf0]  ;;  %v17669_v8 = vld [vmem:[#allocation3 + $0x1c64] sm:$0xf] }
 0x3cd   : > { %8420 = vmatpush.bf16.msra.mxu0 %v15718_v57  ;;  %v7700_v57 = vadd.f32 %v19825_v49, %v20821_v32  ;;  %v15630_v17 = vor.u32 %v17577_v40, %v15627_v6  ;;  %v15995_v29 = vld [vmem:[#allocation3 + $0x1c68] sm:$0xf0]  ;;  %v17651_v6 = vld [vmem:[#allocation3 + $0x1bd4] sm:$0xf] }
 0x3ce   : > { %8406 = vmatpush.bf16.msra.mxu3 %v15654_v25  ;;  %v17593_v25 = vld [vmem:[#allocation3 + $0x1a04] sm:$0xf] }
 0x3cf   : > { %8504 = vmatpush.bf16.msra.mxu2 %v16102_v15  ;;  %v17689_v15 = vld [vmem:[#allocation3 + $0x1d04] sm:$0xf]  ;;  %v15694_v54 = vor.u32 %v17593_v25, %v15691_v63  ;;  %v7714_v49 = vadd.f32 %v19828_v21, %v7700_v57  ;;  %v15934_v21 = vor.u32 %v17653_v10, %v15931_v11  ;;  %v17687_v25 = vld [vmem:[#allocation3 + $0x1cf4] sm:$0xf]  ;;  %v16067_v63 = vld [vmem:[#allocation3 + $0x1cf8] sm:$0xf0] }
 0x3d0   : > { %8433 = vmatpush.bf16.msra.mxu1 %v15790_v20  ;;  %v17735_v20 = vld [vmem:[#allocation7 + $0x74] sm:$0xf]  ;;  %v16078_v51 = vor.u32 %v17689_v15, %v16075_v44  ;;  %v15923_v57 = vld [vmem:[#allocation3 + $0x1bd8] sm:$0xf0] }
 0x3d1   : > { %8421 = vmatpush.bf16.msra.mxu0 %v15710_v19  ;;  %v17611_v19 = vld [vmem:[#allocation3 + $0x1a94] sm:$0xf]  ;;  %v15987_v44 = vld [vmem:[#allocation3 + $0x1c58] sm:$0xf0] }
 0x3d2   : > { %8407 = vmatpush.bf16.msra.mxu3 %v15646_v27  ;;  %v16259_v27 = vld [vmem:[#allocation7 + $0x78] sm:$0xf0]  ;;  %v15766_v40 = vor.u32 %v17611_v19, %v15763_v59  ;;  %v17667_v15 = vld [vmem:[#allocation3 + $0x1c54] sm:$0xf]  ;;  %v17665_v19 = vld [vmem:[#allocation3 + $0x1c44] sm:$0xf] }
 0x3d3   : > { %8505 = vmatpush.bf16.msra.mxu2 %v16094_v39  ;;  %v15942_v39 = vor.u32 %v17655_v36, %v15939_v47  ;;  %v16262_v4 = vor.u32 %v17735_v20, %v16259_v27  ;;  %v17731_v36 = vld [vmem:[#allocation7 + $0x54] sm:$0xf]  ;;  %v16243_v47 = vld [vmem:[#allocation7 + $0x58] sm:$0xf0]  ;;  %v17685_v20 = vld [vmem:[#allocation3 + $0x1ce4] sm:$0xf] }
 0x3d4   : > { %8434 = vmatpush.bf16.msra.mxu1 %v15782_v43  ;;  %v17733_v43 = vld [vmem:[#allocation7 + $0x64] sm:$0xf]  ;;  %v16059_v27 = vld [vmem:[#allocation3 + $0x1ce8] sm:$0xf0]  ;;  %v17647_v10 = vld [vmem:[#allocation3 + $0x1bb4] sm:$0xf] }
 0x3d5   : > { %8422 = vmatpush.bf16.msra.mxu0 %v15702_v16  ;;  %v7728_v16 = vadd.f32 %v19830_v24, %v7714_v49  ;;  %v16070_v24 = vor.u32 %v17687_v25, %v16067_v63  ;;  %v15979_v59 = vld [vmem:[#allocation3 + $0x1c48] sm:$0xf0]  ;;  %v17729_v49 = vld [vmem:[#allocation7 + $0x44] sm:$0xf]  ;;  %v16051_v11 = vld [vmem:[#allocation3 + $0x1cd8] sm:$0xf0] }
 0x3d6   : > { %8408 = vmatpush.bf16.msra.mxu3 %v15638_v37  ;;  %v16251_v37 = vld [vmem:[#allocation7 + $0x68] sm:$0xf0] }
 0x3d7   : > { %8506 = vmatpush.bf16.msra.mxu2 %v16086_v52  ;;  %v15998_v52 = vor.u32 %v17669_v8, %v15995_v29  ;;  %v16254_v32 = vor.u32 %v17733_v43, %v16251_v37  ;;  %v7742_v2 = vadd.f32 %v19838_v62, %v7728_v16  ;;  %v15907_v29 = vld [vmem:[#allocation3 + $0x1bb8] sm:$0xf0]  ;;  %v17663_v43 = vld [vmem:[#allocation3 + $0x1c34] sm:$0xf]  ;;  %v16043_v25 = vld [vmem:[#allocation3 + $0x1cc8] sm:$0xf0] }
 0x3d8   : > { %8435 = vmatpush.bf16.msra.mxu1 %v15774_v61  ;;  %v15926_v61 = vor.u32 %v17651_v6, %v15923_v57  ;;  %v15971_v37 = vld [vmem:[#allocation3 + $0x1c38] sm:$0xf0]  ;;  %v15910_v16 = vor.u32 %v17647_v10, %v15907_v29  ;;  %v17681_v6 = vld [vmem:[#allocation3 + $0x1cc4] sm:$0xf]  ;;  %v15963_v57 = vld [vmem:[#allocation3 + $0x1c28] sm:$0xf0] }
 0x3d9   : > { %8423 = vmatpush.bf16.msra.mxu0 %v15694_v54  ;;  %v16246_v54 = vor.u32 %v17731_v36, %v16243_v47  ;;  %v16046_v36 = vor.u32 %v17681_v6, %v16043_v25  ;;  %v17657_v10 = vld [vmem:[#allocation3 + $0x1c04] sm:$0xf]  ;;  %v17719_v29 = vld [vmem:[#allocation3 + $0x1df4] sm:$0xf] }
 0x3da   : > { %8409 = vmatpush.bf16.msra.mxu3 %v15630_v17  ;;  %v15990_v17 = vor.u32 %v17667_v15, %v15987_v44  ;;  %v17725_v15 = vld [vmem:[#allocation7 + $0x24] sm:$0xf]  ;;  %v16219_v44 = vld [vmem:[#allocation7 + $0x28] sm:$0xf0] }
 0x3db   : > { %8507 = vmatpush.bf16.msra.mxu2 %v16078_v51  ;;  %v15915_v51 = vld [vmem:[#allocation3 + $0x1bc8] sm:$0xf0] }
 0x3dc   : > { %8436 = vmatpush.bf16.msra.mxu1 %v15766_v40  ;;  %8424 = vmatmul.bf16.vlgmr.msra.gmra.mxu0 %v19638_v22  ;;  %v16235_v22 = vld [vmem:[#allocation7 + $0x48] sm:$0xf0]  ;;  %v17727_v40 = vld [vmem:[#allocation7 + $0x34] sm:$0xf] }
 0x3dd   : > { %8472 = vmatpush.bf16.msrb.mxu0 %v16006_v31  ;;  %8410 = vmatmul.bf16.vlgmr.msra.gmra.mxu3 %v19635_v58  ;;  %v17649_v58 = vld [vmem:[#allocation3 + $0x1bc4] sm:$0xf]  ;;  %v15982_v31 = vor.u32 %v17665_v19, %v15979_v59  ;;  %v16238_v8 = vor.u32 %v17729_v49, %v16235_v22  ;;  %v16230_v63 = vor.u32 %v17727_v40, %v16227_v9  ;;  %v16211_v19 = vld [vmem:[#allocation7 + $0x18] sm:$0xf0]  ;;  %v17736_v40 = vld [vmem:[#allocation7 + $0x74] sm:$0xf0] }
 0x3de   : > { %8458 = vmatpush.bf16.msrb.mxu3 %v15942_v39  ;;  %8508 = vmatmul.bf16.vlgmr.msra.gmra.mxu2 %v19640_v13  ;;  %v16062_v39 = vor.u32 %v17685_v20, %v16059_v27  ;;  %v7756_v13 = vadd.f32 %v19840_v60, %v7742_v2  ;;  %v15918_v62 = vor.u32 %v17649_v58, %v15915_v51  ;;  %v17679_v2 = vld [vmem:[#allocation3 + $0x1cb4] sm:$0xf]  ;;  %v15891_v58 = vld [vmem:[#allocation3 + $0x1b98] sm:$0xf0]  ;;  %v17641_v49 = vld [vmem:[#allocation3 + $0x1b84] sm:$0xf] }
 0x3df   : > { %8760 = vmatpush.bf16.msrb.mxu2 %v16262_v4  ;;  %v17683_v4 = vld [vmem:[#allocation3 + $0x1cd4] sm:$0xf]  ;;  %v15955_v27 = vld [vmem:[#allocation3 + $0x1c18] sm:$0xf0] }
 0x3e0   : > { %8437 = vmatpush.bf16.msra.mxu1 %v15758_v14  ;;  %v16054_v1 = vor.u32 %v17683_v4, %v16051_v11  ;;  %v7770_v60 = vadd.f32 %v19842_v34, %v7756_v13  ;;  %v17659_v20 = vld [vmem:[#allocation3 + $0x1c14] sm:$0xf]  ;;  %v17677_v13 = vld [vmem:[#allocation3 + $0x1ca4] sm:$0xf]  ;;  %v15947_v4 = vld [vmem:[#allocation3 + $0x1c08] sm:$0xf0] }
 0x3e1   : > { %8473 = vmatpush.bf16.msrb.mxu0 %v15998_v52  ;;  %v17645_v52 = vld [vmem:[#allocation3 + $0x1ba4] sm:$0xf]  ;;  %v17723_v51 = vld [vmem:[#allocation7 + $0x14] sm:$0xf]  ;;  %v15958_v22 = vor.u32 %v17659_v20, %v15955_v27 }
 0x3e2   : > { %8459 = vmatpush.bf16.msrb.mxu3 %v15934_v21  ;;  %v15974_v21 = vor.u32 %v17663_v43, %v15971_v37  ;;  %v7784_v47 = vadd.f32 %v19845_v12, %v7770_v60  ;;  %v17721_v11 = vld [vmem:[#allocation7 + $0x4] sm:$0xf]  ;;  %v16195_v43 = vld [vmem:[#allocation3 + $0x1df8] sm:$0xf0]  ;;  %v16257_v37 = vld [vmem:[#allocation7 + $0x70] sm:$0xf]  ;;  %v15950_v60 = vor.u32 %v17657_v10, %v15947_v4 }
 0x3e3   : > { %8761 = vmatpush.bf16.msrb.mxu2 %v16254_v32  ;;  %8438 = vmatmul.bf16.vlgmr.msra.gmra.mxu1 %v19649_v41  ;;  %v15899_v41 = vld [vmem:[#allocation3 + $0x1ba8] sm:$0xf0]  ;;  %v17661_v32 = vld [vmem:[#allocation3 + $0x1c24] sm:$0xf]  ;;  %v16198_v6 = vor.u32 %v17719_v29, %v16195_v43  ;;  %v17707_v29 = vld [vmem:[#allocation3 + $0x1d94] sm:$0xf] }
 0x3e4   : > { %8486 = vmatpush.bf16.msrb.mxu1 %v16070_v24  ;;  %v15902_v34 = vor.u32 %v17645_v52, %v15899_v41  ;;  %v15966_v14 = vor.u32 %v17661_v32, %v15963_v57  ;;  %v17643_v24 = vld [vmem:[#allocation3 + $0x1b94] sm:$0xf]  ;;  %v16187_v41 = vld [vmem:[#allocation3 + $0x1de8] sm:$0xf0]  ;;  %v16249_v32 = vld [vmem:[#allocation7 + $0x60] sm:$0xf] }
 0x3e5   : > { %8474 = vmatpush.bf16.msrb.mxu0 %v15990_v17  ;;  %v16222_v17 = vor.u32 %v17725_v15, %v16219_v44  ;;  %v15894_v12 = vor.u32 %v17643_v24, %v15891_v58  ;;  %v17734_v57 = vld [vmem:[#allocation7 + $0x64] sm:$0xf0]  ;;  %v17673_v44 = vld [vmem:[#allocation3 + $0x1c84] sm:$0xf]  ;;  %v17715_v24 = vld [vmem:[#allocation3 + $0x1dd4] sm:$0xf] }
 0x3e6   : > { %8460 = vmatpush.bf16.msrb.mxu3 %v15926_v61  ;;  %v16035_v61 = vld [vmem:[#allocation3 + $0x1cb8] sm:$0xf0]  ;;  %v17713_v27 = vld [vmem:[#allocation3 + $0x1dc4] sm:$0xf]  ;;  %v16155_v10 = vld [vmem:[#allocation3 + $0x1da8] sm:$0xf0] }
 0x3e7   : > { %8762 = vmatpush.bf16.msrb.mxu2 %v16246_v54  ;;  %v7798_v54 = vadd.f32 %v19853_v28, %v7784_v47  ;;  %v16038_v59 = vor.u32 %v17679_v2, %v16035_v61  ;;  %v16203_v28 = vld [vmem:[#allocation7 + $0x8] sm:$0xf0]  ;;  %v16241_v2 = vld [vmem:[#allocation7 + $0x50] sm:$0xf]  ;;  %v17732_v61 = vld [vmem:[#allocation7 + $0x54] sm:$0xf0] }
 0x3e8   : > { %8487 = vmatpush.bf16.msrb.mxu1 %v16062_v39  ;;  %v15883_v39 = vld [vmem:[#allocation3 + $0x1b88] sm:$0xf0]  ;;  %v16206_v52 = vor.u32 %v17721_v11, %v16203_v28  ;;  %v16217_v4 = vld [vmem:[#allocation7 + $0x20] sm:$0xf]  ;;  %v16147_v43 = vld [vmem:[#allocation3 + $0x1d98] sm:$0xf0] }
 0x3e9   : > { %8475 = vmatpush.bf16.msrb.mxu0 %v15982_v31  ;;  %v16214_v31 = vor.u32 %v17723_v51, %v16211_v19  ;;  %v16233_v51 = vld [vmem:[#allocation7 + $0x40] sm:$0xf]  ;;  %v17730_v19 = vld [vmem:[#allocation7 + $0x44] sm:$0xf0] }
 0x3ea   : > { %8461 = vmatpush.bf16.msrb.mxu3 %v15918_v62  ;;  %v16027_v62 = vld [vmem:[#allocation3 + $0x1ca8] sm:$0xf0] }
 0x3eb   : > { %8763 = vmatpush.bf16.msrb.mxu2 %v16238_v8  ;;  %v7812_v8 = vadd.f32 %v19855_v0, %v7798_v54  ;;  %v16030_v9 = vor.u32 %v17677_v13, %v16027_v62  ;;  %v17717_v0 = vld [vmem:[#allocation3 + $0x1de4] sm:$0xf]  ;;  %v16171_v54 = vld [vmem:[#allocation3 + $0x1dc8] sm:$0xf0] }
 0x3ec   : > { %8488 = vmatpush.bf16.msrb.mxu1 %v16054_v1  ;;  %v15886_v1 = vor.u32 %v17641_v49, %v15883_v39  ;;  %v16190_v47 = vor.u32 %v17717_v0, %v16187_v41  ;;  %v17711_v49 = vld [vmem:[#allocation3 + $0x1db4] sm:$0xf] }
 0x3ed   : > { %8476 = vmatpush.bf16.msrb.mxu0 %v15974_v21  ;;  %v16019_v21 = vld [vmem:[#allocation3 + $0x1c98] sm:$0xf0]  ;;  %v7826_v25 = vadd.f32 %v19857_v35, %v7812_v8  ;;  %v20822_v0 = vld [vmem:[#allocation70_spill] sm:$0xff] }
 0x3ee   : > { %8462 = vmatpush.bf16.msrb.mxu3 %v15910_v16  ;;  %v17675_v16 = vld [vmem:[#allocation3 + $0x1c94] sm:$0xf]  ;;  %v16179_v35 = vld [vmem:[#allocation3 + $0x1dd8] sm:$0xf0] }
 0x3ef   : > { %8764 = vmatpush.bf16.msrb.mxu2 %v16230_v63  ;;  %v16258_v63 = vor.u32 %v17736_v40, %v16257_v37  ;;  %v16022_v15 = vor.u32 %v17675_v16, %v16019_v21  ;;  %v16182_v20 = vor.u32 %v17715_v24, %v16179_v35  ;;  %v16209_v37 = vld [vmem:[#allocation7 + $0x10] sm:$0xf]  ;;  %v16150_v40 = vor.u32 %v17707_v29, %v16147_v43  ;;  %v16139_v16 = vld [vmem:[#allocation3 + $0x1d88] sm:$0xf0]  ;;  %v16201_v21 = vld [vmem:[#allocation7] sm:$0xf]  ;;  %v8133_v24 = vpop.f32.mrf.mxu3 }
 0x3f0   : > { %8489 = vmatpush.bf16.msrb.mxu1 %v16046_v36  ;;  %v16011_v36 = vld [vmem:[#allocation3 + $0x1c88] sm:$0xf0] }
 0x3f1   : > { %8477 = vmatpush.bf16.msrb.mxu0 %v15966_v14  ;;  %v16250_v14 = vor.u32 %v17734_v57, %v16249_v32  ;;  %v8105_v32 = vpop.f32.mrf.mxu1  ;;  %v20823_v57 = vld [vmem:[#allocation71_spill] sm:$0xff] }
 0x3f2   : > { %8463 = vmatpush.bf16.msrb.mxu3 %v15902_v34  ;;  %v7840_v34 = vadd.f32 %v19860_v46, %v7826_v25  ;;  %v16242_v46 = vor.u32 %v17732_v61, %v16241_v2  ;;  %v20827_v61 = vld [vmem:[#allocation27_spill] sm:$0xff] }
 0x3f3   : > { %8765 = vmatpush.bf16.msrb.mxu2 %v16222_v17  ;;  %v16014_v17 = vor.u32 %v17673_v44, %v16011_v36  ;;  %v8119_v44 = vpop.f32.mrf.mxu2  ;;  %v20824_v36 = vld [vmem:[#allocation72_spill] sm:$0xff] }
 0x3f4   : > { %8490 = vmatpush.bf16.msrb.mxu1 %v16038_v59  ;;  %v7854_v58 = vadd.f32 %v19868_v45, %v7840_v34  ;;  %v16174_v59 = vor.u32 %v17713_v27, %v16171_v54  ;;  %v16234_v45 = vor.u32 %v17730_v19, %v16233_v51 }
 0x3f5   : > { %8478 = vmatpush.bf16.msrb.mxu0 %v15958_v22  ;;  %v17728_v22 = vld [vmem:[#allocation7 + $0x34] sm:$0xf0] }
 0x3f6   : > { %8464 = vmatpush.bf16.msrb.mxu3 %v15894_v12  ;;  %v16163_v12 = vld [vmem:[#allocation3 + $0x1db8] sm:$0xf0] }
 0x3f7   : > { %8766 = vmatpush.bf16.msrb.mxu2 %v16214_v31  ;;  %v16166_v13 = vor.u32 %v17711_v49, %v16163_v12  ;;  %v17709_v31 = vld [vmem:[#allocation3 + $0x1da4] sm:$0xf] }
 0x3f8   : > { %8491 = vmatpush.bf16.msrb.mxu1 %v16030_v9  ;;  %v16158_v8 = vor.u32 %v17709_v31, %v16155_v10 }
 0x3f9   : > { %8479 = vmatpush.bf16.msrb.mxu0 %v15950_v60  ;;  %v17705_v60 = vld [vmem:[#allocation3 + $0x1d84] sm:$0xf]  ;;  %v8159_v34 = vpop.f32.mrf.mxu1 }
 0x3fa   : > { %8465 = vmatpush.bf16.msrb.mxu3 %v15886_v1 }
 0x3fb   : > { %8767 = vmatpush.bf16.msrb.mxu2 %v16206_v52  ;;  %v16142_v52 = vor.u32 %v17705_v60, %v16139_v16  ;;  %v8173_v35 = vpop.f32.mrf.mxu2 }
 0x3fc   : > { %8492 = vmatpush.bf16.msrb.mxu1 %v16022_v15  ;;  %8480 = vmatmul.bf16.vlgmr.msrb.gmra.mxu0 %v19675_v56  ;;  %v16225_v56 = vld [vmem:[#allocation7 + $0x30] sm:$0xf] }
 0x3fd   : > { %8732 = vmatpush.bf16.msra.mxu0 %v16258_v63  ;;  %8466 = vmatmul.bf16.vlgmr.msrb.gmra.mxu3 %v19673_v38  ;;  %v7868_v38 = vadd.f32 %v19870_v50, %v7854_v58  ;;  %v16226_v62 = vor.u32 %v17728_v22, %v16225_v56  ;;  %v17726_v50 = vld [vmem:[#allocation7 + $0x24] sm:$0xf0]  ;;  %v8187_v58 = vpop.f32.mrf.mxu3 }
 0x3fe   : > { %8514 = vmatpush.bf16.msra.mxu3 %v16198_v6  ;;  %8768 = vmatmul.bf16.vlgmr.msrb.gmra.mxu2 %v19820_v48  ;;  %v16218_v28 = vor.u32 %v17726_v50, %v16217_v4 }
 0x3ff   : > { %v7882_v39 = vadd.f32 %v19872_v53, %v7868_v38  ;;  %v17724_v53 = vld [vmem:[#allocation7 + $0x14] sm:$0xf0] }
 0x400   : > { %8493 = vmatpush.bf16.msrb.mxu1 %v16014_v17  ;;  %v16210_v1 = vor.u32 %v17724_v53, %v16209_v37 }
 0x401   : > { %8733 = vmatpush.bf16.msra.mxu0 %v16250_v14  ;;  %v7896_v11 = vadd.f32 %v19875_v3, %v7882_v39  ;;  %v17722_v3 = vld [vmem:[#allocation7 + $0x4] sm:$0xf0] }
 0x402   : > { %8515 = vmatpush.bf16.msra.mxu3 %v16190_v47  ;;  %v16202_v6 = vor.u32 %v17722_v3, %v16201_v21  ;;  %v20825_v14 = vld [vmem:[#allocation77_spill] sm:$0xff] }
 0x403   : > { %8494 = vmatmul.bf16.vlgmr.msrb.gmra.mxu1 %v19684_v7  ;;  %v7910_v7 = vadd.f32 %v19883_v5, %v7896_v11  ;;  %v8175_v27 = vpop.f32.mrf.mxu2 }
 0x405   : > { %8734 = vmatpush.bf16.msra.mxu0 %v16242_v46  ;;  %v7924_v9 = vadd.f32 %v19885_v55, %v7910_v7  ;;  %v8091_v55 = vpop.f32.mrf.mxu0 }
 0x406   : > { %8516 = vmatpush.bf16.msra.mxu3 %v16182_v20  ;;  %v20828_v20 = vld [vmem:[#allocation29_spill] sm:$0xff] }
 0x407   : > { %v7938_v5 = vadd.f32 %v19887_v42, %v7924_v9 }
 0x409   : > { %8735 = vmatpush.bf16.msra.mxu0 %v16234_v45  ;;  %v7952_v25 = vadd.f32 %v19890_v23, %v7938_v5 }
 0x40a   : > { %8517 = vmatpush.bf16.msra.mxu3 %v16174_v59  ;;  %v8189_v59 = vpop.f32.mrf.mxu3 }
 0x40b   : > { %v7966_v63 = vadd.f32 %v19898_v18, %v7952_v25  ;;  %v20826_v18 = vld [vmem:[#allocation26_spill] sm:$0xff]  ;;  %v8229_v45 = vpop.f32.mrf.mxu2 }
 0x40d   : > { %8736 = vmatpush.bf16.msra.mxu0 %v16226_v62  ;;  %v7980_v41 = vadd.f32 %v20822_v0, %v7966_v63  ;;  %v8145_v42 = vpop.f32.mrf.mxu0 }
 0x40e   : > { %8518 = vmatpush.bf16.msra.mxu3 %v16166_v13  ;;  %v8146_v62 = vadd.f32 %v8145_v42, %v19932_v33 }
 0x40f   : > { %v7994_v15 = vadd.f32 %v20823_v57, %v7980_v41 }
 0x410   : > { %v8160_v50 = vadd.f32 %v8159_v34, %v8146_v62 }
 0x411   : > { %8737 = vmatpush.bf16.msra.mxu0 %v16218_v28  ;;  %v8008_v47 = vadd.f32 %v20824_v36, %v7994_v15 }
 0x412   : > { %8519 = vmatpush.bf16.msra.mxu3 %v16158_v8  ;;  %v8243_v39 = vpop.f32.mrf.mxu3 }
 0x413   : > { %v8022_v23 = vadd.f32 %v20825_v14, %v8008_v47  ;;  %v8231_v31 = vpop.f32.mrf.mxu2 }
 0x415   : > { %8738 = vmatpush.bf16.msra.mxu0 %v16210_v1  ;;  %v8036_v2 = vadd.f32 %v20826_v18, %v8022_v23  ;;  %v16321_v23 = vld [vmem:[#allocation7 + $0xf0] sm:$0xf] }
 0x416   : > { %8520 = vmatpush.bf16.msra.mxu3 %v16150_v40 }
 0x417   : > { %v8050_v17 = vadd.f32 %v20827_v61, %v8036_v2  ;;  %v16323_v61 = vld [vmem:[#allocation7 + $0xf8] sm:$0xf0] }
 0x419   : > { %8739 = vmatpush.bf16.msra.mxu0 %v16202_v6  ;;  %v8064_v46 = vadd.f32 %v20828_v20, %v8050_v17  ;;  %v17749_v20 = vld [vmem:[#allocation7 + $0xe4] sm:$0xf] }
 0x41a   : > { %8521 = vmatpush.bf16.msra.mxu3 %v16142_v52  ;;  %v8245_v7 = vpop.f32.mrf.mxu3 }
 0x41b   : > { %v8078_v51 = vadd.f32 %v19928_v26, %v8064_v46  ;;  %v8174_v26 = vadd.f32 %v8173_v35, %v8160_v50  ;;  %v8285_v28 = vpop.f32.mrf.mxu2  ;;  %v17751_v35 = vld [vmem:[#allocation7 + $0xf4] sm:$0xf]  ;;  %v16297_v50 = vld [vmem:[#allocation7 + $0xc0] sm:$0xf] }
 0x41c   : > { %8740 = vmatmul.bf16.vlgmr.msra.gmra.mxu0 %v19820_v48  ;;  %v8161_v48 = vpop.f32.mrf.mxu1  ;;  %v16326_v17 = vor.u32 %v17751_v35, %v16323_v61  ;;  %v16265_v61 = vld [vmem:[#allocation7 + $0x80] sm:$0xf] }
 0x41d   : > { %8522 = vmatmul.bf16.vlgmr.msra.gmra.mxu3 %v19706_v30  ;;  %v8147_v30 = vpop.f32.mrf.mxu0  ;;  %v8092_v38 = vadd.f32 %v8091_v55, %v8078_v51  ;;  %v8188_v43 = vadd.f32 %v8187_v58, %v8174_v26  ;;  %v17750_v58 = vld [vmem:[#allocation7 + $0xe4] sm:$0xf0] }
 0x41e   : > { %8774 = vmatpush.bf16.msrb.mxu3 %v16326_v17  ;;  %v17738_v17 = vld [vmem:[#allocation7 + $0x84] sm:$0xf0] }
 0x41f   : > { %v8106_v49 = vadd.f32 %v8105_v32, %v8092_v38  ;;  %v16305_v38 = vld [vmem:[#allocation7 + $0xd0] sm:$0xf] }
 0x421   : > { %v8120_v56 = vadd.f32 %v8119_v44, %v8106_v49  ;;  %v17747_v49 = vld [vmem:[#allocation7 + $0xd4] sm:$0xf] }
 0x422   : > { %v8299_v1 = vpop.f32.mrf.mxu3 }
 0x423   : > { %v8134_v13 = vadd.f32 %v8133_v24, %v8120_v56  ;;  %v8287_v21 = vpop.f32.mrf.mxu2  ;;  %v17752_v24 = vld [vmem:[#allocation7 + $0xf4] sm:$0xf0] }
 0x424   : > { %v8215_v19 = vpop.f32.mrf.mxu1 }
 0x425   : > { %v8201_v54 = vpop.f32.mrf.mxu0  ;;  %v8148_v4 = vadd.f32 %v8147_v30, %v8134_v13  ;;  %v16322_v30 = vor.u32 %v17752_v24, %v16321_v23 }
 0x426   : > { %v8202_v40 = vadd.f32 %v8201_v54, %v8188_v43  ;;  %v16315_v54 = vld [vmem:[#allocation7 + $0xe8] sm:$0xf0] }
 0x427   : > { %v8162_v8 = vadd.f32 %v8161_v48, %v8148_v4  ;;  %v16313_v48 = vld [vmem:[#allocation7 + $0xe0] sm:$0xf]  ;;  %8746 = vmatpush.bf16.msra.mxu1 %v16322_v30 }
 0x428   : > { %v8216_v16 = vadd.f32 %v8215_v19, %v8202_v40  ;;  %v16318_v19 = vor.u32 %v17749_v20, %v16315_v54 }
 0x429   : > { %v8176_v29 = vadd.f32 %v8175_v27, %v8162_v8  ;;  %v16314_v27 = vor.u32 %v17750_v58, %v16313_v48  ;;  %v17745_v8 = vld [vmem:[#allocation7 + $0xc4] sm:$0xf] }
 0x42a   : > { %v8230_v52 = vadd.f32 %v8229_v45, %v8216_v16  ;;  %v8301_v63 = vpop.f32.mrf.mxu3  ;;  %8775 = vmatpush.bf16.msrb.mxu3 %v16318_v19  ;;  %v17737_v48 = vld [vmem:[#allocation7 + $0x84] sm:$0xf] }
 0x42b   : > { %v8190_v53 = vadd.f32 %v8189_v59, %v8176_v29  ;;  %v8341_v0 = vpop.f32.mrf.mxu2  ;;  %v17748_v59 = vld [vmem:[#allocation7 + $0xd4] sm:$0xf0]  ;;  %8747 = vmatpush.bf16.msra.mxu1 %v16314_v27  ;;  %v16267_v27 = vld [vmem:[#allocation7 + $0x88] sm:$0xf0] }
 0x42c   : > { %v8217_v22 = vpop.f32.mrf.mxu1  ;;  %v8244_v25 = vadd.f32 %v8243_v39, %v8230_v52  ;;  %v16306_v39 = vor.u32 %v17748_v59, %v16305_v38  ;;  %v16270_v54 = vor.u32 %v17737_v48, %v16267_v27  ;;  %v16457_v48 = vld [vmem:[#allocation10 + $0xf8] sm:$0xf]  ;;  %v16459_v27 = vld [vmem:[#allocation10 + $0x10c] sm:$0xf0] }
 0x42d   : > { %v8203_v12 = vpop.f32.mrf.mxu0 }
 0x42e   : > { %v8204_v60 = vadd.f32 %v8203_v12, %v8190_v53  ;;  %v16307_v12 = vld [vmem:[#allocation7 + $0xd8] sm:$0xf0] }
 0x42f   : > { %v16310_v62 = vor.u32 %v17747_v49, %v16307_v12  ;;  %8748 = vmatpush.bf16.msra.mxu1 %v16306_v39  ;;  %v17790_v49 = vld [vmem:[#allocation10 + $0x128] sm:$0xf0]  ;;  %v16449_v12 = vld [vmem:[#allocation10 + $0xf0] sm:$0xf] }
 0x430   : > { %v8218_v3 = vadd.f32 %v8217_v22, %v8204_v60  ;;  %v17743_v60 = vld [vmem:[#allocation7 + $0xb4] sm:$0xf] }
 0x431   : > { %8776 = vmatpush.bf16.msrb.mxu3 %v16310_v62 }
 0x432   : > { %v8232_v6 = vadd.f32 %v8231_v31, %v8218_v3 }
 0x433   : > { %v8343_v34 = vpop.f32.mrf.mxu2 }
 0x434   : > { %v8271_v11 = vpop.f32.mrf.mxu1  ;;  %v8246_v55 = vadd.f32 %v8245_v7, %v8232_v6 }
 0x435   : > { %v8257_v10 = vpop.f32.mrf.mxu0 }
 0x436   : > { %v8258_v41 = vadd.f32 %v8257_v10, %v8244_v25  ;;  %v16281_v25 = vld [vmem:[#allocation7 + $0xa0] sm:$0xf] }
 0x438   : > { %v8272_v15 = vadd.f32 %v8271_v11, %v8258_v41  ;;  %v17746_v11 = vld [vmem:[#allocation7 + $0xc4] sm:$0xf0] }
 0x439   : > { %v16298_v26 = vor.u32 %v17746_v11, %v16297_v50  ;;  %v17780_v50 = vld [vmem:[#allocation10 + $0xd8] sm:$0xf0] }
 0x43a   : > { %v8286_v47 = vadd.f32 %v8285_v28, %v8272_v15  ;;  %v16299_v28 = vld [vmem:[#allocation7 + $0xc8] sm:$0xf0] }
 0x43b   : > { %v8397_v13 = vpop.f32.mrf.mxu2  ;;  %8749 = vmatpush.bf16.msra.mxu1 %v16298_v26 }
 0x43c   : > { %v8273_v9 = vpop.f32.mrf.mxu1  ;;  %v8300_v2 = vadd.f32 %v8299_v1, %v8286_v47  ;;  %v17744_v1 = vld [vmem:[#allocation7 + $0xb4] sm:$0xf0] }
 0x43d   : > { %v8259_v37 = vpop.f32.mrf.mxu0  ;;  %v17740_v47 = vld [vmem:[#allocation7 + $0x94] sm:$0xf0] }
 0x43e   : > { %v8260_v57 = vadd.f32 %v8259_v37, %v8246_v55  ;;  %v16302_v37 = vor.u32 %v17745_v8, %v16299_v28  ;;  %v17741_v55 = vld [vmem:[#allocation7 + $0xa4] sm:$0xf] }
 0x440   : > { %v8355_v42 = vpop.f32.mrf.mxu3  ;;  %v8274_v36 = vadd.f32 %v8273_v9, %v8260_v57  ;;  %8777 = vmatpush.bf16.msrb.mxu3 %v16302_v37  ;;  %v16289_v9 = vld [vmem:[#allocation7 + $0xb0] sm:$0xf] }
 0x442   : > { %v8288_v18 = vadd.f32 %v8287_v21, %v8274_v36  ;;  %v16290_v21 = vor.u32 %v17744_v1, %v16289_v9  ;;  %v16273_v36 = vld [vmem:[#allocation7 + $0x90] sm:$0xf] }
 0x443   : > { %v8399_v3 = vpop.f32.mrf.mxu2  ;;  %v16274_v24 = vor.u32 %v17740_v47, %v16273_v36  ;;  %v16477_v36 = vld [vmem:[#allocation10 + $0x120] sm:$0xf] }
 0x444   : > { %v8327_v5 = vpop.f32.mrf.mxu1  ;;  %v8302_v46 = vadd.f32 %v8301_v63, %v8288_v18  ;;  %8750 = vmatpush.bf16.msra.mxu1 %v16290_v21  ;;  %v17742_v63 = vld [vmem:[#allocation7 + $0xa4] sm:$0xf0] }
 0x445   : > { %v8313_v33 = vpop.f32.mrf.mxu0  ;;  %v16282_v41 = vor.u32 %v17742_v63, %v16281_v25 }
 0x446   : > { %v8314_v45 = vadd.f32 %v8313_v33, %v8300_v2  ;;  %v16291_v33 = vld [vmem:[#allocation7 + $0xb8] sm:$0xf0] }
 0x448   : > { %v8357_v56 = vpop.f32.mrf.mxu3  ;;  %v8328_v31 = vadd.f32 %v8327_v5, %v8314_v45  ;;  %v16294_v5 = vor.u32 %v17743_v60, %v16291_v33  ;;  %8751 = vmatpush.bf16.msra.mxu1 %v16282_v41  ;;  %v16469_v45 = vld [vmem:[#allocation10 + $0x118] sm:$0xf] }
 0x44a   : > { %v8342_v7 = vadd.f32 %v8341_v0, %v8328_v31  ;;  %8778 = vmatpush.bf16.msrb.mxu3 %v16294_v5 }
 0x44b   : > { %v8453_v35 = vpop.f32.mrf.mxu2 }
 0x44c   : > { %v8329_v44 = vpop.f32.mrf.mxu1  ;;  %v8356_v40 = vadd.f32 %v8355_v42, %v8342_v7  ;;  %8752 = vmatpush.bf16.msra.mxu1 %v16274_v24  ;;  %v16479_v24 = vld [vmem:[#allocation10 + $0x134] sm:$0xf0] }
 0x44d   : > { %v8315_v32 = vpop.f32.mrf.mxu0 }
 0x44e   : > { %v8316_v22 = vadd.f32 %v8315_v32, %v8302_v46  ;;  %v16283_v32 = vld [vmem:[#allocation7 + $0xa8] sm:$0xf0]  ;;  %v16266_v46 = vor.u32 %v17738_v17, %v16265_v61  ;;  %v17783_v61 = vld [vmem:[#allocation10 + $0xf4] sm:$0xf] }
 0x44f   : > { %v16286_v15 = vor.u32 %v17741_v55, %v16283_v32  ;;  %v16409_v32 = vld [vmem:[#allocation10 + $0xa0] sm:$0xf]  ;;  %v16451_v17 = vld [vmem:[#allocation10 + $0x104] sm:$0xf0] }
 0x450   : > { %v8330_v4 = vadd.f32 %v8329_v44, %v8316_v22  ;;  %8753 = vmatpush.bf16.msra.mxu1 %v16266_v46  ;;  %v17785_v22 = vld [vmem:[#allocation10 + $0x100] sm:$0xf0]  ;;  %v17784_v46 = vld [vmem:[#allocation10 + $0xfc] sm:$0xf] }
 0x451   : > { %8779 = vmatpush.bf16.msrb.mxu3 %v16286_v15  ;;  %v16450_v31 = vor.u32 %v17785_v22, %v16449_v12  ;;  %v16437_v12 = vld [vmem:[#allocation10 + $0xd0] sm:$0xf]  ;;  %v17781_v22 = vld [vmem:[#allocation10 + $0xe0] sm:$0xf0] }
 0x452   : > { %v8344_v53 = vadd.f32 %v8343_v34, %v8330_v4  ;;  %v17739_v34 = vld [vmem:[#allocation7 + $0x94] sm:$0xf]  ;;  %v16429_v4 = vld [vmem:[#allocation10 + $0xc8] sm:$0xf] }
 0x453   : > { %v16430_v7 = vor.u32 %v17780_v50, %v16429_v4  ;;  %v17760_v4 = vld [vmem:[#allocation10 + $0x38] sm:$0xf0] }
 0x454   : > { %v8383_v51 = vpop.f32.mrf.mxu1  ;;  %v8358_v16 = vadd.f32 %v8357_v56, %v8344_v53  ;;  %v16470_v56 = vor.u32 %v17790_v49, %v16469_v45  ;;  %v17778_v45 = vld [vmem:[#allocation10 + $0xcc] sm:$0xf]  ;;  %v16431_v49 = vld [vmem:[#allocation10 + $0xdc] sm:$0xf0] }
 0x455   : > { %v8369_v14 = vpop.f32.mrf.mxu0 }
 0x456   : > { %v8370_v6 = vadd.f32 %v8369_v14, %v8356_v40  ;;  %v16275_v14 = vld [vmem:[#allocation7 + $0x98] sm:$0xf0]  ;;  %9069 = vmatpush.bf16.msrb.mxu0 %v16470_v56  ;;  %v16434_v56 = vor.u32 %v17778_v45, %v16431_v49  ;;  %v16337_v49 = vld [vmem:[#allocation10 + $0x8] sm:$0xf] }
 0x457   : > { %v16278_v18 = vor.u32 %v17739_v34, %v16275_v14  ;;  %v17791_v34 = vld [vmem:[#allocation10 + $0x130] sm:$0xf0]  ;;  %v16331_v45 = vld [vmem:[#allocation10 + $0x14] sm:$0xf0] }
 0x458   : > { %v8384_v44 = vadd.f32 %v8383_v51, %v8370_v6  ;;  %v16478_v14 = vor.u32 %v17791_v34, %v16477_v36  ;;  %v16465_v34 = vld [vmem:[#allocation10 + $0x100] sm:$0xf] }
 0x459   : > { %8780 = vmatpush.bf16.msrb.mxu3 %v16278_v18  ;;  %v16389_v18 = vld [vmem:[#allocation10 + $0x78] sm:$0xf] }
 0x45a   : > { %v8398_v2 = vadd.f32 %v8397_v13, %v8384_v44  ;;  %v8455_v13 = vpop.f32.mrf.mxu2  ;;  %9070 = vmatpush.bf16.msrb.mxu0 %v16450_v31  ;;  %v17788_v44 = vld [vmem:[#allocation10 + $0x11c] sm:$0xf]  ;;  %9097 = vmatpush.bf16.msra.mxu2 %v16478_v14 }
 0x45c   : > { %v8385_v29 = vpop.f32.mrf.mxu1 }
 0x45d   : > { %v8371_v10 = vpop.f32.mrf.mxu0  ;;  %8781 = vmatpush.bf16.msrb.mxu3 %v16270_v54 }
 0x45e   : > { %v8372_v0 = vadd.f32 %v8371_v10, %v8358_v16  ;;  %9071 = vmatpush.bf16.msrb.mxu0 %v16430_v7  ;;  %v16417_v7 = vld [vmem:[#allocation10 + $0xa8] sm:$0xf] }
 0x460   : > { %v8411_v43 = vpop.f32.mrf.mxu3  ;;  %v8386_v23 = vadd.f32 %v8385_v29, %v8372_v0 }
 0x461   : > { %v8412_v20 = vadd.f32 %v8411_v43, %v8398_v2  ;;  %v17770_v2 = vld [vmem:[#allocation10 + $0x88] sm:$0xf0] }
 0x462   : > { %v8400_v58 = vadd.f32 %v8399_v3, %v8386_v23  ;;  %v8509_v53 = vpop.f32.mrf.mxu2  ;;  %v17789_v23 = vld [vmem:[#allocation10 + $0x124] sm:$0xf] }
 0x464   : > { %v8439_v57 = vpop.f32.mrf.mxu1 }
 0x465   : > { %v8425_v52 = vpop.f32.mrf.mxu0 }
 0x466   : > { %v8426_v59 = vadd.f32 %v8425_v52, %v8412_v20  ;;  %v17786_v20 = vld [vmem:[#allocation10 + $0x108] sm:$0xf0] }
 0x467   : > { %v16458_v54 = vor.u32 %v17786_v20, %v16457_v48  ;;  %v17761_v48 = vld [vmem:[#allocation10 + $0x40] sm:$0xf0]  ;;  %v16359_v20 = vld [vmem:[#allocation10 + $0x44] sm:$0xf0] }
 0x468   : > { %v8413_v42 = vpop.f32.mrf.mxu3  ;;  %v8440_v10 = vadd.f32 %v8439_v57, %v8426_v59  ;;  %v17775_v57 = vld [vmem:[#allocation10 + $0xb0] sm:$0xf0] }
 0x469   : > { %v8414_v51 = vadd.f32 %v8413_v42, %v8400_v58  ;;  %v16410_v15 = vor.u32 %v17775_v57, %v16409_v32  ;;  %v16471_v42 = vld [vmem:[#allocation10 + $0x12c] sm:$0xf0]  ;;  %v16454_v58 = vor.u32 %v17783_v61, %v16451_v17  ;;  %9098 = vmatpush.bf16.msra.mxu2 %v16458_v54  ;;  %v16371_v32 = vld [vmem:[#allocation10 + $0x64] sm:$0xf0]  ;;  %v16377_v57 = vld [vmem:[#allocation10 + $0x58] sm:$0xf] }
 0x46a   : > { %v8454_v26 = vadd.f32 %v8453_v35, %v8440_v10  ;;  %v8511_v52 = vpop.f32.mrf.mxu2  ;;  %v16474_v47 = vor.u32 %v17788_v44, %v16471_v42  ;;  %v16482_v35 = vor.u32 %v17789_v23, %v16479_v24  ;;  %v16349_v10 = vld [vmem:[#allocation10 + $0x28] sm:$0xf]  ;;  %v17766_v44 = vld [vmem:[#allocation10 + $0x68] sm:$0xf0]  ;;  %v17764_v42 = vld [vmem:[#allocation10 + $0x5c] sm:$0xf] }
 0x46b   : > { %9072 = vmatpush.bf16.msrb.mxu0 %v16410_v15  ;;  %v16350_v50 = vor.u32 %v17760_v4, %v16349_v10  ;;  %v16378_v36 = vor.u32 %v17766_v44, %v16377_v57  ;;  %v17787_v23 = vld [vmem:[#allocation10 + $0x110] sm:$0xf0]  ;;  %v19975_v24 = vld [vmem:[#allocation8] sm:$0x3]  ;;  %v16425_v10 = vld [vmem:[#allocation10 + $0xb0] sm:$0xf] }
 0x46c   : > { %v8441_v19 = vpop.f32.mrf.mxu1  ;;  %9083 = vmatpush.bf16.msrb.mxu1 %v16474_v47  ;;  %9111 = vmatpush.bf16.msra.mxu3 %v16482_v35  ;;  %v16379_v47 = vld [vmem:[#allocation10 + $0x6c] sm:$0xf0]  ;;  %v16466_v35 = vor.u32 %v17787_v23, %v16465_v34  ;;  %v17777_v4 = vld [vmem:[#allocation10 + $0xc0] sm:$0xf0]  ;;  %v8788_v34 = vld [vmem:[%s694_s25] sm:$0xff] }
 0x46d   : > { %v8427_v30 = vpop.f32.mrf.mxu0  ;;  %v16382_v14 = vor.u32 %v17764_v42, %v16379_v47  ;;  %v8789_v23 = vld [vmem:[%s694_s25 + $0x8] sm:$0xff] }
 0x46e   : > { %v8428_v39 = vadd.f32 %v8427_v30, %v8414_v51  ;;  %v16390_v30 = vor.u32 %v17770_v2, %v16389_v18  ;;  %v16462_v51 = vor.u32 %v17784_v46, %v16459_v27  ;;  %v17758_v18 = vld [vmem:[#allocation10 + $0x2c] sm:$0xf]  ;;  %v16351_v2 = vld [vmem:[#allocation10 + $0x3c] sm:$0xf0]  ;;  %v8568_v46 = vperm.slane %v19975_v24, 0 }
 0x46f   : > { %v16354_v17 = vor.u32 %v17758_v18, %v16351_v2 }
 0x470   : > { %v8442_v11 = vadd.f32 %v8441_v19, %v8428_v39  ;;  %9073 = vmatpush.bf16.msrb.mxu0 %v16390_v30  ;;  %9084 = vmatpush.bf16.msrb.mxu1 %v16454_v58  ;;  %v16369_v19 = vld [vmem:[#allocation10 + $0x50] sm:$0xf]  ;;  %v17779_v39 = vld [vmem:[#allocation10 + $0xd4] sm:$0xf] }
 0x471   : > { %9112 = vmatpush.bf16.msra.mxu3 %v16462_v51  ;;  %v16357_v30 = vld [vmem:[#allocation10 + $0x30] sm:$0xf]  ;;  %v17759_v58 = vld [vmem:[#allocation10 + $0x34] sm:$0xf]  ;;  %v16445_v51 = vld [vmem:[#allocation10 + $0xd8] sm:$0xf] }
 0x472   : > { %v8456_v43 = vadd.f32 %v8455_v13, %v8442_v11  ;;  %v16439_v13 = vld [vmem:[#allocation10 + $0xe4] sm:$0xf0]  ;;  %v17773_v11 = vld [vmem:[#allocation10 + $0xa4] sm:$0xf]  ;;  %v16358_v27 = vor.u32 %v17761_v48, %v16357_v30  ;;  %v16362_v54 = vor.u32 %v17759_v58, %v16359_v20  ;;  %v17799_v48 = vld [vmem:[#allocation13 + $0x30] sm:$0xff] }
 0x473   : > { %v16442_v31 = vor.u32 %v17779_v39, %v16439_v13  ;;  %v16339_v39 = vld [vmem:[#allocation10 + $0x1c] sm:$0xf0]  ;;  %v17807_v58 = vld [vmem:[#allocation16 + $0x30] sm:$0xff]  ;;  %v17798_v20 = vld [vmem:[#allocation13 + $0x28] sm:$0xff] }
 0x474   : > { %9085 = vmatpush.bf16.msrb.mxu1 %v16434_v56  ;;  %v17756_v56 = vld [vmem:[#allocation10 + $0x18] sm:$0xf0] }
 0x475   : > { %9113 = vmatpush.bf16.msra.mxu3 %v16442_v31 }
 0x479   : > { %v8481_v62 = vpop.f32.mrf.mxu0 }
 0x480   : > { %v8467_v38 = vpop.f32.mrf.mxu3  ;;  %v8495_v8 = vpop.f32.mrf.mxu1 }
 0x481   : > { %v8468_v29 = vadd.f32 %v8467_v38, %v8454_v26  ;;  %v8483_v40 = vpop.f32.mrf.mxu0  ;;  %v17765_v38 = vld [vmem:[#allocation10 + $0x60] sm:$0xf0] }
 0x482   : > { %v16370_v59 = vor.u32 %v17765_v38, %v16369_v19  ;;  %v17782_v19 = vld [vmem:[#allocation10 + $0xe8] sm:$0xf0] }
 0x483   : > { %v8482_v9 = vadd.f32 %v8481_v62, %v8468_v29  ;;  %v16438_v62 = vor.u32 %v17781_v22, %v16437_v12  ;;  %v17774_v29 = vld [vmem:[#allocation10 + $0xac] sm:$0xf]  ;;  %v16446_v38 = vor.u32 %v17782_v19, %v16445_v51 }
 0x484   : > { %9074 = vmatpush.bf16.msrb.mxu0 %v16370_v59  ;;  %v17753_v59 = vld [vmem:[#allocation10 + $0x4] sm:$0xf]  ;;  %v17754_v22 = vld [vmem:[#allocation10 + $0xc] sm:$0xf] }
 0x485   : > { %v8496_v21 = vadd.f32 %v8495_v8, %v8482_v9  ;;  %9099 = vmatpush.bf16.msra.mxu2 %v16438_v62  ;;  %v16411_v8 = vld [vmem:[#allocation10 + $0xb4] sm:$0xf0]  ;;  %v17755_v9 = vld [vmem:[#allocation10 + $0x10] sm:$0xf0]  ;;  %v16334_v12 = vor.u32 %v17753_v59, %v16331_v45  ;;  %v16338_v62 = vor.u32 %v17756_v56, %v16337_v49  ;;  %v16342_v31 = vor.u32 %v17754_v22, %v16339_v39  ;;  %v17797_v19 = vld [vmem:[#allocation13 + $0x20] sm:$0xff] }
 0x486   : > { %v16414_v26 = vor.u32 %v17773_v11, %v16411_v8  ;;  %v16426_v8 = vor.u32 %v17777_v4, %v16425_v10  ;;  %v17796_v56 = vld [vmem:[#allocation13 + $0x18] sm:$0xff]  ;;  %v17795_v10 = vld [vmem:[#allocation13 + $0x10] sm:$0xff] }
 0x487   : > { %v8510_v3 = vadd.f32 %v8509_v53, %v8496_v21  ;;  %v16397_v21 = vld [vmem:[#allocation10 + $0x80] sm:$0xf]  ;;  %v17803_v4 = vld [vmem:[#allocation16 + $0x10] sm:$0xff] }
 0x488   : > { %v8469_v28 = vpop.f32.mrf.mxu3  ;;  %v8497_v60 = vpop.f32.mrf.mxu1  ;;  %9075 = vmatpush.bf16.msrb.mxu0 %v16350_v50  ;;  %9086 = vmatpush.bf16.msrb.mxu1 %v16414_v26  ;;  %v17804_v22 = vld [vmem:[#allocation16 + $0x18] sm:$0xff] }
 0x489   : > { %v8470_v37 = vadd.f32 %v8469_v28, %v8456_v43  ;;  %v17776_v28 = vld [vmem:[#allocation10 + $0xb8] sm:$0xf0]  ;;  %v16419_v43 = vld [vmem:[#allocation10 + $0xbc] sm:$0xf0]  ;;  %v8769_v50 = vpop.f32.mrf.mxu2 }
 0x48a   : > { %v16422_v53 = vor.u32 %v17774_v29, %v16419_v43  ;;  %v17772_v29 = vld [vmem:[#allocation10 + $0x98] sm:$0xf0] }
 0x48b   : > { %v8484_v1 = vadd.f32 %v8483_v40, %v8470_v37  ;;  %v16418_v37 = vor.u32 %v17776_v28, %v16417_v7  ;;  %v16329_v40 = vld [vmem:[#allocation10] sm:$0xf]  ;;  %v8569_v7 = vperm.slane %v19975_v24, 1  ;;  %v16405_v28 = vld [vmem:[#allocation10 + $0x88] sm:$0xf] }
 0x48c   : > { %9114 = vmatpush.bf16.msra.mxu3 %v16422_v53  ;;  %v16406_v43 = vor.u32 %v17772_v29, %v16405_v28  ;;  %v17767_v53 = vld [vmem:[#allocation10 + $0x70] sm:$0xf0] }
 0x48d   : > { %v8498_v33 = vadd.f32 %v8497_v60, %v8484_v1  ;;  %9100 = vmatpush.bf16.msra.mxu2 %v16418_v37  ;;  %v16330_v1 = vor.u32 %v17755_v9, %v16329_v40  ;;  %v17768_v60 = vld [vmem:[#allocation10 + $0x7c] sm:$0xf]  ;;  %v16385_v37 = vld [vmem:[#allocation10 + $0x60] sm:$0xf]  ;;  %v8770_v9 = vadd.f32 %v8769_v50, %v8569_v7 }
 0x48f   : > { %v8512_v6 = vadd.f32 %v8511_v52, %v8498_v33  ;;  %v17769_v52 = vld [vmem:[#allocation10 + $0x84] sm:$0xf]  ;;  %9076 = vmatpush.bf16.msrb.mxu0 %v16330_v1 }
 0x499   : > { %v8741_v61 = vpop.f32.mrf.mxu0 }
 0x49a   : > { %v8742_v13 = vadd.f32 %v8741_v61, %v8568_v46  ;;  %v17800_v61 = vld [vmem:[#allocation13 + $0x38] sm:$0xff] }
 0x4a0   : > { %v8523_v16 = vpop.f32.mrf.mxu3 }
 0x4a1   : > { %v8524_v5 = vadd.f32 %v8523_v16, %v8510_v3  ;;  %v16391_v16 = vld [vmem:[#allocation10 + $0x8c] sm:$0xf0]  ;;  %v17771_v3 = vld [vmem:[#allocation10 + $0x90] sm:$0xf0]  ;;  %v8743_v40 = vpop.f32.mrf.mxu0 }
 0x4a2   : > { %v16394_v33 = vor.u32 %v17768_v60, %v16391_v16  ;;  %v16386_v60 = vor.u32 %v17767_v53, %v16385_v37  ;;  %v8744_v16 = vadd.f32 %v8743_v40, %v8568_v46  ;;  %v17806_v46 = vld [vmem:[#allocation16 + $0x28] sm:$0xff] }
 0x4a3   : > { %v8529_v55 = vmax.f32 %v8524_v5, 0.0  ;;  %v16399_v5 = vld [vmem:[#allocation10 + $0x94] sm:$0xf0]  ;;  %v17794_v40 = vld [vmem:[#allocation13 + $0x8] sm:$0xff] }
 0x4a4   : > { %9087 = vmatpush.bf16.msrb.mxu1 %v16394_v33  ;;  %v16365_v33 = vld [vmem:[#allocation10 + $0x38] sm:$0xf] }
 0x4a8   : > { %v8525_v25 = vpop.f32.mrf.mxu3 }
 0x4a9   : > { %v8526_v63 = vadd.f32 %v8525_v25, %v8512_v6  ;;  %v16398_v6 = vor.u32 %v17771_v3, %v16397_v21  ;;  %v16402_v25 = vor.u32 %v17769_v52, %v16399_v5  ;;  %v17762_v3 = vld [vmem:[#allocation10 + $0x48] sm:$0xf0] }
 0x4ab   : > { %v8531_v0 = vmax.f32 %v8526_v63, 0.0  ;;  %v16485_v63 = vld [vmem:[#allocation10 + $0x128] sm:$0xf]  ;;  %9101 = vmatpush.bf16.msra.mxu2 %v16398_v6  ;;  %9115 = vmatpush.bf16.msra.mxu3 %v16402_v25  ;;  %v8771_v25 = vpop.f32.mrf.mxu2 }
 0x4ad   : > { %v8533_v41 = vpack.c.bf16 %v8531_v0, %v8529_v55  ;;  %v17792_v55 = vld [vmem:[#allocation10 + $0x138] sm:$0xf0] }
 0x4ae   : > { %v16486_v0 = vor.u32 %v17792_v55, %v16485_v63  ;;  %v16366_v63 = vor.u32 %v17762_v3, %v16365_v33  ;;  %v16345_v55 = vld [vmem:[#allocation10 + $0x10] sm:$0xf] }
 0x4af   : > { %8754 = vmatmul.bf16.vlgmr.msra.gmra.mxu1 %v8533_v41  ;;  %8782 = vmatmul.bf16.vlgmr.msrb.gmra.mxu3 %v8533_v41  ;;  %v17763_v41 = vld [vmem:[#allocation10 + $0x54] sm:$0xf] }
 0x4b0   : > { %9125 = vmatpush.bf16.msra.mxu0 %v16486_v0  ;;  %v16374_v15 = vor.u32 %v17763_v41, %v16371_v32  ;;  %9102 = vmatpush.bf16.msra.mxu2 %v16378_v36  ;;  %v17757_v0 = vld [vmem:[#allocation10 + $0x20] sm:$0xf0]  ;;  %v8772_v41 = vadd.f32 %v8771_v25, %v8569_v7 }
 0x4b1   : > { %9116 = vmatpush.bf16.msra.mxu3 %v16382_v14 }
 0x4b2   : > { %9088 = vmatpush.bf16.msrb.mxu1 %v16374_v15  ;;  %v16346_v15 = vor.u32 %v17757_v0, %v16345_v55 }
 0x4b4   : > { %9126 = vmatpush.bf16.msra.mxu0 %v16466_v35  ;;  %9103 = vmatpush.bf16.msra.mxu2 %v16358_v27  ;;  %v19998_v27 = vld [vmem:[#allocation11] sm:$0x1f] }
 0x4b5   : > { %9117 = vmatpush.bf16.msra.mxu3 %v16362_v54  ;;  %v8851_v54 = vperm.slane %v19998_v27, 0  ;;  %v8852_v51 = vperm.slane %v19998_v27, 1 }
 0x4b6   : > { %9089 = vmatpush.bf16.msrb.mxu1 %v16354_v17  ;;  %v17808_v17 = vld [vmem:[#allocation16 + $0x38] sm:$0xff] }
 0x4b8   : > { %9127 = vmatpush.bf16.msra.mxu0 %v16446_v38  ;;  %9104 = vmatpush.bf16.msra.mxu2 %v16338_v62  ;;  %v17805_v38 = vld [vmem:[#allocation16 + $0x20] sm:$0xff]  ;;  %v8853_v62 = vperm.slane %v19998_v27, 2 }
 0x4b9   : > { %9118 = vmatpush.bf16.msra.mxu3 %v16342_v31  ;;  %v8854_v31 = vperm.slane %v19998_v27, 3 }
 0x4ba   : > { %9090 = vmatpush.bf16.msrb.mxu1 %v16334_v12 }
 0x4bc   : > { %9128 = vmatpush.bf16.msra.mxu0 %v16426_v8  ;;  %9549 = vmatpush.bf16.msrb.mxu2 %v17808_v17 }
 0x4be   : > { %9409 = vmatpush.bf16.msra.mxu1 %v17800_v61 }
 0x4c0   : > { %9129 = vmatpush.bf16.msra.mxu0 %v16406_v43  ;;  %9550 = vmatpush.bf16.msrb.mxu2 %v17807_v58 }
 0x4c2   : > { %9410 = vmatpush.bf16.msra.mxu1 %v17799_v48 }
 0x4c4   : > { %9130 = vmatpush.bf16.msra.mxu0 %v16386_v60  ;;  %9551 = vmatpush.bf16.msrb.mxu2 %v17806_v46 }
 0x4c6   : > { %9411 = vmatpush.bf16.msra.mxu1 %v17798_v20 }
 0x4c8   : > { %9131 = vmatpush.bf16.msra.mxu0 %v16366_v63  ;;  %9552 = vmatpush.bf16.msrb.mxu2 %v17805_v38 }
 0x4ca   : > { %9412 = vmatpush.bf16.msra.mxu1 %v17797_v19 }
 0x4cc   : > { %9132 = vmatpush.bf16.msra.mxu0 %v16346_v15  ;;  %9553 = vmatpush.bf16.msrb.mxu2 %v17804_v22 }
 0x4ce   : > { %9413 = vmatpush.bf16.msra.mxu1 %v17796_v56 }
 0x4d0   : > { %9554 = vmatpush.bf16.msrb.mxu2 %v17803_v4 }
 0x4d2   : > { %9414 = vmatpush.bf16.msra.mxu1 %v17795_v10 }
 0x4d6   : > { %9415 = vmatpush.bf16.msra.mxu1 %v17794_v40 }
 0x52c   : > { %v8755_v11 = vpop.f32.mrf.mxu1 }
 0x52d   : > { %v8756_v26 = vadd.f32 %v8755_v11, %v8742_v13 }
 0x52f   : > { %11802 = vst [vmem:[%s19985_s29] sm:$0xff] %v8756_v26 }
 0x532   : > { %v8783_v1 = vpop.f32.mrf.mxu3 }
 0x533   : > { %v8784_v21 = vadd.f32 %v8783_v1, %v8770_v9  ;;  %v17802_v9 = vld [vmem:[#allocation16 + $0x8] sm:$0xff] }
 0x534   : > { %v8757_v52 = vpop.f32.mrf.mxu1  ;;  %9555 = vmatpush.bf16.msrb.mxu2 %v17802_v9 }
 0x535   : > { %v8790_v5 = vmul.f32 0.5, %v8784_v21  ;;  %11804 = vst [vmem:[%s713_s19] sm:$0xff] %v8784_v21  ;;  %v8758_v6 = vadd.f32 %v8757_v52, %v8744_v16  ;;  %v17793_v52 = vld [vmem:[#allocation13] sm:$0xff] }
 0x536   : > { %9416 = vmatpush.bf16.msra.mxu1 %v17793_v52 }
 0x537   : > { %11803 = vst [vmem:[%s19985_s29 + $0x8] sm:$0xff] %v8758_v6  ;;  %v8792_v32 = vmul.f32 1.442695, %v8790_v5  ;;  %v17801_v5 = vld [vmem:[#allocation16] sm:$0xff] }
 0x538   : > { %9556 = vmatpush.bf16.msrb.mxu2 %v17801_v5 }
 0x539   : > { %18641 = vpow2.f32 %v8792_v32 }
 0x53a   : > { %v8785_v57 = vpop.f32.mrf.mxu3 }
 0x53b   : > { %v8786_v44 = vadd.f32 %v8785_v57, %v8772_v41 }
 0x53d   : > { %v8791_v42 = vmul.f32 0.5, %v8786_v44  ;;  %11805 = vst [vmem:[%s713_s19 + $0x8] sm:$0xff] %v8786_v44 }
 0x53f   : > { %v8794_v36 = vmul.f32 1.442695, %v8791_v42  ;;  %v18642_v47 = vpop.eup %18641 }
 0x540   : > { %v8796_v24 = vmul.f32 %v18642_v47, %v8788_v34 }
 0x541   : > { %18643 = vpow2.f32 %v8794_v36 }
 0x542   : > { %v8798_v18 = vadd.f32 %v8796_v24, %v8756_v26 }
 0x547   : > { %v18644_v14 = vpop.eup %18643 }
 0x548   : > { %v8797_v35 = vmul.f32 %v18644_v14, %v8789_v23 }
 0x54a   : > { %v8799_v2 = vadd.f32 %v8797_v35, %v8758_v6 }
 0x54c   : > { %v8800_v30 = vpack.c.bf16 %v8799_v2, %v8798_v18  ;;  %v8855_v2 = vperm.slane %v19998_v27, 4 }
 0x54e   : > { %9077 = vmatmul.bf16.vlgmr.msrb.gmra.mxu0 %v8800_v30  ;;  %9091 = vmatmul.bf16.vlgmr.msrb.gmra.mxu1 %v8800_v30 }
 0x54f   : > { %9105 = vmatmul.bf16.vlgmr.msra.gmra.mxu2 %v8800_v30  ;;  %9119 = vmatmul.bf16.vlgmr.msra.gmra.mxu3 %v8800_v30 }
 0x55e   : > { %9133 = vmatmul.bf16.vlgmr.msra.gmra.mxu0 %v8800_v30 }
 0x5cb   : > { %v9078_v59 = vpop.f32.mrf.mxu0  ;;  %v9092_v45 = vpop.f32.mrf.mxu1 }
 0x5cc   : > { %v9079_v49 = vadd.f32 %v9078_v59, %v8851_v54  ;;  %v9093_v12 = vadd.f32 %v9092_v45, %v8852_v51 }
 0x5ce   : > { %v16487_v39 = vmul.f32 -1.442695, %v9079_v49  ;;  %v16488_v13 = vmul.f32 -1.442695, %v9093_v12 }
 0x5d0   : > { %18645 = vpow2.f32 %v16487_v39 }
 0x5d1   : > { %18647 = vpow2.f32 %v16488_v13 }
 0x5d2   : > { %v9106_v50 = vpop.f32.mrf.mxu2  ;;  %v9120_v11 = vpop.f32.mrf.mxu3 }
 0x5d3   : > { %v9107_v8 = vadd.f32 %v9106_v50, %v8853_v62  ;;  %v9121_v7 = vadd.f32 %v9120_v11, %v8854_v31  ;;  %v9080_v26 = vpop.f32.mrf.mxu0  ;;  %v9094_v28 = vpop.f32.mrf.mxu1 }
 0x5d4   : > { %v9081_v29 = vadd.f32 %v9080_v26, %v8851_v54  ;;  %v9095_v43 = vadd.f32 %v9094_v28, %v8852_v51 }
 0x5d5   : > { %v16489_v37 = vmul.f32 -1.442695, %v9107_v8  ;;  %v16490_v53 = vmul.f32 -1.442695, %v9121_v7 }
 0x5d6   : > { %v18646_v1 = vpop.eup %18645  ;;  %v16492_v21 = vmul.f32 -1.442695, %v9081_v29  ;;  %v16493_v3 = vmul.f32 -1.442695, %v9095_v43 }
 0x5d7   : > { %v18648_v60 = vpop.eup %18647  ;;  %v20004_v16 = vadd.f32 1.0, %v18646_v1  ;;  %18649 = vpow2.f32 %v16489_v37 }
 0x5d8   : > { %v20006_v33 = vadd.f32 1.0, %v18648_v60  ;;  %18651 = vpow2.f32 %v16490_v53 }
 0x5d9   : > { %18653 = vrcp.f32 %v20004_v16  ;;  %v9188_v48 = vand.u32 2147483647, %v20004_v16  ;;  %v9190_v20 = vand.u32 2147483648, %v20004_v16  ;;  %vm9184_vm0 = vweird.f32 %v20004_v16 }
 0x5da   : > { %18655 = vrcp.f32 %v20006_v33  ;;  %v9108_v6 = vpop.f32.mrf.mxu2  ;;  %v9122_v25 = vpop.f32.mrf.mxu3  ;;  %v9203_v54 = vand.u32 2147483647, %v20006_v33  ;;  %v9205_v27 = vand.u32 2147483648, %v20006_v33  ;;  %vm9199_vm2 = vweird.f32 %v20006_v33 }
 0x5db   : > { %18657 = vpow2.f32 %v16492_v21  ;;  %v9109_v63 = vadd.f32 %v9108_v6, %v8853_v62  ;;  %v9123_v55 = vadd.f32 %v9122_v25, %v8854_v31  ;;  %v9134_v34 = vpop.f32.mrf.mxu0  ;;  %vm20047_vm3 = vcmp.eq.f32.partialorder %v9188_v48, 8.507059e+37 }
 0x5dc   : > { %18659 = vpow2.f32 %v16493_v3  ;;  %v9135_v19 = vadd.f32 %v9134_v34, %v8855_v2  ;;  %v9191_v22 = vor.u32 1.1754944e-38, %v9190_v20  ;;  %vm20053_vm5 = vcmp.eq.f32.partialorder %v9203_v54, 8.507059e+37 }
 0x5dd   : > { %v18650_v0 = vpop.eup %18649  ;;  %v16494_v41 = vmul.f32 -1.442695, %v9109_v63  ;;  %v16495_v15 = vmul.f32 -1.442695, %v9123_v55  ;;  %v9206_v10 = vor.u32 1.1754944e-38, %v9205_v27 }
 0x5de   : > { %v18652_v32 = vpop.eup %18651  ;;  %v20010_v57 = vadd.f32 1.0, %v18650_v0  ;;  %v16491_v11 = vmul.f32 -1.442695, %v9135_v19 }
 0x5df   : > { %v20012_v44 = vpop.eup %18653  ;;  %v20014_v42 = vadd.f32 1.0, %v18652_v32  ;;  %18661 = vpow2.f32 %v16494_v41 }
 0x5e0   : > { %v20016_v36 = vpop.eup %18655  ;;  %v9180_v47 = vmul.f32 %v20012_v44, %v20004_v16  ;;  %18663 = vrcp.f32 %v20010_v57  ;;  %vm9185_vm1 = vweird.f32 %v20012_v44  ;;  %v9220_v29 = vand.u32 2147483648, %v20010_v57 }
 0x5e1   : > { %v18658_v23 = vpop.eup %18657  ;;  %v9195_v24 = vmul.f32 %v20016_v36, %v20006_v33  ;;  %18665 = vrcp.f32 %v20014_v42  ;;  %vm9200_vm4 = vweird.f32 %v20016_v36  ;;  %vm20060_vm6 = vmor %vm9184_vm0, %vm9185_vm1  ;;  %vm9214_vm15 = vweird.f32 %v20010_v57 }
 0x5e2   : > { %v18660_v14 = vpop.eup %18659  ;;  %v9181_v35 = vsub.f32 1.0, %v9180_v47  ;;  %v20024_v18 = vadd.f32 1.0, %v18658_v23  ;;  %18667 = vpow2.f32 %v16495_v15  ;;  %vm20070_vm7 = vmor %vm9199_vm2, %vm9200_vm4 }
 0x5e3   : > { %v9196_v30 = vsub.f32 1.0, %v9195_v24  ;;  %v20027_v61 = vadd.f32 1.0, %v18660_v14  ;;  %v9136_v8 = vpop.f32.mrf.mxu0 }
 0x5e4   : > { %v9182_v17 = vmul.f32 %v20012_v44, %v9181_v35  ;;  %18669 = vrcp.f32 %v20024_v18  ;;  %vm9259_vm8 = vweird.f32 %v20024_v18  ;;  %v9263_v53 = vand.u32 2147483647, %v20024_v18 }
 0x5e5   : > { %v18662_v58 = vpop.eup %18661  ;;  %v9197_v46 = vmul.f32 %v20016_v36, %v9196_v30  ;;  %18671 = vrcp.f32 %v20027_v61  ;;  %v9265_v1 = vand.u32 2147483648, %v20024_v18  ;;  %vm9274_vm9 = vweird.f32 %v20027_v61 }
 0x5e6   : > { %v20036_v51 = vpop.eup %18663  ;;  %v20044_v59 = vadd.f32 1.0, %v18662_v58  ;;  %v9183_v49 = vadd.f32 %v20012_v44, %v9182_v17  ;;  %v9137_v60 = vadd.f32 %v9136_v8, %v8855_v2  ;;  %v9280_v3 = vand.u32 2147483648, %v20027_v61 }
 0x5e7   : > { %v20039_v38 = vpop.eup %18665  ;;  %v9198_v56 = vadd.f32 %v20016_v36, %v9197_v46  ;;  %v9210_v4 = vmul.f32 %v20036_v51, %v20010_v57  ;;  %v9278_v55 = vand.u32 2147483647, %v20027_v61  ;;  %vm20100_vm12 = vcmp.eq.f32.partialorder %v9263_v53, 8.507059e+37 }
 0x5e8   : > { %v18668_v45 = vpop.eup %18667  ;;  %18673 = vrcp.f32 %v20044_v59  ;;  %v9225_v50 = vmul.f32 %v20039_v38, %v20014_v42  ;;  %v9187_v43 = vsel %vm20060_vm6, %v20012_v44, %v9183_v49  ;;  %v9266_v44 = vor.u32 1.1754944e-38, %v9265_v1 }
 0x5e9   : > { %v20058_v13 = vadd.f32 1.0, %v18668_v45  ;;  %v9202_v37 = vsel %vm20070_vm7, %v20016_v36, %v9198_v56  ;;  %v9211_v16 = vsub.f32 1.0, %v9210_v4  ;;  %v9192_v6 = vsel %vm20047_vm3, %v9191_v22, %v9187_v43 }
 0x5ea   : > { %v18670_v62 = vpop.eup %18669  ;;  %v9226_v21 = vsub.f32 1.0, %v9225_v50  ;;  %v9207_v25 = vsel %vm20053_vm5, %v9206_v10, %v9202_v37  ;;  %v16496_v36 = vmul.f32 -1.442695, %v9137_v60  ;;  %v9281_v14 = vor.u32 1.1754944e-38, %v9280_v3 }
 0x5eb   : > { %v18672_v7 = vpop.eup %18671  ;;  %v9255_v28 = vmul.f32 %v18670_v62, %v20024_v18  ;;  %18675 = vrcp.f32 %v20058_v13  ;;  %vm9260_vm10 = vweird.f32 %v18670_v62  ;;  %v9329_v24 = vpack.c.bf16 %v9207_v25, %v9192_v6 }
 0x5ec   : > { %v9270_v40 = vmul.f32 %v18672_v7, %v20027_v61  ;;  %vm9275_vm11 = vweird.f32 %v18672_v7  ;;  %vm9261_vm13 = vmor %vm9259_vm8, %vm9260_vm10  ;;  %v9212_v2 = vmul.f32 %v20036_v51, %v9211_v16  ;;  %v9227_v30 = vmul.f32 %v20039_v38, %v9226_v21 }
 0x5ed   : > { %v9256_v9 = vsub.f32 1.0, %v9255_v28  ;;  %vm9276_vm14 = vmor %vm9274_vm9, %vm9275_vm11  ;;  %vm9279_vm0 = vcmp.eq.f32.partialorder %v9278_v55, 8.507059e+37  ;;  %18677 = vpow2.f32 %v16491_v11  ;;  %vm9215_vm1 = vweird.f32 %v20036_v51 }
 0x5ee   : > { %v9271_v33 = vsub.f32 1.0, %v9270_v40  ;;  %v20089_v52 = vpop.eup %18673  ;;  %18679 = vpow2.f32 %v16496_v36  ;;  %v9357_v46 = vunpack.c.l.b16 %v9329_v24  ;;  %v9461_v54 = vunpack.c.h.b16 %v9329_v24  ;;  %vm20145_vm9 = vmor %vm9214_vm15, %vm9215_vm1 }
 0x5ef   : > { %v9257_v5 = vmul.f32 %v18670_v62, %v9256_v9  ;;  %v9285_v0 = vmul.f32 %v20089_v52, %v20044_v59  ;;  %v9213_v27 = vadd.f32 %v20036_v51, %v9212_v2  ;;  %v9228_v19 = vadd.f32 %v20039_v38, %v9227_v30 }
 0x5f0   : > { %v9272_v63 = vmul.f32 %v18672_v7, %v9271_v33  ;;  %vm9230_vm2 = vweird.f32 %v20039_v38  ;;  %vm9290_vm3 = vweird.f32 %v20089_v52  ;;  %vm9289_vm4 = vweird.f32 %v20044_v59 }
 0x5f1   : > { %v20098_v41 = vpop.eup %18675  ;;  %v9258_v32 = vadd.f32 %v18670_v62, %v9257_v5  ;;  %v9286_v34 = vsub.f32 1.0, %v9285_v0  ;;  %v9293_v22 = vand.u32 2147483647, %v20044_v59  ;;  %v9295_v39 = vand.u32 2147483648, %v20044_v59  ;;  %vm20127_vm6 = vmor %vm9289_vm4, %vm9290_vm3 }
 0x5f2   : > { %v9273_v47 = vadd.f32 %v18672_v7, %v9272_v63  ;;  %v9300_v23 = vmul.f32 %v20098_v41, %v20058_v13  ;;  %vm9304_vm5 = vweird.f32 %v20058_v13  ;;  %vm9305_vm7 = vweird.f32 %v20098_v41 }
 0x5f3   : > { %v9262_v35 = vsel %vm9261_vm13, %v18670_v62, %v9258_v32  ;;  %v9287_v61 = vmul.f32 %v20089_v52, %v9286_v34  ;;  %v18678_v50 = vpop.eup %18677  ;;  %v9218_v11 = vand.u32 2147483647, %v20010_v57  ;;  %v9235_v8 = vand.u32 2147483648, %v20014_v42  ;;  %vm20135_vm8 = vmor %vm9304_vm5, %vm9305_vm7 }
 0x5f4   : > { %v9301_v18 = vsub.f32 1.0, %v9300_v23  ;;  %v9267_v17 = vsel %vm20100_vm12, %v9266_v44, %v9262_v35  ;;  %v9277_v48 = vsel %vm9276_vm14, %v18672_v7, %v9273_v47  ;;  %v9308_v59 = vand.u32 2147483647, %v20058_v13  ;;  %v18680_v28 = vpop.eup %18679 }
 0x5f5   : > { %v9282_v58 = vsel %vm9279_vm0, %v9281_v14, %v9277_v48  ;;  %v9288_v12 = vadd.f32 %v20089_v52, %v9287_v61  ;;  %v9310_v26 = vand.u32 2147483648, %v20058_v13  ;;  %vm9229_vm10 = vweird.f32 %v20014_v42 }
 0x5f6   : > { %v9332_v20 = vpack.c.bf16 %v9282_v58, %v9267_v17  ;;  %v9302_v56 = vmul.f32 %v20098_v41, %v9301_v18  ;;  %v9233_v37 = vand.u32 2147483647, %v20014_v42  ;;  %v9221_v40 = vor.u32 1.1754944e-38, %v9220_v29  ;;  %vm20161_vm11 = vmor %vm9229_vm10, %vm9230_vm2 }
 0x5f7   : > { %v9292_v53 = vsel %vm20127_vm6, %v20089_v52, %v9288_v12  ;;  %v9296_v1 = vor.u32 1.1754944e-38, %v9295_v39  ;;  %v9311_v60 = vor.u32 1.1754944e-38, %v9310_v26  ;;  %v9217_v42 = vsel %vm20145_vm9, %v20036_v51, %v9213_v27 }
 0x5f8   : > { %v9358_v45 = vunpack.c.l.b16 %v9332_v20  ;;  %v9462_v49 = vunpack.c.h.b16 %v9332_v20  ;;  %v9303_v4 = vadd.f32 %v20098_v41, %v9302_v56  ;;  %v9232_v16 = vsel %vm20161_vm11, %v20039_v38, %v9228_v19  ;;  %v18639_v56 = vld [vmem:[#allocation14] ss:$0 sm:$0xff] }
 0x5f9   : > { %vm9294_vm12 = vcmp.eq.f32.partialorder %v9293_v22, 8.507059e+37  ;;  %vm9309_vm13 = vcmp.eq.f32.partialorder %v9308_v59, 8.507059e+37  ;;  %v9178_v57 = vadd.f32 1.0, %v18680_v28  ;;  %v9236_v29 = vor.u32 1.1754944e-38, %v9235_v8 }
 0x5fa   : > { %v9359_v62 = vpack.c.b16 %v9358_v45, %v9357_v46  ;;  %v9463_v31 = vpack.c.b16 %v9462_v49, %v9461_v54  ;;  %v9307_v13 = vsel %vm20135_vm8, %v20098_v41, %v9303_v4  ;;  %v9297_v21 = vsel %vm9294_vm12, %v9296_v1, %v9292_v53 }
 0x5fb   : > { %v9312_v33 = vsel %vm9309_vm13, %v9311_v60, %v9307_v13  ;;  %vm9219_vm14 = vcmp.eq.f32.partialorder %v9218_v11, 8.507059e+37  ;;  %vm9234_vm15 = vcmp.eq.f32.partialorder %v9233_v37, 8.507059e+37  ;;  %v9173_v3 = vadd.f32 1.0, %v18678_v50 }
 0x5fc   : > { %9417 = vmatmul.bf16.vlgmr.msra.gmra.mxu1 %v9359_v62  ;;  %9557 = vmatmul.bf16.vlgmr.msrb.gmra.mxu2 %v9463_v31  ;;  %v9222_v52 = vsel %vm9219_vm14, %v9221_v40, %v9217_v42  ;;  %v9237_v5 = vsel %vm9234_vm15, %v9236_v29, %v9232_v16  ;;  %v9333_v6 = vpack.c.bf16 %v9312_v33, %v9297_v21  ;;  %18681 = vrcp.f32 %v9178_v57  ;;  %v20171_v31 = vld [vmem:[#allocation17] ss:$0 sm:$0xff] }
 0x5fd   : > { %v9330_v25 = vpack.c.bf16 %v9237_v5, %v9222_v52  ;;  %18683 = vrcp.f32 %v9173_v3  ;;  %v9325_v14 = vand.u32 2147483648, %v9178_v57  ;;  %vm9319_vm2 = vweird.f32 %v9178_v57 }
 0x5fe   : > { %v9468_v51 = vunpack.c.l.b16 %v9333_v6  ;;  %v9472_v47 = vunpack.c.h.b16 %v9333_v6  ;;  %v9323_v30 = vand.u32 2147483647, %v9178_v57  ;;  %v9250_v18 = vand.u32 2147483648, %v9173_v3 }
 0x5ff   : > { %v9467_v63 = vunpack.c.l.b16 %v9330_v25  ;;  %v9471_v23 = vunpack.c.h.b16 %v9330_v25  ;;  %vm9244_vm4 = vweird.f32 %v9173_v3  ;;  %v9248_v17 = vand.u32 2147483647, %v9173_v3 }
 0x600   : > { %v9326_v58 = vor.u32 1.1754944e-38, %v9325_v14  ;;  %vm9324_vm6 = vcmp.eq.f32.partialorder %v9323_v30, 8.507059e+37  ;;  %v9251_v20 = vor.u32 1.1754944e-38, %v9250_v18 }
 0x601   : > { %v9469_v0 = vpack.c.b16 %v9468_v51, %v9467_v63  ;;  %v9473_v35 = vpack.c.b16 %v9472_v47, %v9471_v23  ;;  %vm9249_vm7 = vcmp.eq.f32.partialorder %v9248_v17, 8.507059e+37 }
 0x602   : > { %v18682_v55 = vpop.eup %18681 }
 0x603   : > { %v18684_v38 = vpop.eup %18683  ;;  %v9315_v41 = vmul.f32 %v18682_v55, %v9178_v57  ;;  %vm9320_vm0 = vweird.f32 %v18682_v55 }
 0x604   : > { %v9240_v32 = vmul.f32 %v18684_v38, %v9173_v3  ;;  %vm9245_vm1 = vweird.f32 %v18684_v38  ;;  %vm9321_vm3 = vmor %vm9319_vm2, %vm9320_vm0 }
 0x605   : > { %v9316_v15 = vsub.f32 1.0, %v9315_v41  ;;  %vm9246_vm5 = vmor %vm9244_vm4, %vm9245_vm1 }
 0x606   : > { %v9241_v44 = vsub.f32 1.0, %v9240_v32 }
 0x607   : > { %v9317_v36 = vmul.f32 %v18682_v55, %v9316_v15 }
 0x608   : > { %v9242_v34 = vmul.f32 %v18684_v38, %v9241_v44 }
 0x609   : > { %v9318_v24 = vadd.f32 %v18682_v55, %v9317_v36 }
 0x60a   : > { %v9243_v2 = vadd.f32 %v18684_v38, %v9242_v34 }
 0x60b   : > { %v9322_v48 = vsel %vm9321_vm3, %v18682_v55, %v9318_v24 }
 0x60c   : > { %9562 = vmatmul.bf16.gmra.mxu2 %v9469_v0  ;;  %v9247_v61 = vsel %vm9246_vm5, %v18684_v38, %v9243_v2  ;;  %v9327_v46 = vsel %vm9324_vm6, %v9326_v58, %v9322_v48 }
 0x60d   : > { %v9252_v54 = vsel %vm9249_vm7, %v9251_v20, %v9247_v61  ;;  %v9334_v27 = vpack.c.bf16 %v9327_v46, %v9327_v46 }
 0x60e   : > { %v9331_v19 = vpack.c.bf16 %v9252_v54, %v9252_v54 }
 0x60f   : > { %v9478_v45 = vunpack.c.l.b16 %v9334_v27 }
 0x610   : > { %v9477_v49 = vunpack.c.l.b16 %v9331_v19 }
 0x612   : > { %v9479_v12 = vpack.c.b16 %v9478_v45, %v9477_v49 }
 0x61c   : > { %9567 = vmatmul.bf16.gmra.mxu2 %v9473_v35 }
 0x62c   : > { %9572 = vmatmul.bf16.gmra.mxu2 %v9479_v12 }
 0x679   : > { %v9418_v22 = vpop.f32.mrf.mxu1 }
 0x67a   : > { %v9419_v39 = vadd.f32 %v18639_v56, %v9418_v22 }
 0x67c   : > { %v16529_v62 = vmul.f32 -1.442695, %v9419_v39 }
 0x67e   : > { %18685 = vpow2.f32 %v16529_v62 }
 0x67f   : > { %v9558_v10 = vpop.f32.mrf.mxu2 }
 0x680   : > { %v9559_v4 = vadd.f32 %v20171_v31, %v9558_v10 }
 0x681   : > { %v9420_v50 = vpop.f32.mrf.mxu1 }
 0x682   : > { %v16563_v11 = vmul.f32 -1.442695, %v9559_v4  ;;  %v9421_v8 = vadd.f32 %v18639_v56, %v9420_v50 }
 0x684   : > { %v18686_v7 = vpop.eup %18685  ;;  %18687 = vpow2.f32 %v16563_v11  ;;  %v16530_v59 = vmul.f32 -1.442695, %v9421_v8 }
 0x685   : > { %v9429_v26 = vadd.f32 1.0, %v18686_v7 }
 0x686   : > { %18689 = vpow2.f32 %v16530_v59 }
 0x687   : > { %18691 = vrcp.f32 %v9429_v26  ;;  %v9560_v28 = vpop.f32.mrf.mxu2  ;;  %v9440_v57 = vand.u32 2147483647, %v9429_v26  ;;  %v9442_v29 = vand.u32 2147483648, %v9429_v26  ;;  %vm9436_vm9 = vweird.f32 %v9429_v26 }
 0x688   : > { %v9561_v43 = vadd.f32 %v20171_v31, %v9560_v28 }
 0x689   : > { %vm9441_vm11 = vcmp.eq.f32.partialorder %v9440_v57, 8.507059e+37  ;;  %v9443_v63 = vor.u32 1.1754944e-38, %v9442_v29 }
 0x68a   : > { %v18688_v37 = vpop.eup %18687  ;;  %v16564_v53 = vmul.f32 -1.442695, %v9561_v43 }
 0x68b   : > { %v9602_v13 = vadd.f32 1.0, %v18688_v37 }
 0x68c   : > { %v18690_v40 = vpop.eup %18689  ;;  %18693 = vpow2.f32 %v16564_v53 }
 0x68d   : > { %v18692_v9 = vpop.eup %18691  ;;  %18695 = vrcp.f32 %v9602_v13  ;;  %v20175_v60 = vadd.f32 1.0, %v18690_v40  ;;  %v9619_v55 = vand.u32 2147483647, %v9602_v13  ;;  %v9621_v32 = vand.u32 2147483648, %v9602_v13 }
 0x68e   : > { %v9432_v1 = vmul.f32 %v18692_v9, %v9429_v26  ;;  %vm9437_vm8 = vweird.f32 %v18692_v9  ;;  %vm9615_vm12 = vweird.f32 %v9602_v13 }
 0x68f   : > { %v9563_v42 = vpop.f32.mrf.mxu2  ;;  %18697 = vrcp.f32 %v20175_v60  ;;  %vm9438_vm10 = vmor %vm9436_vm9, %vm9437_vm8  ;;  %v9457_v36 = vand.u32 2147483648, %v20175_v60  ;;  %vm20195_vm14 = vcmp.eq.f32.partialorder %v9619_v55, 8.507059e+37  ;;  %v9622_v17 = vor.u32 1.1754944e-38, %v9621_v32 }
 0x690   : > { %v9433_v16 = vsub.f32 1.0, %v9432_v1  ;;  %v9564_v21 = vadd.f32 %v20171_v31, %v9563_v42  ;;  %vm9451_vm15 = vweird.f32 %v20175_v60  ;;  %v9455_v46 = vand.u32 2147483647, %v20175_v60 }
 0x691   : > { %v9458_v19 = vor.u32 1.1754944e-38, %v9457_v36 }
 0x692   : > { %v18694_v33 = vpop.eup %18693  ;;  %v9434_v3 = vmul.f32 %v18692_v9, %v9433_v16  ;;  %v16565_v6 = vmul.f32 -1.442695, %v9564_v21  ;;  %vm9456_vm4 = vcmp.eq.f32.partialorder %v9455_v46, 8.507059e+37 }
 0x693   : > { %v18696_v52 = vpop.eup %18695  ;;  %v20179_v5 = vadd.f32 1.0, %v18694_v33 }
 0x694   : > { %v9435_v25 = vadd.f32 %v18692_v9, %v9434_v3  ;;  %v9611_v51 = vmul.f32 %v18696_v52, %v9602_v13  ;;  %vm9616_vm13 = vweird.f32 %v18696_v52 }
 0x695   : > { %18699 = vrcp.f32 %v20179_v5  ;;  %v20182_v0 = vpop.eup %18697  ;;  %vm9617_vm0 = vmor %vm9615_vm12, %vm9616_vm13  ;;  %v9634_v10 = vand.u32 2147483647, %v20179_v5  ;;  %v9636_v4 = vand.u32 2147483648, %v20179_v5  ;;  %vm9630_vm5 = vweird.f32 %v20179_v5 }
 0x696   : > { %v9439_v38 = vsel %vm9438_vm10, %v18692_v9, %v9435_v25  ;;  %v9612_v41 = vsub.f32 1.0, %v9611_v51  ;;  %18701 = vpow2.f32 %v16565_v6  ;;  %v9447_v44 = vmul.f32 %v20182_v0, %v20175_v60 }
 0x697   : > { %v20184_v15 = vsel %vm9441_vm11, %v9443_v63, %v9439_v38  ;;  %v9565_v47 = vpop.f32.mrf.mxu2  ;;  %vm9452_vm1 = vweird.f32 %v20182_v0  ;;  %vm9635_vm7 = vcmp.eq.f32.partialorder %v9634_v10, 8.507059e+37  ;;  %v9637_v40 = vor.u32 1.1754944e-38, %v9636_v4 }
 0x698   : > { %v9748_v34 = vrot.slane %v20184_v15, 1  ;;  %v9749_v23 = vrot.slane %v20184_v15, 2  ;;  %v9752_v24 = vrot.slane %v20184_v15, 5  ;;  %9776 = vst [vmem:[#allocation2] sm:$0x1] %v20184_v15  ;;  %v9753_v14 = vrot.slane %v20184_v15, 6  ;;  %vm9453_vm2 = vmor %vm9451_vm15, %vm9452_vm1 }
 0x699   : > { %v9613_v35 = vmul.f32 %v18696_v52, %v9612_v41  ;;  %v9448_v2 = vsub.f32 1.0, %v9447_v44  ;;  %v9566_v30 = vadd.f32 %v20171_v31, %v9565_v47  ;;  %v9751_v48 = vrot.slane %v20184_v15, 4 }
 0x69a   : > { %9777 = vst [vmem:[#allocation2 + $0x8] sm:$0x1] %v9748_v34  ;;  %v9754_v49 = vrot.slane %v20184_v15, 7  ;;  %v9750_v29 = vrot.slane %v20184_v15, 3 }
 0x69b   : > { %v18700_v58 = vpop.eup %18699  ;;  %9778 = vst [vmem:[#allocation2 + $0x10] sm:$0x1] %v9749_v23  ;;  %v9614_v61 = vadd.f32 %v18696_v52, %v9613_v35  ;;  %v9449_v20 = vmul.f32 %v20182_v0, %v9448_v2  ;;  %v16566_v54 = vmul.f32 -1.442695, %v9566_v30 }
 0x69c   : > { %v18702_v27 = vpop.eup %18701  ;;  %9781 = vst [vmem:[#allocation2 + $0x28] sm:$0x1] %v9752_v24  ;;  %v9626_v45 = vmul.f32 %v18700_v58, %v20179_v5  ;;  %vm9631_vm3 = vweird.f32 %v18700_v58 }
 0x69d   : > { %9782 = vst [vmem:[#allocation2 + $0x30] sm:$0x1] %v9753_v14  ;;  %v9618_v12 = vsel %vm9617_vm0, %v18696_v52, %v9614_v61  ;;  %v9450_v56 = vadd.f32 %v20182_v0, %v9449_v20  ;;  %v20209_v22 = vadd.f32 1.0, %v18702_v27  ;;  %18703 = vpow2.f32 %v16566_v54  ;;  %vm9632_vm6 = vmor %vm9630_vm5, %vm9631_vm3 }
 0x69e   : > { %v20213_v39 = vsel %vm20195_vm14, %v9622_v17, %v9618_v12  ;;  %v9627_v62 = vsub.f32 1.0, %v9626_v45  ;;  %9780 = vst [vmem:[#allocation2 + $0x20] sm:$0x1] %v9751_v48 }
 0x69f   : > { %v9794_v50 = vrot.slane %v20213_v39, 1  ;;  %v9795_v11 = vrot.slane %v20213_v39, 2  ;;  %v9798_v8 = vrot.slane %v20213_v39, 5  ;;  %9822 = vst [vmem:[#allocation2 + $0x1] sm:$0x1] %v20213_v39  ;;  %v9568_v7 = vpop.f32.mrf.mxu2  ;;  %v9799_v59 = vrot.slane %v20213_v39, 6 }
 0x6a0   : > { %v9454_v26 = vsel %vm9453_vm2, %v20182_v0, %v9450_v56  ;;  %v9628_v28 = vmul.f32 %v18700_v58, %v9627_v62  ;;  %18705 = vrcp.f32 %v20209_v22  ;;  %9783 = vst [vmem:[#allocation2 + $0x38] sm:$0x1] %v9754_v49  ;;  %v9569_v53 = vadd.f32 %v20171_v31, %v9568_v7 }
 0x6a1   : > { %9823 = vst [vmem:[#allocation2 + $0x9] sm:$0x1] %v9794_v50  ;;  %v20228_v43 = vsel %vm9456_vm4, %v9458_v19, %v9454_v26  ;;  %v9797_v9 = vrot.slane %v20213_v39, 4  ;;  %v9800_v16 = vrot.slane %v20213_v39, 7  ;;  %v9796_v33 = vrot.slane %v20213_v39, 3 }
 0x6a2   : > { %9824 = vst [vmem:[#allocation2 + $0x11] sm:$0x1] %v9795_v11  ;;  %v9629_v37 = vadd.f32 %v18700_v58, %v9628_v28  ;;  %v16567_v42 = vmul.f32 -1.442695, %v9569_v53  ;;  %v9757_v5 = vrot.slane %v20228_v43, 3  ;;  %v9755_v63 = vrot.slane %v20228_v43, 1 }
 0x6a3   : > { %v18704_v13 = vpop.eup %18703  ;;  %9827 = vst [vmem:[#allocation2 + $0x29] sm:$0x1] %v9798_v8  ;;  %v9651_v55 = vand.u32 2147483648, %v20209_v22  ;;  %v9756_v38 = vrot.slane %v20228_v43, 2  ;;  %v9649_v32 = vand.u32 2147483647, %v20209_v22  ;;  %vm9645_vm9 = vweird.f32 %v20209_v22 }
 0x6a4   : > { %9828 = vst [vmem:[#allocation2 + $0x31] sm:$0x1] %v9799_v59  ;;  %v9633_v1 = vsel %vm9632_vm6, %v18700_v58, %v9629_v37  ;;  %v20234_v60 = vadd.f32 1.0, %v18704_v13  ;;  %v11806_v17 = vadd.f32 %v20213_v39, %v20184_v15 }
 0x6a5   : > { %9784 = vst [vmem:[#allocation2 + $0x40] sm:$0x1] %v20228_v43  ;;  %v20238_v57 = vsel %vm9635_vm7, %v9637_v40, %v9633_v1  ;;  %v9652_v14 = vor.u32 1.1754944e-38, %v9651_v55  ;;  %vm9650_vm11 = vcmp.eq.f32.partialorder %v9649_v32, 8.507059e+37 }
 0x6a6   : > { %v18706_v21 = vpop.eup %18705  ;;  %9830 = vst [vmem:[#allocation2 + $0x41] sm:$0x1] %v20238_v57  ;;  %18707 = vrcp.f32 %v20234_v60  ;;  %v9803_v25 = vrot.slane %v20238_v57, 3  ;;  %v9801_v44 = vrot.slane %v20238_v57, 1  ;;  %v9802_v47 = vrot.slane %v20238_v57, 2 }
 0x6a7   : > { %v9641_v3 = vmul.f32 %v18706_v21, %v20209_v22  ;;  %18709 = vpow2.f32 %v16567_v42  ;;  %v9570_v52 = vpop.f32.mrf.mxu2  ;;  %9826 = vst [vmem:[#allocation2 + $0x21] sm:$0x1] %v9797_v9  ;;  %vm9646_vm8 = vweird.f32 %v18706_v21  ;;  %v9664_v58 = vand.u32 2147483647, %v20234_v60 }
 0x6a8   : > { %v9571_v6 = vadd.f32 %v20171_v31, %v9570_v52  ;;  %9829 = vst [vmem:[#allocation2 + $0x39] sm:$0x1] %v9800_v16  ;;  %vm9647_vm10 = vmor %vm9645_vm9, %vm9646_vm8  ;;  %v9666_v46 = vand.u32 2147483648, %v20234_v60  ;;  %vm9660_vm13 = vweird.f32 %v20234_v60  ;;  %v11807_v10 = vadd.f32 %v20238_v57, %v20228_v43 }
 0x6a9   : > { %v9642_v51 = vsub.f32 1.0, %v9641_v3  ;;  %9779 = vst [vmem:[#allocation2 + $0x18] sm:$0x1] %v9750_v29  ;;  %vm9665_vm15 = vcmp.eq.f32.partialorder %v9664_v58, 8.507059e+37 }
 0x6aa   : > { %v16568_v0 = vmul.f32 -1.442695, %v9571_v6  ;;  %9825 = vst [vmem:[#allocation2 + $0x19] sm:$0x1] %v9796_v33  ;;  %v9667_v22 = vor.u32 1.1754944e-38, %v9666_v46 }
 0x6ab   : > { %v9643_v41 = vmul.f32 %v18706_v21, %v9642_v51  ;;  %9787 = vst [vmem:[#allocation2 + $0x58] sm:$0x1] %v9757_v5 }
 0x6ac   : > { %v18708_v36 = vpop.eup %18707  ;;  %18711 = vpow2.f32 %v16568_v0  ;;  %9833 = vst [vmem:[#allocation2 + $0x59] sm:$0x1] %v9803_v25  ;;  %v19074_v25 = vmov 0.0  }
 0x6ad   : > { %v18710_v34 = vpop.eup %18709  ;;  %v9644_v23 = vadd.f32 %v18706_v21, %v9643_v41  ;;  %v9656_v24 = vmul.f32 %v18708_v36, %v20234_v60  ;;  %9785 = vst [vmem:[#allocation2 + $0x48] sm:$0x1] %v9755_v63  ;;  %vm9661_vm12 = vweird.f32 %v18708_v36 }
 0x6ae   : > { %v20256_v35 = vadd.f32 1.0, %v18710_v34  ;;  %9786 = vst [vmem:[#allocation2 + $0x50] sm:$0x1] %v9756_v38  ;;  %vm9662_vm14 = vmor %vm9660_vm13, %vm9661_vm12 }
 0x6af   : > { %v9648_v2 = vsel %vm9647_vm10, %v18706_v21, %v9644_v23  ;;  %v9657_v30 = vsub.f32 1.0, %v9656_v24  ;;  %v9573_v18 = vpop.f32.mrf.mxu2  ;;  %9831 = vst [vmem:[#allocation2 + $0x49] sm:$0x1] %v9801_v44 }
 0x6b0   : > { %v9653_v48 = vsel %vm9650_vm11, %v9652_v14, %v9648_v2  ;;  %18713 = vrcp.f32 %v20256_v35  ;;  %9832 = vst [vmem:[#allocation2 + $0x51] sm:$0x1] %v9802_v47  ;;  %v9574_v12 = vadd.f32 %v20171_v31, %v9573_v18  ;;  %v9681_v40 = vand.u32 2147483648, %v20256_v35 }
 0x6b1   : > { %v9840_v61 = vrot.slane %v9653_v48, 1  ;;  %v9841_v20 = vrot.slane %v9653_v48, 2  ;;  %9868 = vst [vmem:[#allocation2 + $0x2] sm:$0x1] %v9653_v48  ;;  %v9844_v27 = vrot.slane %v9653_v48, 5  ;;  %v11808_v15 = vadd.f32 %v11806_v17, %v9653_v48 }
 0x6b2   : > { %v18712_v54 = vpop.eup %18711  ;;  %v9658_v19 = vmul.f32 %v18708_v36, %v9657_v30  ;;  %v9845_v45 = vrot.slane %v9653_v48, 6  ;;  %v9843_v39 = vrot.slane %v9653_v48, 4  ;;  %v16569_v50 = vmul.f32 -1.442695, %v9574_v12  ;;  %9730 = vst [vmem:[#allocation2 + $0x5] sm:$0x7] %v19074_v25 }
 0x6b3   : > { %9869 = vst [vmem:[#allocation2 + $0xa] sm:$0x1] %v9840_v61  ;;  %v20269_v49 = vadd.f32 1.0, %v18712_v54  ;;  %v9846_v59 = vrot.slane %v9653_v48, 7  ;;  %v9842_v37 = vrot.slane %v9653_v48, 3  ;;  %vm9675_vm1 = vweird.f32 %v20256_v35 }
 0x6b4   : > { %11810 = vst [vmem:[%s20266_s17] sm:$0xff] %v11808_v15  ;;  %v9659_v56 = vadd.f32 %v18708_v36, %v9658_v19  ;;  %v9679_v42 = vand.u32 2147483647, %v20256_v35  ;;  %v9682_v33 = vor.u32 1.1754944e-38, %v9681_v40 }
 0x6b5   : > { %9870 = vst [vmem:[#allocation2 + $0x12] sm:$0x1] %v9841_v20  ;;  %18715 = vrcp.f32 %v20269_v49  ;;  %v9696_v5 = vand.u32 2147483648, %v20269_v49  ;;  %v9694_v55 = vand.u32 2147483647, %v20269_v49  ;;  %vm9690_vm5 = vweird.f32 %v20269_v49 }
 0x6b6   : > { %v18714_v62 = vpop.eup %18713  ;;  %9873 = vst [vmem:[#allocation2 + $0x2a] sm:$0x1] %v9844_v27  ;;  %v9663_v4 = vsel %vm9662_vm14, %v18708_v36, %v9659_v56  ;;  %18717 = vpow2.f32 %v16569_v50  ;;  %vm9680_vm3 = vcmp.eq.f32.partialorder %v9679_v42, 8.507059e+37 }
 0x6b7   : > { %9874 = vst [vmem:[#allocation2 + $0x32] sm:$0x1] %v9845_v45  ;;  %v20277_v11 = vsel %vm9665_vm15, %v9667_v22, %v9663_v4  ;;  %v9671_v8 = vmul.f32 %v18714_v62, %v20256_v35  ;;  %v9575_v7 = vpop.f32.mrf.mxu2  ;;  %vm9676_vm0 = vweird.f32 %v18714_v62  ;;  %v9697_v34 = vor.u32 1.1754944e-38, %v9696_v5 }
 0x6b8   : > { %v11809_v26 = vadd.f32 %v11807_v10, %v20277_v11  ;;  %9876 = vst [vmem:[#allocation2 + $0x42] sm:$0x1] %v20277_v11  ;;  %v9576_v28 = vadd.f32 %v20171_v31, %v9575_v7  ;;  %v9849_v13 = vrot.slane %v20277_v11, 3  ;;  %v9847_v16 = vrot.slane %v20277_v11, 1  ;;  %vm9677_vm2 = vmor %vm9675_vm1, %vm9676_vm0 }
 0x6b9   : > { %v9672_v53 = vsub.f32 1.0, %v9671_v8  ;;  %9872 = vst [vmem:[#allocation2 + $0x22] sm:$0x1] %v9843_v39  ;;  %vm9695_vm7 = vcmp.eq.f32.partialorder %v9694_v55, 8.507059e+37  ;;  %vm10049_vm0 = vcmask 1043456   ;;  %vm10024_vm1 = vcmask 64512  }
 0x6ba   : > { %11811 = vst [vmem:[%s20266_s17 + $0x8] sm:$0xff] %v11809_v26  ;;  %v16570_v9 = vmul.f32 -1.442695, %v9576_v28 }
 0x6bb   : > { %v18716_v1 = vpop.eup %18715  ;;  %v9673_v60 = vmul.f32 %v18714_v62, %v9672_v53  ;;  %9875 = vst [vmem:[#allocation2 + $0x3a] sm:$0x1] %v9846_v59 }
 0x6bc   : > { %v9686_v29 = vmul.f32 %v18716_v1, %v20269_v49  ;;  %18719 = vpow2.f32 %v16570_v9  ;;  %9871 = vst [vmem:[#allocation2 + $0x1a] sm:$0x1] %v9842_v37  ;;  %v18718_v21 = vpop.eup %18717  ;;  %vm9691_vm4 = vweird.f32 %v18716_v1 }
 0x6bd   : > { %v9674_v31 = vadd.f32 %v18714_v62, %v9673_v60  ;;  %9879 = vst [vmem:[#allocation2 + $0x5a] sm:$0x1] %v9849_v13  ;;  %v20291_v6 = vadd.f32 1.0, %v18718_v21  ;;  %vm9692_vm6 = vmor %vm9690_vm5, %vm9691_vm4 }
 0x6be   : > { %v9687_v3 = vsub.f32 1.0, %v9686_v29  ;;  %9877 = vst [vmem:[#allocation2 + $0x4a] sm:$0x1] %v9847_v16 }
 0x6bf   : > { %v9678_v52 = vsel %vm9677_vm2, %v18714_v62, %v9674_v31  ;;  %9731 = vst [vmem:[#allocation2 + $0xd] sm:$0x7] %v19074_v25  ;;  %18721 = vrcp.f32 %v20291_v6  ;;  %v9711_v15 = vand.u32 2147483648, %v20291_v6  ;;  %v9709_v45 = vand.u32 2147483647, %v20291_v6 }
 0x6c0   : > { %v9683_v51 = vsel %vm9680_vm3, %v9682_v33, %v9678_v52  ;;  %v9688_v63 = vmul.f32 %v18716_v1, %v9687_v3  ;;  %9732 = vst [vmem:[#allocation2 + $0x15] sm:$0x7] %v19074_v25  ;;  %vm9705_vm9 = vweird.f32 %v20291_v6 }
 0x6c1   : > { %v9886_v0 = vrot.slane %v9683_v51, 1  ;;  %v9887_v38 = vrot.slane %v9683_v51, 2  ;;  %9914 = vst [vmem:[#allocation2 + $0x3] sm:$0x1] %v9683_v51  ;;  %v9890_v32 = vrot.slane %v9683_v51, 5  ;;  %v9891_v44 = vrot.slane %v9683_v51, 6 }
 0x6c2   : > { %v18720_v41 = vpop.eup %18719  ;;  %v9689_v36 = vadd.f32 %v18716_v1, %v9688_v63  ;;  %v9888_v47 = vrot.slane %v9683_v51, 3  ;;  %v9889_v23 = vrot.slane %v9683_v51, 4  ;;  %v9892_v35 = vrot.slane %v9683_v51, 7  ;;  %9733 = vst [vmem:[#allocation2 + $0x1d] sm:$0x7] %v19074_v25 }
 0x6c3   : > { %9915 = vst [vmem:[#allocation2 + $0xb] sm:$0x1] %v9886_v0  ;;  %v9609_v14 = vadd.f32 1.0, %v18720_v41  ;;  %v9712_v22 = vor.u32 1.1754944e-38, %v9711_v15  ;;  %vm9710_vm11 = vcmp.eq.f32.partialorder %v9709_v45, 8.507059e+37  ;;  %v9758_v45 = vrot.slane %v20228_v43, 4 }
 0x6c4   : > { %9916 = vst [vmem:[#allocation2 + $0x13] sm:$0x1] %v9887_v38  ;;  %v9693_v24 = vsel %vm9692_vm6, %v18716_v1, %v9689_v36 }
 0x6c5   : > { %9919 = vst [vmem:[#allocation2 + $0x2b] sm:$0x1] %v9890_v32  ;;  %v20299_v2 = vsel %vm9695_vm7, %v9697_v34, %v9693_v24  ;;  %18723 = vrcp.f32 %v9609_v14  ;;  %v18722_v17 = vpop.eup %18721  ;;  %v9726_v10 = vand.u32 2147483648, %v9609_v14  ;;  %v9724_v50 = vand.u32 2147483647, %v9609_v14 }
 0x6c6   : > { %9920 = vst [vmem:[#allocation2 + $0x33] sm:$0x1] %v9891_v44  ;;  %v9893_v30 = vrot.slane %v20299_v2, 1  ;;  %v9894_v18 = vrot.slane %v20299_v2, 2  ;;  %v9896_v48 = vrot.slane %v20299_v2, 4  ;;  %v9897_v58 = vrot.slane %v20299_v2, 5 }
 0x6c7   : > { %9917 = vst [vmem:[#allocation2 + $0x1b] sm:$0x1] %v9888_v47  ;;  %v9701_v61 = vmul.f32 %v18722_v17, %v20291_v6  ;;  %v9898_v20 = vrot.slane %v20299_v2, 6  ;;  %v9899_v46 = vrot.slane %v20299_v2, 7  ;;  %vm9706_vm8 = vweird.f32 %v18722_v17 }
 0x6c8   : > { %9918 = vst [vmem:[#allocation2 + $0x23] sm:$0x1] %v9889_v23  ;;  %vm9707_vm10 = vmor %vm9705_vm9, %vm9706_vm8  ;;  %vm9720_vm13 = vweird.f32 %v9609_v14  ;;  %v9727_v53 = vor.u32 1.1754944e-38, %v9726_v10  ;;  %vm9725_vm15 = vcmp.eq.f32.partialorder %v9724_v50, 8.507059e+37  ;;  %v9850_v10 = vrot.slane %v20277_v11, 4 }
 0x6c9   : > { %9921 = vst [vmem:[#allocation2 + $0x3b] sm:$0x1] %v9892_v35  ;;  %v9702_v54 = vsub.f32 1.0, %v9701_v61  ;;  %v9853_v50 = vrot.slane %v20277_v11, 7 }
 0x6ca   : > { %9922 = vst [vmem:[#allocation2 + $0x43] sm:$0x1] %v20299_v2 }
 0x6cb   : > { %9923 = vst [vmem:[#allocation2 + $0x4b] sm:$0x1] %v9893_v30  ;;  %v18724_v27 = vpop.eup %18723  ;;  %v9703_v19 = vmul.f32 %v18722_v17, %v9702_v54  ;;  %v9805_v54 = vrot.slane %v20238_v57, 5 }
 0x6cc   : > { %9924 = vst [vmem:[#allocation2 + $0x53] sm:$0x1] %v9894_v18  ;;  %v9716_v49 = vmul.f32 %v18724_v27, %v9609_v14  ;;  %vm9721_vm12 = vweird.f32 %v18724_v27  ;;  %v9895_v18 = vrot.slane %v20299_v2, 3 }
 0x6cd   : > { %9926 = vst [vmem:[#allocation2 + $0x63] sm:$0x1] %v9896_v48  ;;  %v9704_v12 = vadd.f32 %v18722_v17, %v9703_v19  ;;  %vm9722_vm14 = vmor %vm9720_vm13, %vm9721_vm12  ;;  %v9852_v19 = vrot.slane %v20277_v11, 6 }
 0x6ce   : > { %9927 = vst [vmem:[#allocation2 + $0x6b] sm:$0x1] %v9897_v58  ;;  %v9717_v56 = vsub.f32 1.0, %v9716_v49  ;;  %v9848_v58 = vrot.slane %v20277_v11, 2 }
 0x6cf   : > { %9928 = vst [vmem:[#allocation2 + $0x73] sm:$0x1] %v9898_v20  ;;  %v9708_v39 = vsel %vm9707_vm10, %v18722_v17, %v9704_v12  ;;  %v9759_v20 = vrot.slane %v20228_v43, 5  ;;  %v9761_v12 = vrot.slane %v20228_v43, 7 }
 0x6d0   : > { %9929 = vst [vmem:[#allocation2 + $0x7b] sm:$0x1] %v9899_v46  ;;  %v9718_v62 = vmul.f32 %v18724_v27, %v9717_v56  ;;  %v9713_v4 = vsel %vm9710_vm11, %v9712_v22, %v9708_v39  ;;  %v9760_v46 = vrot.slane %v20228_v43, 6  ;;  %v9804_v56 = vrot.slane %v20238_v57, 4 }
 0x6d1   : > { %9734 = vst [vmem:[#allocation2 + $0x25] sm:$0x7] %v19074_v25  ;;  %v9932_v8 = vrot.slane %v9713_v4, 1  ;;  %v9933_v7 = vrot.slane %v9713_v4, 2  ;;  %v9936_v59 = vrot.slane %v9713_v4, 5  ;;  %v9937_v26 = vrot.slane %v9713_v4, 6 }
 0x6d2   : > { %9735 = vst [vmem:[#allocation2 + $0x2d] sm:$0x7] %v19074_v25  ;;  %v9719_v28 = vadd.f32 %v18724_v27, %v9718_v62  ;;  %v9934_v37 = vrot.slane %v9713_v4, 3  ;;  %v9935_v13 = vrot.slane %v9713_v4, 4  ;;  %v9938_v9 = vrot.slane %v9713_v4, 7 }
 0x6d3   : > { %9960 = vst [vmem:[#allocation2 + $0x4] sm:$0x1] %v9713_v4  ;;  %v9807_v39 = vrot.slane %v20238_v57, 7 }
 0x6d4   : > { %9736 = vst [vmem:[#allocation2 + $0x35] sm:$0x7] %v19074_v25  ;;  %v9723_v40 = vsel %vm9722_vm14, %v18724_v27, %v9719_v28  ;;  %v9806_v27 = vrot.slane %v20238_v57, 6 }
 0x6d5   : > { %9961 = vst [vmem:[#allocation2 + $0xc] sm:$0x1] %v9932_v8  ;;  %v20316_v1 = vsel %vm9725_vm15, %v9727_v53, %v9723_v40 }
 0x6d6   : > { %9962 = vst [vmem:[#allocation2 + $0x14] sm:$0x1] %v9933_v7  ;;  %v9939_v60 = vrot.slane %v20316_v1, 1  ;;  %v9940_v42 = vrot.slane %v20316_v1, 2  ;;  %v9942_v29 = vrot.slane %v20316_v1, 4  ;;  %v9943_v21 = vrot.slane %v20316_v1, 5 }
 0x6d7   : > { %9965 = vst [vmem:[#allocation2 + $0x2c] sm:$0x1] %v9936_v59  ;;  %v9944_v3 = vrot.slane %v20316_v1, 6  ;;  %v9945_v51 = vrot.slane %v20316_v1, 7  ;;  %v9941_v17 = vrot.slane %v20316_v1, 3 }
 0x6d8   : > { %9966 = vst [vmem:[#allocation2 + $0x34] sm:$0x1] %v9937_v26 }
 0x6d9   : > { %9963 = vst [vmem:[#allocation2 + $0x1c] sm:$0x1] %v9934_v37 }
 0x6da   : > { %9964 = vst [vmem:[#allocation2 + $0x24] sm:$0x1] %v9935_v13  ;;  %v9976_v16 = vld [vmem:[#allocation2] sm:$0xff] }
 0x6db   : > { %9967 = vst [vmem:[#allocation2 + $0x3c] sm:$0x1] %v9938_v9  ;;  %v9992_v31 = vpack.c.bf16 %v9976_v16, %v9976_v16 }
 0x6dc   : > { %9968 = vst [vmem:[#allocation2 + $0x44] sm:$0x1] %v20316_v1  ;;  %v9977_v33 = vld [vmem:[#allocation2 + $0x8] sm:$0xff] }
 0x6dd   : > { %9969 = vst [vmem:[#allocation2 + $0x4c] sm:$0x1] %v9939_v60  ;;  %v10051_v52 = vsel %vm10049_vm0, %v9992_v31, 0  ;;  %v20325_v5 = vpack.c.bf16 %v9977_v33, %v9977_v33  ;;  %v9978_v6 = vld [vmem:[#allocation2 + $0x10] sm:$0xff] }
 0x6de   : > { %9970 = vst [vmem:[#allocation2 + $0x54] sm:$0x1] %v9940_v42  ;;  %10060 = vmatpush.bf16.msrb.mxu3 %v10051_v52  ;;  %v20328_v63 = vpack.c.bf16 %v9978_v6, %v9978_v6  ;;  %v9981_v55 = vld [vmem:[#allocation2 + $0x28] sm:$0xff] }
 0x6df   : > { %9972 = vst [vmem:[#allocation2 + $0x64] sm:$0x1] %v9942_v29  ;;  %v10139_v0 = vsel %vm10049_vm0, %v20325_v5, 0  ;;  %v20332_v38 = vpack.c.bf16 %v9981_v55, %v9981_v55  ;;  %v9982_v41 = vld [vmem:[#allocation2 + $0x30] sm:$0xff] }
 0x6e0   : > { %9973 = vst [vmem:[#allocation2 + $0x6c] sm:$0x1] %v9943_v21  ;;  %v9979_v32 = vld [vmem:[#allocation2 + $0x18] sm:$0xff]  ;;  %10148 = vmatpush.bf16.msrb.mxu0 %v10139_v0  ;;  %v10227_v44 = vsel %vm10049_vm0, %v20328_v63, 0  ;;  %v20336_v36 = vpack.c.bf16 %v9982_v41, %v9982_v41 }
 0x6e1   : > { %9974 = vst [vmem:[#allocation2 + $0x74] sm:$0x1] %v9944_v3  ;;  %v9980_v47 = vld [vmem:[#allocation2 + $0x20] sm:$0xff]  ;;  %v9995_v34 = vpack.c.bf16 %v9979_v32, %v9979_v32  ;;  %10236 = vmatpush.bf16.msrb.mxu1 %v10227_v44  ;;  %v10491_v23 = vsel %vm10049_vm0, %v20332_v38, 0 }
 0x6e2   : > { %9975 = vst [vmem:[#allocation2 + $0x7c] sm:$0x1] %v9945_v51  ;;  %v9996_v24 = vpack.c.bf16 %v9980_v47, %v9980_v47  ;;  %v10579_v14 = vsel %vm10049_vm0, %v20336_v36, 0 }
 0x6e3   : > { %9737 = vst [vmem:[#allocation2 + $0x3d] sm:$0x7] %v19074_v25  ;;  %18503 = vxpose.binary.xlu0.c.b16.start.end [1/2] (short) %v9995_v34, %v9992_v31, 128  ;;  %v10315_v35 = vsel %vm10049_vm0, %v9995_v34, 0 }
 0x6e4   : > { %10500 = vmatpush.bf16.msra.mxu0 %v10491_v23  ;;  %9738 = vst [vmem:[#allocation2 + $0x45] sm:$0x7] %v19074_v25  ;;  %10324 = vmatpush.bf16.msra.mxu2 %v10315_v35  ;;  %v10403_v30 = vsel %vm10049_vm0, %v9996_v24, 0 }
 0x6e5   : > { %10588 = vmatpush.bf16.msra.mxu1 %v10579_v14  ;;  %9739 = vst [vmem:[#allocation2 + $0x4d] sm:$0x7] %v19074_v25  ;;  %10412 = vmatpush.bf16.msra.mxu3 %v10403_v30 }
 0x6e6   : > { %9740 = vst [vmem:[#allocation2 + $0x55] sm:$0x7] %v19074_v25 }
 0x6e7   : > { %9741 = vst [vmem:[#allocation2 + $0x5d] sm:$0x7] %v19074_v25 }
 0x6e8   : > { %9742 = vst [vmem:[#allocation2 + $0x65] sm:$0x7] %v19074_v25 }
 0x6e9   : > { %9743 = vst [vmem:[#allocation2 + $0x6d] sm:$0x7] %v19074_v25 }
 0x6ea   : > { %9744 = vst [vmem:[#allocation2 + $0x75] sm:$0x7] %v19074_v25  ;;  %v9983_v48 = vld [vmem:[#allocation2 + $0x38] sm:$0xff] }
 0x6eb   : > { %9745 = vst [vmem:[#allocation2 + $0x7d] sm:$0x7] %v19074_v25  ;;  %v9999_v61 = vpack.c.bf16 %v9983_v48, %v9983_v48  ;;  %v9984_v15 = vld [vmem:[#allocation2 + $0x40] sm:$0xff]  ;;  %v9851_v25 = vrot.slane %v20277_v11, 5 }
 0x6ec   : > { %9925 = vst [vmem:[#allocation2 + $0x5b] sm:$0x1] %v9895_v18  ;;  %v10000_v49 = vpack.c.bf16 %v9984_v15, %v9984_v15  ;;  %v9985_v57 = vld [vmem:[#allocation2 + $0x48] sm:$0xff] }
 0x6ed   : > { %18537 = vxpose.binary.xlu1.c.b16.start.end [1/2] (short) %v9999_v61, %v9996_v24, 128  ;;  %v10667_v2 = vsel %vm10049_vm0, %v9999_v61, 0  ;;  %9971 = vst [vmem:[#allocation2 + $0x5c] sm:$0x1] %v9941_v17  ;;  %v10001_v7 = vpack.c.bf16 %v9985_v57, %v9985_v57 }
 0x6ee   : > { %10676 = vmatpush.bf16.msrb.mxu2 %v10667_v2  ;;  %9878 = vst [vmem:[#allocation2 + $0x52] sm:$0x1] %v9848_v58  ;;  %v10755_v4 = vsel %vm10049_vm0, %v10000_v49, 0 }
 0x6ef   : > { %9789 = vst [vmem:[#allocation2 + $0x68] sm:$0x1] %v9759_v20  ;;  %v10843_v34 = vsel %vm10049_vm0, %v10001_v7, 0 }
 0x6f0   : > { %9790 = vst [vmem:[#allocation2 + $0x70] sm:$0x1] %v9760_v46 }
 0x6f1   : > { %9835 = vst [vmem:[#allocation2 + $0x69] sm:$0x1] %v9805_v54 }
 0x6f2   : > { %9836 = vst [vmem:[#allocation2 + $0x71] sm:$0x1] %v9806_v27 }
 0x6f3   : > { %9881 = vst [vmem:[#allocation2 + $0x6a] sm:$0x1] %v9851_v25 }
 0x6f4   : > { %v9987_v22 = vld [vmem:[#allocation2 + $0x58] sm:$0xff]  ;;  %9882 = vst [vmem:[#allocation2 + $0x72] sm:$0x1] %v9852_v19 }
 0x6f5   : > { %v10003_v62 = vpack.c.bf16 %v9987_v22, %v9987_v22  ;;  %9788 = vst [vmem:[#allocation2 + $0x60] sm:$0x1] %v9758_v45  ;;  %v9986_v8 = vld [vmem:[#allocation2 + $0x50] sm:$0xff] }
 0x6f6   : > { %9791 = vst [vmem:[#allocation2 + $0x78] sm:$0x1] %v9761_v12  ;;  %v20375_v59 = vpack.c.bf16 %v9986_v8, %v9986_v8 }
 0x6f7   : > { %18571 = vxpose.binary.xlu2.c.b16.start.end [1/2] (short) %v10003_v62, %v10000_v49, 128  ;;  %9834 = vst [vmem:[#allocation2 + $0x61] sm:$0x1] %v9804_v56  ;;  %v11019_v43 = vsel %vm10049_vm0, %v10003_v62, 0 }
 0x6f8   : > { %9837 = vst [vmem:[#allocation2 + $0x79] sm:$0x1] %v9807_v39  ;;  %v10931_v30 = vsel %vm10049_vm0, %v20375_v59, 0 }
 0x6f9   : > { %9880 = vst [vmem:[#allocation2 + $0x62] sm:$0x1] %v9850_v10 }
 0x6fa   : > { %9883 = vst [vmem:[#allocation2 + $0x7a] sm:$0x1] %v9853_v50  ;;  %v9989_v3 = vld [vmem:[#allocation2 + $0x68] sm:$0xff] }
 0x6fb   : > { %v9990_v52 = vld [vmem:[#allocation2 + $0x70] sm:$0xff]  ;;  %v20390_v6 = vpack.c.bf16 %v9989_v3, %v9989_v3 }
 0x6fc   : > { %v20392_v51 = vpack.c.bf16 %v9990_v52, %v9990_v52 }
 0x700   : > { %v9988_v42 = vld [vmem:[#allocation2 + $0x60] sm:$0xff] }
 0x701   : > { %v9991_v16 = vld [vmem:[#allocation2 + $0x78] sm:$0xff]  ;;  %v10004_v31 = vpack.c.bf16 %v9988_v42, %v9988_v42 }
 0x702   : > { %v10007_v21 = vpack.c.bf16 %v9991_v16, %v9991_v16 }
 0x703   : > { %v11107_v23 = vsel %vm10049_vm0, %v10004_v31, 0 }
 0x704   : > { %v11371_v18 = vsel %vm10049_vm0, %v10007_v21, 0 }
 0x763   : > { %18520 = vxpose.binary.xlu0.c.b16.start.end [1/2] (short) %v20328_v63, %v20325_v5, 128 }
 0x76d   : > { %18554 = vxpose.binary.xlu1.c.b16.start.end [1/2] (short) %v20336_v36, %v20332_v38, 128 }
 0x777   : > { %18588 = vxpose.binary.xlu2.c.b16.start.end [1/2] (short) %v20375_v59, %v10001_v7, 128 }
 0x78f   : > { %v18504_v11 = vpop.trf.xlu0 }
 0x790   : > { %16571 = vmatmul.msk.bf16.vlgmr.msrb.gmra.mxu3 %vm10024_vm1, %v18504_v11 }
 0x791   : > { %10764 = vmatpush.bf16.msrb.mxu3 %v10755_v4 }
 0x797   : > { %v18505_v26 = vpop.trf.xlu0 }
 0x798   : > { %16595 = vmatmul.msk.bf16.vlgmr.msra.gmra.mxu2 %vm10024_vm1, %v18505_v26 }
 0x799   : > { %11028 = vmatpush.bf16.msra.mxu2 %v11019_v43  ;;  %v18538_v5 = vpop.trf.xlu1 }
 0x79f   : > { %v18506_v28 = vpop.trf.xlu0 }
 0x7a0   : > { %16572 = vmatmul.msk.bf16.gmra.mxu3 %vm10024_vm1, %v18506_v28 }
 0x7a1   : > { %v18539_v55 = vpop.trf.xlu1 }
 0x7a7   : > { %v18507_v37 = vpop.trf.xlu0 }
 0x7a8   : > { %16596 = vmatmul.msk.bf16.gmra.mxu2 %vm10024_vm1, %v18507_v37 }
 0x7a9   : > { %v18540_v38 = vpop.trf.xlu1 }
 0x7af   : > { %v18508_v53 = vpop.trf.xlu0 }
 0x7b0   : > { %16573 = vmatmul.msk.bf16.gmra.mxu3 %vm10024_vm1, %v18508_v53 }
 0x7b1   : > { %v18541_v32 = vpop.trf.xlu1 }
 0x7b7   : > { %v18509_v13 = vpop.trf.xlu0 }
 0x7b8   : > { %16597 = vmatmul.msk.bf16.gmra.mxu2 %vm10024_vm1, %v18509_v13 }
 0x7b9   : > { %v18542_v36 = vpop.trf.xlu1 }
 0x7bf   : > { %v18510_v40 = vpop.trf.xlu0 }
 0x7c0   : > { %16574 = vmatmul.msk.bf16.gmra.mxu3 %vm10024_vm1, %v18510_v40 }
 0x7c1   : > { %v18543_v14 = vpop.trf.xlu1 }
 0x7c7   : > { %v18511_v9 = vpop.trf.xlu0 }
 0x7c8   : > { %16598 = vmatmul.msk.bf16.gmra.mxu2 %vm10024_vm1, %v18511_v9 }
 0x7c9   : > { %v18544_v61 = vpop.trf.xlu1 }
 0x7cf   : > { %v18512_v1 = vpop.trf.xlu0 }
 0x7d0   : > { %16575 = vmatmul.msk.bf16.gmra.mxu3 %vm10024_vm1, %v18512_v1 }
 0x7d1   : > { %v18545_v27 = vpop.trf.xlu1 }
 0x7d7   : > { %v18513_v60 = vpop.trf.xlu0 }
 0x7d8   : > { %16599 = vmatmul.msk.bf16.gmra.mxu2 %vm10024_vm1, %v18513_v60 }
 0x7d9   : > { %v18546_v49 = vpop.trf.xlu1 }
 0x7df   : > { %v18514_v29 = vpop.trf.xlu0 }
 0x7e0   : > { %16576 = vmatmul.msk.bf16.gmra.mxu3 %vm10024_vm1, %v18514_v29 }
 0x7e1   : > { %v18547_v62 = vpop.trf.xlu1 }
 0x7e3   : > { %18605 = vxpose.binary.xlu0.c.b16.start.end [1/2] (short) %v10007_v21, %v10004_v31, 128 }
 0x7e7   : > { %v18515_v33 = vpop.trf.xlu0 }
 0x7e8   : > { %16600 = vmatmul.msk.bf16.gmra.mxu2 %vm10024_vm1, %v18515_v33 }
 0x7e9   : > { %v18548_v57 = vpop.trf.xlu1 }
 0x7ed   : > { %18622 = vxpose.binary.xlu1.c.b16.start.end [1/2] (short) %v20392_v51, %v20390_v6, 128 }
 0x7ef   : > { %v18516_v63 = vpop.trf.xlu0 }
 0x7f0   : > { %16577 = vmatmul.msk.bf16.gmra.mxu3 %vm10024_vm1, %v18516_v63 }
 0x7f1   : > { %v18549_v26 = vpop.trf.xlu1 }
 0x7f7   : > { %v18517_v0 = vpop.trf.xlu0 }
 0x7f8   : > { %16601 = vmatmul.msk.bf16.gmra.mxu2 %vm10024_vm1, %v18517_v0 }
 0x7f9   : > { %v18550_v40 = vpop.trf.xlu1 }
 0x7ff   : > { %v18518_v41 = vpop.trf.xlu0 }
 0x800   : > { %16578 = vmatmul.msk.bf16.gmra.mxu3 %vm10024_vm1, %v18518_v41 }
 0x801   : > { %v18551_v16 = vpop.trf.xlu1 }
 0x807   : > { %v18519_v44 = vpop.trf.xlu0 }
 0x808   : > { %16602 = vmatmul.msk.bf16.gmra.mxu2 %vm10024_vm1, %v18519_v44 }
 0x809   : > { %v18552_v3 = vpop.trf.xlu1 }
 0x80f   : > { %v18521_v47 = vpop.trf.xlu0 }
 0x810   : > { %16579 = vmatmul.msk.bf16.vlgmr.msrb.gmra.mxu0 %vm10024_vm1, %v18521_v47  ;;  %16603 = vmatmul.msk.bf16.vlgmr.msra.gmra.mxu3 %vm10024_vm1, %v18538_v5 }
 0x811   : > { %10852 = vmatpush.bf16.msrb.mxu0 %v10843_v34  ;;  %11116 = vmatpush.bf16.msra.mxu3 %v11107_v23  ;;  %v18553_v0 = vpop.trf.xlu1 }
 0x813   : > { %v10062_v24 = vpop.f32.mrf.mxu3 }
 0x817   : > { %v18522_v35 = vpop.trf.xlu0 }
 0x818   : > { %16587 = vmatmul.msk.bf16.vlgmr.msrb.gmra.mxu1 %vm10024_vm1, %v18522_v35  ;;  %16627 = vmatmul.msk.bf16.vlgmr.msrb.gmra.mxu2 %vm10024_vm1, %v18539_v55 }
 0x819   : > { %10940 = vmatpush.bf16.msrb.mxu1 %v10931_v30  ;;  %11380 = vmatpush.bf16.msrb.mxu2 %v11371_v18  ;;  %v18555_v47 = vpop.trf.xlu1 }
 0x81b   : > { %v10064_v17 = vpop.f32.mrf.mxu3  ;;  %v10326_v48 = vpop.f32.mrf.mxu2 }
 0x81c   : > { %v17812_v58 = vpack.c.bf16 %v10064_v17, %v10062_v24 }
 0x81e   : > { %17813 = vst [vmem:[%s20413_s28] sm:$0xff] %v17812_v58  }
 0x81f   : > { %v18523_v20 = vpop.trf.xlu0 }
 0x820   : > { %16580 = vmatmul.msk.bf16.gmra.mxu0 %vm10024_vm1, %v18523_v20  ;;  %16604 = vmatmul.msk.bf16.gmra.mxu3 %vm10024_vm1, %v18540_v38 }
 0x821   : > { %v18556_v18 = vpop.trf.xlu1 }
 0x823   : > { %v10067_v46 = vpop.f32.mrf.mxu3  ;;  %v10328_v2 = vpop.f32.mrf.mxu2 }
 0x824   : > { %v17902_v54 = vpack.c.bf16 %v10328_v2, %v10326_v48 }
 0x826   : > { %18306 = vst [vmem:[%s20413_s28 + $0x90] sm:$0xff] %v17902_v54  }
 0x827   : > { %v18524_v15 = vpop.trf.xlu0 }
 0x828   : > { %16588 = vmatmul.msk.bf16.gmra.mxu1 %vm10024_vm1, %v18524_v15  ;;  %16628 = vmatmul.msk.bf16.gmra.mxu2 %vm10024_vm1, %v18541_v32 }
 0x829   : > { %v18557_v20 = vpop.trf.xlu1 }
 0x82b   : > { %v10069_v25 = vpop.f32.mrf.mxu3  ;;  %v10331_v19 = vpop.f32.mrf.mxu2 }
 0x82c   : > { %v17817_v45 = vpack.c.bf16 %v10069_v25, %v10067_v46 }
 0x82e   : > { %18289 = vst [vmem:[%s20413_s28 + $0x8] sm:$0xff] %v17817_v45  }
 0x82f   : > { %v18525_v12 = vpop.trf.xlu0 }
 0x830   : > { %16581 = vmatmul.msk.bf16.gmra.mxu0 %vm10024_vm1, %v18525_v12  ;;  %16605 = vmatmul.msk.bf16.gmra.mxu3 %vm10024_vm1, %v18542_v36  ;;  %v18572_v36 = vpop.trf.xlu2 }
 0x833   : > { %v10072_v56 = vpop.f32.mrf.mxu3  ;;  %v10333_v22 = vpop.f32.mrf.mxu2 }
 0x834   : > { %v17907_v39 = vpack.c.bf16 %v10333_v22, %v10331_v19  ;;  %v18558_v19 = vpop.trf.xlu1 }
 0x836   : > { %18307 = vst [vmem:[%s20413_s28 + $0x98] sm:$0xff] %v17907_v39  }
 0x837   : > { %v18526_v10 = vpop.trf.xlu0 }
 0x838   : > { %16589 = vmatmul.msk.bf16.gmra.mxu1 %vm10024_vm1, %v18526_v10  ;;  %16629 = vmatmul.msk.bf16.gmra.mxu2 %vm10024_vm1, %v18543_v14  ;;  %v18573_v30 = vpop.trf.xlu2 }
 0x83b   : > { %v10074_v4 = vpop.f32.mrf.mxu3  ;;  %v10336_v50 = vpop.f32.mrf.mxu2 }
 0x83c   : > { %v17822_v43 = vpack.c.bf16 %v10074_v4, %v10072_v56  ;;  %v18559_v4 = vpop.trf.xlu1 }
 0x83e   : > { %18290 = vst [vmem:[%s20413_s28 + $0x10] sm:$0xff] %v17822_v43  }
 0x83f   : > { %v18527_v8 = vpop.trf.xlu0 }
 0x840   : > { %16582 = vmatmul.msk.bf16.gmra.mxu0 %vm10024_vm1, %v18527_v8  ;;  %16606 = vmatmul.msk.bf16.gmra.mxu3 %vm10024_vm1, %v18544_v61  ;;  %v18574_v61 = vpop.trf.xlu2 }
 0x843   : > { %v10077_v7 = vpop.f32.mrf.mxu3  ;;  %v10338_v59 = vpop.f32.mrf.mxu2 }
 0x844   : > { %v17912_v11 = vpack.c.bf16 %v10338_v59, %v10336_v50  ;;  %v11283_v50 = vsel %vm10049_vm0, %v20392_v51, 0 }
 0x846   : > { %18308 = vst [vmem:[%s20413_s28 + $0xa0] sm:$0xff] %v17912_v11  }
 0x847   : > { %v18528_v28 = vpop.trf.xlu0 }
 0x848   : > { %16590 = vmatmul.msk.bf16.gmra.mxu1 %vm10024_vm1, %v18528_v28  ;;  %16630 = vmatmul.msk.bf16.gmra.mxu2 %vm10024_vm1, %v18545_v27  ;;  %v18575_v27 = vpop.trf.xlu2 }
 0x84b   : > { %v10079_v37 = vpop.f32.mrf.mxu3  ;;  %v10341_v53 = vpop.f32.mrf.mxu2 }
 0x84c   : > { %v17827_v13 = vpack.c.bf16 %v10079_v37, %v10077_v7 }
 0x84e   : > { %18291 = vst [vmem:[%s20413_s28 + $0x18] sm:$0xff] %v17827_v13  }
 0x84f   : > { %v18529_v9 = vpop.trf.xlu0 }
 0x850   : > { %16583 = vmatmul.msk.bf16.gmra.mxu0 %vm10024_vm1, %v18529_v9  ;;  %16607 = vmatmul.msk.bf16.gmra.mxu3 %vm10024_vm1, %v18546_v49  ;;  %v11195_v49 = vsel %vm10049_vm0, %v20390_v6, 0  ;;  %v18576_v12 = vpop.trf.xlu2 }
 0x853   : > { %v10082_v1 = vpop.f32.mrf.mxu3  ;;  %v10343_v60 = vpop.f32.mrf.mxu2 }
 0x854   : > { %v17917_v42 = vpack.c.bf16 %v10343_v60, %v10341_v53 }
 0x856   : > { %18309 = vst [vmem:[%s20413_s28 + $0xa8] sm:$0xff] %v17917_v42  }
 0x857   : > { %v18530_v29 = vpop.trf.xlu0 }
 0x858   : > { %16591 = vmatmul.msk.bf16.gmra.mxu1 %vm10024_vm1, %v18530_v29  ;;  %16631 = vmatmul.msk.bf16.gmra.mxu2 %vm10024_vm1, %v18547_v62  ;;  %v18577_v43 = vpop.trf.xlu2 }
 0x85b   : > { %v10084_v31 = vpop.f32.mrf.mxu3  ;;  %v10346_v21 = vpop.f32.mrf.mxu2 }
 0x85c   : > { %v17832_v33 = vpack.c.bf16 %v10084_v31, %v10082_v1 }
 0x85e   : > { %18292 = vst [vmem:[%s20413_s28 + $0x20] sm:$0xff] %v17832_v33  }
 0x85f   : > { %v18531_v52 = vpop.trf.xlu0 }
 0x860   : > { %16584 = vmatmul.msk.bf16.gmra.mxu0 %vm10024_vm1, %v18531_v52  ;;  %16608 = vmatmul.msk.bf16.gmra.mxu3 %vm10024_vm1, %v18548_v57  ;;  %v18578_v28 = vpop.trf.xlu2 }
 0x863   : > { %v10087_v5 = vpop.f32.mrf.mxu3  ;;  %v10348_v63 = vpop.f32.mrf.mxu2 }
 0x864   : > { %v17922_v55 = vpack.c.bf16 %v10348_v63, %v10346_v21 }
 0x866   : > { %18310 = vst [vmem:[%s20413_s28 + $0xb0] sm:$0xff] %v17922_v55  }
 0x867   : > { %v18532_v38 = vpop.trf.xlu0 }
 0x868   : > { %16592 = vmatmul.msk.bf16.gmra.mxu1 %vm10024_vm1, %v18532_v38  ;;  %16632 = vmatmul.msk.bf16.gmra.mxu2 %vm10024_vm1, %v18549_v26  ;;  %v18560_v26 = vpop.trf.xlu1  ;;  %v18579_v1 = vpop.trf.xlu2 }
 0x86b   : > { %v10089_v41 = vpop.f32.mrf.mxu3  ;;  %v10351_v32 = vpop.f32.mrf.mxu2 }
 0x86c   : > { %v17837_v44 = vpack.c.bf16 %v10089_v41, %v10087_v5 }
 0x86e   : > { %18293 = vst [vmem:[%s20413_s28 + $0x28] sm:$0xff] %v17837_v44  }
 0x86f   : > { %v18533_v34 = vpop.trf.xlu0 }
 0x870   : > { %16585 = vmatmul.msk.bf16.gmra.mxu0 %vm10024_vm1, %v18533_v34  ;;  %16609 = vmatmul.msk.bf16.gmra.mxu3 %vm10024_vm1, %v18550_v40  ;;  %v18561_v60 = vpop.trf.xlu1 }
 0x873   : > { %v10092_v23 = vpop.f32.mrf.mxu3  ;;  %v10353_v24 = vpop.f32.mrf.mxu2 }
 0x874   : > { %v17927_v14 = vpack.c.bf16 %v10353_v24, %v10351_v32 }
 0x876   : > { %18311 = vst [vmem:[%s20413_s28 + $0xb8] sm:$0xff] %v17927_v14  }
 0x877   : > { %v18534_v35 = vpop.trf.xlu0 }
 0x878   : > { %16593 = vmatmul.msk.bf16.gmra.mxu1 %vm10024_vm1, %v18534_v35  ;;  %16633 = vmatmul.msk.bf16.gmra.mxu2 %vm10024_vm1, %v18551_v16  ;;  %v18562_v55 = vpop.trf.xlu1 }
 0x87b   : > { %v10093_v17 = vpop.f32.mrf.mxu3  ;;  %v10356_v48 = vpop.f32.mrf.mxu2 }
 0x87f   : > { %v18535_v58 = vpop.trf.xlu0 }
 0x880   : > { %16586 = vmatmul.msk.bf16.gmra.mxu0 %vm10024_vm1, %v18535_v58  ;;  %16610 = vmatmul.msk.bf16.gmra.mxu3 %vm10024_vm1, %v18552_v3  ;;  %v18580_v3 = vpop.trf.xlu2  ;;  %v18563_v14 = vpop.trf.xlu1 }
 0x883   : > { %v10095_v46 = vpop.f32.mrf.mxu3  ;;  %v10357_v2 = vpop.f32.mrf.mxu2 }
 0x887   : > { %v18536_v54 = vpop.trf.xlu0 }
 0x888   : > { %16594 = vmatmul.msk.bf16.gmra.mxu1 %vm10024_vm1, %v18536_v54  ;;  %16634 = vmatmul.msk.bf16.gmra.mxu2 %vm10024_vm1, %v18553_v0  ;;  %v18581_v32 = vpop.trf.xlu2 }
 0x88b   : > { %v10096_v15 = vpop.f32.mrf.mxu3  ;;  %v10359_v25 = vpop.f32.mrf.mxu2 }
 0x88d   : > { %v10150_v45 = vpop.f32.mrf.mxu0 }
 0x890   : > { %16611 = vmatmul.msk.bf16.vlgmr.msra.gmra.mxu0 %vm10024_vm1, %v18555_v47  ;;  %16635 = vmatmul.msk.bf16.vlgmr.msrb.gmra.mxu3 %vm10024_vm1, %v18572_v36  ;;  %v18582_v35 = vpop.trf.xlu2 }
 0x891   : > { %11204 = vmatpush.bf16.msra.mxu0 %v11195_v49 }
 0x893   : > { %v10360_v56 = vpop.f32.mrf.mxu2  ;;  %v10414_v22 = vpop.f32.mrf.mxu3 }
 0x895   : > { %v10152_v39 = vpop.f32.mrf.mxu0  ;;  %v10238_v62 = vpop.f32.mrf.mxu1 }
 0x896   : > { %v17842_v10 = vpack.c.bf16 %v10152_v39, %v10150_v45 }
 0x898   : > { %18294 = vst [vmem:[%s20413_s28 + $0x30] sm:$0xff] %v17842_v10   ;;  %16619 = vmatmul.msk.bf16.vlgmr.msra.gmra.mxu1 %vm10024_vm1, %v18556_v18  ;;  %16659 = vmatmul.msk.bf16.vlgmr.msra.gmra.mxu2 %vm10024_vm1, %v18573_v30  ;;  %v18583_v46 = vpop.trf.xlu2 }
 0x899   : > { %11292 = vmatpush.bf16.msra.mxu1 %v11283_v50 }
 0x89b   : > { %v10416_v6 = vpop.f32.mrf.mxu3  ;;  %v10678_v57 = vpop.f32.mrf.mxu2 }
 0x89c   : > { %v17932_v8 = vpack.c.bf16 %v10416_v6, %v10414_v22 }
 0x89d   : > { %v10155_v7 = vpop.f32.mrf.mxu0  ;;  %v10240_v59 = vpop.f32.mrf.mxu1 }
 0x89e   : > { %18312 = vst [vmem:[%s20413_s28 + $0xc0] sm:$0xff] %v17932_v8   ;;  %v17872_v11 = vpack.c.bf16 %v10240_v59, %v10238_v62 }
 0x8a0   : > { %18300 = vst [vmem:[%s20413_s28 + $0x60] sm:$0xff] %v17872_v11   ;;  %16612 = vmatmul.msk.bf16.gmra.mxu0 %vm10024_vm1, %v18557_v20  ;;  %16636 = vmatmul.msk.bf16.gmra.mxu3 %vm10024_vm1, %v18574_v61  ;;  %v18564_v20 = vpop.trf.xlu1  ;;  %v18584_v45 = vpop.trf.xlu2 }
 0x8a3   : > { %v10419_v37 = vpop.f32.mrf.mxu3  ;;  %v10680_v51 = vpop.f32.mrf.mxu2 }
 0x8a4   : > { %v18022_v53 = vpack.c.bf16 %v10680_v51, %v10678_v57 }
 0x8a5   : > { %v10157_v13 = vpop.f32.mrf.mxu0  ;;  %v10243_v40 = vpop.f32.mrf.mxu1 }
 0x8a6   : > { %18330 = vst [vmem:[%s20413_s28 + $0x150] sm:$0xff] %v18022_v53   ;;  %v17847_v9 = vpack.c.bf16 %v10157_v13, %v10155_v7 }
 0x8a8   : > { %18295 = vst [vmem:[%s20413_s28 + $0x38] sm:$0xff] %v17847_v9   ;;  %16620 = vmatmul.msk.bf16.gmra.mxu1 %vm10024_vm1, %v18558_v19  ;;  %16660 = vmatmul.msk.bf16.gmra.mxu2 %vm10024_vm1, %v18575_v27  ;;  %v18565_v49 = vpop.trf.xlu1 }
 0x8ab   : > { %v10421_v42 = vpop.f32.mrf.mxu3  ;;  %v10683_v16 = vpop.f32.mrf.mxu2 }
 0x8ac   : > { %v17937_v29 = vpack.c.bf16 %v10421_v42, %v10419_v37 }
 0x8ad   : > { %v10160_v31 = vpop.f32.mrf.mxu0  ;;  %v10245_v21 = vpop.f32.mrf.mxu1 }
 0x8ae   : > { %18313 = vst [vmem:[%s20413_s28 + $0xc8] sm:$0xff] %v17937_v29   ;;  %v17877_v33 = vpack.c.bf16 %v10245_v21, %v10243_v40 }
 0x8b0   : > { %18301 = vst [vmem:[%s20413_s28 + $0x68] sm:$0xff] %v17877_v33   ;;  %16613 = vmatmul.msk.bf16.gmra.mxu0 %vm10024_vm1, %v18559_v4  ;;  %16637 = vmatmul.msk.bf16.gmra.mxu3 %vm10024_vm1, %v18576_v12  ;;  %v18585_v4 = vpop.trf.xlu2  ;;  %v18566_v57 = vpop.trf.xlu1 }
 0x8b3   : > { %v10424_v52 = vpop.f32.mrf.mxu3  ;;  %v10685_v5 = vpop.f32.mrf.mxu2 }
 0x8b4   : > { %v18027_v63 = vpack.c.bf16 %v10685_v5, %v10683_v16 }
 0x8b5   : > { %v10162_v0 = vpop.f32.mrf.mxu0  ;;  %v10248_v38 = vpop.f32.mrf.mxu1 }
 0x8b6   : > { %18331 = vst [vmem:[%s20413_s28 + $0x158] sm:$0xff] %v18027_v63   ;;  %v17852_v41 = vpack.c.bf16 %v10162_v0, %v10160_v31 }
 0x8b8   : > { %18296 = vst [vmem:[%s20413_s28 + $0x40] sm:$0xff] %v17852_v41   ;;  %16621 = vmatmul.msk.bf16.gmra.mxu1 %vm10024_vm1, %v18560_v26  ;;  %16661 = vmatmul.msk.bf16.gmra.mxu2 %vm10024_vm1, %v18577_v43  ;;  %v18586_v11 = vpop.trf.xlu2  ;;  %v18567_v40 = vpop.trf.xlu1 }
 0x8bb   : > { %v10426_v44 = vpop.f32.mrf.mxu3  ;;  %v10688_v36 = vpop.f32.mrf.mxu2 }
 0x8bc   : > { %v17942_v47 = vpack.c.bf16 %v10426_v44, %v10424_v52 }
 0x8bd   : > { %v10165_v34 = vpop.f32.mrf.mxu0  ;;  %v10250_v23 = vpop.f32.mrf.mxu1 }
 0x8be   : > { %18314 = vst [vmem:[%s20413_s28 + $0xd0] sm:$0xff] %v17942_v47   ;;  %v17882_v24 = vpack.c.bf16 %v10250_v23, %v10248_v38 }
 0x8c0   : > { %18302 = vst [vmem:[%s20413_s28 + $0x70] sm:$0xff] %v17882_v24   ;;  %16614 = vmatmul.msk.bf16.gmra.mxu0 %vm10024_vm1, %v18561_v60  ;;  %16638 = vmatmul.msk.bf16.gmra.mxu3 %vm10024_vm1, %v18578_v28  ;;  %v18587_v9 = vpop.trf.xlu2  ;;  %v18568_v21 = vpop.trf.xlu1 }
 0x8c3   : > { %v10429_v30 = vpop.f32.mrf.mxu3  ;;  %v10690_v18 = vpop.f32.mrf.mxu2 }
 0x8c4   : > { %v18032_v17 = vpack.c.bf16 %v10690_v18, %v10688_v36 }
 0x8c5   : > { %v10167_v48 = vpop.f32.mrf.mxu0  ;;  %v10253_v58 = vpop.f32.mrf.mxu1 }
 0x8c6   : > { %18332 = vst [vmem:[%s20413_s28 + $0x160] sm:$0xff] %v18032_v17   ;;  %v17857_v61 = vpack.c.bf16 %v10167_v48, %v10165_v34 }
 0x8c8   : > { %18297 = vst [vmem:[%s20413_s28 + $0x48] sm:$0xff] %v17857_v61   ;;  %16622 = vmatmul.msk.bf16.gmra.mxu1 %vm10024_vm1, %v18562_v55  ;;  %16662 = vmatmul.msk.bf16.gmra.mxu2 %vm10024_vm1, %v18579_v1  ;;  %v18589_v33 = vpop.trf.xlu2  ;;  %v18569_v38 = vpop.trf.xlu1 }
 0x8cb   : > { %v10431_v2 = vpop.f32.mrf.mxu3  ;;  %v10693_v54 = vpop.f32.mrf.mxu2 }
 0x8cc   : > { %v17947_v27 = vpack.c.bf16 %v10431_v2, %v10429_v30 }
 0x8cd   : > { %v10170_v15 = vpop.f32.mrf.mxu0  ;;  %v10255_v25 = vpop.f32.mrf.mxu1 }
 0x8ce   : > { %18315 = vst [vmem:[%s20413_s28 + $0xd8] sm:$0xff] %v17947_v27   ;;  %v17887_v19 = vpack.c.bf16 %v10255_v25, %v10253_v58 }
 0x8d0   : > { %18303 = vst [vmem:[%s20413_s28 + $0x78] sm:$0xff] %v17887_v19   ;;  %16615 = vmatmul.msk.bf16.gmra.mxu0 %vm10024_vm1, %v18563_v14  ;;  %16639 = vmatmul.msk.bf16.gmra.mxu3 %vm10024_vm1, %v18580_v3  ;;  %v18590_v0 = vpop.trf.xlu2  ;;  %v18570_v24 = vpop.trf.xlu1 }
 0x8d3   : > { %v10434_v12 = vpop.f32.mrf.mxu3  ;;  %v10695_v56 = vpop.f32.mrf.mxu2 }
 0x8d4   : > { %v18037_v22 = vpack.c.bf16 %v10695_v56, %v10693_v54 }
 0x8d5   : > { %v10172_v39 = vpop.f32.mrf.mxu0  ;;  %v10258_v62 = vpop.f32.mrf.mxu1 }
 0x8d6   : > { %18333 = vst [vmem:[%s20413_s28 + $0x168] sm:$0xff] %v18037_v22   ;;  %v17862_v10 = vpack.c.bf16 %v10172_v39, %v10170_v15 }
 0x8d8   : > { %18298 = vst [vmem:[%s20413_s28 + $0x50] sm:$0xff] %v17862_v10   ;;  %16623 = vmatmul.msk.bf16.gmra.mxu1 %vm10024_vm1, %v18564_v20  ;;  %16663 = vmatmul.msk.bf16.gmra.mxu2 %vm10024_vm1, %v18581_v32  ;;  %v18591_v47 = vpop.trf.xlu2 }
 0x8db   : > { %v10436_v50 = vpop.f32.mrf.mxu3  ;;  %v10698_v43 = vpop.f32.mrf.mxu2 }
 0x8dc   : > { %v17952_v6 = vpack.c.bf16 %v10436_v50, %v10434_v12 }
 0x8dd   : > { %v10175_v8 = vpop.f32.mrf.mxu0  ;;  %v10260_v7 = vpop.f32.mrf.mxu1 }
 0x8de   : > { %18316 = vst [vmem:[%s20413_s28 + $0xe0] sm:$0xff] %v17952_v6   ;;  %v17892_v59 = vpack.c.bf16 %v10260_v7, %v10258_v62 }
 0x8e0   : > { %18304 = vst [vmem:[%s20413_s28 + $0x80] sm:$0xff] %v17892_v59   ;;  %16616 = vmatmul.msk.bf16.gmra.mxu0 %vm10024_vm1, %v18565_v49  ;;  %16640 = vmatmul.msk.bf16.gmra.mxu3 %vm10024_vm1, %v18582_v35  ;;  %v18592_v17 = vpop.trf.xlu2 }
 0x8e3   : > { %v10439_v26 = vpop.f32.mrf.mxu3  ;;  %v10700_v28 = vpop.f32.mrf.mxu2 }
 0x8e4   : > { %v18042_v37 = vpack.c.bf16 %v10700_v28, %v10698_v43 }
 0x8e5   : > { %v10177_v51 = vpop.f32.mrf.mxu0  ;;  %v10263_v53 = vpop.f32.mrf.mxu1 }
 0x8e6   : > { %18334 = vst [vmem:[%s20413_s28 + $0x170] sm:$0xff] %v18042_v37   ;;  %v17867_v13 = vpack.c.bf16 %v10177_v51, %v10175_v8 }
 0x8e8   : > { %18299 = vst [vmem:[%s20413_s28 + $0x58] sm:$0xff] %v17867_v13   ;;  %16624 = vmatmul.msk.bf16.gmra.mxu1 %vm10024_vm1, %v18566_v57  ;;  %16664 = vmatmul.msk.bf16.gmra.mxu2 %vm10024_vm1, %v18583_v46  ;;  %v18593_v27 = vpop.trf.xlu2 }
 0x8eb   : > { %v10441_v1 = vpop.f32.mrf.mxu3  ;;  %v10703_v60 = vpop.f32.mrf.mxu2 }
 0x8ec   : > { %v17957_v42 = vpack.c.bf16 %v10441_v1, %v10439_v26 }
 0x8ed   : > { %v10180_v16 = vpop.f32.mrf.mxu0  ;;  %v10265_v29 = vpop.f32.mrf.mxu1 }
 0x8ee   : > { %18317 = vst [vmem:[%s20413_s28 + $0xe8] sm:$0xff] %v17957_v42   ;;  %v17897_v31 = vpack.c.bf16 %v10265_v29, %v10263_v53 }
 0x8f0   : > { %18305 = vst [vmem:[%s20413_s28 + $0x88] sm:$0xff] %v17897_v31   ;;  %16617 = vmatmul.msk.bf16.gmra.mxu0 %vm10024_vm1, %v18567_v40  ;;  %16641 = vmatmul.msk.bf16.gmra.mxu3 %vm10024_vm1, %v18584_v45  ;;  %v18594_v56 = vpop.trf.xlu2 }
 0x8f3   : > { %v10444_v3 = vpop.f32.mrf.mxu3  ;;  %v10705_v52 = vpop.f32.mrf.mxu2 }
 0x8f4   : > { %v18047_v5 = vpack.c.bf16 %v10705_v52, %v10703_v60 }
 0x8f5   : > { %v10181_v63 = vpop.f32.mrf.mxu0  ;;  %v10268_v55 = vpop.f32.mrf.mxu1 }
 0x8f6   : > { %18335 = vst [vmem:[%s20413_s28 + $0x178] sm:$0xff] %v18047_v5  }
 0x8f8   : > { %16625 = vmatmul.msk.bf16.gmra.mxu1 %vm10024_vm1, %v18568_v21  ;;  %16665 = vmatmul.msk.bf16.gmra.mxu2 %vm10024_vm1, %v18585_v4  ;;  %v18595_v43 = vpop.trf.xlu2 }
 0x8fb   : > { %v10445_v41 = vpop.f32.mrf.mxu3  ;;  %v10708_v32 = vpop.f32.mrf.mxu2 }
 0x8fd   : > { %v10183_v44 = vpop.f32.mrf.mxu0  ;;  %v10269_v36 = vpop.f32.mrf.mxu1 }
 0x900   : > { %16618 = vmatmul.msk.bf16.gmra.mxu0 %vm10024_vm1, %v18569_v38  ;;  %16642 = vmatmul.msk.bf16.gmra.mxu3 %vm10024_vm1, %v18586_v11  ;;  %v18596_v51 = vpop.trf.xlu2 }
 0x903   : > { %v10447_v34 = vpop.f32.mrf.mxu3  ;;  %v10709_v23 = vpop.f32.mrf.mxu2 }
 0x905   : > { %v10184_v14 = vpop.f32.mrf.mxu0  ;;  %v10271_v35 = vpop.f32.mrf.mxu1 }
 0x908   : > { %16626 = vmatmul.msk.bf16.gmra.mxu1 %vm10024_vm1, %v18570_v24  ;;  %16666 = vmatmul.msk.bf16.gmra.mxu2 %vm10024_vm1, %v18587_v9  ;;  %v18597_v31 = vpop.trf.xlu2 }
 0x90b   : > { %v10448_v30 = vpop.f32.mrf.mxu3  ;;  %v10711_v18 = vpop.f32.mrf.mxu2 }
 0x90d   : > { %v10272_v48 = vpop.f32.mrf.mxu1  ;;  %v10502_v58 = vpop.f32.mrf.mxu0 }
 0x910   : > { %16643 = vmatmul.msk.bf16.vlgmr.msrb.gmra.mxu0 %vm10024_vm1, %v18589_v33  ;;  %v18598_v55 = vpop.trf.xlu2 }
 0x913   : > { %v10712_v61 = vpop.f32.mrf.mxu2  ;;  %v10766_v20 = vpop.f32.mrf.mxu3 }
 0x915   : > { %v10504_v46 = vpop.f32.mrf.mxu0  ;;  %v10590_v2 = vpop.f32.mrf.mxu1 }
 0x916   : > { %v17962_v54 = vpack.c.bf16 %v10504_v46, %v10502_v58 }
 0x918   : > { %18318 = vst [vmem:[%s20413_s28 + $0xf0] sm:$0xff] %v17962_v54   ;;  %16651 = vmatmul.msk.bf16.vlgmr.msrb.gmra.mxu1 %vm10024_vm1, %v18590_v0 }
 0x91b   : > { %v10768_v15 = vpop.f32.mrf.mxu3  ;;  %v11030_v25 = vpop.f32.mrf.mxu2 }
 0x91c   : > { %v18052_v19 = vpack.c.bf16 %v10768_v15, %v10766_v20 }
 0x91d   : > { %v10507_v45 = vpop.f32.mrf.mxu0  ;;  %v10592_v49 = vpop.f32.mrf.mxu1 }
 0x91e   : > { %18336 = vst [vmem:[%s20413_s28 + $0x180] sm:$0xff] %v18052_v19   ;;  %v17992_v12 = vpack.c.bf16 %v10592_v49, %v10590_v2  ;;  %v18606_v2 = vpop.trf.xlu0 }
 0x91f   : > { %16667 = vmatmul.msk.bf16.vlgmr.msra.gmra.mxu3 %vm10024_vm1, %v18606_v2 }
 0x920   : > { %18324 = vst [vmem:[%s20413_s28 + $0x120] sm:$0xff] %v17992_v12   ;;  %16644 = vmatmul.msk.bf16.gmra.mxu0 %vm10024_vm1, %v18591_v47  ;;  %v18599_v47 = vpop.trf.xlu2 }
 0x923   : > { %v10771_v22 = vpop.f32.mrf.mxu3  ;;  %v11032_v39 = vpop.f32.mrf.mxu2 }
 0x924   : > { %v18142_v62 = vpack.c.bf16 %v11032_v39, %v11030_v25 }
 0x925   : > { %v10509_v10 = vpop.f32.mrf.mxu0  ;;  %v10595_v4 = vpop.f32.mrf.mxu1 }
 0x926   : > { %18354 = vst [vmem:[%s20413_s28 + $0x210] sm:$0xff] %v18142_v62   ;;  %v17967_v50 = vpack.c.bf16 %v10509_v10, %v10507_v45  ;;  %v18607_v12 = vpop.trf.xlu0 }
 0x927   : > { %16691 = vmatmul.msk.bf16.vlgmr.msrb.gmra.mxu2 %vm10024_vm1, %v18607_v12 }
 0x928   : > { %18319 = vst [vmem:[%s20413_s28 + $0xf8] sm:$0xff] %v17967_v50   ;;  %16652 = vmatmul.msk.bf16.gmra.mxu1 %vm10024_vm1, %v18592_v17  ;;  %v18600_v58 = vpop.trf.xlu2  ;;  %v18623_v50 = vpop.trf.xlu1 }
 0x92b   : > { %v10773_v6 = vpop.f32.mrf.mxu3  ;;  %v11035_v57 = vpop.f32.mrf.mxu2 }
 0x92c   : > { %v18057_v8 = vpack.c.bf16 %v10773_v6, %v10771_v22 }
 0x92d   : > { %v10512_v7 = vpop.f32.mrf.mxu0  ;;  %v10597_v59 = vpop.f32.mrf.mxu1 }
 0x92e   : > { %18337 = vst [vmem:[%s20413_s28 + $0x188] sm:$0xff] %v18057_v8   ;;  %v17997_v11 = vpack.c.bf16 %v10597_v59, %v10595_v4  ;;  %v18608_v6 = vpop.trf.xlu0 }
 0x92f   : > { %16668 = vmatmul.msk.bf16.gmra.mxu3 %vm10024_vm1, %v18608_v6 }
 0x930   : > { %18325 = vst [vmem:[%s20413_s28 + $0x128] sm:$0xff] %v17997_v11   ;;  %16645 = vmatmul.msk.bf16.gmra.mxu0 %vm10024_vm1, %v18593_v27  ;;  %v18601_v49 = vpop.trf.xlu2 }
 0x933   : > { %v10776_v26 = vpop.f32.mrf.mxu3  ;;  %v11037_v28 = vpop.f32.mrf.mxu2 }
 0x934   : > { %v18147_v37 = vpack.c.bf16 %v11037_v28, %v11035_v57 }
 0x935   : > { %v10514_v53 = vpop.f32.mrf.mxu0  ;;  %v10600_v13 = vpop.f32.mrf.mxu1 }
 0x936   : > { %18355 = vst [vmem:[%s20413_s28 + $0x218] sm:$0xff] %v18147_v37   ;;  %v17972_v40 = vpack.c.bf16 %v10514_v53, %v10512_v7  ;;  %v18609_v28 = vpop.trf.xlu0 }
 0x937   : > { %16692 = vmatmul.msk.bf16.gmra.mxu2 %vm10024_vm1, %v18609_v28 }
 0x938   : > { %18320 = vst [vmem:[%s20413_s28 + $0x100] sm:$0xff] %v17972_v40   ;;  %16653 = vmatmul.msk.bf16.gmra.mxu1 %vm10024_vm1, %v18594_v56 }
 0x93b   : > { %v10778_v9 = vpop.f32.mrf.mxu3  ;;  %v11040_v1 = vpop.f32.mrf.mxu2 }
 0x93c   : > { %v18062_v60 = vpack.c.bf16 %v10778_v9, %v10776_v26  ;;  %v18624_v26 = vpop.trf.xlu1 }
 0x93d   : > { %v10517_v42 = vpop.f32.mrf.mxu0  ;;  %v10602_v16 = vpop.f32.mrf.mxu1 }
 0x93e   : > { %18338 = vst [vmem:[%s20413_s28 + $0x190] sm:$0xff] %v18062_v60   ;;  %v18002_v29 = vpack.c.bf16 %v10602_v16, %v10600_v13  ;;  %v18610_v9 = vpop.trf.xlu0 }
 0x93f   : > { %16669 = vmatmul.msk.bf16.gmra.mxu3 %vm10024_vm1, %v18610_v9 }
 0x940   : > { %18326 = vst [vmem:[%s20413_s28 + $0x130] sm:$0xff] %v18002_v29   ;;  %16646 = vmatmul.msk.bf16.gmra.mxu0 %vm10024_vm1, %v18595_v43  ;;  %v18602_v43 = vpop.trf.xlu2 }
 0x943   : > { %v10781_v21 = vpop.f32.mrf.mxu3  ;;  %v11042_v33 = vpop.f32.mrf.mxu2 }
 0x944   : > { %v18152_v3 = vpack.c.bf16 %v11042_v33, %v11040_v1  ;;  %v18625_v1 = vpop.trf.xlu1 }
 0x945   : > { %v10519_v52 = vpop.f32.mrf.mxu0  ;;  %v10605_v5 = vpop.f32.mrf.mxu1 }
 0x946   : > { %18356 = vst [vmem:[%s20413_s28 + $0x220] sm:$0xff] %v18152_v3   ;;  %v17977_v63 = vpack.c.bf16 %v10519_v52, %v10517_v42 }
 0x948   : > { %18321 = vst [vmem:[%s20413_s28 + $0x108] sm:$0xff] %v17977_v63   ;;  %16654 = vmatmul.msk.bf16.gmra.mxu1 %vm10024_vm1, %v18596_v51  ;;  %v18603_v37 = vpop.trf.xlu2 }
 0x94b   : > { %v10783_v0 = vpop.f32.mrf.mxu3  ;;  %v11045_v38 = vpop.f32.mrf.mxu2 }
 0x94c   : > { %v18067_v41 = vpack.c.bf16 %v10783_v0, %v10781_v21  ;;  %v18611_v21 = vpop.trf.xlu0  ;;  %v18626_v52 = vpop.trf.xlu1 }
 0x94d   : > { %v10522_v32 = vpop.f32.mrf.mxu0  ;;  %v10607_v44 = vpop.f32.mrf.mxu1  ;;  %16693 = vmatmul.msk.bf16.gmra.mxu2 %vm10024_vm1, %v18611_v21 }
 0x94e   : > { %18339 = vst [vmem:[%s20413_s28 + $0x198] sm:$0xff] %v18067_v41   ;;  %v18007_v36 = vpack.c.bf16 %v10607_v44, %v10605_v5 }
 0x950   : > { %18327 = vst [vmem:[%s20413_s28 + $0x138] sm:$0xff] %v18007_v36   ;;  %16647 = vmatmul.msk.bf16.gmra.mxu0 %vm10024_vm1, %v18597_v31  ;;  %v18604_v16 = vpop.trf.xlu2 }
 0x953   : > { %v10786_v34 = vpop.f32.mrf.mxu3  ;;  %v11047_v23 = vpop.f32.mrf.mxu2 }
 0x954   : > { %v18157_v24 = vpack.c.bf16 %v11047_v23, %v11045_v38  ;;  %v18627_v44 = vpop.trf.xlu1 }
 0x955   : > { %v10524_v14 = vpop.f32.mrf.mxu0  ;;  %v10610_v35 = vpop.f32.mrf.mxu1 }
 0x956   : > { %18357 = vst [vmem:[%s20413_s28 + $0x228] sm:$0xff] %v18157_v24   ;;  %v17982_v30 = vpack.c.bf16 %v10524_v14, %v10522_v32 }
 0x958   : > { %18322 = vst [vmem:[%s20413_s28 + $0x110] sm:$0xff] %v17982_v30   ;;  %16655 = vmatmul.msk.bf16.gmra.mxu1 %vm10024_vm1, %v18598_v55  ;;  %v18612_v55 = vpop.trf.xlu0 }
 0x959   : > { %16670 = vmatmul.msk.bf16.gmra.mxu3 %vm10024_vm1, %v18612_v55 }
 0x95b   : > { %v10788_v18 = vpop.f32.mrf.mxu3  ;;  %v11050_v17 = vpop.f32.mrf.mxu2 }
 0x95c   : > { %v18072_v48 = vpack.c.bf16 %v10788_v18, %v10786_v34  ;;  %v18628_v24 = vpop.trf.xlu1 }
 0x95d   : > { %v10527_v61 = vpop.f32.mrf.mxu0  ;;  %v10612_v20 = vpop.f32.mrf.mxu1 }
 0x95e   : > { %18340 = vst [vmem:[%s20413_s28 + $0x1a0] sm:$0xff] %v18072_v48   ;;  %v18012_v46 = vpack.c.bf16 %v10612_v20, %v10610_v35 }
 0x960   : > { %18328 = vst [vmem:[%s20413_s28 + $0x140] sm:$0xff] %v18012_v46   ;;  %16648 = vmatmul.msk.bf16.gmra.mxu0 %vm10024_vm1, %v18599_v47  ;;  %v18613_v36 = vpop.trf.xlu0 }
 0x961   : > { %16694 = vmatmul.msk.bf16.gmra.mxu2 %vm10024_vm1, %v18613_v36 }
 0x963   : > { %v10791_v54 = vpop.f32.mrf.mxu3  ;;  %v11052_v27 = vpop.f32.mrf.mxu2 }
 0x964   : > { %v18162_v15 = vpack.c.bf16 %v11052_v27, %v11050_v17  ;;  %v18629_v48 = vpop.trf.xlu1 }
 0x965   : > { %v10529_v25 = vpop.f32.mrf.mxu0  ;;  %v10615_v19 = vpop.f32.mrf.mxu1 }
 0x966   : > { %18358 = vst [vmem:[%s20413_s28 + $0x230] sm:$0xff] %v18162_v15   ;;  %v17987_v45 = vpack.c.bf16 %v10529_v25, %v10527_v61 }
 0x968   : > { %18323 = vst [vmem:[%s20413_s28 + $0x118] sm:$0xff] %v17987_v45   ;;  %16656 = vmatmul.msk.bf16.gmra.mxu1 %vm10024_vm1, %v18600_v58  ;;  %v18614_v14 = vpop.trf.xlu0 }
 0x969   : > { %16671 = vmatmul.msk.bf16.gmra.mxu3 %vm10024_vm1, %v18614_v14 }
 0x96b   : > { %v10793_v56 = vpop.f32.mrf.mxu3  ;;  %v11055_v22 = vpop.f32.mrf.mxu2 }
 0x96c   : > { %v18077_v39 = vpack.c.bf16 %v10793_v56, %v10791_v54  ;;  %v18630_v2 = vpop.trf.xlu1 }
 0x96d   : > { %v10532_v62 = vpop.f32.mrf.mxu0  ;;  %v10617_v10 = vpop.f32.mrf.mxu1 }
 0x96e   : > { %18341 = vst [vmem:[%s20413_s28 + $0x1a8] sm:$0xff] %v18077_v39   ;;  %v18017_v4 = vpack.c.bf16 %v10617_v10, %v10615_v19 }
 0x970   : > { %18329 = vst [vmem:[%s20413_s28 + $0x148] sm:$0xff] %v18017_v4   ;;  %16649 = vmatmul.msk.bf16.gmra.mxu0 %vm10024_vm1, %v18601_v49  ;;  %v18615_v17 = vpop.trf.xlu0 }
 0x971   : > { %16695 = vmatmul.msk.bf16.gmra.mxu2 %vm10024_vm1, %v18615_v17 }
 0x973   : > { %v10796_v57 = vpop.f32.mrf.mxu3  ;;  %v11057_v8 = vpop.f32.mrf.mxu2 }
 0x974   : > { %v18167_v7 = vpack.c.bf16 %v11057_v8, %v11055_v22  ;;  %v18631_v12 = vpop.trf.xlu1 }
 0x975   : > { %v10533_v59 = vpop.f32.mrf.mxu0  ;;  %v10620_v11 = vpop.f32.mrf.mxu1 }
 0x976   : > { %18359 = vst [vmem:[%s20413_s28 + $0x238] sm:$0xff] %v18167_v7  }
 0x978   : > { %16657 = vmatmul.msk.bf16.gmra.mxu1 %vm10024_vm1, %v18602_v43  ;;  %v18616_v46 = vpop.trf.xlu0 }
 0x979   : > { %16672 = vmatmul.msk.bf16.gmra.mxu3 %vm10024_vm1, %v18616_v46 }
 0x97b   : > { %v10797_v51 = vpop.f32.mrf.mxu3  ;;  %v11060_v53 = vpop.f32.mrf.mxu2 }
 0x97c   : > { %v18632_v10 = vpop.trf.xlu1 }
 0x97d   : > { %v10535_v13 = vpop.f32.mrf.mxu0  ;;  %v10621_v40 = vpop.f32.mrf.mxu1 }
 0x980   : > { %16650 = vmatmul.msk.bf16.gmra.mxu0 %vm10024_vm1, %v18603_v37  ;;  %v18617_v25 = vpop.trf.xlu0 }
 0x981   : > { %16696 = vmatmul.msk.bf16.gmra.mxu2 %vm10024_vm1, %v18617_v25 }
 0x983   : > { %v10799_v60 = vpop.f32.mrf.mxu3  ;;  %v11061_v42 = vpop.f32.mrf.mxu2 }
 0x984   : > { %v18633_v8 = vpop.trf.xlu1 }
 0x985   : > { %v10536_v29 = vpop.f32.mrf.mxu0  ;;  %v10623_v31 = vpop.f32.mrf.mxu1 }
 0x988   : > { %16658 = vmatmul.msk.bf16.gmra.mxu1 %vm10024_vm1, %v18604_v16  ;;  %v18618_v56 = vpop.trf.xlu0 }
 0x989   : > { %16673 = vmatmul.msk.bf16.gmra.mxu3 %vm10024_vm1, %v18618_v56 }
 0x98b   : > { %v10800_v33 = vpop.f32.mrf.mxu3  ;;  %v11063_v3 = vpop.f32.mrf.mxu2 }
 0x98c   : > { %v18634_v28 = vpop.trf.xlu1 }
 0x98d   : > { %v10624_v5 = vpop.f32.mrf.mxu1  ;;  %v10854_v63 = vpop.f32.mrf.mxu0 }
 0x990   : > { %16675 = vmatmul.msk.bf16.vlgmr.msra.gmra.mxu0 %vm10024_vm1, %v18623_v50  ;;  %v18619_v4 = vpop.trf.xlu0 }
 0x991   : > { %16697 = vmatmul.msk.bf16.gmra.mxu2 %vm10024_vm1, %v18619_v4 }
 0x993   : > { %v11064_v0 = vpop.f32.mrf.mxu2 }
 0x995   : > { %v10856_v38 = vpop.f32.mrf.mxu0  ;;  %v10942_v41 = vpop.f32.mrf.mxu1 }
 0x996   : > { %v18082_v32 = vpack.c.bf16 %v10856_v38, %v10854_v63 }
 0x998   : > { %18342 = vst [vmem:[%s20413_s28 + $0x1b0] sm:$0xff] %v18082_v32   ;;  %16683 = vmatmul.msk.bf16.vlgmr.msra.gmra.mxu1 %vm10024_vm1, %v18624_v26  ;;  %v18620_v57 = vpop.trf.xlu0 }
 0x999   : > { %16674 = vmatmul.msk.bf16.gmra.mxu3 %vm10024_vm1, %v18620_v57 }
 0x99d   : > { %v10859_v47 = vpop.f32.mrf.mxu0  ;;  %v10944_v34 = vpop.f32.mrf.mxu1 }
 0x99e   : > { %v18112_v23 = vpack.c.bf16 %v10944_v34, %v10942_v41 }
 0x9a0   : > { %18348 = vst [vmem:[%s20413_s28 + $0x1e0] sm:$0xff] %v18112_v23   ;;  %16676 = vmatmul.msk.bf16.gmra.mxu0 %vm10024_vm1, %v18625_v1  ;;  %v18621_v26 = vpop.trf.xlu0  ;;  %v18635_v1 = vpop.trf.xlu1 }
 0x9a1   : > { %16698 = vmatmul.msk.bf16.gmra.mxu2 %vm10024_vm1, %v18621_v26 }
 0x9a2   : > { %v11118_v60 = vpop.f32.mrf.mxu3 }
 0x9a5   : > { %v10861_v35 = vpop.f32.mrf.mxu0  ;;  %v10947_v30 = vpop.f32.mrf.mxu1 }
 0x9a6   : > { %v18087_v18 = vpack.c.bf16 %v10861_v35, %v10859_v47 }
 0x9a8   : > { %18343 = vst [vmem:[%s20413_s28 + $0x1b8] sm:$0xff] %v18087_v18   ;;  %16684 = vmatmul.msk.bf16.gmra.mxu1 %vm10024_vm1, %v18626_v52  ;;  %v18636_v3 = vpop.trf.xlu1 }
 0x9aa   : > { %v11120_v31 = vpop.f32.mrf.mxu3  ;;  %v11382_v21 = vpop.f32.mrf.mxu2 }
 0x9ab   : > { %v18172_v33 = vpack.c.bf16 %v11120_v31, %v11118_v60 }
 0x9ad   : > { %v10864_v58 = vpop.f32.mrf.mxu0  ;;  %v10949_v61 = vpop.f32.mrf.mxu1  ;;  %18360 = vst [vmem:[%s20413_s28 + $0x240] sm:$0xff] %v18172_v33  }
 0x9ae   : > { %v18117_v20 = vpack.c.bf16 %v10949_v61, %v10947_v30 }
 0x9b0   : > { %18349 = vst [vmem:[%s20413_s28 + $0x1e8] sm:$0xff] %v18117_v20   ;;  %16677 = vmatmul.msk.bf16.gmra.mxu0 %vm10024_vm1, %v18627_v44  ;;  %v18637_v38 = vpop.trf.xlu1 }
 0x9b2   : > { %v11123_v63 = vpop.f32.mrf.mxu3  ;;  %v11384_v55 = vpop.f32.mrf.mxu2 }
 0x9b3   : > { %v18262_v0 = vpack.c.bf16 %v11384_v55, %v11382_v21 }
 0x9b5   : > { %v10866_v54 = vpop.f32.mrf.mxu0  ;;  %v10952_v27 = vpop.f32.mrf.mxu1  ;;  %18378 = vst [vmem:[%s20413_s28 + $0x2d0] sm:$0xff] %v18262_v0  }
 0x9b6   : > { %v18092_v15 = vpack.c.bf16 %v10866_v54, %v10864_v58 }
 0x9b8   : > { %18344 = vst [vmem:[%s20413_s28 + $0x1c0] sm:$0xff] %v18092_v15   ;;  %16685 = vmatmul.msk.bf16.gmra.mxu1 %vm10024_vm1, %v18628_v24  ;;  %v18638_v34 = vpop.trf.xlu1 }
 0x9ba   : > { %v11125_v44 = vpop.f32.mrf.mxu3  ;;  %v11387_v47 = vpop.f32.mrf.mxu2 }
 0x9bb   : > { %v18177_v36 = vpack.c.bf16 %v11125_v44, %v11123_v63 }
 0x9bd   : > { %v10869_v19 = vpop.f32.mrf.mxu0  ;;  %v10954_v45 = vpop.f32.mrf.mxu1  ;;  %18361 = vst [vmem:[%s20413_s28 + $0x248] sm:$0xff] %v18177_v36  }
 0x9be   : > { %v18122_v49 = vpack.c.bf16 %v10954_v45, %v10952_v27 }
 0x9c0   : > { %18350 = vst [vmem:[%s20413_s28 + $0x1f0] sm:$0xff] %v18122_v49   ;;  %16678 = vmatmul.msk.bf16.gmra.mxu0 %vm10024_vm1, %v18629_v48 }
 0x9c2   : > { %v11128_v14 = vpop.f32.mrf.mxu3  ;;  %v11389_v35 = vpop.f32.mrf.mxu2 }
 0x9c3   : > { %v18267_v30 = vpack.c.bf16 %v11389_v35, %v11387_v47 }
 0x9c5   : > { %v10871_v22 = vpop.f32.mrf.mxu0  ;;  %v10957_v39 = vpop.f32.mrf.mxu1  ;;  %18379 = vst [vmem:[%s20413_s28 + $0x2d8] sm:$0xff] %v18267_v30  }
 0x9c6   : > { %v18097_v62 = vpack.c.bf16 %v10871_v22, %v10869_v19 }
 0x9c8   : > { %18345 = vst [vmem:[%s20413_s28 + $0x1c8] sm:$0xff] %v18097_v62   ;;  %16686 = vmatmul.msk.bf16.gmra.mxu1 %vm10024_vm1, %v18630_v2 }
 0x9ca   : > { %v11130_v48 = vpop.f32.mrf.mxu3 }
 0x9cb   : > { %v18182_v58 = vpack.c.bf16 %v11130_v48, %v11128_v14 }
 0x9cd   : > { %v10874_v50 = vpop.f32.mrf.mxu0  ;;  %v10959_v43 = vpop.f32.mrf.mxu1  ;;  %18362 = vst [vmem:[%s20413_s28 + $0x250] sm:$0xff] %v18182_v58  }
 0x9ce   : > { %v18127_v6 = vpack.c.bf16 %v10959_v43, %v10957_v39 }
 0x9d0   : > { %18351 = vst [vmem:[%s20413_s28 + $0x1f8] sm:$0xff] %v18127_v6   ;;  %16679 = vmatmul.msk.bf16.gmra.mxu0 %vm10024_vm1, %v18631_v12  ;;  %v11392_v61 = vpop.f32.mrf.mxu2 }
 0x9d5   : > { %v10876_v7 = vpop.f32.mrf.mxu0  ;;  %v10962_v59 = vpop.f32.mrf.mxu1 }
 0x9d6   : > { %v18102_v11 = vpack.c.bf16 %v10876_v7, %v10874_v50 }
 0x9d8   : > { %18346 = vst [vmem:[%s20413_s28 + $0x1d0] sm:$0xff] %v18102_v11   ;;  %16687 = vmatmul.msk.bf16.gmra.mxu1 %vm10024_vm1, %v18632_v10  ;;  %v11394_v27 = vpop.f32.mrf.mxu2 }
 0x9d9   : > { %v18272_v15 = vpack.c.bf16 %v11394_v27, %v11392_v61 }
 0x9db   : > { %18380 = vst [vmem:[%s20413_s28 + $0x2e0] sm:$0xff] %v18272_v15  }
 0x9dc   : > { %v11133_v54 = vpop.f32.mrf.mxu3 }
 0x9dd   : > { %v10879_v37 = vpop.f32.mrf.mxu0  ;;  %v10964_v51 = vpop.f32.mrf.mxu1 }
 0x9de   : > { %v18132_v53 = vpack.c.bf16 %v10964_v51, %v10962_v59 }
 0x9e0   : > { %18352 = vst [vmem:[%s20413_s28 + $0x200] sm:$0xff] %v18132_v53   ;;  %16680 = vmatmul.msk.bf16.gmra.mxu0 %vm10024_vm1, %v18633_v8 }
 0x9e4   : > { %v11135_v49 = vpop.f32.mrf.mxu3  ;;  %v11397_v56 = vpop.f32.mrf.mxu2 }
 0x9e5   : > { %v10881_v13 = vpop.f32.mrf.mxu0  ;;  %v10967_v40 = vpop.f32.mrf.mxu1  ;;  %v18187_v12 = vpack.c.bf16 %v11135_v49, %v11133_v54 }
 0x9e6   : > { %v18107_v9 = vpack.c.bf16 %v10881_v13, %v10879_v37 }
 0x9e7   : > { %18363 = vst [vmem:[%s20413_s28 + $0x258] sm:$0xff] %v18187_v12  }
 0x9e8   : > { %18347 = vst [vmem:[%s20413_s28 + $0x1d8] sm:$0xff] %v18107_v9   ;;  %16688 = vmatmul.msk.bf16.gmra.mxu1 %vm10024_vm1, %v18634_v28 }
 0x9ec   : > { %v11138_v10 = vpop.f32.mrf.mxu3  ;;  %v11399_v4 = vpop.f32.mrf.mxu2 }
 0x9ed   : > { %v10884_v42 = vpop.f32.mrf.mxu0  ;;  %v10969_v16 = vpop.f32.mrf.mxu1  ;;  %v18277_v50 = vpack.c.bf16 %v11399_v4, %v11397_v56 }
 0x9ee   : > { %v18137_v29 = vpack.c.bf16 %v10969_v16, %v10967_v40 }
 0x9ef   : > { %18381 = vst [vmem:[%s20413_s28 + $0x2e8] sm:$0xff] %v18277_v50  }
 0x9f0   : > { %18353 = vst [vmem:[%s20413_s28 + $0x208] sm:$0xff] %v18137_v29   ;;  %16681 = vmatmul.msk.bf16.gmra.mxu0 %vm10024_vm1, %v18635_v1 }
 0x9f4   : > { %v11140_v8 = vpop.f32.mrf.mxu3  ;;  %v11402_v59 = vpop.f32.mrf.mxu2 }
 0x9f5   : > { %v10885_v52 = vpop.f32.mrf.mxu0  ;;  %v10972_v5 = vpop.f32.mrf.mxu1  ;;  %v18192_v7 = vpack.c.bf16 %v11140_v8, %v11138_v10 }
 0x9f7   : > { %18364 = vst [vmem:[%s20413_s28 + $0x260] sm:$0xff] %v18192_v7  }
 0x9f8   : > { %16689 = vmatmul.msk.bf16.gmra.mxu1 %vm10024_vm1, %v18636_v3 }
 0x9fc   : > { %v11143_v37 = vpop.f32.mrf.mxu3  ;;  %v11404_v51 = vpop.f32.mrf.mxu2 }
 0x9fd   : > { %v10887_v41 = vpop.f32.mrf.mxu0  ;;  %v10973_v32 = vpop.f32.mrf.mxu1  ;;  %v18282_v53 = vpack.c.bf16 %v11404_v51, %v11402_v59 }
 0x9ff   : > { %18382 = vst [vmem:[%s20413_s28 + $0x2f0] sm:$0xff] %v18282_v53  }
 0xa00   : > { %16682 = vmatmul.msk.bf16.gmra.mxu0 %vm10024_vm1, %v18637_v38 }
 0xa04   : > { %v11145_v1 = vpop.f32.mrf.mxu3  ;;  %v11407_v42 = vpop.f32.mrf.mxu2 }
 0xa05   : > { %v10888_v23 = vpop.f32.mrf.mxu0  ;;  %v10975_v24 = vpop.f32.mrf.mxu1  ;;  %v18197_v60 = vpack.c.bf16 %v11145_v1, %v11143_v37 }
 0xa07   : > { %18365 = vst [vmem:[%s20413_s28 + $0x268] sm:$0xff] %v18197_v60  }
 0xa08   : > { %16690 = vmatmul.msk.bf16.gmra.mxu1 %vm10024_vm1, %v18638_v34 }
 0xa0c   : > { %v11148_v21 = vpop.f32.mrf.mxu3  ;;  %v11409_v33 = vpop.f32.mrf.mxu2 }
 0xa0d   : > { %v10976_v18 = vpop.f32.mrf.mxu1  ;;  %v11206_v17 = vpop.f32.mrf.mxu0  ;;  %v18287_v3 = vpack.c.bf16 %v11409_v33, %v11407_v42 }
 0xa0f   : > { %18383 = vst [vmem:[%s20413_s28 + $0x2f8] sm:$0xff] %v18287_v3  }
 0xa14   : > { %v11149_v55 = vpop.f32.mrf.mxu3  ;;  %v11412_v0 = vpop.f32.mrf.mxu2 }
 0xa15   : > { %v11208_v20 = vpop.f32.mrf.mxu0  ;;  %v11294_v46 = vpop.f32.mrf.mxu1 }
 0xa16   : > { %v18202_v2 = vpack.c.bf16 %v11208_v20, %v11206_v17 }
 0xa18   : > { %18366 = vst [vmem:[%s20413_s28 + $0x270] sm:$0xff] %v18202_v2  }
 0xa1c   : > { %v11151_v44 = vpop.f32.mrf.mxu3  ;;  %v11413_v36 = vpop.f32.mrf.mxu2 }
 0xa1d   : > { %v11211_v25 = vpop.f32.mrf.mxu0  ;;  %v11296_v19 = vpop.f32.mrf.mxu1 }
 0xa1e   : > { %v18232_v45 = vpack.c.bf16 %v11296_v19, %v11294_v46 }
 0xa20   : > { %18372 = vst [vmem:[%s20413_s28 + $0x2a0] sm:$0xff] %v18232_v45  }
 0xa24   : > { %v11152_v24 = vpop.f32.mrf.mxu3  ;;  %v11415_v14 = vpop.f32.mrf.mxu2 }
 0xa25   : > { %v11213_v22 = vpop.f32.mrf.mxu0  ;;  %v11299_v39 = vpop.f32.mrf.mxu1 }
 0xa26   : > { %v18207_v62 = vpack.c.bf16 %v11213_v22, %v11211_v25 }
 0xa28   : > { %18367 = vst [vmem:[%s20413_s28 + $0x278] sm:$0xff] %v18207_v62  }
 0xa2c   : > { %v11416_v17 = vpop.f32.mrf.mxu2 }
 0xa2d   : > { %v11216_v43 = vpop.f32.mrf.mxu0  ;;  %v11301_v6 = vpop.f32.mrf.mxu1 }
 0xa2e   : > { %v18237_v57 = vpack.c.bf16 %v11301_v6, %v11299_v39 }
 0xa30   : > { %18373 = vst [vmem:[%s20413_s28 + $0x2a8] sm:$0xff] %v18237_v57  }
 0xa35   : > { %v11218_v11 = vpop.f32.mrf.mxu0  ;;  %v11304_v26 = vpop.f32.mrf.mxu1 }
 0xa36   : > { %v18212_v28 = vpack.c.bf16 %v11218_v11, %v11216_v43 }
 0xa38   : > { %18368 = vst [vmem:[%s20413_s28 + $0x280] sm:$0xff] %v18212_v28  }
 0xa3d   : > { %v11221_v13 = vpop.f32.mrf.mxu0  ;;  %v11306_v40 = vpop.f32.mrf.mxu1 }
 0xa3e   : > { %v18242_v9 = vpack.c.bf16 %v11306_v40, %v11304_v26 }
 0xa40   : > { %18374 = vst [vmem:[%s20413_s28 + $0x2b0] sm:$0xff] %v18242_v9  }
 0xa45   : > { %v11223_v16 = vpop.f32.mrf.mxu0  ;;  %v11309_v29 = vpop.f32.mrf.mxu1 }
 0xa46   : > { %v18217_v31 = vpack.c.bf16 %v11223_v16, %v11221_v13 }
 0xa48   : > { %18369 = vst [vmem:[%s20413_s28 + $0x288] sm:$0xff] %v18217_v31  }
 0xa4d   : > { %v11226_v52 = vpop.f32.mrf.mxu0  ;;  %v11311_v5 = vpop.f32.mrf.mxu1 }
 0xa4e   : > { %v18247_v63 = vpack.c.bf16 %v11311_v5, %v11309_v29 }
 0xa50   : > { %18375 = vst [vmem:[%s20413_s28 + $0x2b8] sm:$0xff] %v18247_v63  }
 0xa55   : > { %v11228_v38 = vpop.f32.mrf.mxu0  ;;  %v11314_v41 = vpop.f32.mrf.mxu1 }
 0xa56   : > { %v18222_v32 = vpack.c.bf16 %v11228_v38, %v11226_v52 }
 0xa58   : > { %18370 = vst [vmem:[%s20413_s28 + $0x290] sm:$0xff] %v18222_v32  }
 0xa5d   : > { %v11231_v47 = vpop.f32.mrf.mxu0  ;;  %v11316_v34 = vpop.f32.mrf.mxu1 }
 0xa5e   : > { %v18252_v23 = vpack.c.bf16 %v11316_v34, %v11314_v41 }
 0xa60   : > { %18376 = vst [vmem:[%s20413_s28 + $0x2c0] sm:$0xff] %v18252_v23  }
 0xa65   : > { %v11233_v35 = vpop.f32.mrf.mxu0  ;;  %v11319_v30 = vpop.f32.mrf.mxu1 }
 0xa66   : > { %v18227_v18 = vpack.c.bf16 %v11233_v35, %v11231_v47 }
 0xa68   : > { %18371 = vst [vmem:[%s20413_s28 + $0x298] sm:$0xff] %v18227_v18  }
 0xa6d   : > { %v11236_v48 = vpop.f32.mrf.mxu0  ;;  %v11321_v58 = vpop.f32.mrf.mxu1 }
 0xa6e   : > { %v18257_v61 = vpack.c.bf16 %v11321_v58, %v11319_v30 }
 0xa70   : > { %18377 = vst [vmem:[%s20413_s28 + $0x2c8] sm:$0xff] %v18257_v61  }
 0xa75   : > { %v11237_v20 = vpop.f32.mrf.mxu0  ;;  %v11324_v46 = vpop.f32.mrf.mxu1 }
 0xa7d   : > { %v11239_v2 = vpop.f32.mrf.mxu0  ;;  %v11325_v54 = vpop.f32.mrf.mxu1 }
 0xa85   : > { %v11240_v27 = vpop.f32.mrf.mxu0  ;;  %v11327_v15 = vpop.f32.mrf.mxu1 }
 0xa8d   : > { %v11328_v25 = vpop.f32.mrf.mxu1 }
 0xa8e PF: > { %s20849_s20 = sld [smem:[#allocation25_spill]] }
 0xa94   : > { %s32_s18 = sadd.s32 1, %s20849_s20  }
 0xa95   : > { %p29_p8 = scmp.ge.s32.totalorder %s32_s18, 4  }
 0xa97   :  { %31 = sbr.rel (!%p29_p8) target bundleno = 10 (0xa), region = 178 }
 0xa9c   :  { %11887 = vsyncpa [#allocation4], 1 }
 0xa9d   :  { %11889 = vsyncpa [#allocation4 + $0x1], 1 }
 0xa9e   :  { %11890 = vsyncpa [#allocation6], 1 }
 0xa9f   :  { %11891 = vsyncpa [#allocation9], 1 }
 0xaa0   :  { %11892 = vsyncpa [#allocation12], 1 }
 0xaa1   :  { %11893 = vsyncpa [#allocation15], 1 }
 0xaa2   :  { %11894 = vsyncpa [#allocation18], 1 }

</bundles_post_ra>
